<compile_context>
chip_gen: v6e
topology: v6e:2x2x1
jax: 0.10.0
libtpu: 0.0.40
codegen_flags: <defaults>
</compile_context>

<pallas_src>
import functools
import math

import jax
import jax.numpy as jnp
from jax.experimental import pallas as pl
from jax.experimental.pallas import tpu as pltpu

_BN_EPS = 1e-5
_LRELU_SLOPE = 0.2


# ----------------------------------------------------------------------------
# Pallas kernels
# ----------------------------------------------------------------------------

def _fused_matmul_kernel(x_ref, scale_ref, shift_ref, w_ref, o_ref, *, act, slope):
    """o = (act(x * scale + shift)) @ w  with bf16 MXU operands, f32 accum.

    scale/shift are per-K-column (per input channel) -> this fuses the
    previous layer's BatchNorm affine + LeakyReLU into the matmul prologue.
    """
    x = x_ref[...].astype(jnp.float32)
    x = x * scale_ref[...] + shift_ref[...]
    if act == "leaky":
        x = jnp.where(x >= 0.0, x, slope * x)
    y = jnp.dot(x.astype(jnp.bfloat16), w_ref[...],
                preferred_element_type=jnp.float32)
    o_ref[...] = y.astype(o_ref.dtype)


def _bn_stats_kernel(x_ref, sum_ref, sq_ref):
    """Per-column sum and sum-of-squares (f32 accumulation) over all rows."""
    @pl.when(pl.program_id(0) == 0)
    def _():
        sum_ref[...] = jnp.zeros_like(sum_ref)
        sq_ref[...] = jnp.zeros_like(sq_ref)

    x = x_ref[...].astype(jnp.float32)
    sum_ref[...] += jnp.sum(x, axis=0, keepdims=True)
    sq_ref[...] += jnp.sum(x * x, axis=0, keepdims=True)


def _affine_act_kernel(x_ref, scale_ref, shift_ref, o_ref, *, act, slope):
    y = x_ref[...].astype(jnp.float32) * scale_ref[...] + shift_ref[...]
    if act == "leaky":
        y = jnp.where(y >= 0.0, y, slope * y)
    elif act == "tanh":
        y = jnp.tanh(y)
    o_ref[...] = y.astype(o_ref.dtype)


# ----------------------------------------------------------------------------
# Pallas wrappers
# ----------------------------------------------------------------------------

def _pick(dim, pref):
    """Tile size: prefer `pref` if it evenly divides, else use the full dim."""
    return pref if (dim % pref == 0 and dim >= pref) else dim


def _lane_group(c):
    """Smallest g so that g*c is a multiple of 128 (lane-dense last dim)."""
    return 128 // math.gcd(c, 128)


def pallas_matmul_fused(x, w, scale, shift, act="none", slope=_LRELU_SLOPE,
                        out_dtype=jnp.bfloat16):
    """(M, K) @ (K, N) with fused per-K-channel affine + activation prologue."""
    M, K = x.shape
    K2, N = w.shape
    assert K == K2
    tm = _pick(M, 256)
    tn = _pick(N, 512)
    grid = (M // tm, N // tn)
    scale2 = scale.reshape(1, K).astype(jnp.float32)
    shift2 = shift.reshape(1, K).astype(jnp.float32)
    return pl.pallas_call(
        functools.partial(_fused_matmul_kernel, act=act, slope=slope),
        out_shape=jax.ShapeDtypeStruct((M, N), out_dtype),
        grid_spec=pltpu.PrefetchScalarGridSpec(
            num_scalar_prefetch=0,
            grid=grid,
            in_specs=[
                pl.BlockSpec((tm, K), lambda i, j: (i, 0)),
                pl.BlockSpec((1, K), lambda i, j: (0, 0)),
                pl.BlockSpec((1, K), lambda i, j: (0, 0)),
                pl.BlockSpec((K, tn), lambda i, j: (0, j)),
            ],
            out_specs=pl.BlockSpec((tm, tn), lambda i, j: (i, j)),
        ),
        compiler_params=pltpu.CompilerParams(
            dimension_semantics=("parallel", "parallel")),
    )(x.astype(jnp.bfloat16), scale2, shift2, w.astype(jnp.bfloat16))


def pallas_bn_stats(x2d):
    """Per-channel sum / sum-of-squares of a (M, C) channels-last activation."""
    M, C = x2d.shape
    g = _lane_group(C)
    assert M % g == 0
    xg = x2d.reshape(M // g, g * C)          # lane-dense view (free reshape)
    Mg, Ng = xg.shape
    tm = _pick(Mg, 512)
    grid = (Mg // tm,)
    s, sq = pl.pallas_call(
        _bn_stats_kernel,
        out_shape=(jax.ShapeDtypeStruct((1, Ng), jnp.float32),
                   jax.ShapeDtypeStruct((1, Ng), jnp.float32)),
        grid_spec=pltpu.PrefetchScalarGridSpec(
            num_scalar_prefetch=0,
            grid=grid,
            in_specs=[pl.BlockSpec((tm, Ng), lambda i: (i, 0))],
            out_specs=[pl.BlockSpec((1, Ng), lambda i: (0, 0)),
                       pl.BlockSpec((1, Ng), lambda i: (0, 0))],
        ),
        compiler_params=pltpu.CompilerParams(
            dimension_semantics=("arbitrary",)),
    )(xg)
    # fold the g row-groups back down to per-channel totals (tiny, XLA)
    return s.reshape(g, C).sum(axis=0), sq.reshape(g, C).sum(axis=0)


def pallas_affine_act(x2d, scale, shift, act="none", slope=_LRELU_SLOPE,
                      out_dtype=jnp.float32):
    """Elementwise y = act(x * scale + shift) on a (M, C) channels-last array."""
    M, C = x2d.shape
    g = _lane_group(C)
    assert M % g == 0
    xg = x2d.reshape(M // g, g * C)
    Mg, Ng = xg.shape
    tm = _pick(Mg, 512)
    grid = (Mg // tm,)
    scale_g = jnp.tile(scale.reshape(1, C).astype(jnp.float32), (1, g))
    shift_g = jnp.tile(shift.reshape(1, C).astype(jnp.float32), (1, g))
    out = pl.pallas_call(
        functools.partial(_affine_act_kernel, act=act, slope=slope),
        out_shape=jax.ShapeDtypeStruct((Mg, Ng), out_dtype),
        grid_spec=pltpu.PrefetchScalarGridSpec(
            num_scalar_prefetch=0,
            grid=grid,
            in_specs=[
                pl.BlockSpec((tm, Ng), lambda i: (i, 0)),
                pl.BlockSpec((1, Ng), lambda i: (0, 0)),
                pl.BlockSpec((1, Ng), lambda i: (0, 0)),
            ],
            out_specs=pl.BlockSpec((tm, Ng), lambda i: (i, 0)),
        ),
        compiler_params=pltpu.CompilerParams(
            dimension_semantics=("parallel",)),
    )(xg, scale_g, shift_g)
    return out.reshape(M, C)


# ----------------------------------------------------------------------------
# XLA glue: overlap-add (col2im) for ConvTranspose2d(k=4, s=2, p=1)
# ----------------------------------------------------------------------------

def _overlap_add_2x(y):
    """y: (B, H, W, 4, 4, C) = per-input-pixel x@W contributions indexed by
    (ky, kx).  Returns the (B, 2H, 2W, C) transposed-conv output, channels-last.

    out[b, 2i+py, 2j+px, c] = sum_{a,b2} y[b, i+py-a, j+px-b2,
                                           (1-py)+2a, (1-px)+2b2, c]
    """
    B, H, W, _, _, C = y.shape
    yp = jnp.pad(y, ((0, 0), (1, 1), (1, 1), (0, 0), (0, 0), (0, 0)))
    rows = []
    for py in range(2):
        cols = []
        for px in range(2):
            acc = None
            for a in range(2):
                for b2 in range(2):
                    ky = (1 - py) + 2 * a
                    kx = (1 - px) + 2 * b2
                    sl = yp[:, 1 + py - a:1 + py - a + H,
                            1 + px - b2:1 + px - b2 + W, ky, kx, :]
                    sl = sl.astype(jnp.float32)
                    acc = sl if acc is None else acc + sl
            cols.append(acc)                         # (B, H, W, C)
        rows.append(jnp.stack(cols, axis=3))         # (B, H, W, 2, C)
    ph = jnp.stack(rows, axis=2)                     # (B, H, 2, W, 2, C)
    return ph.reshape(B, 2 * H, 2 * W, C).astype(jnp.bfloat16)


# ----------------------------------------------------------------------------
# Generator forward
# ----------------------------------------------------------------------------

_CHANS = [(None, 512), (512, 384), (384, 192), (192, 96), (96, 64), (64, 3)]


def init_params(key, in_dim):
    chans = [(in_dim, 512)] + _CHANS[1:]
    params = {"w": [], "gamma": [], "beta": []}
    for (cin, cout) in chans:
        key, kw = jax.random.split(key)
        params["w"].append(0.05 * jax.random.normal(kw, (cin, cout, 4, 4),
                                                    dtype=jnp.float32))
    for (_, cout) in chans[1:5]:                     # BN follows convs 2..5
        key, kg, kb = jax.random.split(key, 3)
        params["gamma"].append(1.0 + 0.1 * jax.random.normal(kg, (cout,),
                                                             dtype=jnp.float32))
        params["beta"].append(0.1 * jax.random.normal(kb, (cout,),
                                                      dtype=jnp.float32))
    return params


def generator_forward(z, params):
    """z: (B, in_dim) -> image (B, 3, 128, 128), NCHW like the PyTorch module."""
    B, in_dim = z.shape

    # --- Layer 0: ConvTranspose2d(in_dim, 512, k=4, s=1, p=0) on a 1x1 input
    # is exactly a matmul:  conv0[b, ky, kx, co] = sum_ci z[b,ci] W[ci,co,ky,kx]
    w0 = params["w"][0]                              # (in_dim, 512, 4, 4)
    cout0 = w0.shape[1]
    wmat0 = w0.transpose(0, 2, 3, 1).reshape(in_dim, 16 * cout0)  # cols: (ky,kx,co)
    conv = pallas_matmul_fused(z,
                               wmat0,
                               jnp.ones((in_dim,), jnp.float32),
                               jnp.zeros((in_dim,), jnp.float32),
                               act="none")
    conv = conv.reshape(B, 4, 4, cout0)              # channels-last, pre-activation
    Hc = Wc = 4
    cin = cout0
    # pending transform applied in the NEXT matmul's prologue: LeakyReLU (no BN)
    scale = jnp.ones((cin,), jnp.float32)
    shift = jnp.zeros((cin,), jnp.float32)

    # --- Layers 1..5: ConvTranspose2d(k=4, s=2, p=1); BN+LeakyReLU on 1..4,
    #     Tanh on layer 5.
    for li in range(1, 6):
        w = params["w"][li]                          # (cin, cout, 4, 4)
        cout = w.shape[1]
        coutp = cout
        if li == 5:
            coutp = 8                                # pad Cout 3 -> 8 (N = 128)
            w = jnp.pad(w, ((0, 0), (0, coutp - cout), (0, 0), (0, 0)))
        wmat = w.transpose(0, 2, 3, 1).reshape(cin, 16 * coutp)

        h2d = conv.reshape(B * Hc * Wc, cin)
        # previous layer's BN affine + LeakyReLU fused into the prologue:
        y = pallas_matmul_fused(h2d, wmat, scale, shift, act="leaky")
        y = y.reshape(B, Hc, Wc, 4, 4, coutp)
        conv = _overlap_add_2x(y)                    # (B, 2Hc, 2Wc, coutp)
        Hc, Wc = 2 * Hc, 2 * Wc
        cin = coutp

        if li < 5:
            # training-mode BatchNorm2d statistics (biased variance)
            s, sq = pallas_bn_stats(conv.reshape(B * Hc * Wc, coutp))
            n = B * Hc * Wc
            mean = s / n
            var = jnp.maximum(sq / n - mean * mean, 0.0)   # clamp f32 cancellation
            invstd = jax.lax.rsqrt(var + _BN_EPS)
            gamma = params["gamma"][li - 1]
            beta = params["beta"][li - 1]
            scale = gamma * invstd
            shift = beta - mean * scale
            # the affine + LeakyReLU themselves are fused into the next matmul.

    # --- Final Tanh (Pallas), drop channel padding, convert to NCHW once.
    out = pallas_affine_act(conv.reshape(B * Hc * Wc, cin),
                            jnp.ones((cin,), jnp.float32),
                            jnp.zeros((cin,), jnp.float32),
                            act="tanh", out_dtype=jnp.float32)
    out = out.reshape(B, Hc, Wc, cin)[:, :, :, :3]
    return out.transpose(0, 3, 1, 2)                 # (B, 3, 128, 128)


# ----------------------------------------------------------------------------

if __name__ == "__main__":
    IN_DIM = 64
    BATCH = 2

    key = jax.random.PRNGKey(0)
    key, kz, kp = jax.random.split(key, 3)
    z = jax.random.normal(kz, (BATCH, IN_DIM), dtype=jnp.float32)
    params = init_params(kp, IN_DIM)

    fwd = jax.jit(generator_forward)
    img = fwd(z, params)
    jax.block_until_ready(img)

    assert img.shape == (BATCH, 3, 128, 128), img.shape
    assert jnp.all(jnp.isfinite(img))
    print("KERNEL_OK")
</pallas_src>

<mosaic_0001>
module attributes {stable_mosaic.version = 11 : i64} {
  func.func @_fused_matmul_kernel(%arg0: i32, %arg1: i32, %arg2: memref<2x64xbf16, #tpu.memory_space<vmem>>, %arg3: memref<1x64xf32, #tpu.memory_space<vmem>>, %arg4: memref<1x64xf32, #tpu.memory_space<vmem>>, %arg5: memref<64x512xbf16, #tpu.memory_space<vmem>>, %arg6: memref<2x512xbf16, #tpu.memory_space<vmem>>) attributes {dimension_semantics = [#tpu.dimension_semantics<parallel>, #tpu.dimension_semantics<parallel>], iteration_bounds = array<i64: 1, 16>, scalar_prefetch = 0 : i64, scratch_operands = 0 : i64, tpu.core_type = #tpu.core_type<tc>, window_params = [{transform_indices = @transform_0, window_bounds = array<i64: 2, 64>}, {pipeline_mode = #tpu.pipeline_mode<synchronous>, transform_indices = @transform_1, window_bounds = array<i64: 1, 64>}, {pipeline_mode = #tpu.pipeline_mode<synchronous>, transform_indices = @transform_2, window_bounds = array<i64: 1, 64>}, {transform_indices = @transform_3, window_bounds = array<i64: 64, 512>}, {transform_indices = @transform_4, window_bounds = array<i64: 2, 512>}]} {
    %c0 = arith.constant 0 : index
    %c0_0 = arith.constant 0 : index
    %0 = vector.load %arg2[%c0, %c0_0] : memref<2x64xbf16, #tpu.memory_space<vmem>>, vector<2x64xbf16>
    %1 = arith.extf %0 : vector<2x64xbf16> to vector<2x64xf32>
    %c0_1 = arith.constant 0 : index
    %c0_2 = arith.constant 0 : index
    %2 = vector.load %arg3[%c0_1, %c0_2] : memref<1x64xf32, #tpu.memory_space<vmem>>, vector<1x64xf32>
    %3 = vector.broadcast %2 : vector<1x64xf32> to vector<2x64xf32>
    %4 = arith.mulf %1, %3 : vector<2x64xf32>
    %c0_3 = arith.constant 0 : index
    %c0_4 = arith.constant 0 : index
    %5 = vector.load %arg4[%c0_3, %c0_4] : memref<1x64xf32, #tpu.memory_space<vmem>>, vector<1x64xf32>
    %6 = vector.broadcast %5 : vector<1x64xf32> to vector<2x64xf32>
    %7 = arith.addf %4, %6 : vector<2x64xf32>
    %8 = arith.truncf %7 : vector<2x64xf32> to vector<2x64xbf16>
    %c0_5 = arith.constant 0 : index
    %c0_6 = arith.constant 0 : index
    %9 = vector.load %arg5[%c0_5, %c0_6] : memref<64x512xbf16, #tpu.memory_space<vmem>>, vector<64x512xbf16>
    %cst = arith.constant dense<0.000000e+00> : vector<2x512xf32>
    %10 = tpu.matmul %8, %9, %cst {dimension_numbers = #tpu.dot_dimension_numbers<[1], [0], [0], [1], [0, 0, 1, 1], [], []>} : vector<2x64xbf16>, vector<64x512xbf16>, vector<2x512xf32> -> vector<2x512xf32>
    %11 = arith.truncf %10 : vector<2x512xf32> to vector<2x512xbf16>
    %c0_7 = arith.constant 0 : index
    %c0_8 = arith.constant 0 : index
    %12 = vector.load %arg6[%c0_7, %c0_8] : memref<2x512xbf16, #tpu.memory_space<vmem>>, vector<2x512xbf16>
    tpu.vector_store %arg6[%c0_7, %c0_8], %11 {strides = array<i32>} : memref<2x512xbf16, #tpu.memory_space<vmem>>, vector<2x512xbf16>,
    return
  }
  func.func @transform_0(%arg0: i32, %arg1: i32) -> (i32, i32) {
    %c0_i32 = arith.constant 0 : i32
    %c0_i32_0 = arith.constant 0 : i32
    return %arg0, %c0_i32 : i32, i32
  }
  func.func @transform_1(%arg0: i32, %arg1: i32) -> (i32, i32) {
    %c0_i32 = arith.constant 0 : i32
    %c0_i32_0 = arith.constant 0 : i32
    %c0_i32_1 = arith.constant 0 : i32
    return %c0_i32, %c0_i32_0 : i32, i32
  }
  func.func @transform_2(%arg0: i32, %arg1: i32) -> (i32, i32) {
    %c0_i32 = arith.constant 0 : i32
    %c0_i32_0 = arith.constant 0 : i32
    %c0_i32_1 = arith.constant 0 : i32
    return %c0_i32, %c0_i32_0 : i32, i32
  }
  func.func @transform_3(%arg0: i32, %arg1: i32) -> (i32, i32) {
    %c0_i32 = arith.constant 0 : i32
    %c0_i32_0 = arith.constant 0 : i32
    return %c0_i32, %arg1 : i32, i32
  }
  func.func @transform_4(%arg0: i32, %arg1: i32) -> (i32, i32) {
    %c0_i32 = arith.constant 0 : i32
    return %arg0, %arg1 : i32, i32
  }
}

module attributes {stable_mosaic.version = 11 : i64} {
  func.func @_fused_matmul_kernel(%arg0: i32, %arg1: i32, %arg2: memref<32x512xbf16, #tpu.memory_space<vmem>>, %arg3: memref<1x512xf32, #tpu.memory_space<vmem>>, %arg4: memref<1x512xf32, #tpu.memory_space<vmem>>, %arg5: memref<512x512xbf16, #tpu.memory_space<vmem>>, %arg6: memref<32x512xbf16, #tpu.memory_space<vmem>>) attributes {dimension_semantics = [#tpu.dimension_semantics<parallel>, #tpu.dimension_semantics<parallel>], iteration_bounds = array<i64: 1, 12>, scalar_prefetch = 0 : i64, scratch_operands = 0 : i64, tpu.core_type = #tpu.core_type<tc>, window_params = [{transform_indices = @transform_0, window_bounds = array<i64: 32, 512>}, {pipeline_mode = #tpu.pipeline_mode<synchronous>, transform_indices = @transform_1, window_bounds = array<i64: 1, 512>}, {pipeline_mode = #tpu.pipeline_mode<synchronous>, transform_indices = @transform_2, window_bounds = array<i64: 1, 512>}, {transform_indices = @transform_3, window_bounds = array<i64: 512, 512>}, {transform_indices = @transform_4, window_bounds = array<i64: 32, 512>}]} {
    %c0 = arith.constant 0 : index
    %c0_0 = arith.constant 0 : index
    %0 = vector.load %arg2[%c0, %c0_0] : memref<32x512xbf16, #tpu.memory_space<vmem>>, vector<32x512xbf16>
    %1 = arith.extf %0 : vector<32x512xbf16> to vector<32x512xf32>
    %c0_1 = arith.constant 0 : index
    %c0_2 = arith.constant 0 : index
    %2 = vector.load %arg3[%c0_1, %c0_2] : memref<1x512xf32, #tpu.memory_space<vmem>>, vector<1x512xf32>
    %3 = vector.broadcast %2 : vector<1x512xf32> to vector<32x512xf32>
    %4 = arith.mulf %1, %3 : vector<32x512xf32>
    %c0_3 = arith.constant 0 : index
    %c0_4 = arith.constant 0 : index
    %5 = vector.load %arg4[%c0_3, %c0_4] : memref<1x512xf32, #tpu.memory_space<vmem>>, vector<1x512xf32>
    %6 = vector.broadcast %5 : vector<1x512xf32> to vector<32x512xf32>
    %7 = arith.addf %4, %6 : vector<32x512xf32>
    %cst = arith.constant 0.000000e+00 : f32
    %8 = vector.broadcast %cst : f32 to vector<32x512xf32>
    %9 = arith.cmpf oge, %7, %8 : vector<32x512xf32>
    %cst_5 = arith.constant 2.000000e-01 : f32
    %10 = vector.broadcast %cst_5 : f32 to vector<32x512xf32>
    %11 = arith.mulf %10, %7 : vector<32x512xf32>
    %12 = arith.select %9, %7, %11 : vector<32x512xi1>, vector<32x512xf32>
    %13 = arith.truncf %12 : vector<32x512xf32> to vector<32x512xbf16>
    %c0_6 = arith.constant 0 : index
    %c0_7 = arith.constant 0 : index
    %14 = vector.load %arg5[%c0_6, %c0_7] : memref<512x512xbf16, #tpu.memory_space<vmem>>, vector<512x512xbf16>
    %cst_8 = arith.constant dense<0.000000e+00> : vector<32x512xf32>
    %15 = tpu.matmul %13, %14, %cst_8 {dimension_numbers = #tpu.dot_dimension_numbers<[1], [0], [0], [1], [0, 0, 1, 1], [], []>} : vector<32x512xbf16>, vector<512x512xbf16>, vector<32x512xf32> -> vector<32x512xf32>
    %16 = arith.truncf %15 : vector<32x512xf32> to vector<32x512xbf16>
    %c0_9 = arith.constant 0 : index
    %c0_10 = arith.constant 0 : index
    %17 = vector.load %arg6[%c0_9, %c0_10] : memref<32x512xbf16, #tpu.memory_space<vmem>>, vector<32x512xbf16>
    tpu.vector_store %arg6[%c0_9, %c0_10], %16 {strides = array<i32>} : memref<32x512xbf16, #tpu.memory_space<vmem>>, vector<32x512xbf16>,
    return
  }
  func.func @transform_0(%arg0: i32, %arg1: i32) -> (i32, i32) {
    %c0_i32 = arith.constant 0 : i32
    %c0_i32_0 = arith.constant 0 : i32
    return %arg0, %c0_i32 : i32, i32
  }
  func.func @transform_1(%arg0: i32, %arg1: i32) -> (i32, i32) {
    %c0_i32 = arith.constant 0 : i32
    %c0_i32_0 = arith.constant 0 : i32
    %c0_i32_1 = arith.constant 0 : i32
    return %c0_i32, %c0_i32_0 : i32, i32
  }
  func.func @transform_2(%arg0: i32, %arg1: i32) -> (i32, i32) {
    %c0_i32 = arith.constant 0 : i32
    %c0_i32_0 = arith.constant 0 : i32
    %c0_i32_1 = arith.constant 0 : i32
    return %c0_i32, %c0_i32_0 : i32, i32
  }
  func.func @transform_3(%arg0: i32, %arg1: i32) -> (i32, i32) {
    %c0_i32 = arith.constant 0 : i32
    %c0_i32_0 = arith.constant 0 : i32
    return %c0_i32, %arg1 : i32, i32
  }
  func.func @transform_4(%arg0: i32, %arg1: i32) -> (i32, i32) {
    %c0_i32 = arith.constant 0 : i32
    return %arg0, %arg1 : i32, i32
  }
}

module attributes {stable_mosaic.version = 11 : i64} {
  func.func @_bn_stats_kernel(%arg0: i32, %arg1: memref<128x384xbf16, #tpu.memory_space<vmem>>, %arg2: memref<1x384xf32, #tpu.memory_space<vmem>>, %arg3: memref<1x384xf32, #tpu.memory_space<vmem>>) attributes {dimension_semantics = [#tpu.dimension_semantics<arbitrary>], iteration_bounds = array<i64: 1>, scalar_prefetch = 0 : i64, scratch_operands = 0 : i64, tpu.core_type = #tpu.core_type<tc>, window_params = [{transform_indices = @transform_0, window_bounds = array<i64: 128, 384>}, {pipeline_mode = #tpu.pipeline_mode<synchronous>, transform_indices = @transform_1, window_bounds = array<i64: 1, 384>}, {pipeline_mode = #tpu.pipeline_mode<synchronous>, transform_indices = @transform_2, window_bounds = array<i64: 1, 384>}]} {
    %c0_i32 = arith.constant 0 : i32
    %0 = arith.cmpi eq, %arg0, %c0_i32 : i32
    %1 = arith.extui %0 : i1 to i32
    %c0_i32_0 = arith.constant 0 : i32
    %2 = arith.cmpi ne, %1, %c0_i32_0 : i32
    scf.if %2 {
      %cst_11 = arith.constant 0.000000e+00 : f32
      %16 = vector.broadcast %cst_11 : f32 to vector<1x384xf32>
      %c0_12 = arith.constant 0 : index
      %c0_13 = arith.constant 0 : index
      %17 = vector.load %arg2[%c0_12, %c0_13] : memref<1x384xf32, #tpu.memory_space<vmem>>, vector<1x384xf32>
      tpu.vector_store %arg2[%c0_12, %c0_13], %16 {strides = array<i32>} : memref<1x384xf32, #tpu.memory_space<vmem>>, vector<1x384xf32>,
      %cst_14 = arith.constant 0.000000e+00 : f32
      %18 = vector.broadcast %cst_14 : f32 to vector<1x384xf32>
      %c0_15 = arith.constant 0 : index
      %c0_16 = arith.constant 0 : index
      %19 = vector.load %arg3[%c0_15, %c0_16] : memref<1x384xf32, #tpu.memory_space<vmem>>, vector<1x384xf32>
      tpu.vector_store %arg3[%c0_15, %c0_16], %18 {strides = array<i32>} : memref<1x384xf32, #tpu.memory_space<vmem>>, vector<1x384xf32>,
    } else {
    }
    %c0 = arith.constant 0 : index
    %c0_1 = arith.constant 0 : index
    %3 = vector.load %arg1[%c0, %c0_1] : memref<128x384xbf16, #tpu.memory_space<vmem>>, vector<128x384xbf16>
    %4 = arith.extf %3 : vector<128x384xbf16> to vector<128x384xf32>
    %c0_2 = arith.constant 0 : index
    %c0_3 = arith.constant 0 : index
    %5 = vector.load %arg2[%c0_2, %c0_3] : memref<1x384xf32, #tpu.memory_space<vmem>>, vector<1x384xf32>
    %cst = arith.constant dense<0.000000e+00> : vector<384xf32>
    %6 = vector.multi_reduction <add>, %4, %cst [0] : vector<128x384xf32> to vector<384xf32>
    %7 = vector.shape_cast %6 : vector<384xf32> to vector<1x384xf32>
    %8 = arith.addf %5, %7 : vector<1x384xf32>
    %c0_4 = arith.constant 0 : index
    %c0_5 = arith.constant 0 : index
    %9 = vector.load %arg2[%c0_4, %c0_5] : memref<1x384xf32, #tpu.memory_space<vmem>>, vector<1x384xf32>
    tpu.vector_store %arg2[%c0_4, %c0_5], %8 {strides = array<i32>} : memref<1x384xf32, #tpu.memory_space<vmem>>, vector<1x384xf32>,
    %c0_6 = arith.constant 0 : index
    %c0_7 = arith.constant 0 : index
    %10 = vector.load %arg3[%c0_6, %c0_7] : memref<1x384xf32, #tpu.memory_space<vmem>>, vector<1x384xf32>
    %11 = arith.mulf %4, %4 : vector<128x384xf32>
    %cst_8 = arith.constant dense<0.000000e+00> : vector<384xf32>
    %12 = vector.multi_reduction <add>, %11, %cst_8 [0] : vector<128x384xf32> to vector<384xf32>
    %13 = vector.shape_cast %12 : vector<384xf32> to vector<1x384xf32>
    %14 = arith.addf %10, %13 : vector<1x384xf32>
    %c0_9 = arith.constant 0 : index
    %c0_10 = arith.constant 0 : index
    %15 = vector.load %arg3[%c0_9, %c0_10] : memref<1x384xf32, #tpu.memory_space<vmem>>, vector<1x384xf32>
    tpu.vector_store %arg3[%c0_9, %c0_10], %14 {strides = array<i32>} : memref<1x384xf32, #tpu.memory_space<vmem>>, vector<1x384xf32>,
    return
  }
  func.func @transform_0(%arg0: i32) -> (i32, i32) {
    %c0_i32 = arith.constant 0 : i32
    %c0_i32_0 = arith.constant 0 : i32
    return %arg0, %c0_i32 : i32, i32
  }
  func.func @transform_1(%arg0: i32) -> (i32, i32) {
    %c0_i32 = arith.constant 0 : i32
    %c0_i32_0 = arith.constant 0 : i32
    %c0_i32_1 = arith.constant 0 : i32
    return %c0_i32, %c0_i32_0 : i32, i32
  }
  func.func @transform_2(%arg0: i32) -> (i32, i32) {
    %c0_i32 = arith.constant 0 : i32
    %c0_i32_0 = arith.constant 0 : i32
    %c0_i32_1 = arith.constant 0 : i32
    return %c0_i32, %c0_i32_0 : i32, i32
  }
}

module attributes {stable_mosaic.version = 11 : i64} {
  func.func @_fused_matmul_kernel(%arg0: i32, %arg1: i32, %arg2: memref<128x384xbf16, #tpu.memory_space<vmem>>, %arg3: memref<1x384xf32, #tpu.memory_space<vmem>>, %arg4: memref<1x384xf32, #tpu.memory_space<vmem>>, %arg5: memref<384x512xbf16, #tpu.memory_space<vmem>>, %arg6: memref<128x512xbf16, #tpu.memory_space<vmem>>) attributes {dimension_semantics = [#tpu.dimension_semantics<parallel>, #tpu.dimension_semantics<parallel>], iteration_bounds = array<i64: 1, 6>, scalar_prefetch = 0 : i64, scratch_operands = 0 : i64, tpu.core_type = #tpu.core_type<tc>, window_params = [{transform_indices = @transform_0, window_bounds = array<i64: 128, 384>}, {pipeline_mode = #tpu.pipeline_mode<synchronous>, transform_indices = @transform_1, window_bounds = array<i64: 1, 384>}, {pipeline_mode = #tpu.pipeline_mode<synchronous>, transform_indices = @transform_2, window_bounds = array<i64: 1, 384>}, {transform_indices = @transform_3, window_bounds = array<i64: 384, 512>}, {transform_indices = @transform_4, window_bounds = array<i64: 128, 512>}]} {
    %c0 = arith.constant 0 : index
    %c0_0 = arith.constant 0 : index
    %0 = vector.load %arg2[%c0, %c0_0] : memref<128x384xbf16, #tpu.memory_space<vmem>>, vector<128x384xbf16>
    %1 = arith.extf %0 : vector<128x384xbf16> to vector<128x384xf32>
    %c0_1 = arith.constant 0 : index
    %c0_2 = arith.constant 0 : index
    %2 = vector.load %arg3[%c0_1, %c0_2] : memref<1x384xf32, #tpu.memory_space<vmem>>, vector<1x384xf32>
    %3 = vector.broadcast %2 : vector<1x384xf32> to vector<128x384xf32>
    %4 = arith.mulf %1, %3 : vector<128x384xf32>
    %c0_3 = arith.constant 0 : index
    %c0_4 = arith.constant 0 : index
    %5 = vector.load %arg4[%c0_3, %c0_4] : memref<1x384xf32, #tpu.memory_space<vmem>>, vector<1x384xf32>
    %6 = vector.broadcast %5 : vector<1x384xf32> to vector<128x384xf32>
    %7 = arith.addf %4, %6 : vector<128x384xf32>
    %cst = arith.constant 0.000000e+00 : f32
    %8 = vector.broadcast %cst : f32 to vector<128x384xf32>
    %9 = arith.cmpf oge, %7, %8 : vector<128x384xf32>
    %cst_5 = arith.constant 2.000000e-01 : f32
    %10 = vector.broadcast %cst_5 : f32 to vector<128x384xf32>
    %11 = arith.mulf %10, %7 : vector<128x384xf32>
    %12 = arith.select %9, %7, %11 : vector<128x384xi1>, vector<128x384xf32>
    %13 = arith.truncf %12 : vector<128x384xf32> to vector<128x384xbf16>
    %c0_6 = arith.constant 0 : index
    %c0_7 = arith.constant 0 : index
    %14 = vector.load %arg5[%c0_6, %c0_7] : memref<384x512xbf16, #tpu.memory_space<vmem>>, vector<384x512xbf16>
    %cst_8 = arith.constant dense<0.000000e+00> : vector<128x512xf32>
    %15 = tpu.matmul %13, %14, %cst_8 {dimension_numbers = #tpu.dot_dimension_numbers<[1], [0], [0], [1], [0, 0, 1, 1], [], []>} : vector<128x384xbf16>, vector<384x512xbf16>, vector<128x512xf32> -> vector<128x512xf32>
    %16 = arith.truncf %15 : vector<128x512xf32> to vector<128x512xbf16>
    %c0_9 = arith.constant 0 : index
    %c0_10 = arith.constant 0 : index
    %17 = vector.load %arg6[%c0_9, %c0_10] : memref<128x512xbf16, #tpu.memory_space<vmem>>, vector<128x512xbf16>
    tpu.vector_store %arg6[%c0_9, %c0_10], %16 {strides = array<i32>} : memref<128x512xbf16, #tpu.memory_space<vmem>>, vector<128x512xbf16>,
    return
  }
  func.func @transform_0(%arg0: i32, %arg1: i32) -> (i32, i32) {
    %c0_i32 = arith.constant 0 : i32
    %c0_i32_0 = arith.constant 0 : i32
    return %arg0, %c0_i32 : i32, i32
  }
  func.func @transform_1(%arg0: i32, %arg1: i32) -> (i32, i32) {
    %c0_i32 = arith.constant 0 : i32
    %c0_i32_0 = arith.constant 0 : i32
    %c0_i32_1 = arith.constant 0 : i32
    return %c0_i32, %c0_i32_0 : i32, i32
  }
  func.func @transform_2(%arg0: i32, %arg1: i32) -> (i32, i32) {
    %c0_i32 = arith.constant 0 : i32
    %c0_i32_0 = arith.constant 0 : i32
    %c0_i32_1 = arith.constant 0 : i32
    return %c0_i32, %c0_i32_0 : i32, i32
  }
  func.func @transform_3(%arg0: i32, %arg1: i32) -> (i32, i32) {
    %c0_i32 = arith.constant 0 : i32
    %c0_i32_0 = arith.constant 0 : i32
    return %c0_i32, %arg1 : i32, i32
  }
  func.func @transform_4(%arg0: i32, %arg1: i32) -> (i32, i32) {
    %c0_i32 = arith.constant 0 : i32
    return %arg0, %arg1 : i32, i32
  }
}

module attributes {stable_mosaic.version = 11 : i64} {
  func.func @_bn_stats_kernel(%arg0: i32, %arg1: memref<256x384xbf16, #tpu.memory_space<vmem>>, %arg2: memref<1x384xf32, #tpu.memory_space<vmem>>, %arg3: memref<1x384xf32, #tpu.memory_space<vmem>>) attributes {dimension_semantics = [#tpu.dimension_semantics<arbitrary>], iteration_bounds = array<i64: 1>, scalar_prefetch = 0 : i64, scratch_operands = 0 : i64, tpu.core_type = #tpu.core_type<tc>, window_params = [{transform_indices = @transform_0, window_bounds = array<i64: 256, 384>}, {pipeline_mode = #tpu.pipeline_mode<synchronous>, transform_indices = @transform_1, window_bounds = array<i64: 1, 384>}, {pipeline_mode = #tpu.pipeline_mode<synchronous>, transform_indices = @transform_2, window_bounds = array<i64: 1, 384>}]} {
    %c0_i32 = arith.constant 0 : i32
    %0 = arith.cmpi eq, %arg0, %c0_i32 : i32
    %1 = arith.extui %0 : i1 to i32
    %c0_i32_0 = arith.constant 0 : i32
    %2 = arith.cmpi ne, %1, %c0_i32_0 : i32
    scf.if %2 {
      %cst_11 = arith.constant 0.000000e+00 : f32
      %16 = vector.broadcast %cst_11 : f32 to vector<1x384xf32>
      %c0_12 = arith.constant 0 : index
      %c0_13 = arith.constant 0 : index
      %17 = vector.load %arg2[%c0_12, %c0_13] : memref<1x384xf32, #tpu.memory_space<vmem>>, vector<1x384xf32>
      tpu.vector_store %arg2[%c0_12, %c0_13], %16 {strides = array<i32>} : memref<1x384xf32, #tpu.memory_space<vmem>>, vector<1x384xf32>,
      %cst_14 = arith.constant 0.000000e+00 : f32
      %18 = vector.broadcast %cst_14 : f32 to vector<1x384xf32>
      %c0_15 = arith.constant 0 : index
      %c0_16 = arith.constant 0 : index
      %19 = vector.load %arg3[%c0_15, %c0_16] : memref<1x384xf32, #tpu.memory_space<vmem>>, vector<1x384xf32>
      tpu.vector_store %arg3[%c0_15, %c0_16], %18 {strides = array<i32>} : memref<1x384xf32, #tpu.memory_space<vmem>>, vector<1x384xf32>,
    } else {
    }
    %c0 = arith.constant 0 : index
    %c0_1 = arith.constant 0 : index
    %3 = vector.load %arg1[%c0, %c0_1] : memref<256x384xbf16, #tpu.memory_space<vmem>>, vector<256x384xbf16>
    %4 = arith.extf %3 : vector<256x384xbf16> to vector<256x384xf32>
    %c0_2 = arith.constant 0 : index
    %c0_3 = arith.constant 0 : index
    %5 = vector.load %arg2[%c0_2, %c0_3] : memref<1x384xf32, #tpu.memory_space<vmem>>, vector<1x384xf32>
    %cst = arith.constant dense<0.000000e+00> : vector<384xf32>
    %6 = vector.multi_reduction <add>, %4, %cst [0] : vector<256x384xf32> to vector<384xf32>
    %7 = vector.shape_cast %6 : vector<384xf32> to vector<1x384xf32>
    %8 = arith.addf %5, %7 : vector<1x384xf32>
    %c0_4 = arith.constant 0 : index
    %c0_5 = arith.constant 0 : index
    %9 = vector.load %arg2[%c0_4, %c0_5] : memref<1x384xf32, #tpu.memory_space<vmem>>, vector<1x384xf32>
    tpu.vector_store %arg2[%c0_4, %c0_5], %8 {strides = array<i32>} : memref<1x384xf32, #tpu.memory_space<vmem>>, vector<1x384xf32>,
    %c0_6 = arith.constant 0 : index
    %c0_7 = arith.constant 0 : index
    %10 = vector.load %arg3[%c0_6, %c0_7] : memref<1x384xf32, #tpu.memory_space<vmem>>, vector<1x384xf32>
    %11 = arith.mulf %4, %4 : vector<256x384xf32>
    %cst_8 = arith.constant dense<0.000000e+00> : vector<384xf32>
    %12 = vector.multi_reduction <add>, %11, %cst_8 [0] : vector<256x384xf32> to vector<384xf32>
    %13 = vector.shape_cast %12 : vector<384xf32> to vector<1x384xf32>
    %14 = arith.addf %10, %13 : vector<1x384xf32>
    %c0_9 = arith.constant 0 : index
    %c0_10 = arith.constant 0 : index
    %15 = vector.load %arg3[%c0_9, %c0_10] : memref<1x384xf32, #tpu.memory_space<vmem>>, vector<1x384xf32>
    tpu.vector_store %arg3[%c0_9, %c0_10], %14 {strides = array<i32>} : memref<1x384xf32, #tpu.memory_space<vmem>>, vector<1x384xf32>,
    return
  }
  func.func @transform_0(%arg0: i32) -> (i32, i32) {
    %c0_i32 = arith.constant 0 : i32
    %c0_i32_0 = arith.constant 0 : i32
    return %arg0, %c0_i32 : i32, i32
  }
  func.func @transform_1(%arg0: i32) -> (i32, i32) {
    %c0_i32 = arith.constant 0 : i32
    %c0_i32_0 = arith.constant 0 : i32
    %c0_i32_1 = arith.constant 0 : i32
    return %c0_i32, %c0_i32_0 : i32, i32
  }
  func.func @transform_2(%arg0: i32) -> (i32, i32) {
    %c0_i32 = arith.constant 0 : i32
    %c0_i32_0 = arith.constant 0 : i32
    %c0_i32_1 = arith.constant 0 : i32
    return %c0_i32, %c0_i32_0 : i32, i32
  }
}

module attributes {stable_mosaic.version = 11 : i64} {
  func.func @_fused_matmul_kernel(%arg0: i32, %arg1: i32, %arg2: memref<256x192xbf16, #tpu.memory_space<vmem>>, %arg3: memref<1x192xf32, #tpu.memory_space<vmem>>, %arg4: memref<1x192xf32, #tpu.memory_space<vmem>>, %arg5: memref<192x512xbf16, #tpu.memory_space<vmem>>, %arg6: memref<256x512xbf16, #tpu.memory_space<vmem>>) attributes {dimension_semantics = [#tpu.dimension_semantics<parallel>, #tpu.dimension_semantics<parallel>], iteration_bounds = array<i64: 2, 3>, scalar_prefetch = 0 : i64, scratch_operands = 0 : i64, tpu.core_type = #tpu.core_type<tc>, window_params = [{transform_indices = @transform_0, window_bounds = array<i64: 256, 192>}, {pipeline_mode = #tpu.pipeline_mode<synchronous>, transform_indices = @transform_1, window_bounds = array<i64: 1, 192>}, {pipeline_mode = #tpu.pipeline_mode<synchronous>, transform_indices = @transform_2, window_bounds = array<i64: 1, 192>}, {transform_indices = @transform_3, window_bounds = array<i64: 192, 512>}, {transform_indices = @transform_4, window_bounds = array<i64: 256, 512>}]} {
    %c0 = arith.constant 0 : index
    %c0_0 = arith.constant 0 : index
    %0 = vector.load %arg2[%c0, %c0_0] : memref<256x192xbf16, #tpu.memory_space<vmem>>, vector<256x192xbf16>
    %1 = arith.extf %0 : vector<256x192xbf16> to vector<256x192xf32>
    %c0_1 = arith.constant 0 : index
    %c0_2 = arith.constant 0 : index
    %2 = vector.load %arg3[%c0_1, %c0_2] : memref<1x192xf32, #tpu.memory_space<vmem>>, vector<1x192xf32>
    %3 = vector.broadcast %2 : vector<1x192xf32> to vector<256x192xf32>
    %4 = arith.mulf %1, %3 : vector<256x192xf32>
    %c0_3 = arith.constant 0 : index
    %c0_4 = arith.constant 0 : index
    %5 = vector.load %arg4[%c0_3, %c0_4] : memref<1x192xf32, #tpu.memory_space<vmem>>, vector<1x192xf32>
    %6 = vector.broadcast %5 : vector<1x192xf32> to vector<256x192xf32>
    %7 = arith.addf %4, %6 : vector<256x192xf32>
    %cst = arith.constant 0.000000e+00 : f32
    %8 = vector.broadcast %cst : f32 to vector<256x192xf32>
    %9 = arith.cmpf oge, %7, %8 : vector<256x192xf32>
    %cst_5 = arith.constant 2.000000e-01 : f32
    %10 = vector.broadcast %cst_5 : f32 to vector<256x192xf32>
    %11 = arith.mulf %10, %7 : vector<256x192xf32>
    %12 = arith.select %9, %7, %11 : vector<256x192xi1>, vector<256x192xf32>
    %13 = arith.truncf %12 : vector<256x192xf32> to vector<256x192xbf16>
    %c0_6 = arith.constant 0 : index
    %c0_7 = arith.constant 0 : index
    %14 = vector.load %arg5[%c0_6, %c0_7] : memref<192x512xbf16, #tpu.memory_space<vmem>>, vector<192x512xbf16>
    %cst_8 = arith.constant dense<0.000000e+00> : vector<256x512xf32>
    %15 = tpu.matmul %13, %14, %cst_8 {dimension_numbers = #tpu.dot_dimension_numbers<[1], [0], [0], [1], [0, 0, 1, 1], [], []>} : vector<256x192xbf16>, vector<192x512xbf16>, vector<256x512xf32> -> vector<256x512xf32>
    %16 = arith.truncf %15 : vector<256x512xf32> to vector<256x512xbf16>
    %c0_9 = arith.constant 0 : index
    %c0_10 = arith.constant 0 : index
    %17 = vector.load %arg6[%c0_9, %c0_10] : memref<256x512xbf16, #tpu.memory_space<vmem>>, vector<256x512xbf16>
    tpu.vector_store %arg6[%c0_9, %c0_10], %16 {strides = array<i32>} : memref<256x512xbf16, #tpu.memory_space<vmem>>, vector<256x512xbf16>,
    return
  }
  func.func @transform_0(%arg0: i32, %arg1: i32) -> (i32, i32) {
    %c0_i32 = arith.constant 0 : i32
    %c0_i32_0 = arith.constant 0 : i32
    return %arg0, %c0_i32 : i32, i32
  }
  func.func @transform_1(%arg0: i32, %arg1: i32) -> (i32, i32) {
    %c0_i32 = arith.constant 0 : i32
    %c0_i32_0 = arith.constant 0 : i32
    %c0_i32_1 = arith.constant 0 : i32
    return %c0_i32, %c0_i32_0 : i32, i32
  }
  func.func @transform_2(%arg0: i32, %arg1: i32) -> (i32, i32) {
    %c0_i32 = arith.constant 0 : i32
    %c0_i32_0 = arith.constant 0 : i32
    %c0_i32_1 = arith.constant 0 : i32
    return %c0_i32, %c0_i32_0 : i32, i32
  }
  func.func @transform_3(%arg0: i32, %arg1: i32) -> (i32, i32) {
    %c0_i32 = arith.constant 0 : i32
    %c0_i32_0 = arith.constant 0 : i32
    return %c0_i32, %arg1 : i32, i32
  }
  func.func @transform_4(%arg0: i32, %arg1: i32) -> (i32, i32) {
    %c0_i32 = arith.constant 0 : i32
    return %arg0, %arg1 : i32, i32
  }
}

module attributes {stable_mosaic.version = 11 : i64} {
  func.func @_bn_stats_kernel(%arg0: i32, %arg1: memref<512x384xbf16, #tpu.memory_space<vmem>>, %arg2: memref<1x384xf32, #tpu.memory_space<vmem>>, %arg3: memref<1x384xf32, #tpu.memory_space<vmem>>) attributes {dimension_semantics = [#tpu.dimension_semantics<arbitrary>], iteration_bounds = array<i64: 1>, scalar_prefetch = 0 : i64, scratch_operands = 0 : i64, tpu.core_type = #tpu.core_type<tc>, window_params = [{transform_indices = @transform_0, window_bounds = array<i64: 512, 384>}, {pipeline_mode = #tpu.pipeline_mode<synchronous>, transform_indices = @transform_1, window_bounds = array<i64: 1, 384>}, {pipeline_mode = #tpu.pipeline_mode<synchronous>, transform_indices = @transform_2, window_bounds = array<i64: 1, 384>}]} {
    %c0_i32 = arith.constant 0 : i32
    %0 = arith.cmpi eq, %arg0, %c0_i32 : i32
    %1 = arith.extui %0 : i1 to i32
    %c0_i32_0 = arith.constant 0 : i32
    %2 = arith.cmpi ne, %1, %c0_i32_0 : i32
    scf.if %2 {
      %cst_11 = arith.constant 0.000000e+00 : f32
      %16 = vector.broadcast %cst_11 : f32 to vector<1x384xf32>
      %c0_12 = arith.constant 0 : index
      %c0_13 = arith.constant 0 : index
      %17 = vector.load %arg2[%c0_12, %c0_13] : memref<1x384xf32, #tpu.memory_space<vmem>>, vector<1x384xf32>
      tpu.vector_store %arg2[%c0_12, %c0_13], %16 {strides = array<i32>} : memref<1x384xf32, #tpu.memory_space<vmem>>, vector<1x384xf32>,
      %cst_14 = arith.constant 0.000000e+00 : f32
      %18 = vector.broadcast %cst_14 : f32 to vector<1x384xf32>
      %c0_15 = arith.constant 0 : index
      %c0_16 = arith.constant 0 : index
      %19 = vector.load %arg3[%c0_15, %c0_16] : memref<1x384xf32, #tpu.memory_space<vmem>>, vector<1x384xf32>
      tpu.vector_store %arg3[%c0_15, %c0_16], %18 {strides = array<i32>} : memref<1x384xf32, #tpu.memory_space<vmem>>, vector<1x384xf32>,
    } else {
    }
    %c0 = arith.constant 0 : index
    %c0_1 = arith.constant 0 : index
    %3 = vector.load %arg1[%c0, %c0_1] : memref<512x384xbf16, #tpu.memory_space<vmem>>, vector<512x384xbf16>
    %4 = arith.extf %3 : vector<512x384xbf16> to vector<512x384xf32>
    %c0_2 = arith.constant 0 : index
    %c0_3 = arith.constant 0 : index
    %5 = vector.load %arg2[%c0_2, %c0_3] : memref<1x384xf32, #tpu.memory_space<vmem>>, vector<1x384xf32>
    %cst = arith.constant dense<0.000000e+00> : vector<384xf32>
    %6 = vector.multi_reduction <add>, %4, %cst [0] : vector<512x384xf32> to vector<384xf32>
    %7 = vector.shape_cast %6 : vector<384xf32> to vector<1x384xf32>
    %8 = arith.addf %5, %7 : vector<1x384xf32>
    %c0_4 = arith.constant 0 : index
    %c0_5 = arith.constant 0 : index
    %9 = vector.load %arg2[%c0_4, %c0_5] : memref<1x384xf32, #tpu.memory_space<vmem>>, vector<1x384xf32>
    tpu.vector_store %arg2[%c0_4, %c0_5], %8 {strides = array<i32>} : memref<1x384xf32, #tpu.memory_space<vmem>>, vector<1x384xf32>,
    %c0_6 = arith.constant 0 : index
    %c0_7 = arith.constant 0 : index
    %10 = vector.load %arg3[%c0_6, %c0_7] : memref<1x384xf32, #tpu.memory_space<vmem>>, vector<1x384xf32>
    %11 = arith.mulf %4, %4 : vector<512x384xf32>
    %cst_8 = arith.constant dense<0.000000e+00> : vector<384xf32>
    %12 = vector.multi_reduction <add>, %11, %cst_8 [0] : vector<512x384xf32> to vector<384xf32>
    %13 = vector.shape_cast %12 : vector<384xf32> to vector<1x384xf32>
    %14 = arith.addf %10, %13 : vector<1x384xf32>
    %c0_9 = arith.constant 0 : index
    %c0_10 = arith.constant 0 : index
    %15 = vector.load %arg3[%c0_9, %c0_10] : memref<1x384xf32, #tpu.memory_space<vmem>>, vector<1x384xf32>
    tpu.vector_store %arg3[%c0_9, %c0_10], %14 {strides = array<i32>} : memref<1x384xf32, #tpu.memory_space<vmem>>, vector<1x384xf32>,
    return
  }
  func.func @transform_0(%arg0: i32) -> (i32, i32) {
    %c0_i32 = arith.constant 0 : i32
    %c0_i32_0 = arith.constant 0 : i32
    return %arg0, %c0_i32 : i32, i32
  }
  func.func @transform_1(%arg0: i32) -> (i32, i32) {
    %c0_i32 = arith.constant 0 : i32
    %c0_i32_0 = arith.constant 0 : i32
    %c0_i32_1 = arith.constant 0 : i32
    return %c0_i32, %c0_i32_0 : i32, i32
  }
  func.func @transform_2(%arg0: i32) -> (i32, i32) {
    %c0_i32 = arith.constant 0 : i32
    %c0_i32_0 = arith.constant 0 : i32
    %c0_i32_1 = arith.constant 0 : i32
    return %c0_i32, %c0_i32_0 : i32, i32
  }
}

module attributes {stable_mosaic.version = 11 : i64} {
  func.func @_fused_matmul_kernel(%arg0: i32, %arg1: i32, %arg2: memref<256x96xbf16, #tpu.memory_space<vmem>>, %arg3: memref<1x96xf32, #tpu.memory_space<vmem>>, %arg4: memref<1x96xf32, #tpu.memory_space<vmem>>, %arg5: memref<96x512xbf16, #tpu.memory_space<vmem>>, %arg6: memref<256x512xbf16, #tpu.memory_space<vmem>>) attributes {dimension_semantics = [#tpu.dimension_semantics<parallel>, #tpu.dimension_semantics<parallel>], iteration_bounds = array<i64: 8, 2>, scalar_prefetch = 0 : i64, scratch_operands = 0 : i64, tpu.core_type = #tpu.core_type<tc>, window_params = [{transform_indices = @transform_0, window_bounds = array<i64: 256, 96>}, {pipeline_mode = #tpu.pipeline_mode<synchronous>, transform_indices = @transform_1, window_bounds = array<i64: 1, 96>}, {pipeline_mode = #tpu.pipeline_mode<synchronous>, transform_indices = @transform_2, window_bounds = array<i64: 1, 96>}, {transform_indices = @transform_3, window_bounds = array<i64: 96, 512>}, {transform_indices = @transform_4, window_bounds = array<i64: 256, 512>}]} {
    %c0 = arith.constant 0 : index
    %c0_0 = arith.constant 0 : index
    %0 = vector.load %arg2[%c0, %c0_0] : memref<256x96xbf16, #tpu.memory_space<vmem>>, vector<256x96xbf16>
    %1 = arith.extf %0 : vector<256x96xbf16> to vector<256x96xf32>
    %c0_1 = arith.constant 0 : index
    %c0_2 = arith.constant 0 : index
    %2 = vector.load %arg3[%c0_1, %c0_2] : memref<1x96xf32, #tpu.memory_space<vmem>>, vector<1x96xf32>
    %3 = vector.broadcast %2 : vector<1x96xf32> to vector<256x96xf32>
    %4 = arith.mulf %1, %3 : vector<256x96xf32>
    %c0_3 = arith.constant 0 : index
    %c0_4 = arith.constant 0 : index
    %5 = vector.load %arg4[%c0_3, %c0_4] : memref<1x96xf32, #tpu.memory_space<vmem>>, vector<1x96xf32>
    %6 = vector.broadcast %5 : vector<1x96xf32> to vector<256x96xf32>
    %7 = arith.addf %4, %6 : vector<256x96xf32>
    %cst = arith.constant 0.000000e+00 : f32
    %8 = vector.broadcast %cst : f32 to vector<256x96xf32>
    %9 = arith.cmpf oge, %7, %8 : vector<256x96xf32>
    %cst_5 = arith.constant 2.000000e-01 : f32
    %10 = vector.broadcast %cst_5 : f32 to vector<256x96xf32>
    %11 = arith.mulf %10, %7 : vector<256x96xf32>
    %12 = arith.select %9, %7, %11 : vector<256x96xi1>, vector<256x96xf32>
    %13 = arith.truncf %12 : vector<256x96xf32> to vector<256x96xbf16>
    %c0_6 = arith.constant 0 : index
    %c0_7 = arith.constant 0 : index
    %14 = vector.load %arg5[%c0_6, %c0_7] : memref<96x512xbf16, #tpu.memory_space<vmem>>, vector<96x512xbf16>
    %cst_8 = arith.constant dense<0.000000e+00> : vector<256x512xf32>
    %15 = tpu.matmul %13, %14, %cst_8 {dimension_numbers = #tpu.dot_dimension_numbers<[1], [0], [0], [1], [0, 0, 1, 1], [], []>} : vector<256x96xbf16>, vector<96x512xbf16>, vector<256x512xf32> -> vector<256x512xf32>
    %16 = arith.truncf %15 : vector<256x512xf32> to vector<256x512xbf16>
    %c0_9 = arith.constant 0 : index
    %c0_10 = arith.constant 0 : index
    %17 = vector.load %arg6[%c0_9, %c0_10] : memref<256x512xbf16, #tpu.memory_space<vmem>>, vector<256x512xbf16>
    tpu.vector_store %arg6[%c0_9, %c0_10], %16 {strides = array<i32>} : memref<256x512xbf16, #tpu.memory_space<vmem>>, vector<256x512xbf16>,
    return
  }
  func.func @transform_0(%arg0: i32, %arg1: i32) -> (i32, i32) {
    %c0_i32 = arith.constant 0 : i32
    %c0_i32_0 = arith.constant 0 : i32
    return %arg0, %c0_i32 : i32, i32
  }
  func.func @transform_1(%arg0: i32, %arg1: i32) -> (i32, i32) {
    %c0_i32 = arith.constant 0 : i32
    %c0_i32_0 = arith.constant 0 : i32
    %c0_i32_1 = arith.constant 0 : i32
    return %c0_i32, %c0_i32_0 : i32, i32
  }
  func.func @transform_2(%arg0: i32, %arg1: i32) -> (i32, i32) {
    %c0_i32 = arith.constant 0 : i32
    %c0_i32_0 = arith.constant 0 : i32
    %c0_i32_1 = arith.constant 0 : i32
    return %c0_i32, %c0_i32_0 : i32, i32
  }
  func.func @transform_3(%arg0: i32, %arg1: i32) -> (i32, i32) {
    %c0_i32 = arith.constant 0 : i32
    %c0_i32_0 = arith.constant 0 : i32
    return %c0_i32, %arg1 : i32, i32
  }
  func.func @transform_4(%arg0: i32, %arg1: i32) -> (i32, i32) {
    %c0_i32 = arith.constant 0 : i32
    return %arg0, %arg1 : i32, i32
  }
}

module attributes {stable_mosaic.version = 11 : i64} {
  func.func @_bn_stats_kernel(%arg0: i32, %arg1: memref<512x128xbf16, #tpu.memory_space<vmem>>, %arg2: memref<1x128xf32, #tpu.memory_space<vmem>>, %arg3: memref<1x128xf32, #tpu.memory_space<vmem>>) attributes {dimension_semantics = [#tpu.dimension_semantics<arbitrary>], iteration_bounds = array<i64: 8>, scalar_prefetch = 0 : i64, scratch_operands = 0 : i64, tpu.core_type = #tpu.core_type<tc>, window_params = [{transform_indices = @transform_0, window_bounds = array<i64: 512, 128>}, {pipeline_mode = #tpu.pipeline_mode<synchronous>, transform_indices = @transform_1, window_bounds = array<i64: 1, 128>}, {pipeline_mode = #tpu.pipeline_mode<synchronous>, transform_indices = @transform_2, window_bounds = array<i64: 1, 128>}]} {
    %c0_i32 = arith.constant 0 : i32
    %0 = arith.cmpi eq, %arg0, %c0_i32 : i32
    %1 = arith.extui %0 : i1 to i32
    %c0_i32_0 = arith.constant 0 : i32
    %2 = arith.cmpi ne, %1, %c0_i32_0 : i32
    scf.if %2 {
      %cst_11 = arith.constant 0.000000e+00 : f32
      %16 = vector.broadcast %cst_11 : f32 to vector<1x128xf32>
      %c0_12 = arith.constant 0 : index
      %c0_13 = arith.constant 0 : index
      %17 = vector.load %arg2[%c0_12, %c0_13] : memref<1x128xf32, #tpu.memory_space<vmem>>, vector<1x128xf32>
      tpu.vector_store %arg2[%c0_12, %c0_13], %16 {strides = array<i32>} : memref<1x128xf32, #tpu.memory_space<vmem>>, vector<1x128xf32>,
      %cst_14 = arith.constant 0.000000e+00 : f32
      %18 = vector.broadcast %cst_14 : f32 to vector<1x128xf32>
      %c0_15 = arith.constant 0 : index
      %c0_16 = arith.constant 0 : index
      %19 = vector.load %arg3[%c0_15, %c0_16] : memref<1x128xf32, #tpu.memory_space<vmem>>, vector<1x128xf32>
      tpu.vector_store %arg3[%c0_15, %c0_16], %18 {strides = array<i32>} : memref<1x128xf32, #tpu.memory_space<vmem>>, vector<1x128xf32>,
    } else {
    }
    %c0 = arith.constant 0 : index
    %c0_1 = arith.constant 0 : index
    %3 = vector.load %arg1[%c0, %c0_1] : memref<512x128xbf16, #tpu.memory_space<vmem>>, vector<512x128xbf16>
    %4 = arith.extf %3 : vector<512x128xbf16> to vector<512x128xf32>
    %c0_2 = arith.constant 0 : index
    %c0_3 = arith.constant 0 : index
    %5 = vector.load %arg2[%c0_2, %c0_3] : memref<1x128xf32, #tpu.memory_space<vmem>>, vector<1x128xf32>
    %cst = arith.constant dense<0.000000e+00> : vector<128xf32>
    %6 = vector.multi_reduction <add>, %4, %cst [0] : vector<512x128xf32> to vector<128xf32>
    %7 = vector.shape_cast %6 : vector<128xf32> to vector<1x128xf32>
    %8 = arith.addf %5, %7 : vector<1x128xf32>
    %c0_4 = arith.constant 0 : index
    %c0_5 = arith.constant 0 : index
    %9 = vector.load %arg2[%c0_4, %c0_5] : memref<1x128xf32, #tpu.memory_space<vmem>>, vector<1x128xf32>
    tpu.vector_store %arg2[%c0_4, %c0_5], %8 {strides = array<i32>} : memref<1x128xf32, #tpu.memory_space<vmem>>, vector<1x128xf32>,
    %c0_6 = arith.constant 0 : index
    %c0_7 = arith.constant 0 : index
    %10 = vector.load %arg3[%c0_6, %c0_7] : memref<1x128xf32, #tpu.memory_space<vmem>>, vector<1x128xf32>
    %11 = arith.mulf %4, %4 : vector<512x128xf32>
    %cst_8 = arith.constant dense<0.000000e+00> : vector<128xf32>
    %12 = vector.multi_reduction <add>, %11, %cst_8 [0] : vector<512x128xf32> to vector<128xf32>
    %13 = vector.shape_cast %12 : vector<128xf32> to vector<1x128xf32>
    %14 = arith.addf %10, %13 : vector<1x128xf32>
    %c0_9 = arith.constant 0 : index
    %c0_10 = arith.constant 0 : index
    %15 = vector.load %arg3[%c0_9, %c0_10] : memref<1x128xf32, #tpu.memory_space<vmem>>, vector<1x128xf32>
    tpu.vector_store %arg3[%c0_9, %c0_10], %14 {strides = array<i32>} : memref<1x128xf32, #tpu.memory_space<vmem>>, vector<1x128xf32>,
    return
  }
  func.func @transform_0(%arg0: i32) -> (i32, i32) {
    %c0_i32 = arith.constant 0 : i32
    %c0_i32_0 = arith.constant 0 : i32
    return %arg0, %c0_i32 : i32, i32
  }
  func.func @transform_1(%arg0: i32) -> (i32, i32) {
    %c0_i32 = arith.constant 0 : i32
    %c0_i32_0 = arith.constant 0 : i32
    %c0_i32_1 = arith.constant 0 : i32
    return %c0_i32, %c0_i32_0 : i32, i32
  }
  func.func @transform_2(%arg0: i32) -> (i32, i32) {
    %c0_i32 = arith.constant 0 : i32
    %c0_i32_0 = arith.constant 0 : i32
    %c0_i32_1 = arith.constant 0 : i32
    return %c0_i32, %c0_i32_0 : i32, i32
  }
}

module attributes {stable_mosaic.version = 11 : i64} {
  func.func @_fused_matmul_kernel(%arg0: i32, %arg1: i32, %arg2: memref<256x64xbf16, #tpu.memory_space<vmem>>, %arg3: memref<1x64xf32, #tpu.memory_space<vmem>>, %arg4: memref<1x64xf32, #tpu.memory_space<vmem>>, %arg5: memref<64x128xbf16, #tpu.memory_space<vmem>>, %arg6: memref<256x128xbf16, #tpu.memory_space<vmem>>) attributes {dimension_semantics = [#tpu.dimension_semantics<parallel>, #tpu.dimension_semantics<parallel>], iteration_bounds = array<i64: 32, 1>, scalar_prefetch = 0 : i64, scratch_operands = 0 : i64, tpu.core_type = #tpu.core_type<tc>, window_params = [{transform_indices = @transform_0, window_bounds = array<i64: 256, 64>}, {pipeline_mode = #tpu.pipeline_mode<synchronous>, transform_indices = @transform_1, window_bounds = array<i64: 1, 64>}, {pipeline_mode = #tpu.pipeline_mode<synchronous>, transform_indices = @transform_2, window_bounds = array<i64: 1, 64>}, {transform_indices = @transform_3, window_bounds = array<i64: 64, 128>}, {transform_indices = @transform_4, window_bounds = array<i64: 256, 128>}]} {
    %c0 = arith.constant 0 : index
    %c0_0 = arith.constant 0 : index
    %0 = vector.load %arg2[%c0, %c0_0] : memref<256x64xbf16, #tpu.memory_space<vmem>>, vector<256x64xbf16>
    %1 = arith.extf %0 : vector<256x64xbf16> to vector<256x64xf32>
    %c0_1 = arith.constant 0 : index
    %c0_2 = arith.constant 0 : index
    %2 = vector.load %arg3[%c0_1, %c0_2] : memref<1x64xf32, #tpu.memory_space<vmem>>, vector<1x64xf32>
    %3 = vector.broadcast %2 : vector<1x64xf32> to vector<256x64xf32>
    %4 = arith.mulf %1, %3 : vector<256x64xf32>
    %c0_3 = arith.constant 0 : index
    %c0_4 = arith.constant 0 : index
    %5 = vector.load %arg4[%c0_3, %c0_4] : memref<1x64xf32, #tpu.memory_space<vmem>>, vector<1x64xf32>
    %6 = vector.broadcast %5 : vector<1x64xf32> to vector<256x64xf32>
    %7 = arith.addf %4, %6 : vector<256x64xf32>
    %cst = arith.constant 0.000000e+00 : f32
    %8 = vector.broadcast %cst : f32 to vector<256x64xf32>
    %9 = arith.cmpf oge, %7, %8 : vector<256x64xf32>
    %cst_5 = arith.constant 2.000000e-01 : f32
    %10 = vector.broadcast %cst_5 : f32 to vector<256x64xf32>
    %11 = arith.mulf %10, %7 : vector<256x64xf32>
    %12 = arith.select %9, %7, %11 : vector<256x64xi1>, vector<256x64xf32>
    %13 = arith.truncf %12 : vector<256x64xf32> to vector<256x64xbf16>
    %c0_6 = arith.constant 0 : index
    %c0_7 = arith.constant 0 : index
    %14 = vector.load %arg5[%c0_6, %c0_7] : memref<64x128xbf16, #tpu.memory_space<vmem>>, vector<64x128xbf16>
    %cst_8 = arith.constant dense<0.000000e+00> : vector<256x128xf32>
    %15 = tpu.matmul %13, %14, %cst_8 {dimension_numbers = #tpu.dot_dimension_numbers<[1], [0], [0], [1], [0, 0, 1, 1], [], []>} : vector<256x64xbf16>, vector<64x128xbf16>, vector<256x128xf32> -> vector<256x128xf32>
    %16 = arith.truncf %15 : vector<256x128xf32> to vector<256x128xbf16>
    %c0_9 = arith.constant 0 : index
    %c0_10 = arith.constant 0 : index
    %17 = vector.load %arg6[%c0_9, %c0_10] : memref<256x128xbf16, #tpu.memory_space<vmem>>, vector<256x128xbf16>
    tpu.vector_store %arg6[%c0_9, %c0_10], %16 {strides = array<i32>} : memref<256x128xbf16, #tpu.memory_space<vmem>>, vector<256x128xbf16>,
    return
  }
  func.func @transform_0(%arg0: i32, %arg1: i32) -> (i32, i32) {
    %c0_i32 = arith.constant 0 : i32
    %c0_i32_0 = arith.constant 0 : i32
    return %arg0, %c0_i32 : i32, i32
  }
  func.func @transform_1(%arg0: i32, %arg1: i32) -> (i32, i32) {
    %c0_i32 = arith.constant 0 : i32
    %c0_i32_0 = arith.constant 0 : i32
    %c0_i32_1 = arith.constant 0 : i32
    return %c0_i32, %c0_i32_0 : i32, i32
  }
  func.func @transform_2(%arg0: i32, %arg1: i32) -> (i32, i32) {
    %c0_i32 = arith.constant 0 : i32
    %c0_i32_0 = arith.constant 0 : i32
    %c0_i32_1 = arith.constant 0 : i32
    return %c0_i32, %c0_i32_0 : i32, i32
  }
  func.func @transform_3(%arg0: i32, %arg1: i32) -> (i32, i32) {
    %c0_i32 = arith.constant 0 : i32
    %c0_i32_0 = arith.constant 0 : i32
    return %c0_i32, %arg1 : i32, i32
  }
  func.func @transform_4(%arg0: i32, %arg1: i32) -> (i32, i32) {
    %c0_i32 = arith.constant 0 : i32
    return %arg0, %arg1 : i32, i32
  }
}

module attributes {stable_mosaic.version = 11 : i64} {
  func.func @_affine_act_kernel(%arg0: i32, %arg1: memref<512x128xbf16, #tpu.memory_space<vmem>>, %arg2: memref<1x128xf32, #tpu.memory_space<vmem>>, %arg3: memref<1x128xf32, #tpu.memory_space<vmem>>, %arg4: memref<512x128xf32, #tpu.memory_space<vmem>>) attributes {dimension_semantics = [#tpu.dimension_semantics<parallel>], iteration_bounds = array<i64: 4>, scalar_prefetch = 0 : i64, scratch_operands = 0 : i64, tpu.core_type = #tpu.core_type<tc>, window_params = [{transform_indices = @transform_0, window_bounds = array<i64: 512, 128>}, {pipeline_mode = #tpu.pipeline_mode<synchronous>, transform_indices = @transform_1, window_bounds = array<i64: 1, 128>}, {pipeline_mode = #tpu.pipeline_mode<synchronous>, transform_indices = @transform_2, window_bounds = array<i64: 1, 128>}, {transform_indices = @transform_3, window_bounds = array<i64: 512, 128>}]} {
    %c0 = arith.constant 0 : index
    %c0_0 = arith.constant 0 : index
    %0 = vector.load %arg1[%c0, %c0_0] : memref<512x128xbf16, #tpu.memory_space<vmem>>, vector<512x128xbf16>
    %1 = arith.extf %0 : vector<512x128xbf16> to vector<512x128xf32>
    %c0_1 = arith.constant 0 : index
    %c0_2 = arith.constant 0 : index
    %2 = vector.load %arg2[%c0_1, %c0_2] : memref<1x128xf32, #tpu.memory_space<vmem>>, vector<1x128xf32>
    %3 = vector.broadcast %2 : vector<1x128xf32> to vector<512x128xf32>
    %4 = arith.mulf %1, %3 : vector<512x128xf32>
    %c0_3 = arith.constant 0 : index
    %c0_4 = arith.constant 0 : index
    %5 = vector.load %arg3[%c0_3, %c0_4] : memref<1x128xf32, #tpu.memory_space<vmem>>, vector<1x128xf32>
    %6 = vector.broadcast %5 : vector<1x128xf32> to vector<512x128xf32>
    %7 = arith.addf %4, %6 : vector<512x128xf32>
    %8 = math.tanh %7 : vector<512x128xf32>
    %c0_5 = arith.constant 0 : index
    %c0_6 = arith.constant 0 : index
    %9 = vector.load %arg4[%c0_5, %c0_6] : memref<512x128xf32, #tpu.memory_space<vmem>>, vector<512x128xf32>
    tpu.vector_store %arg4[%c0_5, %c0_6], %8 {strides = array<i32>} : memref<512x128xf32, #tpu.memory_space<vmem>>, vector<512x128xf32>,
    return
  }
  func.func @transform_0(%arg0: i32) -> (i32, i32) {
    %c0_i32 = arith.constant 0 : i32
    %c0_i32_0 = arith.constant 0 : i32
    return %arg0, %c0_i32 : i32, i32
  }
  func.func @transform_1(%arg0: i32) -> (i32, i32) {
    %c0_i32 = arith.constant 0 : i32
    %c0_i32_0 = arith.constant 0 : i32
    %c0_i32_1 = arith.constant 0 : i32
    return %c0_i32, %c0_i32_0 : i32, i32
  }
  func.func @transform_2(%arg0: i32) -> (i32, i32) {
    %c0_i32 = arith.constant 0 : i32
    %c0_i32_0 = arith.constant 0 : i32
    %c0_i32_1 = arith.constant 0 : i32
    return %c0_i32, %c0_i32_0 : i32, i32
  }
  func.func @transform_3(%arg0: i32) -> (i32, i32) {
    %c0_i32 = arith.constant 0 : i32
    %c0_i32_0 = arith.constant 0 : i32
    return %arg0, %c0_i32 : i32, i32
  }
}

</mosaic_0001>

<bundles_post_ra>
// kernel: generator_forward.11
= control target key start
LH: loop header
LB: loop body
LE: loop exit
PB: predicated region body
PF: predicated region fallthrough
CT: control target
= control target key end

     0   :  { %s783_s15 = smov 0   ;;  %s785_s16 = smov 0   ;;  %s893_s0 = inlined_call_operand.vmem [shape: bf16[2,64], index: 0, kind: input, shape index: {}]   ;;  %s894_s1 = inlined_call_operand.vmem [shape: f32[1,64], index: 1, kind: input, shape index: {}]   ;;  %s895_s2 = inlined_call_operand.vmem [shape: f32[1,64], index: 2, kind: input, shape index: {}]   ;;  %s896_s3 = inlined_call_operand.vmem [shape: bf16[64,8192], index: 3, kind: input, shape index: {}]   ;;  %s897_s4 = inlined_call_operand.vmem [shape: bf16[2,8192], index: 4, kind: output, shape index: {}]  }
   0x1   :  { %s787_s17 = smov 0   ;;  %s789_s18 = smov 0  }
   0x2   :  { %s791_s19 = smov 0  }
   0x3 LB: > { %s23_s20 = sadd.s32 1, %s750_s18  ;;  %p108_p1 = scmp.ne.s32.totalorder %s742_s16, %s738_s15  ;;  %s754_s19 = sphi %s791_s19, %s14_s19   ;;  %s750_s18 = sphi %s789_s18, %s901_s18   ;;  %s746_s17 = sphi %s787_s17, %s900_s17   ;;  %s742_s16 = sphi %s785_s16, %s899_s16   ;;  %s738_s15 = sphi %s783_s15, %s898_s15  }
   0x4   : > { %p24_p0 = scmp.ge.s32.totalorder %s23_s20, 16  ;;  %p109_p2 = scmp.eq.s32.totalorder %s754_s19, 0 }
   0x5   : > { %s101_s22 = sadd.s32 1, %s742_s16  ;;  %p617_p5 = scmp.ge.s32.totalorder %s754_s19, 16 }
   0x6   : > { %s903_s20 = smov (%p24_p0, %s23_s20), 0  ;;  %p110_p3 = por %p109_p2, %p108_p1 }
   0x7   : > { %s98_s21 = ssub.s32 %s750_s18, %s903_s20  ;;  %174 = sbr.rel (%p617_p5) target bundleno = 24 (0x18), region = 28 }
   0x8   : > { %p99_p4 = scmp.eq.s32.totalorder %s98_s21, 0 }
   0xa   : > { %s818_s23 = scalar_select %p99_p4, %s742_s16, %s101_s22  }
   0xc   : > { %177 = sbr.rel (!%p110_p3) target bundleno = 24 (0x18), region = 32  ;;  %s179_s24 = sand.u32 (%p110_p3), 1, %s742_s16  }
   0xd   : > { %s649_s25 = sshll.u32 (%p110_p3), %s750_s18, 4  ;;  %s618_s26 = sshll.u32 (%p110_p3), %s179_s24, 7 }
   0xe   : > { %s826_s29 = scalar_lea.vmem (%p110_p3), %s896_s3, %s649_s25  ;;  %s181_s30 = scalar_lea.vmem (%p110_p3), [#allocation2], %s618_s26 }
   0xf   : > { %v197_v0 = vld [vmem:[%s826_s29] sm:$0xff] (%p110_p3)  ;;  %v199_v1 = vld [vmem:[%s826_s29 + $0x8] sm:$0xff] (%p110_p3) }
  0x10   : > { %v201_v2 = vld [vmem:[%s826_s29 + $0x100] sm:$0xff] (%p110_p3)  ;;  %198 = vst [vmem:[%s181_s30] sm:$0xff] (%p110_p3), %v197_v0  ;;  %200 = vst [vmem:[%s181_s30 + $0x8] sm:$0xff] (%p110_p3), %v199_v1  ;;  %v203_v3 = vld [vmem:[%s826_s29 + $0x108] sm:$0xff] (%p110_p3) }
  0x11   : > { %202 = vst [vmem:[%s181_s30 + $0x10] sm:$0xff] %v201_v2  ;;  %v205_v4 = vld [vmem:[%s826_s29 + $0x200] sm:$0xff]  ;;  %v207_v5 = vld [vmem:[%s826_s29 + $0x208] sm:$0xff]  ;;  %204 = vst [vmem:[%s181_s30 + $0x18] sm:$0xff] %v203_v3 }
  0x12   : > { %206 = vst [vmem:[%s181_s30 + $0x20] sm:$0xff] %v205_v4  ;;  %208 = vst [vmem:[%s181_s30 + $0x28] sm:$0xff] %v207_v5  ;;  %v209_v6 = vld [vmem:[%s826_s29 + $0x300] sm:$0xff]  ;;  %v211_v7 = vld [vmem:[%s826_s29 + $0x308] sm:$0xff] }
  0x13   : > { %v213_v8 = vld [vmem:[%s826_s29 + $0x400] sm:$0xff]  ;;  %210 = vst [vmem:[%s181_s30 + $0x30] sm:$0xff] %v209_v6  ;;  %212 = vst [vmem:[%s181_s30 + $0x38] sm:$0xff] %v211_v7  ;;  %v215_v9 = vld [vmem:[%s826_s29 + $0x408] sm:$0xff] }
  0x14   : > { %214 = vst [vmem:[%s181_s30 + $0x40] sm:$0xff] %v213_v8  ;;  %v217_v10 = vld [vmem:[%s826_s29 + $0x500] sm:$0xff]  ;;  %v219_v11 = vld [vmem:[%s826_s29 + $0x508] sm:$0xff]  ;;  %216 = vst [vmem:[%s181_s30 + $0x48] sm:$0xff] %v215_v9 }
  0x15   : > { %218 = vst [vmem:[%s181_s30 + $0x50] sm:$0xff] %v217_v10  ;;  %220 = vst [vmem:[%s181_s30 + $0x58] sm:$0xff] %v219_v11  ;;  %v221_v12 = vld [vmem:[%s826_s29 + $0x600] sm:$0xff]  ;;  %v223_v13 = vld [vmem:[%s826_s29 + $0x608] sm:$0xff] }
  0x16   : > { %v225_v14 = vld [vmem:[%s826_s29 + $0x700] sm:$0xff]  ;;  %222 = vst [vmem:[%s181_s30 + $0x60] sm:$0xff] %v221_v12  ;;  %224 = vst [vmem:[%s181_s30 + $0x68] sm:$0xff] %v223_v13  ;;  %v227_v15 = vld [vmem:[%s826_s29 + $0x708] sm:$0xff] }
  0x17   : > { %226 = vst [vmem:[%s181_s30 + $0x70] sm:$0xff] %v225_v14  ;;  %228 = vst [vmem:[%s181_s30 + $0x78] sm:$0xff] %v227_v15 }
  0x18 PF: > { %p621_p6 = scmp.ge.s32.totalorder %s754_s19, 1  ;;  %p233_p7 = scmp.lt.s32.totalorder %s754_s19, 17 }
  0x1a   : > { %p234_p8 = pnand %p621_p6, %p233_p7 }
  0x1b   : > { %s240_s5 = sand.u32 (!%p234_p8), 1, %s738_s15   ;;  %s623_s14 = sshll.u32 (!%p234_p8), %s746_s17, 2 }
  0x1c   : > { %237 = sbr.rel (%p234_p8) target bundleno = 253 (0xfd), region = 55  ;;  %s622_s6 = sshll.u32 (!%p234_p8), %s240_s5, 7 }
  0x1d   : > { %s850_s9 = scalar_lea.vmem (!%p234_p8), [#allocation2], %s622_s6  ;;  %p278_p9 = scmp.lt.s32.totalorder (!%p234_p8), %s623_s14, 63 }
  0x21   : > { %v756_v16 = vmov 0   ;;  %v285_v17 = vld [vmem:[%s893_s0] sm:$0x1]  ;;  %v692_v18 = vld [vmem:[%s850_s9 + $0x64] ss:$16 sps:$4 sm:$0xff]   ;;  %vm400_vm0 = vcmask 523264   ;;  %v499_v42 = vlaneseq }
  0x22   : > { %436 = vmatprep.mubr.bf16.mxu0 %v756_v16  ;;  %477 = vmatprep.mubr.bf16.mxu1 %v756_v16  ;;  %v694_v19 = vld [vmem:[%s850_s9 + $0x6c] ss:$16 sps:$4 sm:$0xff]   ;;  %v696_v20 = vld [vmem:[%s850_s9 + $0x60] ss:$16 sps:$4 sm:$0xff]   ;;  %v697_v21 = vld [vmem:[%s850_s9 + $0x68] ss:$16 sps:$4 sm:$0xff]   ;;  %v286_v24 = vunpack.c.l.bf16 %v285_v17 }
  0x23   : > { %412 = vmatprep.subr.bf16.mxu0 %v692_v18  ;;  %v624_v22 = vld [vmem:[%s894_s1] ss:$0 sm:$0xff]  ;;  %453 = vmatprep.subr.bf16.mxu1 %v694_v19  ;;  %v698_v23 = vld [vmem:[%s850_s9 + $0x44] ss:$16 sps:$4 sm:$0xff]   ;;  %v700_v25 = vld [vmem:[%s850_s9 + $0x4c] ss:$16 sps:$4 sm:$0xff]  }
  0x24   : > { %413 = vmatpush1.bf16.msra.mxu0 %v696_v20  ;;  %454 = vmatpush1.bf16.msra.mxu1 %v697_v21  ;;  %v702_v26 = vld [vmem:[%s850_s9 + $0x40] ss:$16 sps:$4 sm:$0xff]   ;;  %v703_v27 = vld [vmem:[%s850_s9 + $0x48] ss:$16 sps:$4 sm:$0xff]   ;;  %v704_v28 = vld [vmem:[%s850_s9 + $0x24] ss:$16 sps:$4 sm:$0xff]   ;;  %v294_v33 = vmul.f32 %v624_v22, %v286_v24 }
  0x25   : > { %414 = vmatprep.subr.bf16.mxu0 %v698_v23  ;;  %455 = vmatprep.subr.bf16.mxu1 %v700_v25  ;;  %v625_v29 = vld [vmem:[%s895_s2] ss:$0 sm:$0xff]  ;;  %v706_v30 = vld [vmem:[%s850_s9 + $0x2c] ss:$16 sps:$4 sm:$0xff]   ;;  %v709_v32 = vld [vmem:[%s850_s9 + $0x28] ss:$16 sps:$4 sm:$0xff]  }
  0x26   : > { %v708_v31 = vld [vmem:[%s850_s9 + $0x20] ss:$16 sps:$4 sm:$0xff]   ;;  %v710_v34 = vld [vmem:[%s850_s9 + $0x4] ss:$16 sps:$4 sm:$0xff]   ;;  %v712_v35 = vld [vmem:[%s850_s9 + $0xc] ss:$16 sps:$4 sm:$0xff]   ;;  %v302_v36 = vadd.f32 %v625_v29, %v294_v33 }
  0x27   : > { %v714_v37 = vld [vmem:[%s850_s9] ss:$16 sps:$4 sm:$0xff]   ;;  %v715_v38 = vld [vmem:[%s850_s9 + $0x8] ss:$16 sps:$4 sm:$0xff]   ;;  %v757_v40 = vmov 1966171168  }
  0x28   : > { %415 = vmatpush1.bf16.msra.mxu0 %v702_v26  ;;  %456 = vmatpush1.bf16.msra.mxu1 %v703_v27  ;;  %v303_v39 = vpack.c.bf16 %v302_v36, %v302_v36  ;;  %v497_v41 = vunpack.c.l.s4 %v757_v40  ;;  %v500_v44 = vshrl.u32 %v499_v42, 7  ;;  %s905_s14 = smov (!%p278_p9, %s623_s14), 63 }
  0x29   : > { %416 = vmatprep.subr.bf16.mxu0 %v704_v28  ;;  %457 = vmatprep.subr.bf16.mxu1 %v706_v30  ;;  %s282_s22 = scalar_lea.vmem %s897_s4, %s905_s14 }
  0x2a   : > { %v498_v43 = vunpack.c.0.s8 %v497_v41 }
  0x2c   : > { %417 = vmatpush1.bf16.msra.mxu0 %v708_v31  ;;  %458 = vmatpush1.bf16.msra.mxu1 %v709_v32  ;;  %v501_v47 = vsub.s32 %v498_v43, %v500_v44 }
  0x2d   : > { %418 = vmatprep.subr.bf16.mxu0 %v710_v34  ;;  %459 = vmatprep.subr.bf16.mxu1 %v712_v35 }
  0x30   : > { %419 = vmatpush1.bf16.msra.mxu0 %v714_v37  ;;  %460 = vmatpush1.bf16.msra.mxu1 %v715_v38 }
  0x33   : > { %642 = vmatmul.mubr.msk.bf16.vlgmr.msra.gmra.mxu0 %vm400_vm0, %v303_v39  ;;  %643 = vmatmul.mubr.msk.bf16.vlgmr.msra.gmra.mxu1 %vm400_vm0, %v303_v39 }
  0xf3   : > { %v438_v45 = vpop.f32.mrf.mxu0  ;;  %v479_v46 = vpop.f32.mrf.mxu1 }
  0xf5   : > { %v440_v48 = vpop.f32.mrf.mxu0  ;;  %v481_v49 = vpop.f32.mrf.mxu1 }
  0xf6   : > { %v644_v50 = vpack.c.bf16 %v440_v48, %v438_v45  ;;  %v645_v51 = vpack.c.bf16 %v481_v49, %v479_v46 }
  0xf7   : > { %v442_v52 = vpop.f32.mrf.mxu0  ;;  %v483_v53 = vpop.f32.mrf.mxu1 }
  0xf8   : > { %v502_v54 = vrot.slane %v644_v50, %v501_v47  ;;  %v509_v55 = vrot.slane %v645_v51, %v501_v47 }
  0xf9   : > { %v443_v56 = vpop.f32.mrf.mxu0  ;;  %v484_v57 = vpop.f32.mrf.mxu1 }
  0xfa   : > { %v510_v58 = vcombine.low %v502_v54, %v509_v55 }
  0xfc   : > { %646 = vst.sshfl [vmem:[%s282_s22] sm:$0x55 pattern:$0x73625140] %v510_v58 }
  0xfd PF: > { %s14_s19 = sadd.s32 1, %s754_s19   ;;  %s898_s15 = smov %s742_s16 }
  0xfe   : > { %p11_p10 = scmp.ge.s32.totalorder %s14_s19, 18   ;;  %s899_s16 = smov %s818_s23 }
  0xff   : > { %s900_s17 = smov %s750_s18  ;;  %s901_s18 = smov %s903_s20 }
 0x100   :  { %13 = sbr.rel (!%p11_p10) target bundleno = 3 (0x3), region = 97 }

// kernel: generator_forward.12
= control target key start
LH: loop header
LB: loop body
LE: loop exit
PB: predicated region body
PF: predicated region fallthrough
CT: control target
= control target key end

     0   :  { %s2286_s15 = smov 0   ;;  %s2288_s16 = smov 0   ;;  %s2906_s0 = inlined_call_operand.vmem [shape: bf16[32,512], index: 0, kind: input, shape index: {}]   ;;  %s2907_s1 = inlined_call_operand.vmem [shape: f32[1,512], index: 1, kind: input, shape index: {}]   ;;  %s2908_s2 = inlined_call_operand.vmem [shape: f32[1,512], index: 2, kind: input, shape index: {}]   ;;  %s2909_s3 = inlined_call_operand.vmem [shape: bf16[512,6144], index: 3, kind: input, shape index: {}]   ;;  %s2910_s4 = inlined_call_operand.vmem [shape: bf16[32,6144], index: 4, kind: output, shape index: {}]  }
   0x1   :  { %s2290_s17 = smov 0   ;;  %s2292_s18 = smov 0  }
   0x2   :  { %s2294_s19 = smov 0  }
   0x3 LB: > { %s23_s20 = sadd.s32 1, %s2255_s18  ;;  %s1827_s21 = sadd.s32 4294967295, %s2259_s19   ;;  %s2259_s19 = sphi %s2294_s19, %s14_s19   ;;  %s2255_s18 = sphi %s2292_s18, %s2915_s18   ;;  %s2251_s17 = sphi %s2290_s17, %s2914_s17   ;;  %s2247_s16 = sphi %s2288_s16, %s2913_s16   ;;  %s2243_s15 = sphi %s2286_s15, %s2912_s15  }
   0x4   : > { %p24_p0 = scmp.ge.s32.totalorder %s23_s20, 12  ;;  %p108_p1 = scmp.ne.s32.totalorder %s2247_s16, %s2243_s15 }
   0x5   : > { %p109_p2 = scmp.eq.s32.totalorder %s2259_s19, 0  ;;  %p140_p4 = scmp.eq.s32.totalorder %s1827_s21, 11 }
   0x6   : > { %s2917_s20 = smov (%p24_p0, %s23_s20), 0  ;;  %s101_s23 = sadd.s32 1, %s2247_s16 }
   0x7   : > { %p110_p3 = por %p109_p2, %p108_p1  ;;  %s98_s22 = ssub.s32 %s2255_s18, %s2917_s20 }
   0x8   : > { %p99_p5 = scmp.eq.s32.totalorder %s98_s22, 0  ;;  %p2321_p6 = por %p140_p4, %p108_p1 }
   0x9   : > { %p1831_p7 = scmp.ge.s32.totalorder %s2259_s19, 12 }
   0xa   : > { %s2326_s25 = scalar_select %p99_p5, %s2247_s16, %s101_s23  }
   0xb   : > { %178 = sbr.rel (%p1831_p7) target bundleno = 84 (0x54), region = 28 }
  0x10   : > { %181 = sbr.rel (!%p110_p3) target bundleno = 84 (0x54), region = 32  ;;  %s183_s26 = sand.u32 (%p110_p3), 1, %s2247_s16  }
  0x11   : > { %s1979_s27 = sshll.u32 (%p110_p3), %s2255_s18, 4  ;;  %s1832_s28 = sshll.u32 (%p110_p3), %s183_s26, 10 }
  0x12   : > { %s2334_s5 = scalar_lea.vmem (%p110_p3), %s2909_s3, %s1979_s27  ;;  %s2339_s6 = scalar_lea.vmem (%p110_p3), [#allocation2], %s1832_s28 }
  0x13   : > { %v201_v0 = vld [vmem:[%s2334_s5] sm:$0xff] (%p110_p3)  ;;  %v203_v1 = vld [vmem:[%s2334_s5 + $0x8] sm:$0xff] (%p110_p3) }
  0x14   : > { %v205_v2 = vld [vmem:[%s2334_s5 + $0xc0] sm:$0xff] (%p110_p3)  ;;  %202 = vst [vmem:[%s2339_s6] sm:$0xff] (%p110_p3), %v201_v0  ;;  %204 = vst [vmem:[%s2339_s6 + $0x8] sm:$0xff] (%p110_p3), %v203_v1  ;;  %v207_v3 = vld [vmem:[%s2334_s5 + $0xc8] sm:$0xff] (%p110_p3) }
  0x15   : > { %206 = vst [vmem:[%s2339_s6 + $0x10] sm:$0xff] %v205_v2  ;;  %v209_v4 = vld [vmem:[%s2334_s5 + $0x180] sm:$0xff]  ;;  %v211_v5 = vld [vmem:[%s2334_s5 + $0x188] sm:$0xff]  ;;  %208 = vst [vmem:[%s2339_s6 + $0x18] sm:$0xff] %v207_v3 }
  0x16   : > { %210 = vst [vmem:[%s2339_s6 + $0x20] sm:$0xff] %v209_v4  ;;  %212 = vst [vmem:[%s2339_s6 + $0x28] sm:$0xff] %v211_v5  ;;  %v213_v6 = vld [vmem:[%s2334_s5 + $0x240] sm:$0xff]  ;;  %v215_v7 = vld [vmem:[%s2334_s5 + $0x248] sm:$0xff] }
  0x17   : > { %v217_v8 = vld [vmem:[%s2334_s5 + $0x300] sm:$0xff]  ;;  %214 = vst [vmem:[%s2339_s6 + $0x30] sm:$0xff] %v213_v6  ;;  %216 = vst [vmem:[%s2339_s6 + $0x38] sm:$0xff] %v215_v7  ;;  %v219_v9 = vld [vmem:[%s2334_s5 + $0x308] sm:$0xff] }
  0x18   : > { %218 = vst [vmem:[%s2339_s6 + $0x40] sm:$0xff] %v217_v8  ;;  %v221_v10 = vld [vmem:[%s2334_s5 + $0x3c0] sm:$0xff]  ;;  %v223_v11 = vld [vmem:[%s2334_s5 + $0x3c8] sm:$0xff]  ;;  %220 = vst [vmem:[%s2339_s6 + $0x48] sm:$0xff] %v219_v9 }
  0x19   : > { %222 = vst [vmem:[%s2339_s6 + $0x50] sm:$0xff] %v221_v10  ;;  %224 = vst [vmem:[%s2339_s6 + $0x58] sm:$0xff] %v223_v11  ;;  %v225_v12 = vld [vmem:[%s2334_s5 + $0x480] sm:$0xff]  ;;  %v227_v13 = vld [vmem:[%s2334_s5 + $0x488] sm:$0xff] }
  0x1a   : > { %v229_v14 = vld [vmem:[%s2334_s5 + $0x540] sm:$0xff]  ;;  %226 = vst [vmem:[%s2339_s6 + $0x60] sm:$0xff] %v225_v12  ;;  %228 = vst [vmem:[%s2339_s6 + $0x68] sm:$0xff] %v227_v13  ;;  %v231_v15 = vld [vmem:[%s2334_s5 + $0x548] sm:$0xff] }
  0x1b   : > { %230 = vst [vmem:[%s2339_s6 + $0x70] sm:$0xff] %v229_v14  ;;  %v233_v16 = vld [vmem:[%s2334_s5 + $0x600] sm:$0xff]  ;;  %v235_v17 = vld [vmem:[%s2334_s5 + $0x608] sm:$0xff]  ;;  %232 = vst [vmem:[%s2339_s6 + $0x78] sm:$0xff] %v231_v15 }
  0x1c   : > { %234 = vst [vmem:[%s2339_s6 + $0x80] sm:$0xff] %v233_v16  ;;  %236 = vst [vmem:[%s2339_s6 + $0x88] sm:$0xff] %v235_v17  ;;  %v237_v18 = vld [vmem:[%s2334_s5 + $0x6c0] sm:$0xff]  ;;  %v239_v19 = vld [vmem:[%s2334_s5 + $0x6c8] sm:$0xff] }
  0x1d   : > { %v241_v20 = vld [vmem:[%s2334_s5 + $0x780] sm:$0xff]  ;;  %238 = vst [vmem:[%s2339_s6 + $0x90] sm:$0xff] %v237_v18  ;;  %240 = vst [vmem:[%s2339_s6 + $0x98] sm:$0xff] %v239_v19  ;;  %v243_v21 = vld [vmem:[%s2334_s5 + $0x788] sm:$0xff] }
  0x1e   : > { %242 = vst [vmem:[%s2339_s6 + $0xa0] sm:$0xff] %v241_v20  ;;  %v245_v22 = vld [vmem:[%s2334_s5 + $0x840] sm:$0xff]  ;;  %v247_v23 = vld [vmem:[%s2334_s5 + $0x848] sm:$0xff]  ;;  %244 = vst [vmem:[%s2339_s6 + $0xa8] sm:$0xff] %v243_v21 }
  0x1f   : > { %246 = vst [vmem:[%s2339_s6 + $0xb0] sm:$0xff] %v245_v22  ;;  %248 = vst [vmem:[%s2339_s6 + $0xb8] sm:$0xff] %v247_v23  ;;  %v249_v24 = vld [vmem:[%s2334_s5 + $0x900] sm:$0xff]  ;;  %v251_v25 = vld [vmem:[%s2334_s5 + $0x908] sm:$0xff] }
  0x20   : > { %v253_v26 = vld [vmem:[%s2334_s5 + $0x9c0] sm:$0xff]  ;;  %250 = vst [vmem:[%s2339_s6 + $0xc0] sm:$0xff] %v249_v24  ;;  %252 = vst [vmem:[%s2339_s6 + $0xc8] sm:$0xff] %v251_v25  ;;  %v255_v27 = vld [vmem:[%s2334_s5 + $0x9c8] sm:$0xff] }
  0x21   : > { %254 = vst [vmem:[%s2339_s6 + $0xd0] sm:$0xff] %v253_v26  ;;  %v257_v28 = vld [vmem:[%s2334_s5 + $0xa80] sm:$0xff]  ;;  %v259_v29 = vld [vmem:[%s2334_s5 + $0xa88] sm:$0xff]  ;;  %256 = vst [vmem:[%s2339_s6 + $0xd8] sm:$0xff] %v255_v27 }
  0x22   : > { %258 = vst [vmem:[%s2339_s6 + $0xe0] sm:$0xff] %v257_v28  ;;  %260 = vst [vmem:[%s2339_s6 + $0xe8] sm:$0xff] %v259_v29  ;;  %v261_v30 = vld [vmem:[%s2334_s5 + $0xb40] sm:$0xff]  ;;  %v263_v31 = vld [vmem:[%s2334_s5 + $0xb48] sm:$0xff] }
  0x23   : > { %v265_v32 = vld [vmem:[%s2334_s5 + $0xc00] sm:$0xff]  ;;  %262 = vst [vmem:[%s2339_s6 + $0xf0] sm:$0xff] %v261_v30  ;;  %264 = vst [vmem:[%s2339_s6 + $0xf8] sm:$0xff] %v263_v31  ;;  %v267_v33 = vld [vmem:[%s2334_s5 + $0xc08] sm:$0xff] }
  0x24   : > { %266 = vst [vmem:[%s2339_s6 + $0x100] sm:$0xff] %v265_v32  ;;  %v269_v34 = vld [vmem:[%s2334_s5 + $0xcc0] sm:$0xff]  ;;  %v271_v35 = vld [vmem:[%s2334_s5 + $0xcc8] sm:$0xff]  ;;  %268 = vst [vmem:[%s2339_s6 + $0x108] sm:$0xff] %v267_v33 }
  0x25   : > { %270 = vst [vmem:[%s2339_s6 + $0x110] sm:$0xff] %v269_v34  ;;  %272 = vst [vmem:[%s2339_s6 + $0x118] sm:$0xff] %v271_v35  ;;  %v273_v36 = vld [vmem:[%s2334_s5 + $0xd80] sm:$0xff]  ;;  %v275_v37 = vld [vmem:[%s2334_s5 + $0xd88] sm:$0xff] }
  0x26   : > { %v277_v38 = vld [vmem:[%s2334_s5 + $0xe40] sm:$0xff]  ;;  %274 = vst [vmem:[%s2339_s6 + $0x120] sm:$0xff] %v273_v36  ;;  %276 = vst [vmem:[%s2339_s6 + $0x128] sm:$0xff] %v275_v37  ;;  %v279_v39 = vld [vmem:[%s2334_s5 + $0xe48] sm:$0xff] }
  0x27   : > { %278 = vst [vmem:[%s2339_s6 + $0x130] sm:$0xff] %v277_v38  ;;  %v281_v40 = vld [vmem:[%s2334_s5 + $0xf00] sm:$0xff]  ;;  %v283_v41 = vld [vmem:[%s2334_s5 + $0xf08] sm:$0xff]  ;;  %280 = vst [vmem:[%s2339_s6 + $0x138] sm:$0xff] %v279_v39 }
  0x28   : > { %282 = vst [vmem:[%s2339_s6 + $0x140] sm:$0xff] %v281_v40  ;;  %284 = vst [vmem:[%s2339_s6 + $0x148] sm:$0xff] %v283_v41  ;;  %v285_v42 = vld [vmem:[%s2334_s5 + $0xfc0] sm:$0xff]  ;;  %v287_v43 = vld [vmem:[%s2334_s5 + $0xfc8] sm:$0xff] }
  0x29   : > { %v289_v44 = vld [vmem:[%s2334_s5 + $0x1080] sm:$0xff]  ;;  %286 = vst [vmem:[%s2339_s6 + $0x150] sm:$0xff] %v285_v42  ;;  %288 = vst [vmem:[%s2339_s6 + $0x158] sm:$0xff] %v287_v43  ;;  %v291_v45 = vld [vmem:[%s2334_s5 + $0x1088] sm:$0xff] }
  0x2a   : > { %290 = vst [vmem:[%s2339_s6 + $0x160] sm:$0xff] %v289_v44  ;;  %v293_v46 = vld [vmem:[%s2334_s5 + $0x1140] sm:$0xff]  ;;  %v295_v47 = vld [vmem:[%s2334_s5 + $0x1148] sm:$0xff]  ;;  %292 = vst [vmem:[%s2339_s6 + $0x168] sm:$0xff] %v291_v45 }
  0x2b   : > { %294 = vst [vmem:[%s2339_s6 + $0x170] sm:$0xff] %v293_v46  ;;  %296 = vst [vmem:[%s2339_s6 + $0x178] sm:$0xff] %v295_v47  ;;  %v297_v48 = vld [vmem:[%s2334_s5 + $0x1200] sm:$0xff]  ;;  %v299_v49 = vld [vmem:[%s2334_s5 + $0x1208] sm:$0xff] }
  0x2c   : > { %v301_v50 = vld [vmem:[%s2334_s5 + $0x12c0] sm:$0xff]  ;;  %298 = vst [vmem:[%s2339_s6 + $0x180] sm:$0xff] %v297_v48  ;;  %300 = vst [vmem:[%s2339_s6 + $0x188] sm:$0xff] %v299_v49  ;;  %v303_v51 = vld [vmem:[%s2334_s5 + $0x12c8] sm:$0xff] }
  0x2d   : > { %302 = vst [vmem:[%s2339_s6 + $0x190] sm:$0xff] %v301_v50  ;;  %v305_v52 = vld [vmem:[%s2334_s5 + $0x1380] sm:$0xff]  ;;  %v307_v53 = vld [vmem:[%s2334_s5 + $0x1388] sm:$0xff]  ;;  %304 = vst [vmem:[%s2339_s6 + $0x198] sm:$0xff] %v303_v51 }
  0x2e   : > { %306 = vst [vmem:[%s2339_s6 + $0x1a0] sm:$0xff] %v305_v52  ;;  %308 = vst [vmem:[%s2339_s6 + $0x1a8] sm:$0xff] %v307_v53  ;;  %v309_v54 = vld [vmem:[%s2334_s5 + $0x1440] sm:$0xff]  ;;  %v311_v55 = vld [vmem:[%s2334_s5 + $0x1448] sm:$0xff] }
  0x2f   : > { %v313_v56 = vld [vmem:[%s2334_s5 + $0x1500] sm:$0xff]  ;;  %310 = vst [vmem:[%s2339_s6 + $0x1b0] sm:$0xff] %v309_v54  ;;  %312 = vst [vmem:[%s2339_s6 + $0x1b8] sm:$0xff] %v311_v55  ;;  %v315_v57 = vld [vmem:[%s2334_s5 + $0x1508] sm:$0xff] }
  0x30   : > { %314 = vst [vmem:[%s2339_s6 + $0x1c0] sm:$0xff] %v313_v56  ;;  %v317_v58 = vld [vmem:[%s2334_s5 + $0x15c0] sm:$0xff]  ;;  %v319_v59 = vld [vmem:[%s2334_s5 + $0x15c8] sm:$0xff]  ;;  %316 = vst [vmem:[%s2339_s6 + $0x1c8] sm:$0xff] %v315_v57 }
  0x31   : > { %318 = vst [vmem:[%s2339_s6 + $0x1d0] sm:$0xff] %v317_v58  ;;  %320 = vst [vmem:[%s2339_s6 + $0x1d8] sm:$0xff] %v319_v59  ;;  %v321_v60 = vld [vmem:[%s2334_s5 + $0x1680] sm:$0xff]  ;;  %v323_v61 = vld [vmem:[%s2334_s5 + $0x1688] sm:$0xff] }
  0x32   : > { %v325_v62 = vld [vmem:[%s2334_s5 + $0x1740] sm:$0xff]  ;;  %322 = vst [vmem:[%s2339_s6 + $0x1e0] sm:$0xff] %v321_v60  ;;  %324 = vst [vmem:[%s2339_s6 + $0x1e8] sm:$0xff] %v323_v61  ;;  %v327_v63 = vld [vmem:[%s2334_s5 + $0x1748] sm:$0xff] }
  0x33   : > { %326 = vst [vmem:[%s2339_s6 + $0x1f0] sm:$0xff] %v325_v62  ;;  %v329_v0 = vld [vmem:[%s2334_s5 + $0x1800] sm:$0xff]  ;;  %v331_v1 = vld [vmem:[%s2334_s5 + $0x1808] sm:$0xff]  ;;  %328 = vst [vmem:[%s2339_s6 + $0x1f8] sm:$0xff] %v327_v63 }
  0x34   : > { %330 = vst [vmem:[%s2339_s6 + $0x200] sm:$0xff] %v329_v0  ;;  %332 = vst [vmem:[%s2339_s6 + $0x208] sm:$0xff] %v331_v1  ;;  %v333_v2 = vld [vmem:[%s2334_s5 + $0x18c0] sm:$0xff]  ;;  %v335_v3 = vld [vmem:[%s2334_s5 + $0x18c8] sm:$0xff] }
  0x35   : > { %v337_v4 = vld [vmem:[%s2334_s5 + $0x1980] sm:$0xff]  ;;  %334 = vst [vmem:[%s2339_s6 + $0x210] sm:$0xff] %v333_v2  ;;  %336 = vst [vmem:[%s2339_s6 + $0x218] sm:$0xff] %v335_v3  ;;  %v339_v5 = vld [vmem:[%s2334_s5 + $0x1988] sm:$0xff] }
  0x36   : > { %338 = vst [vmem:[%s2339_s6 + $0x220] sm:$0xff] %v337_v4  ;;  %v341_v6 = vld [vmem:[%s2334_s5 + $0x1a40] sm:$0xff]  ;;  %v343_v7 = vld [vmem:[%s2334_s5 + $0x1a48] sm:$0xff]  ;;  %340 = vst [vmem:[%s2339_s6 + $0x228] sm:$0xff] %v339_v5 }
  0x37   : > { %342 = vst [vmem:[%s2339_s6 + $0x230] sm:$0xff] %v341_v6  ;;  %344 = vst [vmem:[%s2339_s6 + $0x238] sm:$0xff] %v343_v7  ;;  %v345_v8 = vld [vmem:[%s2334_s5 + $0x1b00] sm:$0xff]  ;;  %v347_v9 = vld [vmem:[%s2334_s5 + $0x1b08] sm:$0xff] }
  0x38   : > { %v349_v10 = vld [vmem:[%s2334_s5 + $0x1bc0] sm:$0xff]  ;;  %346 = vst [vmem:[%s2339_s6 + $0x240] sm:$0xff] %v345_v8  ;;  %348 = vst [vmem:[%s2339_s6 + $0x248] sm:$0xff] %v347_v9  ;;  %v351_v11 = vld [vmem:[%s2334_s5 + $0x1bc8] sm:$0xff] }
  0x39   : > { %350 = vst [vmem:[%s2339_s6 + $0x250] sm:$0xff] %v349_v10  ;;  %v353_v12 = vld [vmem:[%s2334_s5 + $0x1c80] sm:$0xff]  ;;  %v355_v13 = vld [vmem:[%s2334_s5 + $0x1c88] sm:$0xff]  ;;  %352 = vst [vmem:[%s2339_s6 + $0x258] sm:$0xff] %v351_v11 }
  0x3a   : > { %354 = vst [vmem:[%s2339_s6 + $0x260] sm:$0xff] %v353_v12  ;;  %356 = vst [vmem:[%s2339_s6 + $0x268] sm:$0xff] %v355_v13  ;;  %v357_v14 = vld [vmem:[%s2334_s5 + $0x1d40] sm:$0xff]  ;;  %v359_v15 = vld [vmem:[%s2334_s5 + $0x1d48] sm:$0xff] }
  0x3b   : > { %v361_v16 = vld [vmem:[%s2334_s5 + $0x1e00] sm:$0xff]  ;;  %358 = vst [vmem:[%s2339_s6 + $0x270] sm:$0xff] %v357_v14  ;;  %360 = vst [vmem:[%s2339_s6 + $0x278] sm:$0xff] %v359_v15  ;;  %v363_v17 = vld [vmem:[%s2334_s5 + $0x1e08] sm:$0xff] }
  0x3c   : > { %362 = vst [vmem:[%s2339_s6 + $0x280] sm:$0xff] %v361_v16  ;;  %v365_v18 = vld [vmem:[%s2334_s5 + $0x1ec0] sm:$0xff]  ;;  %v367_v19 = vld [vmem:[%s2334_s5 + $0x1ec8] sm:$0xff]  ;;  %364 = vst [vmem:[%s2339_s6 + $0x288] sm:$0xff] %v363_v17 }
  0x3d   : > { %366 = vst [vmem:[%s2339_s6 + $0x290] sm:$0xff] %v365_v18  ;;  %368 = vst [vmem:[%s2339_s6 + $0x298] sm:$0xff] %v367_v19  ;;  %v369_v20 = vld [vmem:[%s2334_s5 + $0x1f80] sm:$0xff]  ;;  %v371_v21 = vld [vmem:[%s2334_s5 + $0x1f88] sm:$0xff] }
  0x3e   : > { %v373_v22 = vld [vmem:[%s2334_s5 + $0x2040] sm:$0xff]  ;;  %370 = vst [vmem:[%s2339_s6 + $0x2a0] sm:$0xff] %v369_v20  ;;  %372 = vst [vmem:[%s2339_s6 + $0x2a8] sm:$0xff] %v371_v21  ;;  %v375_v23 = vld [vmem:[%s2334_s5 + $0x2048] sm:$0xff] }
  0x3f   : > { %374 = vst [vmem:[%s2339_s6 + $0x2b0] sm:$0xff] %v373_v22  ;;  %v377_v24 = vld [vmem:[%s2334_s5 + $0x2100] sm:$0xff]  ;;  %v379_v25 = vld [vmem:[%s2334_s5 + $0x2108] sm:$0xff]  ;;  %376 = vst [vmem:[%s2339_s6 + $0x2b8] sm:$0xff] %v375_v23 }
  0x40   : > { %378 = vst [vmem:[%s2339_s6 + $0x2c0] sm:$0xff] %v377_v24  ;;  %380 = vst [vmem:[%s2339_s6 + $0x2c8] sm:$0xff] %v379_v25  ;;  %v381_v26 = vld [vmem:[%s2334_s5 + $0x21c0] sm:$0xff]  ;;  %v383_v27 = vld [vmem:[%s2334_s5 + $0x21c8] sm:$0xff] }
  0x41   : > { %v385_v28 = vld [vmem:[%s2334_s5 + $0x2280] sm:$0xff]  ;;  %382 = vst [vmem:[%s2339_s6 + $0x2d0] sm:$0xff] %v381_v26  ;;  %384 = vst [vmem:[%s2339_s6 + $0x2d8] sm:$0xff] %v383_v27  ;;  %v387_v29 = vld [vmem:[%s2334_s5 + $0x2288] sm:$0xff] }
  0x42   : > { %386 = vst [vmem:[%s2339_s6 + $0x2e0] sm:$0xff] %v385_v28  ;;  %v389_v30 = vld [vmem:[%s2334_s5 + $0x2340] sm:$0xff]  ;;  %v391_v31 = vld [vmem:[%s2334_s5 + $0x2348] sm:$0xff]  ;;  %388 = vst [vmem:[%s2339_s6 + $0x2e8] sm:$0xff] %v387_v29 }
  0x43   : > { %390 = vst [vmem:[%s2339_s6 + $0x2f0] sm:$0xff] %v389_v30  ;;  %392 = vst [vmem:[%s2339_s6 + $0x2f8] sm:$0xff] %v391_v31  ;;  %v393_v32 = vld [vmem:[%s2334_s5 + $0x2400] sm:$0xff]  ;;  %v395_v33 = vld [vmem:[%s2334_s5 + $0x2408] sm:$0xff] }
  0x44   : > { %v397_v34 = vld [vmem:[%s2334_s5 + $0x24c0] sm:$0xff]  ;;  %394 = vst [vmem:[%s2339_s6 + $0x300] sm:$0xff] %v393_v32  ;;  %396 = vst [vmem:[%s2339_s6 + $0x308] sm:$0xff] %v395_v33  ;;  %v399_v35 = vld [vmem:[%s2334_s5 + $0x24c8] sm:$0xff] }
  0x45   : > { %398 = vst [vmem:[%s2339_s6 + $0x310] sm:$0xff] %v397_v34  ;;  %v401_v36 = vld [vmem:[%s2334_s5 + $0x2580] sm:$0xff]  ;;  %v403_v37 = vld [vmem:[%s2334_s5 + $0x2588] sm:$0xff]  ;;  %400 = vst [vmem:[%s2339_s6 + $0x318] sm:$0xff] %v399_v35 }
  0x46   : > { %402 = vst [vmem:[%s2339_s6 + $0x320] sm:$0xff] %v401_v36  ;;  %404 = vst [vmem:[%s2339_s6 + $0x328] sm:$0xff] %v403_v37  ;;  %v405_v38 = vld [vmem:[%s2334_s5 + $0x2640] sm:$0xff]  ;;  %v407_v39 = vld [vmem:[%s2334_s5 + $0x2648] sm:$0xff] }
  0x47   : > { %v409_v40 = vld [vmem:[%s2334_s5 + $0x2700] sm:$0xff]  ;;  %406 = vst [vmem:[%s2339_s6 + $0x330] sm:$0xff] %v405_v38  ;;  %408 = vst [vmem:[%s2339_s6 + $0x338] sm:$0xff] %v407_v39  ;;  %v411_v41 = vld [vmem:[%s2334_s5 + $0x2708] sm:$0xff] }
  0x48   : > { %410 = vst [vmem:[%s2339_s6 + $0x340] sm:$0xff] %v409_v40  ;;  %v413_v42 = vld [vmem:[%s2334_s5 + $0x27c0] sm:$0xff]  ;;  %v415_v43 = vld [vmem:[%s2334_s5 + $0x27c8] sm:$0xff]  ;;  %412 = vst [vmem:[%s2339_s6 + $0x348] sm:$0xff] %v411_v41 }
  0x49   : > { %414 = vst [vmem:[%s2339_s6 + $0x350] sm:$0xff] %v413_v42  ;;  %416 = vst [vmem:[%s2339_s6 + $0x358] sm:$0xff] %v415_v43  ;;  %v417_v44 = vld [vmem:[%s2334_s5 + $0x2880] sm:$0xff]  ;;  %v419_v45 = vld [vmem:[%s2334_s5 + $0x2888] sm:$0xff] }
  0x4a   : > { %v421_v46 = vld [vmem:[%s2334_s5 + $0x2940] sm:$0xff]  ;;  %418 = vst [vmem:[%s2339_s6 + $0x360] sm:$0xff] %v417_v44  ;;  %420 = vst [vmem:[%s2339_s6 + $0x368] sm:$0xff] %v419_v45  ;;  %v423_v47 = vld [vmem:[%s2334_s5 + $0x2948] sm:$0xff] }
  0x4b   : > { %422 = vst [vmem:[%s2339_s6 + $0x370] sm:$0xff] %v421_v46  ;;  %v425_v48 = vld [vmem:[%s2334_s5 + $0x2a00] sm:$0xff]  ;;  %v427_v49 = vld [vmem:[%s2334_s5 + $0x2a08] sm:$0xff]  ;;  %424 = vst [vmem:[%s2339_s6 + $0x378] sm:$0xff] %v423_v47 }
  0x4c   : > { %426 = vst [vmem:[%s2339_s6 + $0x380] sm:$0xff] %v425_v48  ;;  %428 = vst [vmem:[%s2339_s6 + $0x388] sm:$0xff] %v427_v49  ;;  %v429_v50 = vld [vmem:[%s2334_s5 + $0x2ac0] sm:$0xff]  ;;  %v431_v51 = vld [vmem:[%s2334_s5 + $0x2ac8] sm:$0xff] }
  0x4d   : > { %v433_v52 = vld [vmem:[%s2334_s5 + $0x2b80] sm:$0xff]  ;;  %430 = vst [vmem:[%s2339_s6 + $0x390] sm:$0xff] %v429_v50  ;;  %432 = vst [vmem:[%s2339_s6 + $0x398] sm:$0xff] %v431_v51  ;;  %v435_v53 = vld [vmem:[%s2334_s5 + $0x2b88] sm:$0xff] }
  0x4e   : > { %434 = vst [vmem:[%s2339_s6 + $0x3a0] sm:$0xff] %v433_v52  ;;  %v437_v54 = vld [vmem:[%s2334_s5 + $0x2c40] sm:$0xff]  ;;  %v439_v55 = vld [vmem:[%s2334_s5 + $0x2c48] sm:$0xff]  ;;  %436 = vst [vmem:[%s2339_s6 + $0x3a8] sm:$0xff] %v435_v53 }
  0x4f   : > { %438 = vst [vmem:[%s2339_s6 + $0x3b0] sm:$0xff] %v437_v54  ;;  %440 = vst [vmem:[%s2339_s6 + $0x3b8] sm:$0xff] %v439_v55  ;;  %v441_v56 = vld [vmem:[%s2334_s5 + $0x2d00] sm:$0xff]  ;;  %v443_v57 = vld [vmem:[%s2334_s5 + $0x2d08] sm:$0xff] }
  0x50   : > { %v445_v58 = vld [vmem:[%s2334_s5 + $0x2dc0] sm:$0xff]  ;;  %442 = vst [vmem:[%s2339_s6 + $0x3c0] sm:$0xff] %v441_v56  ;;  %444 = vst [vmem:[%s2339_s6 + $0x3c8] sm:$0xff] %v443_v57  ;;  %v447_v59 = vld [vmem:[%s2334_s5 + $0x2dc8] sm:$0xff] }
  0x51   : > { %446 = vst [vmem:[%s2339_s6 + $0x3d0] sm:$0xff] %v445_v58  ;;  %v449_v60 = vld [vmem:[%s2334_s5 + $0x2e80] sm:$0xff]  ;;  %v451_v61 = vld [vmem:[%s2334_s5 + $0x2e88] sm:$0xff]  ;;  %448 = vst [vmem:[%s2339_s6 + $0x3d8] sm:$0xff] %v447_v59 }
  0x52   : > { %450 = vst [vmem:[%s2339_s6 + $0x3e0] sm:$0xff] %v449_v60  ;;  %452 = vst [vmem:[%s2339_s6 + $0x3e8] sm:$0xff] %v451_v61  ;;  %v453_v62 = vld [vmem:[%s2334_s5 + $0x2f40] sm:$0xff]  ;;  %v455_v63 = vld [vmem:[%s2334_s5 + $0x2f48] sm:$0xff] }
  0x53   : > { %454 = vst [vmem:[%s2339_s6 + $0x3f0] sm:$0xff] %v453_v62  ;;  %456 = vst [vmem:[%s2339_s6 + $0x3f8] sm:$0xff] %v455_v63 }
  0x54 PF: > { %p1835_p8 = scmp.ge.s32.totalorder %s2259_s19, 1  ;;  %p461_p9 = scmp.lt.s32.totalorder %s2259_s19, 13 }
  0x56   : > { %p462_p10 = pnand %p1835_p8, %p461_p9 }
  0x57   : > { %s468_s7 = sand.u32 (!%p462_p10), 1, %s2243_s15  }
  0x58   : > { %465 = sbr.rel (%p462_p10) target bundleno = 445 (0x1bd), region = 55  ;;  %s1836_s10 = sshll.u32 (!%p462_p10), %s468_s7, 10 }
  0x59   : > { %s2631_s29 = scalar_lea.vmem (!%p462_p10), [#allocation2], %s1836_s10  ;;  %s1837_s13 = sshll.u32 (!%p462_p10), %s468_s7, 6 }
  0x5a   : > { %s2867_s14 = scalar_lea.vmem (!%p462_p10), [#allocation3], %s1837_s13 }
  0x5d   : > { %v2600_v0 = vld [vmem:[%s2906_s0] sm:$0xff]  ;;  %v534_v1 = vlaneseq  ;;  %v2607_v2 = vld [vmem:[%s2906_s0 + $0x10] sm:$0xff]  ;;  %v2617_v4 = vld [vmem:[%s2906_s0 + $0x8] sm:$0xff]  ;;  %s1988_s15 = sshll.u32 (%p2321_p6), %s2251_s17, 4 }
  0x5e   : > { %v2612_v3 = vld [vmem:[%s2907_s1] sm:$0xf]  ;;  %v2629_v7 = vld [vmem:[%s2906_s0 + $0x18] sm:$0xff]  ;;  %v2029_v8 = vld [vmem:[%s2631_s29 + $0xe4] ss:$16 sps:$4 sm:$0xff]   ;;  %v517_v9 = vunpack.c.h.bf16 %v2600_v0  ;;  %v521_v11 = vunpack.c.h.bf16 %v2607_v2  ;;  %v519_v13 = vunpack.c.h.bf16 %v2617_v4  ;;  %s1712_s22 = scalar_lea.vmem (%p2321_p6), %s2910_s4, %s1988_s15 }
  0x5f   : > { %v2619_v5 = vshrl.u32 %v534_v1, 7  ;;  %v2624_v6 = vld [vmem:[%s2908_s2] sm:$0xf]  ;;  %v2031_v10 = vld [vmem:[%s2631_s29 + $0x2e4] ss:$16 sps:$4 sm:$0xff]   ;;  %1432 = vmatprep.subr.bf16.mxu0 %v2029_v8  ;;  %v523_v20 = vunpack.c.h.bf16 %v2629_v7 }
  0x60   : > { %v2033_v15 = vld [vmem:[%s2631_s29 + $0xe0] ss:$16 sps:$4 sm:$0xff]   ;;  %1485 = vmatprep.subr.bf16.mxu1 %v2031_v10  ;;  %v2035_v17 = vld [vmem:[%s2631_s29 + $0xc4] ss:$16 sps:$4 sm:$0xff]  }
  0x61   : > { %v540_v12 = vsub.s32 1, %v2619_v5  ;;  %v548_v14 = vsub.s32 3, %v2619_v5  ;;  %v2034_v16 = vld [vmem:[%s2631_s29 + $0x2e0] ss:$16 sps:$4 sm:$0xff]   ;;  %1433 = vmatpush1.bf16.msra.mxu0 %v2033_v15  ;;  %v2037_v22 = vld [vmem:[%s2631_s29 + $0x2c4] ss:$16 sps:$4 sm:$0xff]  }
  0x62   : > { %1486 = vmatpush1.bf16.msra.mxu1 %v2034_v16  ;;  %v2039_v23 = vld [vmem:[%s2631_s29 + $0xc0] ss:$16 sps:$4 sm:$0xff]   ;;  %1434 = vmatprep.subr.bf16.mxu0 %v2035_v17  ;;  %v2041_v29 = vld [vmem:[%s2631_s29 + $0xa4] ss:$16 sps:$4 sm:$0xff]  }
  0x63   : > { %v2644_v18 = vrot.slane %v2612_v3, %v540_v12  ;;  %v2647_v19 = vrot.slane %v2624_v6, %v540_v12  ;;  %v2651_v21 = vrot.slane %v2612_v3, %v548_v14  ;;  %v2656_v24 = vrot.slane %v2624_v6, %v548_v14  ;;  %v2040_v25 = vld [vmem:[%s2631_s29 + $0x2c0] ss:$16 sps:$4 sm:$0xff]   ;;  %1487 = vmatprep.subr.bf16.mxu1 %v2037_v22  ;;  %v2043_v30 = vld [vmem:[%s2631_s29 + $0x2a4] ss:$16 sps:$4 sm:$0xff]  }
  0x64   : > { %v2045_v31 = vld [vmem:[%s2631_s29 + $0xa0] ss:$16 sps:$4 sm:$0xff]   ;;  %v2047_v36 = vld [vmem:[%s2631_s29 + $0x84] ss:$16 sps:$4 sm:$0xff]  }
  0x65   : > { %v555_v26 = vmul.f32 %v2644_v18, %v517_v9  ;;  %v559_v27 = vmul.f32 %v2644_v18, %v521_v11  ;;  %v557_v28 = vmul.f32 %v2651_v21, %v519_v13  ;;  %v2046_v32 = vld [vmem:[%s2631_s29 + $0x2a0] ss:$16 sps:$4 sm:$0xff]   ;;  %v561_v35 = vmul.f32 %v2651_v21, %v523_v20  ;;  %1435 = vmatpush1.bf16.msra.mxu0 %v2039_v23  ;;  %v2049_v38 = vld [vmem:[%s2631_s29 + $0x284] ss:$16 sps:$4 sm:$0xff]  }
  0x66   : > { %1488 = vmatpush1.bf16.msra.mxu1 %v2040_v25  ;;  %1436 = vmatprep.subr.bf16.mxu0 %v2041_v29  ;;  %v2051_v39 = vld [vmem:[%s2631_s29 + $0x80] ss:$16 sps:$4 sm:$0xff]   ;;  %v2053_v43 = vld [vmem:[%s2631_s29 + $0x64] ss:$16 sps:$4 sm:$0xff]   ;;  %v536_v25 = vsub.s32 0, %v2619_v5 }
  0x67   : > { %v593_v33 = vadd.f32 %v2647_v19, %v555_v26  ;;  %v597_v34 = vadd.f32 %v2647_v19, %v559_v27  ;;  %v595_v37 = vadd.f32 %v2656_v24, %v557_v28  ;;  %1489 = vmatprep.subr.bf16.mxu1 %v2043_v30  ;;  %v599_v41 = vadd.f32 %v2656_v24, %v561_v35  ;;  %v2052_v42 = vld [vmem:[%s2631_s29 + $0x280] ss:$16 sps:$4 sm:$0xff]   ;;  %v2055_v44 = vld [vmem:[%s2631_s29 + $0x264] ss:$16 sps:$4 sm:$0xff]  }
  0x68   : > { %v2057_v48 = vld [vmem:[%s2631_s29 + $0x60] ss:$16 sps:$4 sm:$0xff]   ;;  %v2059_v51 = vld [vmem:[%s2631_s29 + $0x44] ss:$16 sps:$4 sm:$0xff]   ;;  %v544_v26 = vsub.s32 2, %v2619_v5  ;;  %v518_v5 = vunpack.c.l.bf16 %v2617_v4  ;;  %v522_v4 = vunpack.c.l.bf16 %v2629_v7 }
  0x69   : > { %vm609_vm0 = vcmp.ge.f32.partialorder %v593_v33, 0.0  ;;  %vm613_vm1 = vcmp.ge.f32.partialorder %v597_v34, 0.0  ;;  %v625_v40 = vmul.f32 0.2, %v593_v33  ;;  %1437 = vmatpush1.bf16.msra.mxu0 %v2045_v31  ;;  %vm611_vm2 = vcmp.ge.f32.partialorder %v595_v37, 0.0  ;;  %v512_v35 = vld [vmem:[%s2906_s0 + $0x20] sm:$0xff] }
  0x6a   : > { %1490 = vmatpush1.bf16.msra.mxu1 %v2046_v32  ;;  %1438 = vmatprep.subr.bf16.mxu0 %v2047_v36  ;;  %v629_v45 = vmul.f32 0.2, %v597_v34  ;;  %v627_v47 = vmul.f32 0.2, %v595_v37  ;;  %v2058_v49 = vld [vmem:[%s2631_s29 + $0x260] ss:$16 sps:$4 sm:$0xff]   ;;  %v516_v31 = vunpack.c.l.bf16 %v2600_v0  ;;  %v537_v32 = vrot.slane %v2612_v3, %v536_v25 }
  0x6b   : > { %1491 = vmatprep.subr.bf16.mxu1 %v2049_v38  ;;  %v641_v46 = vsel %vm609_vm0, %v593_v33, %v625_v40  ;;  %vm615_vm3 = vcmp.ge.f32.partialorder %v599_v41, 0.0  ;;  %v631_v53 = vmul.f32 0.2, %v599_v41  ;;  %v2061_v55 = vld [vmem:[%s2631_s29 + $0x244] ss:$16 sps:$4 sm:$0xff]   ;;  %v520_v33 = vunpack.c.l.bf16 %v2607_v2 }
  0x6c   : > { %v645_v50 = vsel %vm613_vm1, %v597_v34, %v629_v45  ;;  %v643_v54 = vsel %vm611_vm2, %v595_v37, %v627_v47  ;;  %v2063_v57 = vld [vmem:[%s2631_s29 + $0x40] ss:$16 sps:$4 sm:$0xff]   ;;  %v2065_v60 = vld [vmem:[%s2631_s29 + $0x24] ss:$16 sps:$4 sm:$0xff]   ;;  %v2720_v34 = vrot.slane %v2612_v3, %v544_v26  ;;  %v554_v38 = vmul.f32 %v537_v32, %v516_v31  ;;  %v513_v31 = vld [vmem:[%s2906_s0 + $0x28] sm:$0xff] }
  0x6d   : > { %1439 = vmatpush1.bf16.msra.mxu0 %v2051_v39  ;;  %v2681_v52 = vpack.c.bf16 %v645_v50, %v641_v46  ;;  %v647_v56 = vsel %vm615_vm3, %v599_v41, %v631_v53  ;;  %v2064_v59 = vld [vmem:[%s2631_s29 + $0x240] ss:$16 sps:$4 sm:$0xff]   ;;  %v2067_v61 = vld [vmem:[%s2631_s29 + $0x224] ss:$16 sps:$4 sm:$0xff]   ;;  %v575_v39 = vrot.slane %v2624_v6, %v536_v25  ;;  %v525_v40 = vunpack.c.h.bf16 %v512_v35 }
  0x6e   : > { %1492 = vmatpush1.bf16.msra.mxu1 %v2052_v42  ;;  %1440 = vmatprep.subr.bf16.mxu0 %v2053_v43  ;;  %v2687_v58 = vpack.c.bf16 %v647_v56, %v643_v54  ;;  %v2069_v62 = vld [vmem:[%s2631_s29 + $0x20] ss:$16 sps:$4 sm:$0xff]   ;;  %v2071_v1 = vld [vmem:[%s2631_s29 + $0x4] ss:$16 sps:$4 sm:$0xff]   ;;  %v558_v41 = vmul.f32 %v537_v32, %v520_v33  ;;  %v556_v42 = vmul.f32 %v2720_v34, %v518_v5 }
  0x6f   : > { %1493 = vmatprep.subr.bf16.mxu1 %v2055_v44  ;;  %1464 = vmatprep.mubr.bf16.mxu0 %v2681_v52  ;;  %v2070_v63 = vld [vmem:[%s2631_s29 + $0x220] ss:$16 sps:$4 sm:$0xff]   ;;  %v2073_v8 = vld [vmem:[%s2631_s29 + $0x204] ss:$16 sps:$4 sm:$0xff]   ;;  %v2736_v43 = vrot.slane %v2624_v6, %v544_v26  ;;  %v560_v47 = vmul.f32 %v2720_v34, %v522_v4  ;;  %v563_v50 = vmul.f32 %v2644_v18, %v525_v40  ;;  %v524_v6 = vunpack.c.l.bf16 %v512_v35  ;;  %v2125_v35 = vld [vmem:[%s2631_s29 + $0xe8] ss:$16 sps:$4 sm:$0xff]  }
  0x70   : > { %1517 = vmatprep.mubr.bf16.mxu1 %v2687_v58  ;;  %v2075_v9 = vld [vmem:[%s2631_s29] ss:$16 sps:$4 sm:$0xff]   ;;  %v2077_v11 = vld [vmem:[%s2631_s29 + $0x1e4] ss:$16 sps:$4 sm:$0xff]   ;;  %v2131_v40 = vld [vmem:[%s2631_s29 + $0xc8] ss:$16 sps:$4 sm:$0xff]  }
  0x71   : > { %1441 = vmatpush1.bf16.msra.mxu0 %v2057_v48  ;;  %v2076_v10 = vld [vmem:[%s2631_s29 + $0x200] ss:$16 sps:$4 sm:$0xff]   ;;  %v2079_v12 = vld [vmem:[%s2631_s29 + $0x3e4] ss:$16 sps:$4 sm:$0xff]   ;;  %v594_v53 = vadd.f32 %v2736_v43, %v556_v42  ;;  %v526_v42 = vunpack.c.l.bf16 %v513_v31 }
  0x72   : > { %1494 = vmatpush1.bf16.msra.mxu1 %v2058_v49  ;;  %1442 = vmatprep.subr.bf16.mxu0 %v2059_v51  ;;  %v2081_v13 = vld [vmem:[%s2631_s29 + $0x1e0] ss:$16 sps:$4 sm:$0xff]   ;;  %v2083_v15 = vld [vmem:[%s2631_s29 + $0x1c4] ss:$16 sps:$4 sm:$0xff]   ;;  %v592_v49 = vadd.f32 %v575_v39, %v554_v38  ;;  %v596_v51 = vadd.f32 %v575_v39, %v558_v41  ;;  %v2134_v41 = vld [vmem:[%s2631_s29 + $0x2c8] ss:$16 sps:$4 sm:$0xff]  }
  0x73   : > { %1495 = vmatprep.subr.bf16.mxu1 %v2061_v55  ;;  %v2082_v14 = vld [vmem:[%s2631_s29 + $0x3e0] ss:$16 sps:$4 sm:$0xff]   ;;  %v2085_v16 = vld [vmem:[%s2631_s29 + $0x3c4] ss:$16 sps:$4 sm:$0xff]   ;;  %vm610_vm6 = vcmp.ge.f32.partialorder %v594_v53, 0.0 }
  0x74   : > { %v2087_v17 = vld [vmem:[%s2631_s29 + $0x1c0] ss:$16 sps:$4 sm:$0xff]   ;;  %v2089_v22 = vld [vmem:[%s2631_s29 + $0x1a4] ss:$16 sps:$4 sm:$0xff]   ;;  %vm608_vm4 = vcmp.ge.f32.partialorder %v592_v49, 0.0  ;;  %vm612_vm5 = vcmp.ge.f32.partialorder %v596_v51, 0.0 }
  0x75   : > { %1443 = vmatpush1.bf16.msra.mxu0 %v2063_v57  ;;  %v2088_v20 = vld [vmem:[%s2631_s29 + $0x3c0] ss:$16 sps:$4 sm:$0xff]   ;;  %v2091_v23 = vld [vmem:[%s2631_s29 + $0x3a4] ss:$16 sps:$4 sm:$0xff]  }
  0x76   : > { %1496 = vmatpush1.bf16.msra.mxu1 %v2064_v59  ;;  %1444 = vmatprep.subr.bf16.mxu0 %v2065_v60  ;;  %v2093_v27 = vld [vmem:[%s2631_s29 + $0x1a0] ss:$16 sps:$4 sm:$0xff]   ;;  %v2095_v29 = vld [vmem:[%s2631_s29 + $0x184] ss:$16 sps:$4 sm:$0xff]   ;;  %v598_v60 = vadd.f32 %v2736_v43, %v560_v47 }
  0x77   : > { %1497 = vmatprep.subr.bf16.mxu1 %v2067_v61  ;;  %v2094_v28 = vld [vmem:[%s2631_s29 + $0x3a0] ss:$16 sps:$4 sm:$0xff]   ;;  %v2097_v30 = vld [vmem:[%s2631_s29 + $0x384] ss:$16 sps:$4 sm:$0xff]  }
  0x78   : > { %v514_v36 = vld [vmem:[%s2906_s0 + $0x30] sm:$0xff]  ;;  %vm614_vm7 = vcmp.ge.f32.partialorder %v598_v60, 0.0 }
  0x79   : > { %1445 = vmatpush1.bf16.msra.mxu0 %v2069_v62  ;;  %v2099_v37 = vld [vmem:[%s2631_s29 + $0x180] ss:$16 sps:$4 sm:$0xff]   ;;  %v2101_v2 = vld [vmem:[%s2631_s29 + $0x164] ss:$16 sps:$4 sm:$0xff]   ;;  %v529_v44 = vunpack.c.h.bf16 %v514_v36  ;;  %v528_v57 = vunpack.c.l.bf16 %v514_v36  ;;  %v624_v62 = vmul.f32 0.2, %v592_v49 }
  0x7a   : > { %1498 = vmatpush1.bf16.msra.mxu1 %v2070_v63  ;;  %1446 = vmatprep.subr.bf16.mxu0 %v2071_v1  ;;  %v2100_v0 = vld [vmem:[%s2631_s29 + $0x380] ss:$16 sps:$4 sm:$0xff]   ;;  %v2103_v3 = vld [vmem:[%s2631_s29 + $0x364] ss:$16 sps:$4 sm:$0xff]   ;;  %v601_v63 = vadd.f32 %v2647_v19, %v563_v50  ;;  %v562_v1 = vmul.f32 %v537_v32, %v524_v6  ;;  %v2128_v36 = vld [vmem:[%s2631_s29 + $0x2e8] ss:$16 sps:$4 sm:$0xff]   ;;  %v564_v6 = vmul.f32 %v2720_v34, %v526_v42 }
  0x7b   : > { %1499 = vmatprep.subr.bf16.mxu1 %v2073_v8  ;;  %v2105_v45 = vld [vmem:[%s2631_s29 + $0x160] ss:$16 sps:$4 sm:$0xff]   ;;  %v2107_v7 = vld [vmem:[%s2631_s29 + $0x144] ss:$16 sps:$4 sm:$0xff]   ;;  %v567_v54 = vmul.f32 %v2644_v18, %v529_v44  ;;  %v628_v18 = vmul.f32 0.2, %v596_v51 }
  0x7c   : > { %v2106_v46 = vld [vmem:[%s2631_s29 + $0x360] ss:$16 sps:$4 sm:$0xff]   ;;  %v2109_v48 = vld [vmem:[%s2631_s29 + $0x344] ss:$16 sps:$4 sm:$0xff]   ;;  %v626_v8 = vmul.f32 0.2, %v594_v53 }
  0x7d   : > { %1447 = vmatpush1.bf16.msra.mxu0 %v2075_v9  ;;  %v2111_v55 = vld [vmem:[%s2631_s29 + $0x140] ss:$16 sps:$4 sm:$0xff]   ;;  %v2113_v59 = vld [vmem:[%s2631_s29 + $0x124] ss:$16 sps:$4 sm:$0xff]   ;;  %v605_v9 = vadd.f32 %v2647_v19, %v567_v54  ;;  %v600_v19 = vadd.f32 %v575_v39, %v562_v1  ;;  %v644_v25 = vsel %vm612_vm5, %v596_v51, %v628_v18  ;;  %vm617_vm8 = vcmp.ge.f32.partialorder %v601_v63, 0.0 }
  0x7e   : > { %1500 = vmatpush1.bf16.msra.mxu1 %v2076_v10  ;;  %1448 = vmatprep.subr.bf16.mxu0 %v2077_v11  ;;  %v2112_v56 = vld [vmem:[%s2631_s29 + $0x340] ss:$16 sps:$4 sm:$0xff]   ;;  %v2115_v61 = vld [vmem:[%s2631_s29 + $0x324] ss:$16 sps:$4 sm:$0xff]   ;;  %v2139_v44 = vld [vmem:[%s2631_s29 + $0xac] ss:$16 sps:$4 sm:$0xff]  }
  0x7f   : > { %1501 = vmatprep.subr.bf16.mxu1 %v2079_v12  ;;  %v2117_v10 = vld [vmem:[%s2631_s29 + $0x120] ss:$16 sps:$4 sm:$0xff]   ;;  %v566_v12 = vmul.f32 %v537_v32, %v528_v57  ;;  %vm621_vm9 = vcmp.ge.f32.partialorder %v605_v9, 0.0  ;;  %v632_v32 = vmul.f32 0.2, %v600_v19  ;;  %vm616_vm10 = vcmp.ge.f32.partialorder %v600_v19, 0.0 }
  0x80   : > { %v2118_v11 = vld [vmem:[%s2631_s29 + $0x320] ss:$16 sps:$4 sm:$0xff]   ;;  %v2145_v51 = vld [vmem:[%s2631_s29 + $0x8c] ss:$16 sps:$4 sm:$0xff]   ;;  %v602_v57 = vadd.f32 %v2736_v43, %v564_v6  ;;  %v2149_v18 = vld [vmem:[%s2631_s29 + $0x68] ss:$16 sps:$4 sm:$0xff]  }
  0x81   : > { %1449 = vmatpush2.bf16.msra.mxu0 %v2081_v13  ;;  %v2119_v13 = vld [vmem:[%s2631_s29 + $0x104] ss:$16 sps:$4 sm:$0xff]   ;;  %v604_v26 = vadd.f32 %v575_v39, %v566_v12  ;;  %v527_v39 = vunpack.c.h.bf16 %v513_v31  ;;  %v2157_v12 = vld [vmem:[%s2631_s29 + $0x4c] ss:$16 sps:$4 sm:$0xff]   ;;  %v2170_v31 = vld [vmem:[%s2631_s29 + $0x208] ss:$16 sps:$4 sm:$0xff]  }
  0x82   : > { %1502 = vmatpush2.bf16.msra.mxu1 %v2082_v14  ;;  %1450 = vmatprep.subr.bf16.mxu0 %v2083_v15  ;;  %v630_v14 = vmul.f32 0.2, %v598_v60  ;;  %v2121_v15 = vld [vmem:[%s2631_s29 + $0x304] ss:$16 sps:$4 sm:$0xff]   ;;  %vm618_vm13 = vcmp.ge.f32.partialorder %v602_v57, 0.0 }
  0x83   : > { %1503 = vmatprep.subr.bf16.mxu1 %v2085_v16  ;;  %v633_v16 = vmul.f32 0.2, %v601_v63  ;;  %v636_v4 = vmul.f32 0.2, %v604_v26  ;;  %vm620_vm11 = vcmp.ge.f32.partialorder %v604_v26, 0.0  ;;  %v565_v47 = vmul.f32 %v2651_v21, %v527_v39 }
  0x84   : > { %v2190_v39 = vld [vmem:[%s2631_s29 + $0x3ac] ss:$16 sps:$4 sm:$0xff]  }
  0x85   : > { %1451 = vmatpush2.bf16.msra.mxu0 %v2087_v17  ;;  %v637_v17 = vmul.f32 0.2, %v605_v9  ;;  %v603_v54 = vadd.f32 %v2656_v24, %v565_v47  ;;  %v2193_v42 = vld [vmem:[%s2631_s29 + $0x18c] ss:$16 sps:$4 sm:$0xff]  }
  0x86   : > { %1504 = vmatpush2.bf16.msra.mxu1 %v2088_v20  ;;  %1452 = vmatprep.subr.bf16.mxu0 %v2089_v22  ;;  %v2123_v20 = vld [vmem:[%s2631_s29 + $0x100] ss:$16 sps:$4 sm:$0xff]   ;;  %v2202_v47 = vld [vmem:[%s2631_s29 + $0x36c] ss:$16 sps:$4 sm:$0xff]  }
  0x87   : > { %1505 = vmatprep.subr.bf16.mxu1 %v2091_v23  ;;  %v2124_v22 = vld [vmem:[%s2631_s29 + $0x300] ss:$16 sps:$4 sm:$0xff]   ;;  %v640_v23 = vsel %vm608_vm4, %v592_v49, %v624_v62  ;;  %v2140_v49 = vld [vmem:[%s2631_s29 + $0x2a8] ss:$16 sps:$4 sm:$0xff]   ;;  %vm619_vm12 = vcmp.ge.f32.partialorder %v603_v54, 0.0 }
  0x88   : > { %v2766_v33 = vpack.c.bf16 %v644_v25, %v640_v23  ;;  %v2205_v6 = vld [vmem:[%s2631_s29 + $0x14c] ss:$16 sps:$4 sm:$0xff]  }
  0x89   : > { %1453 = vmatpush2.bf16.msra.mxu0 %v2093_v27  ;;  %v642_v27 = vsel %vm610_vm6, %v594_v53, %v626_v8  ;;  %v2148_v53 = vld [vmem:[%s2631_s29 + $0x28c] ss:$16 sps:$4 sm:$0xff]   ;;  %v634_v8 = vmul.f32 0.2, %v602_v57 }
  0x8a   : > { %1506 = vmatpush2.bf16.msra.mxu1 %v2094_v28  ;;  %1454 = vmatprep.subr.bf16.mxu0 %v2095_v29  ;;  %v646_v28 = vsel %vm614_vm7, %v598_v60, %v630_v14  ;;  %v2127_v29 = vld [vmem:[%s2631_s29 + $0xec] ss:$16 sps:$4 sm:$0xff]   ;;  %v2155_v14 = vld [vmem:[%s2631_s29 + $0x48] ss:$16 sps:$4 sm:$0xff]  }
  0x8b   : > { %1507 = vmatprep.subr.bf16.mxu1 %v2097_v30  ;;  %v2130_v30 = vld [vmem:[%s2631_s29 + $0x2ec] ss:$16 sps:$4 sm:$0xff]   ;;  %v2768_v5 = vpack.c.bf16 %v646_v28, %v642_v27  ;;  %v2164_v27 = vld [vmem:[%s2631_s29 + $0x228] ss:$16 sps:$4 sm:$0xff]  }
  0x8c   : > { %v2154_v60 = vld [vmem:[%s2631_s29 + $0x26c] ss:$16 sps:$4 sm:$0xff]  }
  0x8d   : > { %1455 = vmatpush2.bf16.msra.mxu0 %v2099_v37  ;;  %v649_v37 = vsel %vm617_vm8, %v601_v63, %v633_v16  ;;  %v635_v63 = vmul.f32 0.2, %v603_v54  ;;  %v2169_v28 = vld [vmem:[%s2631_s29 + $0xc] ss:$16 sps:$4 sm:$0xff]  }
  0x8e   : > { %1508 = vmatpush2.bf16.msra.mxu1 %v2100_v0  ;;  %1456 = vmatprep.subr.bf16.mxu0 %v2101_v2  ;;  %v653_v0 = vsel %vm621_vm9, %v605_v9, %v637_v17  ;;  %v2133_v2 = vld [vmem:[%s2631_s29 + $0xcc] ss:$16 sps:$4 sm:$0xff]   ;;  %v2152_v9 = vld [vmem:[%s2631_s29 + $0x268] ss:$16 sps:$4 sm:$0xff]  }
  0x8f   : > { %1509 = vmatprep.subr.bf16.mxu1 %v2103_v3  ;;  %v2136_v3 = vld [vmem:[%s2631_s29 + $0x2cc] ss:$16 sps:$4 sm:$0xff]   ;;  %v2774_v38 = vpack.c.bf16 %v653_v0, %v649_v37  ;;  %v2176_v37 = vld [vmem:[%s2631_s29 + $0x3e8] ss:$16 sps:$4 sm:$0xff]  }
  0x90   : > { %v2163_v17 = vld [vmem:[%s2631_s29 + $0x2c] ss:$16 sps:$4 sm:$0xff]  }
  0x91   : > { %1457 = vmatpush2.bf16.msra.mxu0 %v2105_v45  ;;  %v648_v45 = vsel %vm616_vm10, %v600_v19, %v632_v32  ;;  %v651_v19 = vsel %vm619_vm12, %v603_v54, %v635_v63  ;;  %v2175_v32 = vld [vmem:[%s2631_s29 + $0x1ec] ss:$16 sps:$4 sm:$0xff]   ;;  %v2206_v54 = vld [vmem:[%s2631_s29 + $0x348] ss:$16 sps:$4 sm:$0xff]  }
  0x92   : > { %1510 = vmatpush2.bf16.msra.mxu1 %v2106_v46  ;;  %1458 = vmatprep.subr.bf16.mxu0 %v2107_v7  ;;  %v652_v46 = vsel %vm620_vm11, %v604_v26, %v636_v4  ;;  %v2142_v7 = vld [vmem:[%s2631_s29 + $0x2ac] ss:$16 sps:$4 sm:$0xff]   ;;  %v2161_v26 = vld [vmem:[%s2631_s29 + $0x28] ss:$16 sps:$4 sm:$0xff]  }
  0x93   : > { %1511 = vmatprep.subr.bf16.mxu1 %v2109_v48  ;;  %v2137_v48 = vld [vmem:[%s2631_s29 + $0xa8] ss:$16 sps:$4 sm:$0xff]   ;;  %v2786_v50 = vpack.c.bf16 %v652_v46, %v648_v45  ;;  %v2181_v0 = vld [vmem:[%s2631_s29 + $0x1cc] ss:$16 sps:$4 sm:$0xff]  }
  0x94   : > { %v2179_v4 = vld [vmem:[%s2631_s29 + $0x1c8] ss:$16 sps:$4 sm:$0xff]  }
  0x95   : > { %1459 = vmatpush2.bf16.msra.mxu0 %v2111_v55  ;;  %v2143_v55 = vld [vmem:[%s2631_s29 + $0x88] ss:$16 sps:$4 sm:$0xff]  }
  0x96   : > { %1512 = vmatpush2.bf16.msra.mxu1 %v2112_v56  ;;  %1460 = vmatprep.subr.bf16.mxu0 %v2113_v59  ;;  %v2146_v56 = vld [vmem:[%s2631_s29 + $0x288] ss:$16 sps:$4 sm:$0xff]   ;;  %v2151_v59 = vld [vmem:[%s2631_s29 + $0x6c] ss:$16 sps:$4 sm:$0xff]  }
  0x97   : > { %1513 = vmatprep.subr.bf16.mxu1 %v2115_v61  ;;  %v515_v61 = vld [vmem:[%s2906_s0 + $0x38] sm:$0xff] }
  0x98   : > { %v531_v62 = vunpack.c.h.bf16 %v515_v61  ;;  %v530_v1 = vunpack.c.l.bf16 %v515_v61  ;;  %v2191_v45 = vld [vmem:[%s2631_s29 + $0x188] ss:$16 sps:$4 sm:$0xff]   ;;  %v2220_v61 = vld [vmem:[%s2631_s29 + $0x30c] ss:$16 sps:$4 sm:$0xff]  }
  0x99   : > { %1461 = vmatpush2.bf16.msra.mxu0 %v2117_v10  ;;  %v2194_v46 = vld [vmem:[%s2631_s29 + $0x388] ss:$16 sps:$4 sm:$0xff]  }
  0x9a   : > { %1514 = vmatpush2.bf16.msra.mxu1 %v2118_v11  ;;  %1462 = vmatprep.subr.bf16.mxu0 %v2119_v13  ;;  %v569_v10 = vmul.f32 %v2651_v21, %v531_v62  ;;  %v568_v11 = vmul.f32 %v2720_v34, %v530_v1  ;;  %v2160_v13 = vld [vmem:[%s2631_s29 + $0x24c] ss:$16 sps:$4 sm:$0xff]   ;;  %v2215_v62 = vld [vmem:[%s2631_s29 + $0x108] ss:$16 sps:$4 sm:$0xff]  }
  0x9b   : > { %1515 = vmatprep.subr.bf16.mxu1 %v2121_v15  ;;  %v2158_v15 = vld [vmem:[%s2631_s29 + $0x248] ss:$16 sps:$4 sm:$0xff]  }
  0x9c   : > { %v606_v16 = vadd.f32 %v2736_v43, %v568_v11  ;;  %v2218_v63 = vld [vmem:[%s2631_s29 + $0x308] ss:$16 sps:$4 sm:$0xff]  }
  0x9d   : > { %1463 = vmatpush2.bf16.msra.mxu0 %v2123_v20  ;;  %v650_v20 = vsel %vm618_vm13, %v602_v57, %v634_v8  ;;  %v2209_v57 = vld [vmem:[%s2631_s29 + $0x128] ss:$16 sps:$4 sm:$0xff]  }
  0x9e   : > { %1516 = vmatpush2.bf16.msra.mxu1 %v2124_v22  ;;  %1538 = vmatprep.subr.bf16.mxu0 %v2127_v29  ;;  %vm622_vm15 = vcmp.ge.f32.partialorder %v606_v16, 0.0  ;;  %v638_v34 = vmul.f32 0.2, %v606_v16  ;;  %v2166_v22 = vld [vmem:[%s2631_s29 + $0x22c] ss:$16 sps:$4 sm:$0xff]  }
  0x9f   : > { %1591 = vmatprep.subr.bf16.mxu1 %v2130_v30  ;;  %v2172_v29 = vld [vmem:[%s2631_s29 + $0x20c] ss:$16 sps:$4 sm:$0xff]   ;;  %v2167_v30 = vld [vmem:[%s2631_s29 + $0x8] ss:$16 sps:$4 sm:$0xff]  }
  0xa0   : > { %1465 = vmatmul.mubr.bf16.vlgmr.msra.gmra.mxu0 %v2766_v33 }
  0xa1   : > { %1518 = vmatmul.mubr.bf16.vlgmr.msra.gmra.mxu1 %v2768_v5  ;;  %1539 = vmatpush1.bf16.msra.mxu0 %v2125_v35  ;;  %v2178_v35 = vld [vmem:[%s2631_s29 + $0x3ec] ss:$16 sps:$4 sm:$0xff]  }
  0xa2   : > { %1592 = vmatpush1.bf16.msra.mxu1 %v2128_v36  ;;  %1540 = vmatprep.subr.bf16.mxu0 %v2133_v2  ;;  %v2173_v36 = vld [vmem:[%s2631_s29 + $0x1e8] ss:$16 sps:$4 sm:$0xff]   ;;  %v2184_v2 = vld [vmem:[%s2631_s29 + $0x3cc] ss:$16 sps:$4 sm:$0xff]  }
  0xa3   : > { %1593 = vmatprep.subr.bf16.mxu1 %v2136_v3  ;;  %1474 = vmatprep.mubr.bf16.mxu0 %v2774_v38  ;;  %v2182_v3 = vld [vmem:[%s2631_s29 + $0x3c8] ss:$16 sps:$4 sm:$0xff]  }
  0xa5   : > { %1541 = vmatpush1.bf16.msra.mxu0 %v2131_v40  ;;  %v2185_v40 = vld [vmem:[%s2631_s29 + $0x1a8] ss:$16 sps:$4 sm:$0xff]  }
  0xa6   : > { %1594 = vmatpush1.bf16.msra.mxu1 %v2134_v41  ;;  %1542 = vmatprep.subr.bf16.mxu0 %v2139_v44  ;;  %v2188_v41 = vld [vmem:[%s2631_s29 + $0x3a8] ss:$16 sps:$4 sm:$0xff]   ;;  %v2196_v44 = vld [vmem:[%s2631_s29 + $0x38c] ss:$16 sps:$4 sm:$0xff]  }
  0xa7   : > { %1595 = vmatprep.subr.bf16.mxu1 %v2142_v7  ;;  %v2199_v7 = vld [vmem:[%s2631_s29 + $0x16c] ss:$16 sps:$4 sm:$0xff]  }
  0xa8   : > { %1475 = vmatmul.mubr.bf16.gmra.mxu0 %v2786_v50 }
  0xa9   : > { %1543 = vmatpush1.bf16.msra.mxu0 %v2137_v48  ;;  %1570 = vmatprep.mubr.bf16.mxu0 %v2681_v52  ;;  %v607_v52 = vadd.f32 %v2656_v24, %v569_v10  ;;  %v654_v24 = vsel %vm622_vm15, %v606_v16, %v638_v34  ;;  %v2197_v48 = vld [vmem:[%s2631_s29 + $0x168] ss:$16 sps:$4 sm:$0xff]  }
  0xaa   : > { %1596 = vmatpush1.bf16.msra.mxu1 %v2140_v49  ;;  %1544 = vmatprep.subr.bf16.mxu0 %v2145_v51  ;;  %v2816_v25 = vpack.c.bf16 %v654_v24, %v650_v20  ;;  %v2200_v49 = vld [vmem:[%s2631_s29 + $0x368] ss:$16 sps:$4 sm:$0xff]   ;;  %v2208_v51 = vld [vmem:[%s2631_s29 + $0x34c] ss:$16 sps:$4 sm:$0xff]  }
  0xab   : > { %1597 = vmatprep.subr.bf16.mxu1 %v2148_v53  ;;  %vm623_vm14 = vcmp.ge.f32.partialorder %v607_v52, 0.0  ;;  %v639_v21 = vmul.f32 0.2, %v607_v52  ;;  %v2203_v53 = vld [vmem:[%s2631_s29 + $0x148] ss:$16 sps:$4 sm:$0xff]  }
  0xad   : > { %1545 = vmatpush1.bf16.msra.mxu0 %v2143_v55  ;;  %v655_v23 = vsel %vm623_vm14, %v607_v52, %v639_v21  ;;  %v2211_v55 = vld [vmem:[%s2631_s29 + $0x12c] ss:$16 sps:$4 sm:$0xff]  }
  0xae   : > { %1598 = vmatpush1.bf16.msra.mxu1 %v2146_v56  ;;  %1546 = vmatprep.subr.bf16.mxu0 %v2151_v59  ;;  %v2814_v43 = vpack.c.bf16 %v655_v23, %v651_v19  ;;  %v2214_v56 = vld [vmem:[%s2631_s29 + $0x32c] ss:$16 sps:$4 sm:$0xff]   ;;  %v2212_v59 = vld [vmem:[%s2631_s29 + $0x328] ss:$16 sps:$4 sm:$0xff]  }
  0xaf   : > { %1599 = vmatprep.subr.bf16.mxu1 %v2154_v60  ;;  %v2217_v60 = vld [vmem:[%s2631_s29 + $0x10c] ss:$16 sps:$4 sm:$0xff]  }
  0xb0   : > { %1527 = vmatprep.mubr.bf16.mxu1 %v2814_v43 }
  0xb1   : > { %1547 = vmatpush1.bf16.msra.mxu0 %v2149_v18  ;;  %1528 = vmatmul.mubr.bf16.gmra.mxu1 %v2816_v25 }
  0xb2   : > { %1600 = vmatpush1.bf16.msra.mxu1 %v2152_v9  ;;  %1548 = vmatprep.subr.bf16.mxu0 %v2157_v12 }
  0xb3   : > { %1601 = vmatprep.subr.bf16.mxu1 %v2160_v13  ;;  %1623 = vmatprep.mubr.bf16.mxu1 %v2687_v58  ;;  %v2187_v58 = vld [vmem:[%s2631_s29 + $0x1ac] ss:$16 sps:$4 sm:$0xff]  }
  0xb5   : > { %1549 = vmatpush1.bf16.msra.mxu0 %v2155_v14 }
  0xb6   : > { %1602 = vmatpush1.bf16.msra.mxu1 %v2158_v15  ;;  %1550 = vmatprep.subr.bf16.mxu0 %v2163_v17 }
  0xb7   : > { %1603 = vmatprep.subr.bf16.mxu1 %v2166_v22 }
  0xb9   : > { %1551 = vmatpush1.bf16.msra.mxu0 %v2161_v26 }
  0xba   : > { %1604 = vmatpush1.bf16.msra.mxu1 %v2164_v27  ;;  %1552 = vmatprep.subr.bf16.mxu0 %v2169_v28 }
  0xbb   : > { %1605 = vmatprep.subr.bf16.mxu1 %v2172_v29 }
  0xbd   : > { %1553 = vmatpush1.bf16.msra.mxu0 %v2167_v30 }
  0xbe   : > { %1606 = vmatpush1.bf16.msra.mxu1 %v2170_v31  ;;  %1554 = vmatprep.subr.bf16.mxu0 %v2175_v32 }
  0xbf   : > { %1607 = vmatprep.subr.bf16.mxu1 %v2178_v35 }
  0xc1   : > { %1555 = vmatpush2.bf16.msra.mxu0 %v2173_v36 }
  0xc2   : > { %1608 = vmatpush2.bf16.msra.mxu1 %v2176_v37  ;;  %1556 = vmatprep.subr.bf16.mxu0 %v2181_v0 }
  0xc3   : > { %1609 = vmatprep.subr.bf16.mxu1 %v2184_v2 }
  0xc5   : > { %1557 = vmatpush2.bf16.msra.mxu0 %v2179_v4 }
  0xc6   : > { %1610 = vmatpush2.bf16.msra.mxu1 %v2182_v3  ;;  %1558 = vmatprep.subr.bf16.mxu0 %v2187_v58 }
  0xc7   : > { %1611 = vmatprep.subr.bf16.mxu1 %v2190_v39 }
  0xc9   : > { %1559 = vmatpush2.bf16.msra.mxu0 %v2185_v40 }
  0xca   : > { %1612 = vmatpush2.bf16.msra.mxu1 %v2188_v41  ;;  %1560 = vmatprep.subr.bf16.mxu0 %v2193_v42 }
  0xcb   : > { %1613 = vmatprep.subr.bf16.mxu1 %v2196_v44 }
  0xcd   : > { %1561 = vmatpush2.bf16.msra.mxu0 %v2191_v45 }
  0xce   : > { %1614 = vmatpush2.bf16.msra.mxu1 %v2194_v46  ;;  %1562 = vmatprep.subr.bf16.mxu0 %v2199_v7 }
  0xcf   : > { %1615 = vmatprep.subr.bf16.mxu1 %v2202_v47 }
  0xd1   : > { %1563 = vmatpush2.bf16.msra.mxu0 %v2197_v48 }
  0xd2   : > { %1616 = vmatpush2.bf16.msra.mxu1 %v2200_v49  ;;  %1564 = vmatprep.subr.bf16.mxu0 %v2205_v6 }
  0xd3   : > { %1617 = vmatprep.subr.bf16.mxu1 %v2208_v51 }
  0xd5   : > { %1565 = vmatpush2.bf16.msra.mxu0 %v2203_v53 }
  0xd6   : > { %1618 = vmatpush2.bf16.msra.mxu1 %v2206_v54  ;;  %1566 = vmatprep.subr.bf16.mxu0 %v2211_v55 }
  0xd7   : > { %1619 = vmatprep.subr.bf16.mxu1 %v2214_v56 }
  0xd9   : > { %1567 = vmatpush2.bf16.msra.mxu0 %v2209_v57 }
  0xda   : > { %1620 = vmatpush2.bf16.msra.mxu1 %v2212_v59  ;;  %1568 = vmatprep.subr.bf16.mxu0 %v2217_v60 }
  0xdb   : > { %1621 = vmatprep.subr.bf16.mxu1 %v2220_v61 }
  0xdd   : > { %1569 = vmatpush2.bf16.msra.mxu0 %v2215_v62 }
  0xde   : > { %1622 = vmatpush2.bf16.msra.mxu1 %v2218_v63 }
  0xe0   : > { %1571 = vmatmul.mubr.bf16.vlgmr.msra.gmra.mxu0 %v2766_v33 }
  0xe1   : > { %1624 = vmatmul.mubr.bf16.vlgmr.msra.gmra.mxu1 %v2768_v5  ;;  %1580 = vmatprep.mubr.bf16.mxu0 %v2774_v38 }
  0xe2   : > { %1633 = vmatprep.mubr.bf16.mxu1 %v2814_v43 }
  0xe8   : > { %1581 = vmatmul.mubr.bf16.gmra.mxu0 %v2786_v50 }
  0xe9   : > { %1634 = vmatmul.mubr.bf16.gmra.mxu1 %v2816_v25 }
 0x160   : > { %v1466_v1 = vpop.f32.mrf.mxu0 }
 0x161   : > { %v1519_v18 = vpop.f32.mrf.mxu1 }
 0x162   : > { %v1520_v8 = vadd.f32 %v1519_v18, %v1466_v1  ;;  %v1468_v9 = vpop.f32.mrf.mxu0 }
 0x163   : > { %v1521_v10 = vpop.f32.mrf.mxu1 }
 0x164   : > { %v1522_v11 = vadd.f32 %v1521_v10, %v1468_v9  ;;  %v1470_v12 = vpop.f32.mrf.mxu0 }
 0x165   : > { %v1523_v33 = vpop.f32.mrf.mxu1 }
 0x166   : > { %v1980_v13 = vpack.c.bf16 %v1522_v11, %v1520_v8  ;;  %v1472_v5 = vpop.f32.mrf.mxu0  ;;  %v1524_v38 = vadd.f32 %v1523_v33, %v1470_v12 }
 0x167   : > { %v1525_v14 = vpop.f32.mrf.mxu1 }
 0x168   : > { %1692 = vst [vmem:[%s2867_s14] sm:$0xff] %v1980_v13  ;;  %v1526_v50 = vadd.f32 %v1525_v14, %v1472_v5  ;;  %v1476_v52 = vpop.f32.mrf.mxu0 }
 0x16a   : > { %v1982_v15 = vpack.c.bf16 %v1526_v50, %v1524_v38  ;;  %v1478_v16 = vpop.f32.mrf.mxu0 }
 0x16c   : > { %1694 = vst [vmem:[%s2867_s14 + $0x10] sm:$0xff] %v1982_v15  ;;  %v1480_v19 = vpop.f32.mrf.mxu0 }
 0x16e   : > { %v1482_v23 = vpop.f32.mrf.mxu0 }
 0x16f   : > { %v1725_v55 = vld [vmem:[%s2867_s14] sm:$0xff] (%p2321_p6) }
 0x170   : > { %1726 = vst [vmem:[%s1712_s22] sm:$0xff] (%p2321_p6), %v1725_v55 }
 0x171   : > { %v1529_v17 = vpop.f32.mrf.mxu1 }
 0x172   : > { %v1530_v20 = vadd.f32 %v1529_v17, %v1476_v52 }
 0x173   : > { %v1531_v21 = vpop.f32.mrf.mxu1  ;;  %v1729_v57 = vld [vmem:[%s2867_s14 + $0x10] sm:$0xff] (%p2321_p6) }
 0x174   : > { %v1532_v34 = vadd.f32 %v1531_v21, %v1478_v16  ;;  %1730 = vst [vmem:[%s1712_s22 + $0xc0] sm:$0xff] (%p2321_p6), %v1729_v57 }
 0x175   : > { %v1533_v22 = vpop.f32.mrf.mxu1 }
 0x176   : > { %v1984_v24 = vpack.c.bf16 %v1532_v34, %v1530_v20  ;;  %v1534_v43 = vadd.f32 %v1533_v22, %v1480_v19 }
 0x177   : > { %v1535_v25 = vpop.f32.mrf.mxu1 }
 0x178   : > { %1696 = vst [vmem:[%s2867_s14 + $0x20] sm:$0xff] %v1984_v24  ;;  %v1536_v26 = vadd.f32 %v1535_v25, %v1482_v23 }
 0x17a   : > { %v1986_v27 = vpack.c.bf16 %v1536_v26, %v1534_v43 }
 0x17c   : > { %1698 = vst [vmem:[%s2867_s14 + $0x30] sm:$0xff] %v1986_v27 }
 0x17f   : > { %v1733_v60 = vld [vmem:[%s2867_s14 + $0x20] sm:$0xff] (%p2321_p6) }
 0x180   : > { %1734 = vst [vmem:[%s1712_s22 + $0x180] sm:$0xff] (%p2321_p6), %v1733_v60 }
 0x183   : > { %v1737_v62 = vld [vmem:[%s2867_s14 + $0x30] sm:$0xff] (%p2321_p6) }
 0x184   : > { %1738 = vst [vmem:[%s1712_s22 + $0x240] sm:$0xff] (%p2321_p6), %v1737_v62 }
 0x1a0   : > { %v1572_v28 = vpop.f32.mrf.mxu0 }
 0x1a1   : > { %v1625_v29 = vpop.f32.mrf.mxu1 }
 0x1a2   : > { %v1574_v30 = vpop.f32.mrf.mxu0  ;;  %v1626_v32 = vadd.f32 %v1625_v29, %v1572_v28 }
 0x1a3   : > { %v1627_v31 = vpop.f32.mrf.mxu1 }
 0x1a4   : > { %v1628_v35 = vadd.f32 %v1627_v31, %v1574_v30  ;;  %v1576_v36 = vpop.f32.mrf.mxu0 }
 0x1a5   : > { %v1629_v37 = vpop.f32.mrf.mxu1 }
 0x1a6   : > { %v1981_v0 = vpack.c.bf16 %v1628_v35, %v1626_v32  ;;  %v1578_v2 = vpop.f32.mrf.mxu0  ;;  %v1630_v3 = vadd.f32 %v1629_v37, %v1576_v36 }
 0x1a7   : > { %v1631_v4 = vpop.f32.mrf.mxu1 }
 0x1a8   : > { %1693 = vst [vmem:[%s2867_s14 + $0x8] sm:$0xff] %v1981_v0  ;;  %v1632_v58 = vadd.f32 %v1631_v4, %v1578_v2  ;;  %v1582_v39 = vpop.f32.mrf.mxu0 }
 0x1a9   : > { %v1635_v40 = vpop.f32.mrf.mxu1 }
 0x1aa   : > { %v1983_v41 = vpack.c.bf16 %v1632_v58, %v1630_v3  ;;  %v1584_v42 = vpop.f32.mrf.mxu0  ;;  %v1636_v45 = vadd.f32 %v1635_v40, %v1582_v39 }
 0x1ab   : > { %v1637_v44 = vpop.f32.mrf.mxu1 }
 0x1ac   : > { %1695 = vst [vmem:[%s2867_s14 + $0x18] sm:$0xff] %v1983_v41  ;;  %v1638_v46 = vadd.f32 %v1637_v44, %v1584_v42  ;;  %v1586_v7 = vpop.f32.mrf.mxu0 }
 0x1ad   : > { %v1639_v47 = vpop.f32.mrf.mxu1 }
 0x1ae   : > { %v1985_v48 = vpack.c.bf16 %v1638_v46, %v1636_v45  ;;  %v1588_v49 = vpop.f32.mrf.mxu0  ;;  %v1640_v51 = vadd.f32 %v1639_v47, %v1586_v7 }
 0x1af   : > { %v1641_v6 = vpop.f32.mrf.mxu1  ;;  %v1727_v56 = vld [vmem:[%s2867_s14 + $0x8] sm:$0xff] (%p2321_p6) }
 0x1b0   : > { %1697 = vst [vmem:[%s2867_s14 + $0x28] sm:$0xff] %v1985_v48  ;;  %v1642_v53 = vadd.f32 %v1641_v6, %v1588_v49  ;;  %1706 = sbr.rel (!%p2321_p6) target bundleno = 445 (0x1bd), region = 63  ;;  %1728 = vst [vmem:[%s1712_s22 + $0x8] sm:$0xff] (%p2321_p6), %v1727_v56 }
 0x1b2   : > { %v1987_v54 = vpack.c.bf16 %v1642_v53, %v1640_v51 }
 0x1b3   : > { %v1731_v59 = vld [vmem:[%s2867_s14 + $0x18] sm:$0xff] (%p2321_p6) }
 0x1b4   : > { %1699 = vst [vmem:[%s2867_s14 + $0x38] sm:$0xff] %v1987_v54  ;;  %1732 = vst [vmem:[%s1712_s22 + $0xc8] sm:$0xff] (%p2321_p6), %v1731_v59 }
 0x1b7   : > { %v1735_v61 = vld [vmem:[%s2867_s14 + $0x28] sm:$0xff] }
 0x1b8   : > { %1736 = vst [vmem:[%s1712_s22 + $0x188] sm:$0xff] %v1735_v61 }
 0x1bb   : > { %v1739_v63 = vld [vmem:[%s2867_s14 + $0x38] sm:$0xff] }
 0x1bc   : > { %1740 = vst [vmem:[%s1712_s22 + $0x248] sm:$0xff] %v1739_v63 }
 0x1bd PF: > { %s14_s19 = sadd.s32 1, %s2259_s19   ;;  %s2912_s15 = smov %s2247_s16 }
 0x1be   : > { %p11_p11 = scmp.ge.s32.totalorder %s14_s19, 14   ;;  %s2913_s16 = smov %s2326_s25 }
 0x1bf   : > { %s2914_s17 = smov %s2255_s18  ;;  %s2915_s18 = smov %s2917_s20 }
 0x1c0   :  { %13 = sbr.rel (!%p11_p11) target bundleno = 3 (0x3), region = 120 }

// kernel: generator_forward.13
= control target key start
LH: loop header
LB: loop body
LE: loop exit
PB: predicated region body
PF: predicated region fallthrough
CT: control target
= control target key end

     0   :  { %v14_v0 = vlaneseq  ;;  %v700_v1 = vmov 0  ;;  %v380_v2 = vmov 0.0   ;;  %v381_v11 = vmov 1966171168   ;;  %s693_s1 = inlined_call_operand.vmem [shape: f32[1,384], index: 1, kind: output, shape index: {0}]   ;;  %s694_s2 = inlined_call_operand.vmem [shape: f32[1,384], index: 2, kind: output, shape index: {1}]   ;;  %s695_s0 = inlined_call_operand.vmem [shape: bf16[128,384], index: 0, kind: input, shape index: {}]  }
   0x1   :  { %v416_v3 = vld [vmem:[%s695_s0] sm:$0xff]  ;;  %v21_v4 = vld [vmem:[%s695_s0 + $0x8] ss:$12 sps:$4 sm:$0xff]   ;;  %v424_v5 = vld [vmem:[%s695_s0 + $0xc] sm:$0xff]  ;;  %v445_v12 = vunpack.c.l.s4 %v381_v11 }
   0x2   :  { %vm399_vm0 = vcmp.lt.s32.totalorder %v14_v0, 384  ;;  %v429_v6 = vld [vmem:[%s695_s0 + $0x18] sm:$0xff]  ;;  %v25_v7 = vld [vmem:[%s695_s0 + $0x20] ss:$12 sps:$4 sm:$0xff]   ;;  %v437_v8 = vld [vmem:[%s695_s0 + $0x24] sm:$0xff]  ;;  %v52_v10 = vunpack.c.l.bf16 %v416_v3  ;;  %v53_v15 = vunpack.c.h.bf16 %v416_v3  ;;  %v456_v16 = vunpack.c.l.bf16 %v21_v4 }
   0x3   :  { %v701_v1 = vsel %vm399_vm0, 4294967295, %v700_v1  ;;  %18 = vst.msk [vmem:[%s693_s1] sm:$0x7] %vm399_vm0, %v380_v2  ;;  %19 = vst.msk [vmem:[%s694_s2] sm:$0x7] %vm399_vm0, %v380_v2  ;;  %v442_v9 = vld [vmem:[%s695_s0 + $0x30] sm:$0xff]  ;;  %v55_v17 = vunpack.c.l.bf16 %v424_v5  ;;  %v56_v18 = vunpack.c.h.bf16 %v424_v5  ;;  %v468_v21 = vunpack.c.h.bf16 %v21_v4 }
   0x4   :  { %702 = vst [vmem:[#allocation2_spill] sm:$0xff] %v701_v1  ;;  %v29_v13 = vld [vmem:[%s695_s0 + $0x38] ss:$12 sps:$4 sm:$0xff]   ;;  %v453_v14 = vld [vmem:[%s695_s0 + $0x3c] sm:$0xff]  ;;  %v463_v19 = vld [vmem:[%s695_s0 + $0x48] sm:$0xff]  ;;  %v58_v22 = vunpack.c.l.bf16 %v429_v6  ;;  %v59_v23 = vunpack.c.h.bf16 %v429_v6  ;;  %v472_v24 = vunpack.c.l.bf16 %v25_v7  ;;  %v61_v26 = vunpack.c.l.bf16 %v437_v8 }
   0x5   :  { %v33_v20 = vld [vmem:[%s695_s0 + $0x50] ss:$12 sps:$4 sm:$0xff]   ;;  %v477_v25 = vld [vmem:[%s695_s0 + $0x54] sm:$0xff]  ;;  %v62_v27 = vunpack.c.h.bf16 %v437_v8  ;;  %v481_v28 = vunpack.c.h.bf16 %v25_v7  ;;  %v64_v29 = vunpack.c.l.bf16 %v442_v9  ;;  %v487_v30 = vld [vmem:[%s695_s0 + $0x60] sm:$0xff]  ;;  %v65_v31 = vunpack.c.h.bf16 %v442_v9 }
   0x6   :  { %v490_v32 = vunpack.c.l.bf16 %v29_v13  ;;  %v67_v33 = vunpack.c.l.bf16 %v453_v14  ;;  %v68_v34 = vunpack.c.h.bf16 %v453_v14  ;;  %v37_v35 = vld [vmem:[%s695_s0 + $0x68] ss:$12 sps:$4 sm:$0xff]   ;;  %v497_v36 = vunpack.c.h.bf16 %v29_v13  ;;  %v506_v40 = vld [vmem:[%s695_s0 + $0x6c] sm:$0xff]  ;;  %v511_v41 = vld [vmem:[%s695_s0 + $0x78] sm:$0xff] }
   0x7   :  { %v70_v37 = vunpack.c.l.bf16 %v463_v19  ;;  %v71_v38 = vunpack.c.h.bf16 %v463_v19  ;;  %v501_v39 = vunpack.c.l.bf16 %v33_v20  ;;  %v73_v42 = vunpack.c.l.bf16 %v477_v25  ;;  %v41_v50 = vld [vmem:[%s695_s0 + $0x80] ss:$12 sps:$4 sm:$0xff]   ;;  %v527_v51 = vld [vmem:[%s695_s0 + $0x84] sm:$0xff]  ;;  %v535_v56 = vld [vmem:[%s695_s0 + $0x90] sm:$0xff] }
   0x8   :  { %v101_v43 = vadd.f32 %v55_v17, %v52_v10  ;;  %v122_v44 = vadd.f32 %v56_v18, %v53_v15  ;;  %v143_v45 = vadd.f32 %v468_v21, %v456_v16  ;;  %v74_v46 = vunpack.c.h.bf16 %v477_v25  ;;  %v45_v61 = vld [vmem:[%s695_s0 + $0x98] ss:$12 sps:$4 sm:$0xff]   ;;  %v548_v62 = vld [vmem:[%s695_s0 + $0x9c] sm:$0xff]  ;;  %v561_v17 = vld [vmem:[%s695_s0 + $0xa8] sm:$0xff] }
   0x9   :  { %v517_v47 = vunpack.c.h.bf16 %v33_v20  ;;  %v76_v48 = vunpack.c.l.bf16 %v487_v30  ;;  %v77_v49 = vunpack.c.h.bf16 %v487_v30  ;;  %v529_v52 = vunpack.c.l.bf16 %v37_v35  ;;  %703 = vst [vmem:[#allocation3_spill] sm:$0xff] %v548_v62  ;;  %704 = vst [vmem:[#allocation4_spill] sm:$0xff] %v561_v17 }
   0xa   :  { %v102_v53 = vadd.f32 %v101_v43, %v58_v22  ;;  %v123_v54 = vadd.f32 %v122_v44, %v59_v23  ;;  %v144_v55 = vadd.f32 %v143_v45, %v472_v24  ;;  %v79_v57 = vunpack.c.l.bf16 %v506_v40  ;;  %v576_v45 = vld [vmem:[%s695_s0 + $0xb4] sm:$0xff] }
   0xb   :  { %v80_v58 = vunpack.c.h.bf16 %v506_v40  ;;  %v539_v59 = vunpack.c.h.bf16 %v37_v35  ;;  %v82_v60 = vunpack.c.l.bf16 %v511_v41  ;;  %v83_v63 = vunpack.c.h.bf16 %v511_v41 }
   0xc   :  { %v103_v2 = vadd.f32 %v102_v53, %v61_v26  ;;  %v124_v4 = vadd.f32 %v123_v54, %v62_v27  ;;  %v145_v7 = vadd.f32 %v144_v55, %v481_v28  ;;  %v552_v10 = vunpack.c.l.bf16 %v41_v50  ;;  %v49_v26 = vld [vmem:[%s695_s0 + $0xb0] ss:$12 sps:$4 sm:$0xff]  }
   0xd   :  { %v85_v11 = vunpack.c.l.bf16 %v527_v51  ;;  %v86_v13 = vunpack.c.h.bf16 %v527_v51  ;;  %v556_v15 = vunpack.c.h.bf16 %v41_v50  ;;  %v88_v18 = vunpack.c.l.bf16 %v535_v56 }
   0xe   :  { %v104_v20 = vadd.f32 %v103_v2, %v64_v29  ;;  %v125_v22 = vadd.f32 %v124_v4, %v65_v31  ;;  %v146_v23 = vadd.f32 %v145_v7, %v490_v32  ;;  %v89_v27 = vunpack.c.h.bf16 %v535_v56 }
   0xf   :  { %v569_v35 = vunpack.c.l.bf16 %v45_v61  ;;  %v91_v43 = vunpack.c.l.bf16 %v548_v62  ;;  %v92_v44 = vunpack.c.h.bf16 %v548_v62  ;;  %v578_v29 = vunpack.c.h.bf16 %v45_v61 }
  0x10   :  { %v105_v31 = vadd.f32 %v104_v20, %v67_v33  ;;  %v126_v50 = vadd.f32 %v125_v22, %v68_v34  ;;  %v147_v53 = vadd.f32 %v146_v23, %v497_v36  ;;  %v94_v54 = vunpack.c.l.bf16 %v561_v17 }
  0x11   :  { %v95_v55 = vunpack.c.h.bf16 %v561_v17  ;;  %v170_v2 = vunpack.c.0.s8 %v445_v12  ;;  %v585_v4 = vshrl.u32 %v14_v0, 7  ;;  %v587_v7 = vunpack.c.l.bf16 %v49_v26 }
  0x12   :  { %v106_v1 = vadd.f32 %v105_v31, %v70_v37  ;;  %v127_v62 = vadd.f32 %v126_v50, %v71_v38  ;;  %v148_v61 = vadd.f32 %v147_v53, %v501_v39  ;;  %v97_v33 = vunpack.c.l.bf16 %v576_v45 }
  0x13   :  { %v98_v34 = vunpack.c.h.bf16 %v576_v45  ;;  %v592_v20 = vunpack.c.h.bf16 %v49_v26  ;;  %v596_v12 = vsub.s32 %v170_v2, %v585_v4  ;;  %v200_v0 = vmul.f32 %v456_v16, %v456_v16 }
  0x14   :  { %v107_v22 = vadd.f32 %v106_v1, %v73_v42  ;;  %v128_v23 = vadd.f32 %v127_v62, %v74_v46  ;;  %v149_v17 = vadd.f32 %v148_v61, %v517_v47  ;;  %v203_v50 = vmul.f32 %v468_v21, %v468_v21 }
  0x15   :  { %v206_v26 = vmul.f32 %v472_v24, %v472_v24  ;;  %v209_v62 = vmul.f32 %v481_v28, %v481_v28  ;;  %v212_v16 = vmul.f32 %v490_v32, %v490_v32  ;;  %v215_v21 = vmul.f32 %v497_v36, %v497_v36 }
  0x16   :  { %v108_v37 = vadd.f32 %v107_v22, %v76_v48  ;;  %v129_v38 = vadd.f32 %v128_v23, %v77_v49  ;;  %v150_v31 = vadd.f32 %v149_v17, %v529_v52  ;;  %348 = vmul.bf16.f32.vacc0 %v416_v3, %v416_v3 }
  0x17   :  { %349 = vmac.bf16.f32.vacc0 %v424_v5, %v424_v5  ;;  %v288_v28 = vadd.f32 %v203_v50, %v200_v0  ;;  %v221_v36 = vmul.f32 %v517_v47, %v517_v47  ;;  %v224_v61 = vmul.f32 %v529_v52, %v529_v52 }
  0x18   :  { %v109_v1 = vadd.f32 %v108_v37, %v79_v57  ;;  %v130_v42 = vadd.f32 %v129_v38, %v80_v58  ;;  %v151_v46 = vadd.f32 %v150_v31, %v539_v59  ;;  %v218_v57 = vmul.f32 %v501_v39, %v501_v39 }
  0x19   :  { %350 = vmac.bf16.f32.vacc0 %v429_v6, %v429_v6  ;;  %v227_v22 = vmul.f32 %v539_v59, %v539_v59  ;;  %v233_v31 = vmul.f32 %v556_v15, %v556_v15 }
  0x1a   :  { %v110_v48 = vadd.f32 %v109_v1, %v82_v60  ;;  %v131_v49 = vadd.f32 %v130_v42, %v83_v63  ;;  %v152_v17 = vadd.f32 %v151_v46, %v552_v10  ;;  %v289_v63 = vadd.f32 %v288_v28, %v206_v26  ;;  %v706_v28 = vld [vmem:[#allocation4_spill] sm:$0xff] }
  0x1b   :  { %351 = vmac.bf16.f32.vacc0 %v437_v8, %v437_v8 }
  0x1c   :  { %v111_v53 = vadd.f32 %v110_v48, %v85_v11  ;;  %v132_v2 = vadd.f32 %v131_v49, %v86_v13  ;;  %v153_v24 = vadd.f32 %v152_v17, %v556_v15  ;;  %v290_v3 = vadd.f32 %v289_v63, %v209_v62 }
  0x1d   :  { %352 = vmac.bf16.f32.vacc0 %v442_v9, %v442_v9  ;;  %v236_v62 = vmul.f32 %v569_v35, %v569_v35  ;;  %v239_v49 = vmul.f32 %v578_v29, %v578_v29 }
  0x1e   :  { %v112_v32 = vadd.f32 %v111_v53, %v88_v18  ;;  %v133_v58 = vadd.f32 %v132_v2, %v89_v27  ;;  %v154_v60 = vadd.f32 %v153_v24, %v569_v35  ;;  %v291_v6 = vadd.f32 %v290_v3, %v212_v16 }
  0x1f   :  { %353 = vmac.bf16.f32.vacc0 %v453_v14, %v453_v14  ;;  %v242_v35 = vmul.f32 %v587_v7, %v587_v7  ;;  %v245_v2 = vmul.f32 %v592_v20, %v592_v20 }
  0x20   :  { %v113_v11 = vadd.f32 %v112_v32, %v91_v43  ;;  %v134_v39 = vadd.f32 %v133_v58, %v92_v44  ;;  %v155_v13 = vadd.f32 %v154_v60, %v578_v29  ;;  %v292_v8 = vadd.f32 %v291_v6, %v215_v21  ;;  %v705_v29 = vld [vmem:[#allocation3_spill] sm:$0xff] }
  0x21   :  { %354 = vmac.bf16.f32.vacc0 %v463_v19, %v463_v19 }
  0x22   :  { %v114_v5 = vadd.f32 %v113_v11, %v94_v54  ;;  %v135_v18 = vadd.f32 %v134_v39, %v95_v55  ;;  %v156_v27 = vadd.f32 %v155_v13, %v587_v7  ;;  %v293_v52 = vadd.f32 %v292_v8, %v218_v57  ;;  %v100_v57 = vld [vmem:[%s693_s1] sm:$0x7] }
  0x23   :  { %355 = vmac.bf16.f32.vacc0 %v477_v25, %v477_v25 }
  0x24   :  { %v115_v47 = vadd.f32 %v114_v5, %v97_v33  ;;  %v136_v43 = vadd.f32 %v135_v18, %v98_v34  ;;  %v157_v44 = vadd.f32 %v156_v27, %v592_v20  ;;  %v230_v34 = vmul.f32 %v552_v10, %v552_v10 }
  0x25   :  { %v294_v59 = vadd.f32 %v293_v52, %v221_v36  ;;  %356 = vmac.bf16.f32.vacc0 %v487_v30, %v487_v30  ;;  %v382_v36 = vmov 1935823168  }
  0x26   :  { %v116_v54 = vrot.slane %v115_v47, 4  ;;  %v137_v55 = vrot.slane %v136_v43, 4  ;;  %v158_v23 = vrot.slane %v157_v44, 4  ;;  %357 = vmac.bf16.f32.vacc0 %v506_v40, %v506_v40 }
  0x27   :  { %v295_v19 = vadd.f32 %v294_v59, %v224_v61  ;;  %358 = vmac.bf16.f32.vacc0 %v511_v41, %v511_v41  ;;  %v368_v63 = vunpack.c.l.s4 %v382_v36 }
  0x28   :  { %v117_v9 = vadd.f32 %v116_v54, %v115_v47  ;;  %v138_v0 = vadd.f32 %v137_v55, %v136_v43  ;;  %v159_v33 = vadd.f32 %v158_v23, %v157_v44  ;;  %359 = vmac.bf16.f32.vacc0 %v527_v51, %v527_v51 }
  0x29   :  { %v296_v10 = vadd.f32 %v295_v19, %v227_v22  ;;  %360 = vmac.bf16.f32.vacc0 %v535_v56, %v535_v56  ;;  %v369_v11 = vunpack.c.0.s8 %v368_v63  ;;  %v197_v19 = vld [vmem:[%s694_s2] sm:$0x7] }
  0x2a   :  { %v118_v37 = vrot.slane %v117_v9, 2  ;;  %v139_v14 = vrot.slane %v138_v0, 2  ;;  %v160_v38 = vrot.slane %v159_v33, 2  ;;  %361 = vmac.bf16.f32.vacc0 %v705_v29, %v705_v29 }
  0x2b   :  { %v297_v15 = vadd.f32 %v296_v10, %v230_v34  ;;  %362 = vmac.bf16.f32.vacc0 %v706_v28, %v706_v28  ;;  %v372_v39 = vsub.s32 %v369_v11, %v585_v4 }
  0x2c   :  { %v119_v50 = vadd.f32 %v118_v37, %v117_v9  ;;  %v140_v26 = vadd.f32 %v139_v14, %v138_v0  ;;  %v161_v1 = vadd.f32 %v160_v38, %v159_v33  ;;  %363 = vmac.bf16.f32.vacc0 %v576_v45, %v576_v45 }
  0x2d   :  { %v298_v40 = vadd.f32 %v297_v15, %v233_v31 }
  0x2e   :  { %v120_v42 = vrot.slane %v119_v50, 1  ;;  %v141_v25 = vrot.slane %v140_v26, 1  ;;  %v162_v46 = vrot.slane %v161_v1, 1  ;;  %v364_v32 = vmovacc.add.low.vacc0 }
  0x2f   :  { %v299_v41 = vadd.f32 %v298_v40, %v236_v62  ;;  %v365_v20 = vmovacc.add.high.vacc0 }
  0x30   :  { %v121_v16 = vadd.f32 %v120_v42, %v119_v50  ;;  %v142_v30 = vadd.f32 %v141_v25, %v140_v26  ;;  %v163_v48 = vadd.f32 %v162_v46, %v161_v1 }
  0x31   :  { %v300_v51 = vadd.f32 %v299_v41, %v239_v49  ;;  %v366_v58 = vcombine.low %v364_v32, %v365_v20  ;;  %v367_v60 = vcombine.high %v364_v32, %v365_v20 }
  0x32   :  { %v167_v17 = vcombine.low %v121_v16, %v142_v30  ;;  %v181_v21 = vrot.slane %v163_v48, %v596_v12 }
  0x33   :  { %v301_v7 = vadd.f32 %v300_v51, %v242_v35  ;;  %v373_v13 = vrot.slane %v366_v58, %v372_v39  ;;  %v379_v3 = vrot.slane %v367_v60, %v372_v39 }
  0x34   :  { %v174_v53 = vrot.slane %v167_v17, %v596_v12 }
  0x35   :  { %v302_v5 = vadd.f32 %v301_v7, %v245_v2  ;;  %v261_v27 = vrot.slane %v373_v13, 4  ;;  %v282_v61 = vrot.slane %v379_v3, 4 }
  0x36   :  { %v182_v24 = vcombine.low %v174_v53, %v181_v21 }
  0x37   :  { %v303_v6 = vrot.slane %v302_v5, 4  ;;  %v262_v45 = vadd.f32 %v373_v13, %v261_v27  ;;  %v283_v43 = vadd.f32 %v379_v3, %v282_v61 }
  0x38   :  { %v189_v56 = vrot.slane %v182_v24, %v596_v12 }
  0x39   :  { %v304_v44 = vadd.f32 %v303_v6, %v302_v5  ;;  %v263_v22 = vrot.slane %v262_v45, 2  ;;  %v284_v8 = vrot.slane %v283_v43, 2 }
  0x3a   :  { %v191_v18 = vadd.f32 %v189_v56, %v100_v57 }
  0x3b   :  { %v305_v54 = vrot.slane %v304_v44, 2  ;;  %v264_v4 = vadd.f32 %v263_v22, %v262_v45  ;;  %v285_v55 = vadd.f32 %v284_v8, %v283_v43 }
  0x3c   :  { %196 = vst.msk [vmem:[%s693_s1] sm:$0x7] %vm399_vm0, %v191_v18 }
  0x3d   :  { %v306_v23 = vadd.f32 %v305_v54, %v304_v44  ;;  %v265_v52 = vrot.slane %v264_v4, 1  ;;  %v286_v9 = vrot.slane %v285_v55, 1 }
  0x3f   :  { %v307_v0 = vrot.slane %v306_v23, 1  ;;  %v266_v33 = vadd.f32 %v265_v52, %v264_v4  ;;  %v287_v34 = vadd.f32 %v286_v9, %v285_v55 }
  0x41   :  { %v308_v59 = vadd.f32 %v307_v0, %v306_v23  ;;  %v312_v37 = vcombine.low %v266_v33, %v287_v34 }
  0x43   :  { %v326_v14 = vrot.slane %v308_v59, %v596_v12  ;;  %v319_v38 = vrot.slane %v312_v37, %v596_v12 }
  0x45   :  { %v327_v31 = vcombine.low %v319_v38, %v326_v14 }
  0x47   :  { %v334_v50 = vrot.slane %v327_v31, %v596_v12 }
  0x49   :  { %v336_v26 = vadd.f32 %v334_v50, %v197_v19 }
  0x4b   :  { %337 = vst.msk [vmem:[%s694_s2] sm:$0x7] %vm399_vm0, %v336_v26 }

// kernel: generator_forward.14
= control target key start
LH: loop header
LB: loop body
LE: loop exit
PB: predicated region body
PF: predicated region fallthrough
CT: control target
= control target key end

     0   :  { %s2695_s15 = smov 0   ;;  %s2697_s16 = smov 0   ;;  %s3769_s0 = inlined_call_operand.vmem [shape: bf16[128,384], index: 0, kind: input, shape index: {}]   ;;  %s3770_s1 = inlined_call_operand.vmem [shape: f32[1,384], index: 1, kind: input, shape index: {}]   ;;  %s3771_s2 = inlined_call_operand.vmem [shape: f32[1,384], index: 2, kind: input, shape index: {}]   ;;  %s3772_s3 = inlined_call_operand.vmem [shape: bf16[384,3072], index: 3, kind: input, shape index: {}]   ;;  %s3773_s4 = inlined_call_operand.vmem [shape: bf16[128,3072], index: 4, kind: output, shape index: {}]  }
   0x1   :  { %s2699_s17 = smov 0   ;;  %s2701_s18 = smov 0  }
   0x2   :  { %s2703_s19 = smov 0  }
   0x3 LB: > { %s23_s20 = sadd.s32 1, %s2663_s18  ;;  %s2250_s21 = sadd.s32 4294967295, %s2667_s19   ;;  %s2667_s19 = sphi %s2703_s19, %s14_s19   ;;  %s2663_s18 = sphi %s2701_s18, %s3778_s18   ;;  %s2659_s17 = sphi %s2699_s17, %s3777_s17   ;;  %s2655_s16 = sphi %s2697_s16, %s3776_s16   ;;  %s2651_s15 = sphi %s2695_s15, %s3775_s15  }
   0x4   : > { %p24_p0 = scmp.ge.s32.totalorder %s23_s20, 6  ;;  %p108_p1 = scmp.ne.s32.totalorder %s2655_s16, %s2651_s15 }
   0x5   : > { %p109_p2 = scmp.eq.s32.totalorder %s2667_s19, 0  ;;  %p140_p4 = scmp.eq.s32.totalorder %s2250_s21, 5 }
   0x6   : > { %s3780_s20 = smov (%p24_p0, %s23_s20), 0  ;;  %s101_s23 = sadd.s32 1, %s2655_s16 }
   0x7   : > { %p110_p3 = por %p109_p2, %p108_p1  ;;  %s98_s22 = ssub.s32 %s2663_s18, %s3780_s20 }
   0x8   : > { %p99_p5 = scmp.eq.s32.totalorder %s98_s22, 0  ;;  %p2730_p6 = por %p140_p4, %p108_p1 }
   0x9   : > { %p2254_p7 = scmp.ge.s32.totalorder %s2667_s19, 6 }
   0xa   : > { %s2735_s25 = scalar_select %p99_p5, %s2655_s16, %s101_s23  }
   0xb   : > { %178 = sbr.rel (%p2254_p7) target bundleno = 68 (0x44), region = 28 }
  0x10   : > { %181 = sbr.rel (!%p110_p3) target bundleno = 68 (0x44), region = 32  ;;  %s183_s26 = sand.u32 (%p110_p3), 1, %s2655_s16  }
  0x11   : > { %s2392_s27 = sshll.u32 (%p110_p3), %s2663_s18, 4  ;;  %s2442_s28 = smul.u32 (%p110_p3), 768, %s183_s26 }
  0x12   : > { %s2743_s5 = scalar_lea.vmem (%p110_p3), %s3772_s3, %s2392_s27 }
  0x13   : > { %v201_v0 = vld [vmem:[%s2743_s5] sm:$0xff] (%p110_p3)  ;;  %v203_v1 = vld [vmem:[%s2743_s5 + $0x8] sm:$0xff] (%p110_p3)  ;;  %s2751_s6 = scalar_lea.vmem (%p110_p3), [#allocation2], %s2442_s28 }
  0x14   : > { %v205_v2 = vld [vmem:[%s2743_s5 + $0x60] sm:$0xff] (%p110_p3)  ;;  %v207_v3 = vld [vmem:[%s2743_s5 + $0x68] sm:$0xff] (%p110_p3)  ;;  %202 = vst [vmem:[%s2751_s6] sm:$0xff] (%p110_p3), %v201_v0  ;;  %204 = vst [vmem:[%s2751_s6 + $0x8] sm:$0xff] (%p110_p3), %v203_v1 }
  0x15   : > { %v209_v4 = vld [vmem:[%s2743_s5 + $0xc0] sm:$0xff]  ;;  %v211_v5 = vld [vmem:[%s2743_s5 + $0xc8] sm:$0xff]  ;;  %206 = vst [vmem:[%s2751_s6 + $0x10] sm:$0xff] %v205_v2  ;;  %208 = vst [vmem:[%s2751_s6 + $0x18] sm:$0xff] %v207_v3 }
  0x16   : > { %210 = vst [vmem:[%s2751_s6 + $0x20] sm:$0xff] %v209_v4  ;;  %212 = vst [vmem:[%s2751_s6 + $0x28] sm:$0xff] %v211_v5  ;;  %v213_v6 = vld [vmem:[%s2743_s5 + $0x120] sm:$0xff]  ;;  %v215_v7 = vld [vmem:[%s2743_s5 + $0x128] sm:$0xff] }
  0x17   : > { %v217_v8 = vld [vmem:[%s2743_s5 + $0x180] sm:$0xff]  ;;  %214 = vst [vmem:[%s2751_s6 + $0x30] sm:$0xff] %v213_v6  ;;  %216 = vst [vmem:[%s2751_s6 + $0x38] sm:$0xff] %v215_v7  ;;  %v219_v9 = vld [vmem:[%s2743_s5 + $0x188] sm:$0xff] }
  0x18   : > { %218 = vst [vmem:[%s2751_s6 + $0x40] sm:$0xff] %v217_v8  ;;  %v221_v10 = vld [vmem:[%s2743_s5 + $0x1e0] sm:$0xff]  ;;  %v223_v11 = vld [vmem:[%s2743_s5 + $0x1e8] sm:$0xff]  ;;  %220 = vst [vmem:[%s2751_s6 + $0x48] sm:$0xff] %v219_v9 }
  0x19   : > { %222 = vst [vmem:[%s2751_s6 + $0x50] sm:$0xff] %v221_v10  ;;  %224 = vst [vmem:[%s2751_s6 + $0x58] sm:$0xff] %v223_v11  ;;  %v225_v12 = vld [vmem:[%s2743_s5 + $0x240] sm:$0xff]  ;;  %v227_v13 = vld [vmem:[%s2743_s5 + $0x248] sm:$0xff] }
  0x1a   : > { %v229_v14 = vld [vmem:[%s2743_s5 + $0x2a0] sm:$0xff]  ;;  %226 = vst [vmem:[%s2751_s6 + $0x60] sm:$0xff] %v225_v12  ;;  %228 = vst [vmem:[%s2751_s6 + $0x68] sm:$0xff] %v227_v13  ;;  %v231_v15 = vld [vmem:[%s2743_s5 + $0x2a8] sm:$0xff] }
  0x1b   : > { %230 = vst [vmem:[%s2751_s6 + $0x70] sm:$0xff] %v229_v14  ;;  %v233_v16 = vld [vmem:[%s2743_s5 + $0x300] sm:$0xff]  ;;  %v235_v17 = vld [vmem:[%s2743_s5 + $0x308] sm:$0xff]  ;;  %232 = vst [vmem:[%s2751_s6 + $0x78] sm:$0xff] %v231_v15 }
  0x1c   : > { %234 = vst [vmem:[%s2751_s6 + $0x80] sm:$0xff] %v233_v16  ;;  %236 = vst [vmem:[%s2751_s6 + $0x88] sm:$0xff] %v235_v17  ;;  %v237_v18 = vld [vmem:[%s2743_s5 + $0x360] sm:$0xff]  ;;  %v239_v19 = vld [vmem:[%s2743_s5 + $0x368] sm:$0xff] }
  0x1d   : > { %v241_v20 = vld [vmem:[%s2743_s5 + $0x3c0] sm:$0xff]  ;;  %238 = vst [vmem:[%s2751_s6 + $0x90] sm:$0xff] %v237_v18  ;;  %240 = vst [vmem:[%s2751_s6 + $0x98] sm:$0xff] %v239_v19  ;;  %v243_v21 = vld [vmem:[%s2743_s5 + $0x3c8] sm:$0xff] }
  0x1e   : > { %242 = vst [vmem:[%s2751_s6 + $0xa0] sm:$0xff] %v241_v20  ;;  %v245_v22 = vld [vmem:[%s2743_s5 + $0x420] sm:$0xff]  ;;  %v247_v23 = vld [vmem:[%s2743_s5 + $0x428] sm:$0xff]  ;;  %244 = vst [vmem:[%s2751_s6 + $0xa8] sm:$0xff] %v243_v21 }
  0x1f   : > { %246 = vst [vmem:[%s2751_s6 + $0xb0] sm:$0xff] %v245_v22  ;;  %248 = vst [vmem:[%s2751_s6 + $0xb8] sm:$0xff] %v247_v23  ;;  %v249_v24 = vld [vmem:[%s2743_s5 + $0x480] sm:$0xff]  ;;  %v251_v25 = vld [vmem:[%s2743_s5 + $0x488] sm:$0xff] }
  0x20   : > { %v253_v26 = vld [vmem:[%s2743_s5 + $0x4e0] sm:$0xff]  ;;  %250 = vst [vmem:[%s2751_s6 + $0xc0] sm:$0xff] %v249_v24  ;;  %252 = vst [vmem:[%s2751_s6 + $0xc8] sm:$0xff] %v251_v25  ;;  %v255_v27 = vld [vmem:[%s2743_s5 + $0x4e8] sm:$0xff] }
  0x21   : > { %254 = vst [vmem:[%s2751_s6 + $0xd0] sm:$0xff] %v253_v26  ;;  %v257_v28 = vld [vmem:[%s2743_s5 + $0x540] sm:$0xff]  ;;  %v259_v29 = vld [vmem:[%s2743_s5 + $0x548] sm:$0xff]  ;;  %256 = vst [vmem:[%s2751_s6 + $0xd8] sm:$0xff] %v255_v27 }
  0x22   : > { %258 = vst [vmem:[%s2751_s6 + $0xe0] sm:$0xff] %v257_v28  ;;  %260 = vst [vmem:[%s2751_s6 + $0xe8] sm:$0xff] %v259_v29  ;;  %v261_v30 = vld [vmem:[%s2743_s5 + $0x5a0] sm:$0xff]  ;;  %v263_v31 = vld [vmem:[%s2743_s5 + $0x5a8] sm:$0xff] }
  0x23   : > { %v265_v32 = vld [vmem:[%s2743_s5 + $0x600] sm:$0xff]  ;;  %262 = vst [vmem:[%s2751_s6 + $0xf0] sm:$0xff] %v261_v30  ;;  %264 = vst [vmem:[%s2751_s6 + $0xf8] sm:$0xff] %v263_v31  ;;  %v267_v33 = vld [vmem:[%s2743_s5 + $0x608] sm:$0xff] }
  0x24   : > { %266 = vst [vmem:[%s2751_s6 + $0x100] sm:$0xff] %v265_v32  ;;  %v269_v34 = vld [vmem:[%s2743_s5 + $0x660] sm:$0xff]  ;;  %v271_v35 = vld [vmem:[%s2743_s5 + $0x668] sm:$0xff]  ;;  %268 = vst [vmem:[%s2751_s6 + $0x108] sm:$0xff] %v267_v33 }
  0x25   : > { %270 = vst [vmem:[%s2751_s6 + $0x110] sm:$0xff] %v269_v34  ;;  %272 = vst [vmem:[%s2751_s6 + $0x118] sm:$0xff] %v271_v35  ;;  %v273_v36 = vld [vmem:[%s2743_s5 + $0x6c0] sm:$0xff]  ;;  %v275_v37 = vld [vmem:[%s2743_s5 + $0x6c8] sm:$0xff] }
  0x26   : > { %v277_v38 = vld [vmem:[%s2743_s5 + $0x720] sm:$0xff]  ;;  %274 = vst [vmem:[%s2751_s6 + $0x120] sm:$0xff] %v273_v36  ;;  %276 = vst [vmem:[%s2751_s6 + $0x128] sm:$0xff] %v275_v37  ;;  %v279_v39 = vld [vmem:[%s2743_s5 + $0x728] sm:$0xff] }
  0x27   : > { %278 = vst [vmem:[%s2751_s6 + $0x130] sm:$0xff] %v277_v38  ;;  %v281_v40 = vld [vmem:[%s2743_s5 + $0x780] sm:$0xff]  ;;  %v283_v41 = vld [vmem:[%s2743_s5 + $0x788] sm:$0xff]  ;;  %280 = vst [vmem:[%s2751_s6 + $0x138] sm:$0xff] %v279_v39 }
  0x28   : > { %282 = vst [vmem:[%s2751_s6 + $0x140] sm:$0xff] %v281_v40  ;;  %284 = vst [vmem:[%s2751_s6 + $0x148] sm:$0xff] %v283_v41  ;;  %v285_v42 = vld [vmem:[%s2743_s5 + $0x7e0] sm:$0xff]  ;;  %v287_v43 = vld [vmem:[%s2743_s5 + $0x7e8] sm:$0xff] }
  0x29   : > { %v289_v44 = vld [vmem:[%s2743_s5 + $0x840] sm:$0xff]  ;;  %286 = vst [vmem:[%s2751_s6 + $0x150] sm:$0xff] %v285_v42  ;;  %288 = vst [vmem:[%s2751_s6 + $0x158] sm:$0xff] %v287_v43  ;;  %v291_v45 = vld [vmem:[%s2743_s5 + $0x848] sm:$0xff] }
  0x2a   : > { %290 = vst [vmem:[%s2751_s6 + $0x160] sm:$0xff] %v289_v44  ;;  %v293_v46 = vld [vmem:[%s2743_s5 + $0x8a0] sm:$0xff]  ;;  %v295_v47 = vld [vmem:[%s2743_s5 + $0x8a8] sm:$0xff]  ;;  %292 = vst [vmem:[%s2751_s6 + $0x168] sm:$0xff] %v291_v45 }
  0x2b   : > { %294 = vst [vmem:[%s2751_s6 + $0x170] sm:$0xff] %v293_v46  ;;  %296 = vst [vmem:[%s2751_s6 + $0x178] sm:$0xff] %v295_v47  ;;  %v297_v48 = vld [vmem:[%s2743_s5 + $0x900] sm:$0xff]  ;;  %v299_v49 = vld [vmem:[%s2743_s5 + $0x908] sm:$0xff] }
  0x2c   : > { %v301_v50 = vld [vmem:[%s2743_s5 + $0x960] sm:$0xff]  ;;  %298 = vst [vmem:[%s2751_s6 + $0x180] sm:$0xff] %v297_v48  ;;  %300 = vst [vmem:[%s2751_s6 + $0x188] sm:$0xff] %v299_v49  ;;  %v303_v51 = vld [vmem:[%s2743_s5 + $0x968] sm:$0xff] }
  0x2d   : > { %302 = vst [vmem:[%s2751_s6 + $0x190] sm:$0xff] %v301_v50  ;;  %v305_v52 = vld [vmem:[%s2743_s5 + $0x9c0] sm:$0xff]  ;;  %v307_v53 = vld [vmem:[%s2743_s5 + $0x9c8] sm:$0xff]  ;;  %304 = vst [vmem:[%s2751_s6 + $0x198] sm:$0xff] %v303_v51 }
  0x2e   : > { %306 = vst [vmem:[%s2751_s6 + $0x1a0] sm:$0xff] %v305_v52  ;;  %308 = vst [vmem:[%s2751_s6 + $0x1a8] sm:$0xff] %v307_v53  ;;  %v309_v54 = vld [vmem:[%s2743_s5 + $0xa20] sm:$0xff]  ;;  %v311_v55 = vld [vmem:[%s2743_s5 + $0xa28] sm:$0xff] }
  0x2f   : > { %v313_v56 = vld [vmem:[%s2743_s5 + $0xa80] sm:$0xff]  ;;  %310 = vst [vmem:[%s2751_s6 + $0x1b0] sm:$0xff] %v309_v54  ;;  %312 = vst [vmem:[%s2751_s6 + $0x1b8] sm:$0xff] %v311_v55  ;;  %v315_v57 = vld [vmem:[%s2743_s5 + $0xa88] sm:$0xff] }
  0x30   : > { %314 = vst [vmem:[%s2751_s6 + $0x1c0] sm:$0xff] %v313_v56  ;;  %v317_v58 = vld [vmem:[%s2743_s5 + $0xae0] sm:$0xff]  ;;  %v319_v59 = vld [vmem:[%s2743_s5 + $0xae8] sm:$0xff]  ;;  %316 = vst [vmem:[%s2751_s6 + $0x1c8] sm:$0xff] %v315_v57 }
  0x31   : > { %318 = vst [vmem:[%s2751_s6 + $0x1d0] sm:$0xff] %v317_v58  ;;  %320 = vst [vmem:[%s2751_s6 + $0x1d8] sm:$0xff] %v319_v59  ;;  %v321_v60 = vld [vmem:[%s2743_s5 + $0xb40] sm:$0xff]  ;;  %v323_v61 = vld [vmem:[%s2743_s5 + $0xb48] sm:$0xff] }
  0x32   : > { %v325_v62 = vld [vmem:[%s2743_s5 + $0xba0] sm:$0xff]  ;;  %322 = vst [vmem:[%s2751_s6 + $0x1e0] sm:$0xff] %v321_v60  ;;  %324 = vst [vmem:[%s2751_s6 + $0x1e8] sm:$0xff] %v323_v61  ;;  %v327_v63 = vld [vmem:[%s2743_s5 + $0xba8] sm:$0xff] }
  0x33   : > { %326 = vst [vmem:[%s2751_s6 + $0x1f0] sm:$0xff] %v325_v62  ;;  %v329_v0 = vld [vmem:[%s2743_s5 + $0xc00] sm:$0xff]  ;;  %v331_v1 = vld [vmem:[%s2743_s5 + $0xc08] sm:$0xff]  ;;  %328 = vst [vmem:[%s2751_s6 + $0x1f8] sm:$0xff] %v327_v63 }
  0x34   : > { %330 = vst [vmem:[%s2751_s6 + $0x200] sm:$0xff] %v329_v0  ;;  %332 = vst [vmem:[%s2751_s6 + $0x208] sm:$0xff] %v331_v1  ;;  %v333_v2 = vld [vmem:[%s2743_s5 + $0xc60] sm:$0xff]  ;;  %v335_v3 = vld [vmem:[%s2743_s5 + $0xc68] sm:$0xff] }
  0x35   : > { %v337_v4 = vld [vmem:[%s2743_s5 + $0xcc0] sm:$0xff]  ;;  %334 = vst [vmem:[%s2751_s6 + $0x210] sm:$0xff] %v333_v2  ;;  %336 = vst [vmem:[%s2751_s6 + $0x218] sm:$0xff] %v335_v3  ;;  %v339_v5 = vld [vmem:[%s2743_s5 + $0xcc8] sm:$0xff] }
  0x36   : > { %338 = vst [vmem:[%s2751_s6 + $0x220] sm:$0xff] %v337_v4  ;;  %v341_v6 = vld [vmem:[%s2743_s5 + $0xd20] sm:$0xff]  ;;  %v343_v7 = vld [vmem:[%s2743_s5 + $0xd28] sm:$0xff]  ;;  %340 = vst [vmem:[%s2751_s6 + $0x228] sm:$0xff] %v339_v5 }
  0x37   : > { %342 = vst [vmem:[%s2751_s6 + $0x230] sm:$0xff] %v341_v6  ;;  %344 = vst [vmem:[%s2751_s6 + $0x238] sm:$0xff] %v343_v7  ;;  %v345_v8 = vld [vmem:[%s2743_s5 + $0xd80] sm:$0xff]  ;;  %v347_v9 = vld [vmem:[%s2743_s5 + $0xd88] sm:$0xff] }
  0x38   : > { %v349_v10 = vld [vmem:[%s2743_s5 + $0xde0] sm:$0xff]  ;;  %346 = vst [vmem:[%s2751_s6 + $0x240] sm:$0xff] %v345_v8  ;;  %348 = vst [vmem:[%s2751_s6 + $0x248] sm:$0xff] %v347_v9  ;;  %v351_v11 = vld [vmem:[%s2743_s5 + $0xde8] sm:$0xff] }
  0x39   : > { %350 = vst [vmem:[%s2751_s6 + $0x250] sm:$0xff] %v349_v10  ;;  %v353_v12 = vld [vmem:[%s2743_s5 + $0xe40] sm:$0xff]  ;;  %v355_v13 = vld [vmem:[%s2743_s5 + $0xe48] sm:$0xff]  ;;  %352 = vst [vmem:[%s2751_s6 + $0x258] sm:$0xff] %v351_v11 }
  0x3a   : > { %354 = vst [vmem:[%s2751_s6 + $0x260] sm:$0xff] %v353_v12  ;;  %356 = vst [vmem:[%s2751_s6 + $0x268] sm:$0xff] %v355_v13  ;;  %v357_v14 = vld [vmem:[%s2743_s5 + $0xea0] sm:$0xff]  ;;  %v359_v15 = vld [vmem:[%s2743_s5 + $0xea8] sm:$0xff] }
  0x3b   : > { %v361_v16 = vld [vmem:[%s2743_s5 + $0xf00] sm:$0xff]  ;;  %358 = vst [vmem:[%s2751_s6 + $0x270] sm:$0xff] %v357_v14  ;;  %360 = vst [vmem:[%s2751_s6 + $0x278] sm:$0xff] %v359_v15  ;;  %v363_v17 = vld [vmem:[%s2743_s5 + $0xf08] sm:$0xff] }
  0x3c   : > { %362 = vst [vmem:[%s2751_s6 + $0x280] sm:$0xff] %v361_v16  ;;  %v365_v18 = vld [vmem:[%s2743_s5 + $0xf60] sm:$0xff]  ;;  %v367_v19 = vld [vmem:[%s2743_s5 + $0xf68] sm:$0xff]  ;;  %364 = vst [vmem:[%s2751_s6 + $0x288] sm:$0xff] %v363_v17 }
  0x3d   : > { %366 = vst [vmem:[%s2751_s6 + $0x290] sm:$0xff] %v365_v18  ;;  %368 = vst [vmem:[%s2751_s6 + $0x298] sm:$0xff] %v367_v19  ;;  %v369_v20 = vld [vmem:[%s2743_s5 + $0xfc0] sm:$0xff]  ;;  %v371_v21 = vld [vmem:[%s2743_s5 + $0xfc8] sm:$0xff] }
  0x3e   : > { %v373_v22 = vld [vmem:[%s2743_s5 + $0x1020] sm:$0xff]  ;;  %370 = vst [vmem:[%s2751_s6 + $0x2a0] sm:$0xff] %v369_v20  ;;  %372 = vst [vmem:[%s2751_s6 + $0x2a8] sm:$0xff] %v371_v21  ;;  %v375_v23 = vld [vmem:[%s2743_s5 + $0x1028] sm:$0xff] }
  0x3f   : > { %374 = vst [vmem:[%s2751_s6 + $0x2b0] sm:$0xff] %v373_v22  ;;  %v377_v24 = vld [vmem:[%s2743_s5 + $0x1080] sm:$0xff]  ;;  %v379_v25 = vld [vmem:[%s2743_s5 + $0x1088] sm:$0xff]  ;;  %376 = vst [vmem:[%s2751_s6 + $0x2b8] sm:$0xff] %v375_v23 }
  0x40   : > { %378 = vst [vmem:[%s2751_s6 + $0x2c0] sm:$0xff] %v377_v24  ;;  %380 = vst [vmem:[%s2751_s6 + $0x2c8] sm:$0xff] %v379_v25  ;;  %v381_v26 = vld [vmem:[%s2743_s5 + $0x10e0] sm:$0xff]  ;;  %v383_v27 = vld [vmem:[%s2743_s5 + $0x10e8] sm:$0xff] }
  0x41   : > { %v385_v28 = vld [vmem:[%s2743_s5 + $0x1140] sm:$0xff]  ;;  %382 = vst [vmem:[%s2751_s6 + $0x2d0] sm:$0xff] %v381_v26  ;;  %384 = vst [vmem:[%s2751_s6 + $0x2d8] sm:$0xff] %v383_v27  ;;  %v387_v29 = vld [vmem:[%s2743_s5 + $0x1148] sm:$0xff] }
  0x42   : > { %386 = vst [vmem:[%s2751_s6 + $0x2e0] sm:$0xff] %v385_v28  ;;  %v389_v30 = vld [vmem:[%s2743_s5 + $0x11a0] sm:$0xff]  ;;  %v391_v31 = vld [vmem:[%s2743_s5 + $0x11a8] sm:$0xff]  ;;  %388 = vst [vmem:[%s2751_s6 + $0x2e8] sm:$0xff] %v387_v29 }
  0x43   : > { %390 = vst [vmem:[%s2751_s6 + $0x2f0] sm:$0xff] %v389_v30  ;;  %392 = vst [vmem:[%s2751_s6 + $0x2f8] sm:$0xff] %v391_v31 }
  0x44 PF: > { %p2257_p8 = scmp.ge.s32.totalorder %s2667_s19, 1  ;;  %p397_p9 = scmp.lt.s32.totalorder %s2667_s19, 7 }
  0x46   : > { %p398_p10 = pnand %p2257_p8, %p397_p9 }
  0x47   : > { %s404_s7 = sand.u32 (!%p398_p10), 1, %s2651_s15  }
  0x48   : > { %401 = sbr.rel (%p398_p10) target bundleno = 459 (0x1cb), region = 55 }
  0x49   : > { %s2443_s8 = smul.u32 (!%p398_p10), 768, %s404_s7 }
  0x4b   : > { %s2945_s9 = scalar_lea.vmem (!%p398_p10), [#allocation2], %s2443_s8 }
  0x4d   : > { %v2669_v32 = vmov 0   ;;  %v527_v33 = vlaneseq  ;;  %v2485_v34 = vld [vmem:[%s2945_s9 + $0xe4] ss:$16 sps:$4 sm:$0xff]   ;;  %v2489_v36 = vld [vmem:[%s2945_s9 + $0xe0] ss:$16 sps:$4 sm:$0xff]   ;;  %s2425_s15 = sshll.u32 (%p2730_p6), %s2659_s17, 4 }
  0x4e   : > { %1544 = vmatprep.mubr.bf16.mxu1 %v2669_v32  ;;  %v2487_v35 = vld [vmem:[%s2945_s9 + $0x2e4] ss:$16 sps:$4 sm:$0xff]   ;;  %1399 = vmatprep.subr.bf16.mxu0 %v2485_v34  ;;  %v2490_v37 = vld [vmem:[%s2945_s9 + $0x2e0] ss:$16 sps:$4 sm:$0xff]   ;;  %s3691_s22 = scalar_lea.vmem (%p2730_p6), %s3773_s4, %s2425_s15 }
  0x4f   : > { %v2951_v38 = vshrl.u32 %v527_v33, 7  ;;  %1512 = vmatprep.subr.bf16.mxu1 %v2487_v35  ;;  %v2491_v39 = vld [vmem:[%s2945_s9 + $0xc4] ss:$16 sps:$4 sm:$0xff]   ;;  %1400 = vmatpush1.bf16.msra.mxu0 %v2489_v36  ;;  %v2495_v41 = vld [vmem:[%s2945_s9 + $0xc0] ss:$16 sps:$4 sm:$0xff]  }
  0x50   : > { %1513 = vmatpush1.bf16.msra.mxu1 %v2490_v37  ;;  %v2493_v40 = vld [vmem:[%s2945_s9 + $0x2c4] ss:$16 sps:$4 sm:$0xff]   ;;  %1401 = vmatprep.subr.bf16.mxu0 %v2491_v39  ;;  %v2496_v42 = vld [vmem:[%s2945_s9 + $0x2c0] ss:$16 sps:$4 sm:$0xff]  }
  0x51   : > { %v446_v43 = vld [vmem:[%s3769_s0 + $0x8] ss:$12 sps:$4 sm:$0xff]   ;;  %v2963_v44 = vld [vmem:[%s3770_s1] sm:$0x7]  ;;  %1514 = vmatprep.subr.bf16.mxu1 %v2493_v40  ;;  %v537_v46 = vsub.s32 2, %v2951_v38  ;;  %v533_v52 = vsub.s32 1, %v2951_v38 }
  0x52   : > { %v2497_v45 = vld [vmem:[%s2945_s9 + $0xa4] ss:$16 sps:$4 sm:$0xff]   ;;  %v2501_v48 = vld [vmem:[%s2945_s9 + $0xa0] ss:$16 sps:$4 sm:$0xff]   ;;  %v479_v54 = vunpack.c.l.bf16 %v446_v43  ;;  %v482_v59 = vunpack.c.h.bf16 %v446_v43 }
  0x53   : > { %v2499_v47 = vld [vmem:[%s2945_s9 + $0x2a4] ss:$16 sps:$4 sm:$0xff]   ;;  %v2502_v49 = vld [vmem:[%s2945_s9 + $0x2a0] ss:$16 sps:$4 sm:$0xff]   ;;  %1402 = vmatpush1.bf16.msra.mxu0 %v2495_v41  ;;  %v2979_v55 = vrot.slane %v2963_v44, %v537_v46  ;;  %v2996_v63 = vrot.slane %v2963_v44, %v533_v52 }
  0x54   : > { %v2973_v50 = vld [vmem:[%s3769_s0] sm:$0xff]  ;;  %1515 = vmatpush1.bf16.msra.mxu1 %v2496_v42  ;;  %1403 = vmatprep.subr.bf16.mxu0 %v2497_v45  ;;  %v2989_v57 = vld [vmem:[%s3769_s0 + $0xc] sm:$0xff] }
  0x55   : > { %v2503_v51 = vld [vmem:[%s2945_s9 + $0x84] ss:$16 sps:$4 sm:$0xff]   ;;  %1516 = vmatprep.subr.bf16.mxu1 %v2499_v47  ;;  %v2984_v56 = vld [vmem:[%s3771_s2] sm:$0x7]  ;;  %v478_v62 = vunpack.c.h.bf16 %v2973_v50  ;;  %v544_v1 = vmul.f32 %v2979_v55, %v479_v54  ;;  %v481_v3 = vunpack.c.h.bf16 %v2989_v57  ;;  %v547_v6 = vmul.f32 %v2979_v55, %v482_v59  ;;  %v458_v35 = vld [vmem:[%s3769_s0 + $0x50] ss:$12 sps:$4 sm:$0xff]  }
  0x56   : > { %v2505_v53 = vld [vmem:[%s2945_s9 + $0x284] ss:$16 sps:$4 sm:$0xff]   ;;  %v2507_v58 = vld [vmem:[%s2945_s9 + $0x80] ss:$16 sps:$4 sm:$0xff]   ;;  %v3001_v2 = vrot.slane %v2984_v56, %v537_v46  ;;  %v3013_v10 = vrot.slane %v2984_v56, %v533_v52  ;;  %v497_v52 = vunpack.c.l.bf16 %v458_v35 }
  0x57   : > { %1404 = vmatpush1.bf16.msra.mxu0 %v2501_v48  ;;  %v2508_v60 = vld [vmem:[%s2945_s9 + $0x280] ss:$16 sps:$4 sm:$0xff]   ;;  %v2509_v61 = vld [vmem:[%s2945_s9 + $0x64] ss:$16 sps:$4 sm:$0xff]   ;;  %v543_v9 = vmul.f32 %v2996_v63, %v478_v62  ;;  %v546_v13 = vmul.f32 %v2996_v63, %v481_v3  ;;  %v529_v48 = vsub.s32 0, %v2951_v38 }
  0x58   : > { %1517 = vmatpush1.bf16.msra.mxu1 %v2502_v49  ;;  %1405 = vmatprep.subr.bf16.mxu0 %v2503_v51  ;;  %v2511_v0 = vld [vmem:[%s2945_s9 + $0x264] ss:$16 sps:$4 sm:$0xff]   ;;  %v2513_v4 = vld [vmem:[%s2945_s9 + $0x60] ss:$16 sps:$4 sm:$0xff]   ;;  %v609_v12 = vadd.f32 %v3001_v2, %v544_v1  ;;  %v612_v15 = vadd.f32 %v3001_v2, %v547_v6  ;;  %v2537_v49 = vld [vmem:[%s2945_s9 + $0xec] ss:$16 sps:$4 sm:$0xff]  }
  0x59   : > { %1518 = vmatprep.subr.bf16.mxu1 %v2505_v53  ;;  %v2514_v5 = vld [vmem:[%s2945_s9 + $0x260] ss:$16 sps:$4 sm:$0xff]   ;;  %v2515_v8 = vld [vmem:[%s2945_s9 + $0x44] ss:$16 sps:$4 sm:$0xff]   ;;  %v608_v20 = vadd.f32 %v3013_v10, %v543_v9  ;;  %v611_v24 = vadd.f32 %v3013_v10, %v546_v13  ;;  %v500_v53 = vunpack.c.h.bf16 %v458_v35  ;;  %v2543_v6 = vld [vmem:[%s2945_s9 + $0xcc] ss:$16 sps:$4 sm:$0xff]   ;;  %v480_v9 = vunpack.c.l.bf16 %v2989_v57 }
  0x5a   : > { %v450_v7 = vld [vmem:[%s3769_s0 + $0x20] ss:$12 sps:$4 sm:$0xff]   ;;  %v2517_v11 = vld [vmem:[%s2945_s9 + $0x244] ss:$16 sps:$4 sm:$0xff]   ;;  %vm657_vm0 = vcmp.ge.f32.partialorder %v609_v12, 0.0  ;;  %vm660_vm1 = vcmp.ge.f32.partialorder %v612_v15, 0.0 }
  0x5b   : > { %1406 = vmatpush1.bf16.msra.mxu0 %v2507_v58  ;;  %v2519_v14 = vld [vmem:[%s2945_s9 + $0x40] ss:$16 sps:$4 sm:$0xff]   ;;  %v485_v16 = vunpack.c.l.bf16 %v450_v7  ;;  %v2521_v18 = vld [vmem:[%s2945_s9 + $0x24] ss:$16 sps:$4 sm:$0xff]   ;;  %v488_v19 = vunpack.c.h.bf16 %v450_v7  ;;  %v705_v23 = vmul.f32 0.2, %v609_v12  ;;  %v562_v7 = vmul.f32 %v2979_v55, %v497_v52 }
  0x5c   : > { %1519 = vmatpush1.bf16.msra.mxu1 %v2508_v60  ;;  %1407 = vmatprep.subr.bf16.mxu0 %v2509_v61  ;;  %v2520_v17 = vld [vmem:[%s2945_s9 + $0x240] ss:$16 sps:$4 sm:$0xff]   ;;  %v2523_v21 = vld [vmem:[%s2945_s9 + $0x224] ss:$16 sps:$4 sm:$0xff]   ;;  %v708_v27 = vmul.f32 0.2, %v612_v15 }
  0x5d   : > { %1520 = vmatprep.subr.bf16.mxu1 %v2511_v0  ;;  %v454_v22 = vld [vmem:[%s3769_s0 + $0x38] ss:$12 sps:$4 sm:$0xff]   ;;  %v2525_v25 = vld [vmem:[%s2945_s9 + $0x20] ss:$16 sps:$4 sm:$0xff]   ;;  %v550_v28 = vmul.f32 %v2979_v55, %v485_v16  ;;  %v553_v30 = vmul.f32 %v2979_v55, %v488_v19  ;;  %vm656_vm2 = vcmp.ge.f32.partialorder %v608_v20, 0.0  ;;  %vm659_vm3 = vcmp.ge.f32.partialorder %v611_v24, 0.0 }
  0x5e   : > { %v2526_v26 = vld [vmem:[%s2945_s9 + $0x220] ss:$16 sps:$4 sm:$0xff]   ;;  %v2527_v29 = vld [vmem:[%s2945_s9 + $0x4] ss:$16 sps:$4 sm:$0xff]   ;;  %v704_v33 = vmul.f32 0.2, %v608_v20  ;;  %v491_v34 = vunpack.c.l.bf16 %v454_v22  ;;  %v494_v39 = vunpack.c.h.bf16 %v454_v22  ;;  %v753_v45 = vsel %vm657_vm0, %v609_v12, %v705_v23 }
  0x5f   : > { %1408 = vmatpush1.bf16.msra.mxu0 %v2513_v4  ;;  %v2529_v31 = vld [vmem:[%s2945_s9 + $0x204] ss:$16 sps:$4 sm:$0xff]   ;;  %v2531_v36 = vld [vmem:[%s2945_s9] ss:$16 sps:$4 sm:$0xff]   ;;  %v615_v37 = vadd.f32 %v3001_v2, %v550_v28  ;;  %v707_v40 = vmul.f32 0.2, %v611_v24  ;;  %v756_v46 = vsel %vm660_vm1, %v612_v15, %v708_v27  ;;  %v618_v47 = vadd.f32 %v3001_v2, %v553_v30 }
  0x60   : > { %1521 = vmatpush1.bf16.msra.mxu1 %v2514_v5  ;;  %1409 = vmatprep.subr.bf16.mxu0 %v2515_v8  ;;  %v752_v41 = vsel %vm656_vm2, %v608_v20, %v704_v33  ;;  %v2532_v42 = vld [vmem:[%s2945_s9 + $0x200] ss:$16 sps:$4 sm:$0xff]   ;;  %v2533_v43 = vld [vmem:[%s2945_s9 + $0x1e4] ss:$16 sps:$4 sm:$0xff]   ;;  %v3052_v59 = vpack.c.bf16 %v756_v46, %v753_v45  ;;  %v2535_v60 = vld [vmem:[%s2945_s9 + $0xe8] ss:$16 sps:$4 sm:$0xff]   ;;  %v556_v62 = vmul.f32 %v2979_v55, %v491_v34  ;;  %v477_v4 = vunpack.c.l.bf16 %v2973_v50 }
  0x61   : > { %1522 = vmatprep.subr.bf16.mxu1 %v2517_v11  ;;  %v755_v51 = vsel %vm659_vm3, %v611_v24, %v707_v40  ;;  %v462_v58 = vld [vmem:[%s3769_s0 + $0x68] ss:$12 sps:$4 sm:$0xff]   ;;  %v2538_v61 = vld [vmem:[%s2945_s9 + $0x1e0] ss:$16 sps:$4 sm:$0xff]   ;;  %v711_v38 = vmul.f32 0.2, %v615_v37  ;;  %v559_v0 = vmul.f32 %v2979_v55, %v494_v39  ;;  %v3061_v5 = vrot.slane %v2963_v44, %v529_v48 }
  0x62   : > { %v3047_v54 = vpack.c.bf16 %v755_v51, %v752_v41  ;;  %v2539_v1 = vld [vmem:[%s2945_s9 + $0x1c4] ss:$16 sps:$4 sm:$0xff]   ;;  %v714_v3 = vmul.f32 0.2, %v618_v47  ;;  %vm663_vm4 = vcmp.ge.f32.partialorder %v615_v37, 0.0  ;;  %vm666_vm5 = vcmp.ge.f32.partialorder %v618_v47, 0.0 }
  0x63   : > { %1410 = vmatpush1.bf16.msra.mxu0 %v2519_v14  ;;  %v565_v8 = vmul.f32 %v2979_v55, %v500_v53  ;;  %v503_v11 = vunpack.c.l.bf16 %v462_v58  ;;  %v3071_v44 = vld [vmem:[%s3769_s0 + $0x18] sm:$0xff]  ;;  %v621_v12 = vadd.f32 %v3001_v2, %v556_v62  ;;  %v624_v13 = vadd.f32 %v3001_v2, %v559_v0  ;;  %v451_v15 = vld [vmem:[%s3769_s0 + $0x24] sm:$0xff]  ;;  %v2544_v16 = vld [vmem:[%s2945_s9 + $0x1c0] ss:$16 sps:$4 sm:$0xff]  }
  0x64   : > { %1523 = vmatpush1.bf16.msra.mxu1 %v2520_v17  ;;  %1411 = vmatprep.subr.bf16.mxu0 %v2521_v18  ;;  %v2541_v50 = vld [vmem:[%s2945_s9 + $0xc8] ss:$16 sps:$4 sm:$0xff]   ;;  %v3078_v14 = vrot.slane %v2984_v56, %v529_v48  ;;  %v506_v57 = vunpack.c.h.bf16 %v462_v58  ;;  %v2545_v17 = vld [vmem:[%s2945_s9 + $0x1a4] ss:$16 sps:$4 sm:$0xff]   ;;  %v759_v18 = vsel %vm663_vm4, %v615_v37, %v711_v38  ;;  %v762_v19 = vsel %vm666_vm5, %v618_v47, %v714_v3  ;;  %v2549_v56 = vld [vmem:[%s2945_s9 + $0xac] ss:$16 sps:$4 sm:$0xff]  }
  0x65   : > { %1524 = vmatprep.subr.bf16.mxu1 %v2523_v21  ;;  %1431 = vmatprep.mubr.bf16.mxu0 %v3047_v54  ;;  %v542_v20 = vmul.f32 %v3061_v5, %v477_v4  ;;  %v3091_v21 = vadd.f32 %v3001_v2, %v562_v7  ;;  %v3094_v22 = vadd.f32 %v3001_v2, %v565_v8  ;;  %v484_v24 = vunpack.c.h.bf16 %v3071_v44  ;;  %v2550_v27 = vld [vmem:[%s2945_s9 + $0x1a0] ss:$16 sps:$4 sm:$0xff]   ;;  %v2561_v53 = vld [vmem:[%s2945_s9 + $0x6c] ss:$16 sps:$4 sm:$0xff]   ;;  %v2559_v62 = vld [vmem:[%s2945_s9 + $0x68] ss:$16 sps:$4 sm:$0xff]  }
  0x66   : > { %v545_v23 = vmul.f32 %v3061_v5, %v480_v9  ;;  %v717_v28 = vmul.f32 0.2, %v621_v12  ;;  %v571_v30 = vmul.f32 %v2979_v55, %v506_v57  ;;  %v720_v33 = vmul.f32 0.2, %v624_v13  ;;  %v2556_v45 = vld [vmem:[%s2945_s9 + $0x180] ss:$16 sps:$4 sm:$0xff]  }
  0x67   : > { %1412 = vmatpush1.bf16.msra.mxu0 %v2525_v25  ;;  %v3098_v25 = vpack.c.bf16 %v762_v19, %v759_v18  ;;  %v607_v34 = vadd.f32 %v3078_v14, %v542_v20  ;;  %v487_v35 = vunpack.c.h.bf16 %v451_v15  ;;  %vm669_vm6 = vcmp.ge.f32.partialorder %v621_v12, 0.0  ;;  %v2562_v4 = vld [vmem:[%s2945_s9 + $0x160] ss:$16 sps:$4 sm:$0xff]   ;;  %v2563_v9 = vld [vmem:[%s2945_s9 + $0x144] ss:$16 sps:$4 sm:$0xff]  }
  0x68   : > { %1525 = vmatpush1.bf16.msra.mxu1 %v2526_v26  ;;  %1413 = vmatprep.subr.bf16.mxu0 %v2527_v29  ;;  %v2547_v26 = vld [vmem:[%s2945_s9 + $0xa8] ss:$16 sps:$4 sm:$0xff]   ;;  %v568_v29 = vmul.f32 %v2979_v55, %v503_v11  ;;  %vm672_vm7 = vcmp.ge.f32.partialorder %v624_v13, 0.0  ;;  %v483_v37 = vunpack.c.l.bf16 %v3071_v44  ;;  %v486_v39 = vunpack.c.l.bf16 %v451_v15  ;;  %v2567_v44 = vld [vmem:[%s2945_s9 + $0x4c] ss:$16 sps:$4 sm:$0xff]  }
  0x69   : > { %1526 = vmatprep.subr.bf16.mxu1 %v2529_v31  ;;  %v2551_v31 = vld [vmem:[%s2945_s9 + $0x184] ss:$16 sps:$4 sm:$0xff]   ;;  %v723_v40 = vmul.f32 0.2, %v3091_v21  ;;  %v726_v41 = vmul.f32 0.2, %v3094_v22  ;;  %v636_v47 = vadd.f32 %v3001_v2, %v571_v30  ;;  %v549_v48 = vmul.f32 %v2996_v63, %v484_v24 }
  0x6a   : > { %vm675_vm8 = vcmp.ge.f32.partialorder %v3091_v21, 0.0  ;;  %v633_v46 = vadd.f32 %v3001_v2, %v568_v29  ;;  %v765_v51 = vsel %vm669_vm6, %v621_v12, %v717_v28  ;;  %v768_v52 = vsel %vm672_vm7, %v624_v13, %v720_v33  ;;  %v2565_v18 = vld [vmem:[%s2945_s9 + $0x48] ss:$16 sps:$4 sm:$0xff]   ;;  %v2569_v29 = vld [vmem:[%s2945_s9 + $0x124] ss:$16 sps:$4 sm:$0xff]  }
  0x6b   : > { %1414 = vmatpush1.bf16.msra.mxu0 %v2531_v36  ;;  %v2555_v36 = vld [vmem:[%s2945_s9 + $0x8c] ss:$16 sps:$4 sm:$0xff]   ;;  %vm678_vm9 = vcmp.ge.f32.partialorder %v3094_v22, 0.0  ;;  %vm655_vm10 = vcmp.ge.f32.partialorder %v607_v34, 0.0  ;;  %v703_v58 = vmul.f32 0.2, %v607_v34  ;;  %v551_v38 = vmul.f32 %v3061_v5, %v486_v39 }
  0x6c   : > { %1527 = vmatpush1.bf16.msra.mxu1 %v2532_v42  ;;  %1415 = vmatprep.subr.bf16.mxu0 %v2533_v43  ;;  %v610_v42 = vadd.f32 %v3078_v14, %v545_v23  ;;  %v2553_v43 = vld [vmem:[%s2945_s9 + $0x88] ss:$16 sps:$4 sm:$0xff]   ;;  %v3131_v3 = vpack.c.bf16 %v768_v52, %v765_v51  ;;  %v3135_v7 = vadd.f32 %v3013_v10, %v549_v48  ;;  %vm681_vm12 = vcmp.ge.f32.partialorder %v633_v46, 0.0  ;;  %v2568_v23 = vld [vmem:[%s2945_s9 + $0x140] ss:$16 sps:$4 sm:$0xff]  }
  0x6d   : > { %1625 = vmatprep.subr.bf16.mxu1 %v2537_v49  ;;  %v2557_v49 = vld [vmem:[%s2945_s9 + $0x164] ss:$16 sps:$4 sm:$0xff]   ;;  %v3144_v57 = vadd.f32 %v3078_v14, %v551_v38  ;;  %v771_v15 = vsel %vm675_vm8, %v3091_v21, %v723_v40  ;;  %vm684_vm13 = vcmp.ge.f32.partialorder %v636_v47, 0.0  ;;  %v2573_v30 = vld [vmem:[%s2945_s9 + $0x2c] ss:$16 sps:$4 sm:$0xff]  }
  0x6e   : > { %v706_v0 = vmul.f32 0.2, %v610_v42  ;;  %vm658_vm11 = vcmp.ge.f32.partialorder %v610_v42, 0.0  ;;  %vm662_vm14 = vcmp.ge.f32.partialorder %v3135_v7, 0.0  ;;  %v453_v21 = vld [vmem:[%s3769_s0 + $0x30] sm:$0xff] }
  0x6f   : > { %1545 = vmatmul.mubr.bf16.vlgmr.msra.gmra.mxu1 %v3052_v59  ;;  %1416 = vmatpush2.bf16.msra.mxu0 %v2538_v61  ;;  %v548_v61 = vmul.f32 %v3061_v5, %v483_v37  ;;  %v710_v24 = vmul.f32 0.2, %v3135_v7  ;;  %v2571_v37 = vld [vmem:[%s2945_s9 + $0x28] ss:$16 sps:$4 sm:$0xff]   ;;  %vm664_vm1 = vcmp.ge.f32.partialorder %v3144_v57, 0.0 }
  0x70   : > { %1626 = vmatpush1.bf16.msra.mxu1 %v2535_v60  ;;  %1417 = vmatprep.subr.bf16.mxu0 %v2539_v1  ;;  %v552_v60 = vmul.f32 %v2996_v63, %v487_v35  ;;  %v466_v1 = vld [vmem:[%s3769_s0 + $0x80] ss:$12 sps:$4 sm:$0xff]   ;;  %v754_v19 = vsel %vm658_vm11, %v610_v42, %v706_v0  ;;  %v2575_v51 = vld [vmem:[%s2945_s9 + $0x104] ss:$16 sps:$4 sm:$0xff]   ;;  %v2577_v38 = vld [vmem:[%s2945_s9 + $0x8] ss:$16 sps:$4 sm:$0xff]  }
  0x71   : > { %1627 = vmatprep.subr.bf16.mxu1 %v2543_v6  ;;  %1554 = vmatprep.mubr.bf16.mxu1 %v2669_v32  ;;  %v729_v6 = vmul.f32 0.2, %v633_v46  ;;  %v509_v8 = vunpack.c.l.bf16 %v466_v1  ;;  %v512_v11 = vunpack.c.h.bf16 %v466_v1  ;;  %v3141_v13 = vadd.f32 %v3078_v14, %v548_v61  ;;  %v2579_v52 = vld [vmem:[%s2945_s9 + $0xc] ss:$16 sps:$4 sm:$0xff]  }
  0x72   : > { %v617_v12 = vadd.f32 %v3013_v10, %v552_v60  ;;  %v3199_v61 = vld [vmem:[%s3769_s0 + $0x48] sm:$0xff] }
  0x73   : > { %1418 = vmatpush2.bf16.msra.mxu0 %v2544_v16  ;;  %v774_v16 = vsel %vm678_vm9, %v3094_v22, %v726_v41  ;;  %v777_v20 = vsel %vm681_vm12, %v633_v46, %v729_v6  ;;  %v455_v22 = vld [vmem:[%s3769_s0 + $0x3c] sm:$0xff]  ;;  %v709_v39 = vmul.f32 0.2, %v3141_v13  ;;  %v470_v46 = vld [vmem:[%s3769_s0 + $0x98] ss:$12 sps:$4 sm:$0xff]   ;;  %vm661_vm0 = vcmp.ge.f32.partialorder %v3141_v13, 0.0 }
  0x74   : > { %1628 = vmatpush1.bf16.msra.mxu1 %v2541_v50  ;;  %1419 = vmatprep.subr.bf16.mxu0 %v2545_v17  ;;  %v732_v50 = vmul.f32 0.2, %v636_v47  ;;  %v751_v17 = vsel %vm655_vm10, %v607_v34, %v703_v58  ;;  %v493_v28 = vunpack.c.h.bf16 %v455_v22  ;;  %v713_v33 = vmul.f32 0.2, %v617_v12  ;;  %v3210_v6 = vld [vmem:[%s3769_s0 + $0x54] sm:$0xff] }
  0x75   : > { %1629 = vmatprep.subr.bf16.mxu1 %v2549_v56  ;;  %v574_v56 = vmul.f32 %v2979_v55, %v509_v8  ;;  %v489_v34 = vunpack.c.l.bf16 %v453_v21  ;;  %v492_v35 = vunpack.c.l.bf16 %v455_v22  ;;  %v3178_v42 = vpack.c.bf16 %v754_v19, %v751_v17  ;;  %v2580_v8 = vld [vmem:[%s2945_s9 + $0x100] ss:$16 sps:$4 sm:$0xff]  }
  0x76   : > { %v558_v41 = vmul.f32 %v2996_v63, %v493_v28  ;;  %vm665_vm15 = vcmp.ge.f32.partialorder %v617_v12, 0.0  ;;  %v2589_v28 = vld [vmem:[%s2945_s9 + $0x1cc] ss:$16 sps:$4 sm:$0xff]  }
  0x77   : > { %1555 = vmatmul.mubr.bf16.gmra.mxu1 %v3098_v25  ;;  %1420 = vmatpush2.bf16.msra.mxu0 %v2550_v27  ;;  %v490_v27 = vunpack.c.h.bf16 %v453_v21  ;;  %v554_v58 = vmul.f32 %v3061_v5, %v489_v34  ;;  %v557_v60 = vmul.f32 %v3061_v5, %v492_v35  ;;  %v761_v0 = vsel %vm665_vm15, %v617_v12, %v713_v33  ;;  %v2581_v21 = vld [vmem:[%s2945_s9 + $0x1e8] ss:$16 sps:$4 sm:$0xff]  }
  0x78   : > { %1630 = vmatpush1.bf16.msra.mxu1 %v2547_v26  ;;  %1421 = vmatprep.subr.bf16.mxu0 %v2551_v31  ;;  %v577_v26 = vmul.f32 %v2979_v55, %v512_v11  ;;  %v780_v31 = vsel %vm684_vm13, %v636_v47, %v732_v50  ;;  %v2574_v47 = vld [vmem:[%s2945_s9 + $0x120] ss:$16 sps:$4 sm:$0xff]   ;;  %v623_v1 = vadd.f32 %v3013_v10, %v558_v41  ;;  %v518_v50 = vunpack.c.h.bf16 %v470_v46 }
  0x79   : > { %1631 = vmatprep.subr.bf16.mxu1 %v2555_v36  ;;  %1564 = vmatprep.mubr.bf16.mxu1 %v2669_v32  ;;  %v3172_v36 = vpack.c.bf16 %v774_v16, %v771_v15  ;;  %v555_v40 = vmul.f32 %v2996_v63, %v490_v27  ;;  %v3186_v48 = vpack.c.bf16 %v780_v31, %v777_v20  ;;  %v496_v15 = vunpack.c.h.bf16 %v3199_v61  ;;  %v3223_v16 = vld [vmem:[%s2945_s9 + $0x2ec] ss:$16 sps:$4 sm:$0xff]   ;;  %v3241_v27 = vld [vmem:[%s2945_s9 + $0x2e8] ss:$16 sps:$4 sm:$0xff]  }
  0x7a   : > { %v757_v11 = vsel %vm661_vm0, %v3141_v13, %v709_v39  ;;  %v619_v13 = vadd.f32 %v3078_v14, %v554_v58  ;;  %v719_v20 = vmul.f32 0.2, %v623_v1  ;;  %vm671_vm5 = vcmp.ge.f32.partialorder %v623_v1, 0.0  ;;  %v3274_v58 = vld [vmem:[%s2945_s9 + $0x2c8] ss:$16 sps:$4 sm:$0xff]  }
  0x7b   : > { %1422 = vmatpush2.bf16.msra.mxu0 %v2556_v45  ;;  %v639_v45 = vadd.f32 %v3001_v2, %v574_v56  ;;  %v561_v31 = vmul.f32 %v2996_v63, %v496_v15  ;;  %v495_v34 = vunpack.c.l.bf16 %v3199_v61 }
  0x7c   : > { %1632 = vmatpush1.bf16.msra.mxu1 %v2553_v43  ;;  %1423 = vmatprep.subr.bf16.mxu0 %v2557_v49  ;;  %v712_v43 = vmul.f32 0.2, %v3144_v57  ;;  %v642_v49 = vadd.f32 %v3001_v2, %v577_v26  ;;  %v474_v26 = vld [vmem:[%s3769_s0 + $0xb0] ss:$12 sps:$4 sm:$0xff]   ;;  %vm667_vm6 = vcmp.ge.f32.partialorder %v619_v13, 0.0 }
  0x7d   : > { %1633 = vmatprep.subr.bf16.mxu1 %v2561_v53  ;;  %v620_v53 = vadd.f32 %v3013_v10, %v555_v40  ;;  %vm687_vm2 = vcmp.ge.f32.partialorder %v639_v45, 0.0  ;;  %v767_v40 = vsel %vm671_vm5, %v623_v1, %v719_v20  ;;  %v2598_v20 = vld [vmem:[%s2945_s9 + $0x18c] ss:$16 sps:$4 sm:$0xff]  }
  0x7e   : > { %vm690_vm3 = vcmp.ge.f32.partialorder %v642_v49, 0.0  ;;  %v738_v12 = vmul.f32 0.2, %v642_v49 }
  0x7f   : > { %1565 = vmatmul.mubr.bf16.gmra.mxu1 %v3131_v3  ;;  %1424 = vmatpush2.bf16.msra.mxu0 %v2562_v4  ;;  %v515_v4 = vunpack.c.l.bf16 %v470_v46  ;;  %v716_v17 = vmul.f32 0.2, %v620_v53  ;;  %vm668_vm4 = vcmp.ge.f32.partialorder %v620_v53, 0.0  ;;  %v3259_v46 = vld [vmem:[%s3769_s0 + $0x60] sm:$0xff] }
  0x80   : > { %1634 = vmatpush1.bf16.msra.mxu1 %v2559_v62  ;;  %1425 = vmatprep.subr.bf16.mxu0 %v2563_v9  ;;  %v758_v62 = vsel %vm662_vm14, %v3135_v7, %v710_v24  ;;  %v2583_v9 = vld [vmem:[%s2945_s9 + $0x1ec] ss:$16 sps:$4 sm:$0xff]   ;;  %v760_v7 = vsel %vm664_vm1, %v3144_v57, %v712_v43  ;;  %v622_v57 = vadd.f32 %v3078_v14, %v557_v60  ;;  %v498_v43 = vunpack.c.l.bf16 %v3210_v6 }
  0x81   : > { %1635 = vmatprep.subr.bf16.mxu1 %v2567_v44  ;;  %1574 = vmatprep.mubr.bf16.mxu1 %v2669_v32  ;;  %v735_v44 = vmul.f32 0.2, %v639_v45  ;;  %v3229_v19 = vpack.c.bf16 %v761_v0, %v758_v62  ;;  %v580_v56 = vmul.f32 %v2979_v55, %v515_v4  ;;  %v3233_v22 = vpack.c.bf16 %v760_v7, %v757_v11  ;;  %v2592_v62 = vld [vmem:[%s2945_s9 + $0x1ac] ss:$16 sps:$4 sm:$0xff]  }
  0x82   : > { %v583_v24 = vmul.f32 %v2979_v55, %v518_v50  ;;  %v764_v35 = vsel %vm668_vm4, %v620_v53, %v716_v17  ;;  %v718_v39 = vmul.f32 0.2, %v622_v57  ;;  %vm670_vm7 = vcmp.ge.f32.partialorder %v622_v57, 0.0  ;;  %v3285_v4 = vld [vmem:[%s2945_s9 + $0x2ac] ss:$16 sps:$4 sm:$0xff]  }
  0x83   : > { %1426 = vmatpush2.bf16.msra.mxu0 %v2568_v23  ;;  %v783_v23 = vsel %vm687_vm2, %v639_v45, %v735_v44  ;;  %v645_v41 = vadd.f32 %v3001_v2, %v580_v56  ;;  %v521_v45 = vunpack.c.l.bf16 %v474_v26  ;;  %v524_v53 = vunpack.c.h.bf16 %v474_v26  ;;  %v2590_v50 = vld [vmem:[%s2945_s9 + $0x1a8] ss:$16 sps:$4 sm:$0xff]  }
  0x84   : > { %1636 = vmatpush1.bf16.msra.mxu1 %v2565_v18  ;;  %1427 = vmatprep.subr.bf16.mxu0 %v2569_v29  ;;  %v499_v18 = vunpack.c.h.bf16 %v3210_v6  ;;  %v786_v29 = vsel %vm690_vm3, %v642_v49, %v738_v12  ;;  %v2587_v49 = vld [vmem:[%s2945_s9 + $0x1c8] ss:$16 sps:$4 sm:$0xff]   ;;  %v626_v60 = vadd.f32 %v3013_v10, %v561_v31  ;;  %v3281_v0 = vpack.c.bf16 %v767_v40, %v764_v35 }
  0x85   : > { %1637 = vmatprep.subr.bf16.mxu1 %v2573_v30  ;;  %v3246_v30 = vld [vmem:[%s2945_s9 + $0x2cc] ss:$16 sps:$4 sm:$0xff]   ;;  %v502_v6 = vunpack.c.h.bf16 %v3259_v46  ;;  %v741_v11 = vmul.f32 0.2, %v645_v41  ;;  %v563_v7 = vmul.f32 %v3061_v5, %v498_v43  ;;  %v586_v44 = vmul.f32 %v2979_v55, %v521_v45 }
  0x86   : > { %v564_v33 = vmul.f32 %v2996_v63, %v499_v18  ;;  %vm693_vm8 = vcmp.ge.f32.partialorder %v645_v41, 0.0  ;;  %v589_v15 = vmul.f32 %v2979_v55, %v524_v53  ;;  %v722_v17 = vmul.f32 0.2, %v626_v60 }
  0x87   : > { %1575 = vmatmul.mubr.bf16.gmra.mxu1 %v3172_v36  ;;  %1428 = vmatpush2.bf16.msra.mxu0 %v2574_v47  ;;  %v3264_v47 = vld [vmem:[%s3769_s0 + $0x6c] sm:$0xff]  ;;  %v567_v18 = vmul.f32 %v2996_v63, %v502_v6  ;;  %vm674_vm10 = vcmp.ge.f32.partialorder %v626_v60, 0.0  ;;  %v651_v26 = vadd.f32 %v3001_v2, %v586_v44  ;;  %v501_v35 = vunpack.c.l.bf16 %v3259_v46  ;;  %v3337_v46 = vld [vmem:[%s2945_s9 + $0x288] ss:$16 sps:$4 sm:$0xff]  }
  0x88   : > { %1638 = vmatpush1.bf16.msra.mxu1 %v2571_v37  ;;  %1429 = vmatprep.subr.bf16.mxu0 %v2575_v51  ;;  %v715_v37 = vmul.f32 0.2, %v619_v13  ;;  %v3269_v51 = vpack.c.bf16 %v786_v29, %v783_v23  ;;  %v629_v61 = vadd.f32 %v3013_v10, %v564_v33  ;;  %v3306_v23 = vld [vmem:[%s2945_s9 + $0x2a8] ss:$16 sps:$4 sm:$0xff]   ;;  %v654_v33 = vadd.f32 %v3001_v2, %v589_v15  ;;  %v3358_v15 = vld [vmem:[%s3769_s0 + $0x90] sm:$0xff] }
  0x89   : > { %1639 = vmatprep.subr.bf16.mxu1 %v2579_v52  ;;  %1584 = vmatprep.mubr.bf16.mxu1 %v2669_v32  ;;  %v648_v52 = vadd.f32 %v3001_v2, %v583_v24  ;;  %v628_v24 = vadd.f32 %v3078_v14, %v563_v7  ;;  %v3318_v29 = vld [vmem:[%s3769_s0 + $0x84] sm:$0xff]  ;;  %v770_v40 = vsel %vm674_vm10, %v626_v60, %v722_v17  ;;  %v2601_v2 = vld [vmem:[%s2945_s9 + $0x16c] ss:$16 sps:$4 sm:$0xff]   ;;  %vm699_vm14 = vcmp.ge.f32.partialorder %v651_v26, 0.0 }
  0x8a   : > { %v763_v1 = vsel %vm667_vm6, %v619_v13, %v715_v37  ;;  %v725_v13 = vmul.f32 0.2, %v629_v61  ;;  %vm677_vm11 = vcmp.ge.f32.partialorder %v629_v61, 0.0  ;;  %v504_v37 = vunpack.c.l.bf16 %v3264_v47  ;;  %v3363_v17 = vld [vmem:[%s3769_s0 + $0x9c] sm:$0xff] }
  0x8b   : > { %1430 = vmatpush2.bf16.msra.mxu0 %v2580_v8  ;;  %v505_v8 = vunpack.c.h.bf16 %v3264_v47  ;;  %vm696_vm9 = vcmp.ge.f32.partialorder %v648_v52, 0.0  ;;  %v744_v12 = vmul.f32 0.2, %v648_v52  ;;  %v632_v45 = vadd.f32 %v3013_v10, %v567_v18  ;;  %v3369_v18 = vld [vmem:[%s2945_s9 + $0x26c] ss:$16 sps:$4 sm:$0xff]  }
  0x8c   : > { %1640 = vmatpush1.bf16.msra.mxu1 %v2577_v38  ;;  %1738 = vmatprep.subr.bf16.mxu0 %v3223_v16  ;;  %v560_v38 = vmul.f32 %v3061_v5, %v495_v34  ;;  %v3325_v34 = vld [vmem:[%s2945_s9 + $0x28c] ss:$16 sps:$4 sm:$0xff]   ;;  %vm676_vm13 = vcmp.ge.f32.partialorder %v628_v24, 0.0  ;;  %v724_v60 = vmul.f32 0.2, %v628_v24  ;;  %v569_v6 = vmul.f32 %v3061_v5, %v504_v37 }
  0x8d   : > { %1641 = vmatprep.subr.bf16.mxu1 %v2583_v9  ;;  %v766_v9 = vsel %vm670_vm7, %v622_v57, %v718_v39  ;;  %v570_v56 = vmul.f32 %v2996_v63, %v505_v8  ;;  %v792_v31 = vsel %vm696_vm9, %v648_v52, %v744_v12  ;;  %v2596_v39 = vld [vmem:[%s2945_s9 + $0x188] ss:$16 sps:$4 sm:$0xff]   ;;  %v511_v52 = vunpack.c.h.bf16 %v3318_v29  ;;  %v2607_v8 = vld [vmem:[%s2945_s9 + $0x14c] ss:$16 sps:$4 sm:$0xff]  }
  0x8e   : > { %1432 = vmatmul.mubr.bf16.vlgmr.msra.gmra.mxu0 %v3178_v42  ;;  %v625_v57 = vadd.f32 %v3078_v14, %v560_v38  ;;  %v3302_v55 = vpack.c.bf16 %v766_v9, %v763_v1  ;;  %v2599_v38 = vld [vmem:[%s2945_s9 + $0x168] ss:$16 sps:$4 sm:$0xff]   ;;  %v566_v1 = vmul.f32 %v3061_v5, %v501_v35  ;;  %vm702_vm15 = vcmp.ge.f32.partialorder %v654_v33, 0.0  ;;  %v3385_v37 = vld [vmem:[%s2945_s9 + $0x24c] ss:$16 sps:$4 sm:$0xff]  }
  0x8f   : > { %1585 = vmatmul.mubr.bf16.gmra.mxu1 %v3186_v48  ;;  %1739 = vmatpush1.bf16.msra.mxu0 %v3241_v27  ;;  %v635_v47 = vadd.f32 %v3013_v10, %v570_v56  ;;  %v728_v7 = vmul.f32 0.2, %v632_v45  ;;  %vm680_vm0 = vcmp.ge.f32.partialorder %v632_v45, 0.0  ;;  %v576_v12 = vmul.f32 %v2996_v63, %v511_v52  ;;  %v2605_v35 = vld [vmem:[%s2945_s9 + $0x148] ss:$16 sps:$4 sm:$0xff]  }
  0x90   : > { %1642 = vmatpush2.bf16.msra.mxu1 %v2581_v21  ;;  %1441 = vmatprep.mubr.bf16.mxu0 %v3229_v19  ;;  %v789_v21 = vsel %vm693_vm8, %v645_v41, %v741_v11  ;;  %v773_v41 = vsel %vm677_vm11, %v629_v61, %v725_v13  ;;  %v721_v43 = vmul.f32 0.2, %v625_v57  ;;  %vm673_vm12 = vcmp.ge.f32.partialorder %v625_v57, 0.0 }
  0x91   : > { %1643 = vmatprep.subr.bf16.mxu1 %v2589_v28  ;;  %1594 = vmatprep.mubr.bf16.mxu1 %v2669_v32  ;;  %v3313_v28 = vld [vmem:[%s3769_s0 + $0x78] sm:$0xff]  ;;  %v3342_v53 = vpack.c.bf16 %v792_v31, %v789_v21  ;;  %v747_v61 = vmul.f32 0.2, %v651_v26  ;;  %v3350_v9 = vpack.c.bf16 %v773_v41, %v770_v40  ;;  %v731_v44 = vmul.f32 0.2, %v635_v47 }
  0x92   : > { %1740 = vmatprep.subr.bf16.mxu0 %v3246_v30  ;;  %v769_v11 = vsel %vm673_vm12, %v625_v57, %v721_v43  ;;  %v772_v13 = vsel %vm676_vm13, %v628_v24, %v724_v60  ;;  %vm683_vm1 = vcmp.ge.f32.partialorder %v635_v47, 0.0  ;;  %v631_v21 = vadd.f32 %v3078_v14, %v566_v1  ;;  %v2610_v40 = vld [vmem:[%s2945_s9 + $0x12c] ss:$16 sps:$4 sm:$0xff]  }
  0x93   : > { %1741 = vmatpush1.bf16.msra.mxu0 %v3274_v58  ;;  %v795_v57 = vsel %vm699_vm14, %v651_v26, %v747_v61  ;;  %v634_v24 = vadd.f32 %v3078_v14, %v569_v6  ;;  %v3378_v26 = vld [vmem:[%s2945_s9 + $0x268] ss:$16 sps:$4 sm:$0xff]   ;;  %v510_v31 = vunpack.c.l.bf16 %v3318_v29  ;;  %v779_v41 = vsel %vm683_vm1, %v635_v47, %v731_v44  ;;  %v2616_v6 = vld [vmem:[%s2945_s9 + $0x10c] ss:$16 sps:$4 sm:$0xff]  }
  0x94   : > { %1644 = vmatpush2.bf16.msra.mxu1 %v2587_v49  ;;  %1742 = vmatprep.subr.bf16.mxu0 %v3285_v4  ;;  %v508_v49 = vunpack.c.h.bf16 %v3313_v28  ;;  %v641_v43 = vadd.f32 %v3013_v10, %v576_v12  ;;  %vm679_vm2 = vcmp.ge.f32.partialorder %v631_v21, 0.0  ;;  %v727_v52 = vmul.f32 0.2, %v631_v21  ;;  %v2608_v61 = vld [vmem:[%s2945_s9 + $0x128] ss:$16 sps:$4 sm:$0xff]  }
  0x95   : > { %1645 = vmatprep.subr.bf16.mxu1 %v2592_v62  ;;  %v750_v62 = vmul.f32 0.2, %v654_v33  ;;  %v730_v60 = vmul.f32 0.2, %v634_v24  ;;  %v575_v47 = vmul.f32 %v3061_v5, %v510_v31  ;;  %vm682_vm3 = vcmp.ge.f32.partialorder %v634_v24, 0.0  ;;  %v3421_v12 = vld [vmem:[%s3769_s0 + $0xb4] sm:$0xff] }
  0x96   : > { %1442 = vmatmul.mubr.bf16.gmra.mxu0 %v3233_v22  ;;  %vm689_vm5 = vcmp.ge.f32.partialorder %v641_v43, 0.0  ;;  %v3411_v44 = vld [vmem:[%s2945_s9 + $0x248] ss:$16 sps:$4 sm:$0xff]   ;;  %v3430_v31 = vld [vmem:[%s2945_s9 + $0x22c] ss:$16 sps:$4 sm:$0xff]  }
  0x97   : > { %1595 = vmatmul.mubr.bf16.gmra.mxu1 %v3269_v51  ;;  %1451 = vmatprep.mubr.bf16.mxu0 %v3281_v0  ;;  %v798_v56 = vsel %vm702_vm15, %v654_v33, %v750_v62  ;;  %v517_v33 = vunpack.c.h.bf16 %v3363_v17 }
  0x98   : > { %1646 = vmatpush2.bf16.msra.mxu1 %v2590_v50  ;;  %1604 = vmatprep.mubr.bf16.mxu1 %v2669_v32  ;;  %v573_v50 = vmul.f32 %v2996_v63, %v508_v49 }
  0x99   : > { %1647 = vmatprep.subr.bf16.mxu1 %v2598_v20  ;;  %1743 = vmatpush1.bf16.msra.mxu0 %v3306_v23  ;;  %v507_v20 = vunpack.c.l.bf16 %v3313_v28  ;;  %v776_v28 = vsel %vm680_vm0, %v632_v45, %v728_v7  ;;  %v3396_v45 = vpack.c.bf16 %v798_v56, %v795_v57  ;;  %v582_v1 = vmul.f32 %v2996_v63, %v517_v33 }
  0x9a   : > { %1744 = vmatprep.subr.bf16.mxu0 %v3325_v34  ;;  %v638_v29 = vadd.f32 %v3013_v10, %v573_v50  ;;  %v3416_v50 = vld [vmem:[%s3769_s0 + $0xa8] sm:$0xff]  ;;  %v778_v57 = vsel %vm682_vm3, %v634_v24, %v730_v60  ;;  %v513_v56 = vunpack.c.l.bf16 %v3358_v15  ;;  %v516_v33 = vunpack.c.l.bf16 %v3363_v17 }
  0x9b   : > { %v572_v49 = vmul.f32 %v3061_v5, %v507_v20  ;;  %v640_v20 = vadd.f32 %v3078_v14, %v575_v47  ;;  %v520_v24 = vunpack.c.h.bf16 %v3416_v50 }
  0x9c   : > { %1648 = vmatpush2.bf16.msra.mxu1 %v2596_v39  ;;  %v514_v39 = vunpack.c.h.bf16 %v3358_v15  ;;  %vm686_vm4 = vcmp.ge.f32.partialorder %v638_v29, 0.0  ;;  %v581_v47 = vmul.f32 %v3061_v5, %v516_v33 }
  0x9d   : > { %1649 = vmatprep.subr.bf16.mxu1 %v2601_v2  ;;  %1745 = vmatpush1.bf16.msra.mxu0 %v3337_v46  ;;  %v3394_v2 = vpack.c.bf16 %v772_v13, %v769_v11  ;;  %v737_v11 = vmul.f32 0.2, %v641_v43  ;;  %v637_v7 = vadd.f32 %v3078_v14, %v572_v49  ;;  %v775_v13 = vsel %vm679_vm2, %v631_v21, %v727_v52  ;;  %v3446_v49 = vld [vmem:[%s2945_s9 + $0x228] ss:$16 sps:$4 sm:$0xff]  }
  0x9e   : > { %1452 = vmatmul.mubr.bf16.gmra.mxu0 %v3302_v55  ;;  %1746 = vmatprep.subr.bf16.mxu0 %v3369_v18  ;;  %v579_v62 = vmul.f32 %v2996_v63, %v514_v39  ;;  %v647_v39 = vadd.f32 %v3013_v10, %v582_v1  ;;  %vm688_vm7 = vcmp.ge.f32.partialorder %v640_v20, 0.0  ;;  %v736_v52 = vmul.f32 0.2, %v640_v20  ;;  %v3458_v1 = vld [vmem:[%s2945_s9 + $0x20c] ss:$16 sps:$4 sm:$0xff]  }
  0x9f   : > { %1605 = vmatmul.mubr.bf16.gmra.mxu1 %v3342_v53  ;;  %1461 = vmatprep.mubr.bf16.mxu0 %v3350_v9  ;;  %v785_v15 = vsel %vm689_vm5, %v641_v43, %v737_v11  ;;  %vm685_vm6 = vcmp.ge.f32.partialorder %v637_v7, 0.0  ;;  %v733_v17 = vmul.f32 0.2, %v637_v7  ;;  %v519_v11 = vunpack.c.l.bf16 %v3416_v50 }
  0xa0   : > { %1650 = vmatpush2.bf16.msra.mxu1 %v2599_v38  ;;  %1614 = vmatprep.mubr.bf16.mxu1 %v2669_v32  ;;  %v3403_v38 = vpack.c.bf16 %v779_v41, %v776_v28  ;;  %v644_v28 = vadd.f32 %v3013_v10, %v579_v62  ;;  %v3442_v41 = vpack.c.bf16 %v778_v57, %v775_v13  ;;  %v743_v60 = vmul.f32 0.2, %v647_v39  ;;  %v3467_v13 = vld [vmem:[%s2945_s9 + $0x208] ss:$16 sps:$4 sm:$0xff]  }
  0xa1   : > { %1651 = vmatprep.subr.bf16.mxu1 %v2607_v8  ;;  %1747 = vmatpush1.bf16.msra.mxu0 %v3378_v26  ;;  %v734_v8 = vmul.f32 0.2, %v638_v29  ;;  %vm695_vm9 = vcmp.ge.f32.partialorder %v647_v39, 0.0 }
  0xa2   : > { %1748 = vmatprep.subr.bf16.mxu0 %v3385_v37  ;;  %v740_v43 = vmul.f32 0.2, %v644_v28  ;;  %vm692_vm8 = vcmp.ge.f32.partialorder %v644_v28, 0.0  ;;  %v791_v57 = vsel %vm695_vm9, %v647_v39, %v743_v60 }
  0xa3   : > { %v782_v21 = vsel %vm686_vm4, %v638_v29, %v734_v8  ;;  %v784_v8 = vsel %vm688_vm7, %v640_v20, %v736_v52 }
  0xa4   : > { %1652 = vmatpush2.bf16.msra.mxu1 %v2605_v35  ;;  %v2614_v35 = vld [vmem:[%s2945_s9 + $0x108] ss:$16 sps:$4 sm:$0xff]   ;;  %v3450_v29 = vpack.c.bf16 %v785_v15, %v782_v21  ;;  %s2258_s9 = sshll.u32 %s404_s7, 8 }
  0xa5   : > { %1653 = vmatprep.subr.bf16.mxu1 %v2610_v40  ;;  %v523_v40 = vunpack.c.h.bf16 %v3421_v12  ;;  %1749 = vmatpush1.bf16.msra.mxu0 %v3411_v44  ;;  %s3534_s14 = scalar_lea.vmem [#allocation3], %s2258_s9 }
  0xa6   : > { %1462 = vmatmul.mubr.bf16.gmra.mxu0 %v3394_v2  ;;  %1750 = vmatprep.subr.bf16.mxu0 %v3430_v31 }
  0xa7   : > { %1615 = vmatmul.mubr.bf16.gmra.mxu1 %v3396_v45  ;;  %1471 = vmatprep.mubr.bf16.mxu0 %v3403_v38  ;;  %v588_v62 = vmul.f32 %v2996_v63, %v523_v40 }
  0xa8   : > { %1654 = vmatpush2.bf16.msra.mxu1 %v2608_v61  ;;  %1657 = vmatprep.mubr.bf16.mxu1 %v3047_v54  ;;  %v578_v54 = vmul.f32 %v3061_v5, %v513_v56  ;;  %v585_v61 = vmul.f32 %v2996_v63, %v520_v24  ;;  %v788_v63 = vsel %vm692_vm8, %v644_v28, %v740_v43 }
  0xa9   : > { %1655 = vmatprep.subr.bf16.mxu1 %v2616_v6  ;;  %1751 = vmatpush1.bf16.msra.mxu0 %v3446_v49  ;;  %v781_v6 = vsel %vm685_vm6, %v637_v7, %v733_v17  ;;  %v646_v56 = vadd.f32 %v3078_v14, %v581_v47  ;;  %v653_v50 = vadd.f32 %v3013_v10, %v588_v62 }
  0xaa   : > { %v650_v7 = vadd.f32 %v3013_v10, %v585_v61  ;;  %1752 = vmatprep.subr.bf16.mxu0 %v3458_v1  ;;  %v814_v20 = vpack.c.bf16 %v784_v8, %v781_v6 }
  0xab   : > { %v742_v28 = vmul.f32 0.2, %v646_v56  ;;  %vm694_vm11 = vcmp.ge.f32.partialorder %v646_v56, 0.0  ;;  %v749_v10 = vmul.f32 0.2, %v653_v50  ;;  %vm701_vm13 = vcmp.ge.f32.partialorder %v653_v50, 0.0 }
  0xac   : > { %1656 = vmatpush2.bf16.msra.mxu1 %v2614_v35  ;;  %vm698_vm12 = vcmp.ge.f32.partialorder %v650_v7, 0.0 }
  0xad   : > { %2426 = vmatprep.subr.bf16.mxu1 %v3223_v16  ;;  %v643_v16 = vadd.f32 %v3078_v14, %v578_v54  ;;  %1753 = vmatpush1.bf16.msra.mxu0 %v3467_v13 }
  0xae   : > { %1472 = vmatmul.mubr.bf16.gmra.mxu0 %v3442_v41 }
  0xaf   : > { %1658 = vmatmul.mubr.bf16.vlgmr.msra.gmra.mxu1 %v3178_v42  ;;  %1481 = vmatprep.mubr.bf16.mxu0 %v3450_v29  ;;  %v522_v42 = vunpack.c.l.bf16 %v3421_v12  ;;  %v739_v35 = vmul.f32 0.2, %v643_v16  ;;  %vm691_vm10 = vcmp.ge.f32.partialorder %v643_v16, 0.0  ;;  %v584_v12 = vmul.f32 %v3061_v5, %v519_v11 }
  0xb0   : > { %2434 = vmatpush1.bf16.msra.mxu1 %v3241_v27  ;;  %1667 = vmatprep.mubr.bf16.mxu1 %v3229_v19  ;;  %v818_v27 = vpack.c.bf16 %v791_v57, %v788_v63 }
  0xb1   : > { %2427 = vmatprep.subr.bf16.mxu1 %v3246_v30  ;;  %v587_v19 = vmul.f32 %v3061_v5, %v522_v42  ;;  %v746_v30 = vmul.f32 0.2, %v650_v7  ;;  %v787_v39 = vsel %vm691_vm10, %v643_v16, %v739_v35  ;;  %v649_v33 = vadd.f32 %v3078_v14, %v584_v12 }
  0xb3   : > { %v652_v21 = vadd.f32 %v3078_v14, %v587_v19  ;;  %v794_v5 = vsel %vm698_vm12, %v650_v7, %v746_v30  ;;  %v745_v40 = vmul.f32 0.2, %v649_v33  ;;  %vm697_vm14 = vcmp.ge.f32.partialorder %v649_v33, 0.0 }
  0xb4   : > { %2435 = vmatpush1.bf16.msra.mxu1 %v3274_v58  ;;  %v790_v58 = vsel %vm694_vm11, %v646_v56, %v742_v28 }
  0xb5   : > { %2428 = vmatprep.subr.bf16.mxu1 %v3285_v4  ;;  %v797_v4 = vsel %vm701_vm13, %v653_v50, %v749_v10  ;;  %v817_v15 = vpack.c.bf16 %v790_v58, %v787_v39  ;;  %v748_v17 = vmul.f32 0.2, %v652_v21  ;;  %vm700_vm15 = vcmp.ge.f32.partialorder %v652_v21, 0.0 }
  0xb6   : > { %1482 = vmatmul.mubr.bf16.gmra.mxu0 %v814_v20  ;;  %v821_v24 = vpack.c.bf16 %v797_v4, %v794_v5  ;;  %v793_v14 = vsel %vm697_vm14, %v649_v33, %v745_v40 }
  0xb7   : > { %1668 = vmatmul.mubr.bf16.gmra.mxu1 %v3233_v22  ;;  %1491 = vmatprep.mubr.bf16.mxu0 %v818_v27  ;;  %v796_v22 = vsel %vm700_vm15, %v652_v21, %v748_v17 }
  0xb8   : > { %1677 = vmatprep.mubr.bf16.mxu1 %v3281_v0  ;;  %2436 = vmatpush1.bf16.msra.mxu1 %v3306_v23  ;;  %v820_v0 = vpack.c.bf16 %v796_v22, %v793_v14 }
  0xb9   : > { %2429 = vmatprep.subr.bf16.mxu1 %v3325_v34 }
  0xbc   : > { %2437 = vmatpush1.bf16.msra.mxu1 %v3337_v46 }
  0xbd   : > { %2430 = vmatprep.subr.bf16.mxu1 %v3369_v18 }
  0xbe   : > { %1492 = vmatmul.mubr.bf16.gmra.mxu0 %v817_v15 }
  0xbf   : > { %1678 = vmatmul.mubr.bf16.gmra.mxu1 %v3302_v55  ;;  %1501 = vmatprep.mubr.bf16.mxu0 %v821_v24 }
  0xc0   : > { %1687 = vmatprep.mubr.bf16.mxu1 %v3350_v9  ;;  %2438 = vmatpush1.bf16.msra.mxu1 %v3378_v26 }
  0xc1   : > { %2431 = vmatprep.subr.bf16.mxu1 %v3385_v37 }
  0xc4   : > { %2439 = vmatpush1.bf16.msra.mxu1 %v3411_v44 }
  0xc5   : > { %2432 = vmatprep.subr.bf16.mxu1 %v3430_v31 }
  0xc6   : > { %1502 = vmatmul.mubr.bf16.gmra.mxu0 %v820_v0 }
  0xc7   : > { %1688 = vmatmul.mubr.bf16.gmra.mxu1 %v3394_v2  ;;  %1770 = vmatprep.mubr.bf16.mxu0 %v2669_v32 }
  0xc8   : > { %1697 = vmatprep.mubr.bf16.mxu1 %v3403_v38  ;;  %2440 = vmatpush1.bf16.msra.mxu1 %v3446_v49 }
  0xc9   : > { %2433 = vmatprep.subr.bf16.mxu1 %v3458_v1 }
  0xcc   : > { %2441 = vmatpush1.bf16.msra.mxu1 %v3467_v13 }
  0xce   : > { %1771 = vmatmul.mubr.bf16.vlgmr.msra.gmra.mxu0 %v3052_v59 }
  0xcf   : > { %1698 = vmatmul.mubr.bf16.gmra.mxu1 %v3442_v41  ;;  %1780 = vmatprep.mubr.bf16.mxu0 %v2669_v32 }
  0xd0   : > { %1707 = vmatprep.mubr.bf16.mxu1 %v3450_v29 }
  0xd6   : > { %1781 = vmatmul.mubr.bf16.gmra.mxu0 %v3098_v25 }
  0xd7   : > { %1708 = vmatmul.mubr.bf16.gmra.mxu1 %v814_v20  ;;  %1790 = vmatprep.mubr.bf16.mxu0 %v2669_v32 }
  0xd8   : > { %1717 = vmatprep.mubr.bf16.mxu1 %v818_v27 }
  0xde   : > { %1791 = vmatmul.mubr.bf16.gmra.mxu0 %v3131_v3 }
  0xdf   : > { %1718 = vmatmul.mubr.bf16.gmra.mxu1 %v817_v15  ;;  %1800 = vmatprep.mubr.bf16.mxu0 %v2669_v32 }
  0xe0   : > { %1727 = vmatprep.mubr.bf16.mxu1 %v821_v24 }
  0xe6   : > { %1801 = vmatmul.mubr.bf16.gmra.mxu0 %v3172_v36 }
  0xe7   : > { %1728 = vmatmul.mubr.bf16.gmra.mxu1 %v820_v0  ;;  %1810 = vmatprep.mubr.bf16.mxu0 %v2669_v32 }
  0xe8   : > { %1830 = vmatprep.mubr.bf16.mxu1 %v2669_v32 }
  0xee   : > { %1811 = vmatmul.mubr.bf16.gmra.mxu0 %v3186_v48 }
  0xef   : > { %1831 = vmatmul.mubr.bf16.vlgmr.msra.gmra.mxu1 %v3342_v53  ;;  %1820 = vmatprep.mubr.bf16.mxu0 %v2669_v32 }
  0xf0   : > { %1840 = vmatprep.mubr.bf16.mxu1 %v2669_v32 }
  0xf6   : > { %1821 = vmatmul.mubr.bf16.gmra.mxu0 %v3269_v51 }
  0xf7   : > { %1841 = vmatmul.mubr.bf16.gmra.mxu1 %v3396_v45 }
 0x12f   : > { %v1546_v59 = vpop.f32.mrf.mxu1 }
 0x131   : > { %v1548_v25 = vpop.f32.mrf.mxu1 }
 0x133   : > { %v1550_v3 = vpop.f32.mrf.mxu1 }
 0x135   : > { %v1552_v36 = vpop.f32.mrf.mxu1 }
 0x137   : > { %v1556_v55 = vpop.f32.mrf.mxu1 }
 0x139   : > { %v1558_v23 = vpop.f32.mrf.mxu1 }
 0x13b   : > { %v1560_v34 = vpop.f32.mrf.mxu1 }
 0x13d   : > { %v1562_v46 = vpop.f32.mrf.mxu1 }
 0x13f   : > { %v1566_v48 = vpop.f32.mrf.mxu1 }
 0x141   : > { %v1568_v9 = vpop.f32.mrf.mxu1 }
 0x143   : > { %v1570_v53 = vpop.f32.mrf.mxu1 }
 0x145   : > { %v1572_v18 = vpop.f32.mrf.mxu1 }
 0x147   : > { %v1576_v26 = vpop.f32.mrf.mxu1 }
 0x149   : > { %v1578_v37 = vpop.f32.mrf.mxu1 }
 0x14b   : > { %v3520_v32 = vpop.f32.mrf.mxu1 }
 0x14d   : > { %v3522_v51 = vpop.f32.mrf.mxu1 }
 0x14e   : > { %v1433_v2 = vpop.f32.mrf.mxu0 }
 0x14f   : > { %v3524_v45 = vpop.f32.mrf.mxu1  ;;  %v1547_v31 = vadd.f32 %v1546_v59, %v1433_v2 }
 0x150   : > { %v1435_v38 = vpop.f32.mrf.mxu0 }
 0x151   : > { %v3528_v44 = vpop.f32.mrf.mxu1  ;;  %v1549_v41 = vadd.f32 %v1548_v25, %v1435_v38 }
 0x152   : > { %v1437_v49 = vpop.f32.mrf.mxu0 }
 0x153   : > { %v3530_v52 = vpop.f32.mrf.mxu1  ;;  %v2393_v54 = vpack.c.bf16 %v1549_v41, %v1547_v31  ;;  %v1551_v60 = vadd.f32 %v1550_v3, %v1437_v49 }
 0x154   : > { %v1439_v29 = vpop.f32.mrf.mxu0 }
 0x155   : > { %v3532_v43 = vpop.f32.mrf.mxu1  ;;  %2043 = vst [vmem:[%s3534_s14] sm:$0xff] %v2393_v54  ;;  %v1553_v47 = vadd.f32 %v1552_v36, %v1439_v29 }
 0x156   : > { %v1443_v61 = vpop.f32.mrf.mxu0 }
 0x157   : > { %v3537_v62 = vpop.f32.mrf.mxu1  ;;  %v2395_v1 = vpack.c.bf16 %v1553_v47, %v1551_v60  ;;  %v1557_v16 = vadd.f32 %v1556_v55, %v1443_v61 }
 0x158   : > { %v1445_v6 = vpop.f32.mrf.mxu0 }
 0x159   : > { %v3539_v8 = vpop.f32.mrf.mxu1  ;;  %2045 = vst [vmem:[%s3534_s14 + $0x10] sm:$0xff] %v2395_v1  ;;  %v1559_v11 = vadd.f32 %v1558_v23, %v1445_v6 }
 0x15a   : > { %v1447_v13 = vpop.f32.mrf.mxu0 }
 0x15b   : > { %v3542_v63 = vpop.f32.mrf.mxu1  ;;  %v2397_v57 = vpack.c.bf16 %v1559_v11, %v1557_v16  ;;  %v1561_v7 = vadd.f32 %v1560_v34, %v1447_v13 }
 0x15c   : > { %v1449_v56 = vpop.f32.mrf.mxu0 }
 0x15d   : > { %v3544_v42 = vpop.f32.mrf.mxu1  ;;  %2047 = vst [vmem:[%s3534_s14 + $0x20] sm:$0xff] %v2397_v57  ;;  %v1563_v50 = vadd.f32 %v1562_v46, %v1449_v56 }
 0x15e   : > { %v1453_v20 = vpop.f32.mrf.mxu0 }
 0x15f   : > { %v3547_v27 = vpop.f32.mrf.mxu1  ;;  %v2399_v35 = vpack.c.bf16 %v1563_v50, %v1561_v7  ;;  %v1567_v19 = vadd.f32 %v1566_v48, %v1453_v20 }
 0x160   : > { %v1455_v28 = vpop.f32.mrf.mxu0 }
 0x161   : > { %v3549_v12 = vpop.f32.mrf.mxu1  ;;  %2049 = vst [vmem:[%s3534_s14 + $0x30] sm:$0xff] %v2399_v35  ;;  %v1569_v30 = vadd.f32 %v1568_v9, %v1455_v28 }
 0x162   : > { %v1457_v10 = vpop.f32.mrf.mxu0 }
 0x163   : > { %v3552_v39 = vpop.f32.mrf.mxu1  ;;  %v2401_v58 = vpack.c.bf16 %v1569_v30, %v1567_v19  ;;  %v1571_v5 = vadd.f32 %v1570_v53, %v1457_v10 }
 0x164   : > { %v1459_v33 = vpop.f32.mrf.mxu0 }
 0x165   : > { %v3554_v21 = vpop.f32.mrf.mxu1  ;;  %2051 = vst [vmem:[%s3534_s14 + $0x40] sm:$0xff] %v2401_v58  ;;  %v1573_v4 = vadd.f32 %v1572_v18, %v1459_v33 }
 0x166   : > { %v1463_v15 = vpop.f32.mrf.mxu0 }
 0x167   : > { %v3557_v24 = vpop.f32.mrf.mxu1  ;;  %v2403_v40 = vpack.c.bf16 %v1573_v4, %v1571_v5  ;;  %v1577_v22 = vadd.f32 %v1576_v26, %v1463_v15 }
 0x168   : > { %v1465_v17 = vpop.f32.mrf.mxu0 }
 0x169   : > { %v3559_v14 = vpop.f32.mrf.mxu1  ;;  %2053 = vst [vmem:[%s3534_s14 + $0x50] sm:$0xff] %v2403_v40  ;;  %v1579_v0 = vadd.f32 %v1578_v37, %v1465_v17 }
 0x16a   : > { %v1467_v59 = vpop.f32.mrf.mxu0 }
 0x16b   : > { %v3562_v25 = vpop.f32.mrf.mxu1  ;;  %v2405_v3 = vpack.c.bf16 %v1579_v0, %v1577_v22  ;;  %v1581_v23 = vadd.f32 %v3520_v32, %v1467_v59 }
 0x16c   : > { %v1469_v36 = vpop.f32.mrf.mxu0 }
 0x16d   : > { %v3564_v55 = vpop.f32.mrf.mxu1  ;;  %2055 = vst [vmem:[%s3534_s14 + $0x60] sm:$0xff] %v2405_v3  ;;  %v1583_v34 = vadd.f32 %v3522_v51, %v1469_v36 }
 0x16e   : > { %v1473_v46 = vpop.f32.mrf.mxu0 }
 0x16f   : > { %v3569_v48 = vpop.f32.mrf.mxu1  ;;  %v2407_v9 = vpack.c.bf16 %v1583_v34, %v1581_v23  ;;  %v1587_v26 = vadd.f32 %v3524_v45, %v1473_v46 }
 0x170   : > { %v1475_v53 = vpop.f32.mrf.mxu0 }
 0x171   : > { %v3571_v18 = vpop.f32.mrf.mxu1  ;;  %2057 = vst [vmem:[%s3534_s14 + $0x70] sm:$0xff] %v2407_v9  ;;  %v1589_v37 = vadd.f32 %v3528_v44, %v1475_v53 }
 0x172   : > { %v1477_v2 = vpop.f32.mrf.mxu0 }
 0x173   : > { %v3576_v38 = vpop.f32.mrf.mxu1  ;;  %v2409_v31 = vpack.c.bf16 %v1589_v37, %v1587_v26  ;;  %v1591_v51 = vadd.f32 %v3530_v52, %v1477_v2 }
 0x174   : > { %v1479_v32 = vpop.f32.mrf.mxu0 }
 0x175   : > { %v3578_v41 = vpop.f32.mrf.mxu1  ;;  %2059 = vst [vmem:[%s3534_s14 + $0x80] sm:$0xff] %v2409_v31  ;;  %v1593_v49 = vadd.f32 %v3532_v43, %v1479_v32 }
 0x176   : > { %v1483_v54 = vpop.f32.mrf.mxu0 }
 0x177   : > { %v3583_v29 = vpop.f32.mrf.mxu1  ;;  %v2411_v60 = vpack.c.bf16 %v1593_v49, %v1591_v51  ;;  %v1597_v44 = vadd.f32 %v3537_v62, %v1483_v54 }
 0x178   : > { %v1485_v45 = vpop.f32.mrf.mxu0 }
 0x179   : > { %v3585_v47 = vpop.f32.mrf.mxu1  ;;  %2061 = vst [vmem:[%s3534_s14 + $0x90] sm:$0xff] %v2411_v60  ;;  %v1599_v61 = vadd.f32 %v3539_v8, %v1485_v45 }
 0x17a   : > { %v1487_v1 = vpop.f32.mrf.mxu0 }
 0x17b   : > { %v3590_v6 = vpop.f32.mrf.mxu1  ;;  %v2413_v16 = vpack.c.bf16 %v1599_v61, %v1597_v44  ;;  %v1601_v43 = vadd.f32 %v3542_v63, %v1487_v1 }
 0x17c   : > { %v1489_v52 = vpop.f32.mrf.mxu0 }
 0x17d   : > { %v3592_v11 = vpop.f32.mrf.mxu1  ;;  %2063 = vst [vmem:[%s3534_s14 + $0xa0] sm:$0xff] %v2413_v16  ;;  %v1603_v13 = vadd.f32 %v3544_v42, %v1489_v52 }
 0x17e   : > { %v1493_v57 = vpop.f32.mrf.mxu0 }
 0x17f   : > { %v3597_v56 = vpop.f32.mrf.mxu1  ;;  %v2415_v7 = vpack.c.bf16 %v1603_v13, %v1601_v43  ;;  %v1607_v8 = vadd.f32 %v3547_v27, %v1493_v57 }
 0x180   : > { %v1495_v62 = vpop.f32.mrf.mxu0 }
 0x181   : > { %v3599_v50 = vpop.f32.mrf.mxu1  ;;  %2065 = vst [vmem:[%s3534_s14 + $0xb0] sm:$0xff] %v2415_v7  ;;  %v1609_v20 = vadd.f32 %v3549_v12, %v1495_v62 }
 0x182   : > { %v1497_v35 = vpop.f32.mrf.mxu0 }
 0x183   : > { %v3604_v28 = vpop.f32.mrf.mxu1  ;;  %v2417_v19 = vpack.c.bf16 %v1609_v20, %v1607_v8  ;;  %v1611_v42 = vadd.f32 %v3552_v39, %v1497_v35 }
 0x184   : > { %v1499_v63 = vpop.f32.mrf.mxu0 }
 0x185   : > { %v3606_v30 = vpop.f32.mrf.mxu1  ;;  %2067 = vst [vmem:[%s3534_s14 + $0xc0] sm:$0xff] %v2417_v19  ;;  %v1613_v10 = vadd.f32 %v3554_v21, %v1499_v63 }
 0x186   : > { %v1503_v58 = vpop.f32.mrf.mxu0 }
 0x187   : > { %v3611_v33 = vpop.f32.mrf.mxu1  ;;  %v2419_v5 = vpack.c.bf16 %v1613_v10, %v1611_v42  ;;  %v1617_v12 = vadd.f32 %v3557_v24, %v1503_v58 }
 0x188   : > { %v1505_v27 = vpop.f32.mrf.mxu0 }
 0x189   : > { %v3613_v4 = vpop.f32.mrf.mxu1  ;;  %2069 = vst [vmem:[%s3534_s14 + $0xd0] sm:$0xff] %v2419_v5  ;;  %v1619_v15 = vadd.f32 %v3559_v14, %v1505_v27 }
 0x18a   : > { %v1507_v40 = vpop.f32.mrf.mxu0 }
 0x18b   : > { %v3618_v17 = vpop.f32.mrf.mxu1  ;;  %v2421_v22 = vpack.c.bf16 %v1619_v15, %v1617_v12  ;;  %v1621_v21 = vadd.f32 %v3562_v25, %v1507_v40 }
 0x18c   : > { %v1509_v39 = vpop.f32.mrf.mxu0 }
 0x18d   : > { %v3620_v0 = vpop.f32.mrf.mxu1  ;;  %2071 = vst [vmem:[%s3534_s14 + $0xe0] sm:$0xff] %v2421_v22  ;;  %v1623_v59 = vadd.f32 %v3564_v55, %v1509_v39 }
 0x18e   : > { %v1772_v36 = vpop.f32.mrf.mxu0 }
 0x18f   : > { %v3625_v3 = vpop.f32.mrf.mxu1  ;;  %v2423_v23 = vpack.c.bf16 %v1623_v59, %v1621_v21  ;;  %v1773_v34 = vadd.f32 %v1772_v36, %v3569_v48 }
 0x190   : > { %v1774_v14 = vpop.f32.mrf.mxu0 }
 0x191   : > { %v3627_v24 = vpop.f32.mrf.mxu1  ;;  %2073 = vst [vmem:[%s3534_s14 + $0xf0] sm:$0xff] %v2423_v23  ;;  %v1775_v46 = vadd.f32 %v1774_v14, %v3571_v18 }
 0x192   : > { %v1776_v53 = vpop.f32.mrf.mxu0 }
 0x193   : > { %v3632_v9 = vpop.f32.mrf.mxu1  ;;  %v2394_v26 = vpack.c.bf16 %v1775_v46, %v1773_v34  ;;  %v1777_v37 = vadd.f32 %v1776_v53, %v3576_v38 }
 0x194   : > { %v1778_v55 = vpop.f32.mrf.mxu0 }
 0x195   : > { %v3634_v25 = vpop.f32.mrf.mxu1  ;;  %2044 = vst [vmem:[%s3534_s14 + $0x8] sm:$0xff] %v2394_v26  ;;  %v1779_v2 = vadd.f32 %v1778_v55, %v3578_v41 }
 0x196   : > { %v1782_v32 = vpop.f32.mrf.mxu0 }
 0x197   : > { %v3639_v31 = vpop.f32.mrf.mxu1  ;;  %v2396_v51 = vpack.c.bf16 %v1779_v2, %v1777_v37  ;;  %v1783_v49 = vadd.f32 %v1782_v32, %v3583_v29 }
 0x198   : > { %v1784_v18 = vpop.f32.mrf.mxu0 }
 0x199   : > { %v3641_v48 = vpop.f32.mrf.mxu1  ;;  %2046 = vst [vmem:[%s3534_s14 + $0x18] sm:$0xff] %v2396_v51  ;;  %v1785_v54 = vadd.f32 %v1784_v18, %v3585_v47 }
 0x19a   : > { %v1786_v45 = vpop.f32.mrf.mxu0 }
 0x19b   : > { %v3646_v60 = vpop.f32.mrf.mxu1  ;;  %v2398_v44 = vpack.c.bf16 %v1785_v54, %v1783_v49  ;;  %v1787_v61 = vadd.f32 %v1786_v45, %v3590_v6 }
 0x19c   : > { %v1788_v41 = vpop.f32.mrf.mxu0 }
 0x19d   : > { %v3648_v38 = vpop.f32.mrf.mxu1  ;;  %2048 = vst [vmem:[%s3534_s14 + $0x28] sm:$0xff] %v2398_v44  ;;  %v1789_v1 = vadd.f32 %v1788_v41, %v3592_v11 }
 0x19e   : > { %v1792_v52 = vpop.f32.mrf.mxu0 }
 0x19f   : > { %v1719_v16 = vpop.f32.mrf.mxu1  ;;  %v2400_v43 = vpack.c.bf16 %v1789_v1, %v1787_v61  ;;  %v1793_v47 = vadd.f32 %v1792_v52, %v3597_v56 }
 0x1a0   : > { %v1794_v29 = vpop.f32.mrf.mxu0 }
 0x1a1   : > { %v1721_v13 = vpop.f32.mrf.mxu1  ;;  %2050 = vst [vmem:[%s3534_s14 + $0x38] sm:$0xff] %v2400_v43  ;;  %v1795_v57 = vadd.f32 %v1794_v29, %v3599_v50 }
 0x1a2   : > { %v1796_v62 = vpop.f32.mrf.mxu0 }
 0x1a3   : > { %v1723_v7 = vpop.f32.mrf.mxu1  ;;  %v2402_v8 = vpack.c.bf16 %v1795_v57, %v1793_v47  ;;  %v1797_v6 = vadd.f32 %v1796_v62, %v3604_v28  ;;  %v2106_v62 = vld [vmem:[%s3534_s14 + $0x18] sm:$0xff] (%p2730_p6) }
 0x1a4   : > { %v1798_v35 = vpop.f32.mrf.mxu0  ;;  %2107 = vst [vmem:[%s3691_s22 + $0x68] sm:$0xff] (%p2730_p6), %v2106_v62 }
 0x1a5   : > { %v1725_v20 = vpop.f32.mrf.mxu1  ;;  %2052 = vst [vmem:[%s3534_s14 + $0x48] sm:$0xff] %v2402_v8  ;;  %v1799_v11 = vadd.f32 %v1798_v35, %v3606_v30  ;;  %v2108_v8 = vld [vmem:[%s3534_s14 + $0x20] sm:$0xff] (%p2730_p6)  ;;  %v2112_v35 = vld [vmem:[%s3534_s14 + $0x30] sm:$0xff] (%p2730_p6) }
 0x1a6   : > { %v1802_v63 = vpop.f32.mrf.mxu0  ;;  %2109 = vst [vmem:[%s3691_s22 + $0xc0] sm:$0xff] (%p2730_p6), %v2108_v8  ;;  %2113 = vst [vmem:[%s3691_s22 + $0x120] sm:$0xff] (%p2730_p6), %v2112_v35 }
 0x1a7   : > { %v1729_v19 = vpop.f32.mrf.mxu1  ;;  %v2404_v42 = vpack.c.bf16 %v1799_v11, %v1797_v6  ;;  %v1803_v56 = vadd.f32 %v1802_v63, %v3611_v33  ;;  %v2116_v11 = vld [vmem:[%s3534_s14 + $0x40] sm:$0xff] (%p2730_p6)  ;;  %v2120_v63 = vld [vmem:[%s3534_s14 + $0x50] sm:$0xff] (%p2730_p6) }
 0x1a8   : > { %v1804_v58 = vpop.f32.mrf.mxu0  ;;  %v2114_v6 = vld [vmem:[%s3534_s14 + $0x38] sm:$0xff] (%p2730_p6)  ;;  %2117 = vst [vmem:[%s3691_s22 + $0x180] sm:$0xff] (%p2730_p6), %v2116_v11  ;;  %2121 = vst [vmem:[%s3691_s22 + $0x1e0] sm:$0xff] (%p2730_p6), %v2120_v63 }
 0x1a9   : > { %v1731_v10 = vpop.f32.mrf.mxu1  ;;  %2054 = vst [vmem:[%s3534_s14 + $0x58] sm:$0xff] %v2404_v42  ;;  %v1805_v50 = vadd.f32 %v1804_v58, %v3613_v4  ;;  %2115 = vst [vmem:[%s3691_s22 + $0x128] sm:$0xff] (%p2730_p6), %v2114_v6 }
 0x1aa   : > { %v1806_v27 = vpop.f32.mrf.mxu0 }
 0x1ab   : > { %v1733_v5 = vpop.f32.mrf.mxu1  ;;  %v2406_v12 = vpack.c.bf16 %v1805_v50, %v1803_v56  ;;  %v1807_v28 = vadd.f32 %v1806_v27, %v3618_v17  ;;  %v2128_v56 = vld [vmem:[%s3534_s14 + $0x70] sm:$0xff] (%p2730_p6) }
 0x1ac   : > { %v1808_v40 = vpop.f32.mrf.mxu0  ;;  %2129 = vst [vmem:[%s3691_s22 + $0x2a0] sm:$0xff] (%p2730_p6), %v2128_v56 }
 0x1ad   : > { %v1735_v15 = vpop.f32.mrf.mxu1  ;;  %2056 = vst [vmem:[%s3534_s14 + $0x68] sm:$0xff] %v2406_v12  ;;  %v1809_v30 = vadd.f32 %v1808_v40, %v3620_v0  ;;  %v2136_v12 = vld [vmem:[%s3534_s14 + $0x90] sm:$0xff] (%p2730_p6)  ;;  %v2140_v40 = vld [vmem:[%s3534_s14 + $0xa0] sm:$0xff] (%p2730_p6) }
 0x1ae   : > { %v1812_v22 = vpop.f32.mrf.mxu0  ;;  %2137 = vst [vmem:[%s3691_s22 + $0x360] sm:$0xff] (%p2730_p6), %v2136_v12  ;;  %2141 = vst [vmem:[%s3691_s22 + $0x3c0] sm:$0xff] (%p2730_p6), %v2140_v40 }
 0x1af   : > { %v1832_v39 = vpop.f32.mrf.mxu1  ;;  %v2408_v21 = vpack.c.bf16 %v1809_v30, %v1807_v28  ;;  %v1813_v33 = vadd.f32 %v1812_v22, %v3625_v3  ;;  %v2144_v30 = vld [vmem:[%s3534_s14 + $0xb0] sm:$0xff] (%p2730_p6) }
 0x1b0   : > { %v1814_v59 = vpop.f32.mrf.mxu0  ;;  %v1833_v4 = vadd.f32 %v1832_v39, %v1719_v16  ;;  %v2122_v42 = vld [vmem:[%s3534_s14 + $0x58] sm:$0xff] (%p2730_p6)  ;;  %2145 = vst [vmem:[%s3691_s22 + $0x420] sm:$0xff] (%p2730_p6), %v2144_v30  ;;  %v2148_v39 = vld [vmem:[%s3534_s14 + $0xc0] sm:$0xff] (%p2730_p6) }
 0x1b1   : > { %v1834_v36 = vpop.f32.mrf.mxu1  ;;  %2058 = vst [vmem:[%s3534_s14 + $0x78] sm:$0xff] %v2408_v21  ;;  %v1815_v23 = vadd.f32 %v1814_v59, %v3627_v24  ;;  %2123 = vst [vmem:[%s3691_s22 + $0x1e8] sm:$0xff] (%p2730_p6), %v2122_v42  ;;  %v2152_v59 = vld [vmem:[%s3534_s14 + $0xd0] sm:$0xff] (%p2730_p6) }
 0x1b2   : > { %v1835_v14 = vadd.f32 %v1834_v36, %v1721_v13  ;;  %v1816_v34 = vpop.f32.mrf.mxu0  ;;  %2149 = vst [vmem:[%s3691_s22 + $0x480] sm:$0xff] (%p2730_p6), %v2148_v39  ;;  %2153 = vst [vmem:[%s3691_s22 + $0x4e0] sm:$0xff] (%p2730_p6), %v2152_v59 }
 0x1b3   : > { %v1836_v46 = vpop.f32.mrf.mxu1  ;;  %v2410_v53 = vpack.c.bf16 %v1815_v23, %v1813_v33  ;;  %v1817_v55 = vadd.f32 %v1816_v34, %v3632_v9  ;;  %v2156_v33 = vld [vmem:[%s3534_s14 + $0xe0] sm:$0xff] (%p2730_p6)  ;;  %v2160_v23 = vld [vmem:[%s3534_s14 + $0xf0] sm:$0xff] (%p2730_p6) }
 0x1b4   : > { %v2418_v17 = vpack.c.bf16 %v1835_v14, %v1833_v4  ;;  %v1818_v0 = vpop.f32.mrf.mxu0  ;;  %v1837_v37 = vadd.f32 %v1836_v46, %v1723_v7  ;;  %v2126_v58 = vld [vmem:[%s3534_s14 + $0x68] sm:$0xff] (%p2730_p6)  ;;  %2157 = vst [vmem:[%s3691_s22 + $0x540] sm:$0xff] (%p2730_p6), %v2156_v33  ;;  %2161 = vst [vmem:[%s3691_s22 + $0x5a0] sm:$0xff] (%p2730_p6), %v2160_v23 }
 0x1b5   : > { %v1838_v26 = vpop.f32.mrf.mxu1  ;;  %2060 = vst [vmem:[%s3534_s14 + $0x88] sm:$0xff] %v2410_v53  ;;  %v1819_v2 = vadd.f32 %v1818_v0, %v3634_v25  ;;  %2127 = vst [vmem:[%s3691_s22 + $0x248] sm:$0xff] (%p2730_p6), %v2126_v58 }
 0x1b6   : > { %2068 = vst [vmem:[%s3534_s14 + $0xc8] sm:$0xff] %v2418_v17  ;;  %v1839_v3 = vadd.f32 %v1838_v26, %v1725_v20  ;;  %v1822_v32 = vpop.f32.mrf.mxu0  ;;  %v2110_v20 = vld [vmem:[%s3534_s14 + $0x28] sm:$0xff] (%p2730_p6) }
 0x1b7   : > { %v1842_v51 = vpop.f32.mrf.mxu1  ;;  %v2412_v24 = vpack.c.bf16 %v1819_v2, %v1817_v55  ;;  %v1823_v45 = vadd.f32 %v1822_v32, %v3639_v31  ;;  %2111 = vst [vmem:[%s3691_s22 + $0xc8] sm:$0xff] (%p2730_p6), %v2110_v20 }
 0x1b8   : > { %v2420_v18 = vpack.c.bf16 %v1839_v3, %v1837_v37  ;;  %v1824_v49 = vpop.f32.mrf.mxu0  ;;  %v1843_v44 = vadd.f32 %v1842_v51, %v1729_v19  ;;  %v2118_v19 = vld [vmem:[%s3534_s14 + $0x48] sm:$0xff] (%p2730_p6)  ;;  %v2130_v50 = vld [vmem:[%s3534_s14 + $0x78] sm:$0xff] (%p2730_p6) }
 0x1b9   : > { %v1844_v54 = vpop.f32.mrf.mxu1  ;;  %2062 = vst [vmem:[%s3534_s14 + $0x98] sm:$0xff] %v2412_v24  ;;  %v1825_v41 = vadd.f32 %v1824_v49, %v3641_v48  ;;  %v2100_v48 = vld [vmem:[%s3534_s14] sm:$0xff] (%p2730_p6)  ;;  %2119 = vst [vmem:[%s3691_s22 + $0x188] sm:$0xff] (%p2730_p6), %v2118_v19 }
 0x1ba   : > { %2070 = vst [vmem:[%s3534_s14 + $0xd8] sm:$0xff] %v2420_v18  ;;  %v1845_v9 = vadd.f32 %v1844_v54, %v1731_v10  ;;  %v1826_v25 = vpop.f32.mrf.mxu0  ;;  %2101 = vst [vmem:[%s3691_s22] sm:$0xff] (%p2730_p6), %v2100_v48  ;;  %v2124_v10 = vld [vmem:[%s3534_s14 + $0x60] sm:$0xff] (%p2730_p6) }
 0x1bb   : > { %v1846_v61 = vpop.f32.mrf.mxu1  ;;  %v2414_v1 = vpack.c.bf16 %v1825_v41, %v1823_v45  ;;  %v1827_v13 = vadd.f32 %v1826_v25, %v3646_v60  ;;  %v2102_v60 = vld [vmem:[%s3534_s14 + $0x8] sm:$0xff] (%p2730_p6)  ;;  %2125 = vst [vmem:[%s3691_s22 + $0x240] sm:$0xff] (%p2730_p6), %v2124_v10  ;;  %2131 = vst [vmem:[%s3691_s22 + $0x2a8] sm:$0xff] (%p2730_p6), %v2130_v50 }
 0x1bc   : > { %v2422_v16 = vpack.c.bf16 %v1845_v9, %v1843_v44  ;;  %v1828_v52 = vpop.f32.mrf.mxu0  ;;  %v1847_v29 = vadd.f32 %v1846_v61, %v1733_v5  ;;  %2103 = vst [vmem:[%s3691_s22 + $0x8] sm:$0xff] (%p2730_p6), %v2102_v60  ;;  %v2132_v5 = vld [vmem:[%s3534_s14 + $0x80] sm:$0xff] (%p2730_p6)  ;;  %v2134_v27 = vld [vmem:[%s3534_s14 + $0x88] sm:$0xff] (%p2730_p6) }
 0x1bd   : > { %v1848_v43 = vpop.f32.mrf.mxu1  ;;  %2064 = vst [vmem:[%s3534_s14 + $0xa8] sm:$0xff] %v2414_v1  ;;  %v1829_v47 = vadd.f32 %v1828_v52, %v3648_v38  ;;  %v2104_v38 = vld [vmem:[%s3534_s14 + $0x10] sm:$0xff] (%p2730_p6)  ;;  %2133 = vst [vmem:[%s3691_s22 + $0x300] sm:$0xff] (%p2730_p6), %v2132_v5  ;;  %v2150_v21 = vld [vmem:[%s3534_s14 + $0xc8] sm:$0xff] (%p2730_p6) }
 0x1be   : > { %2072 = vst [vmem:[%s3534_s14 + $0xe8] sm:$0xff] %v2422_v16  ;;  %v1849_v31 = vadd.f32 %v1848_v43, %v1735_v15  ;;  %2081 = sbr.rel (!%p2730_p6) target bundleno = 459 (0x1cb), region = 63  ;;  %2105 = vst [vmem:[%s3691_s22 + $0x60] sm:$0xff] (%p2730_p6), %v2104_v38 }
 0x1bf   : > { %v2416_v57 = vpack.c.bf16 %v1829_v47, %v1827_v13  ;;  %2135 = vst [vmem:[%s3691_s22 + $0x308] sm:$0xff] (%p2730_p6), %v2134_v27  ;;  %2151 = vst [vmem:[%s3691_s22 + $0x488] sm:$0xff] (%p2730_p6), %v2150_v21 }
 0x1c0   : > { %v2424_v7 = vpack.c.bf16 %v1849_v31, %v1847_v29  ;;  %v2138_v15 = vld [vmem:[%s3534_s14 + $0x98] sm:$0xff] (%p2730_p6) }
 0x1c1   : > { %2066 = vst [vmem:[%s3534_s14 + $0xb8] sm:$0xff] %v2416_v57  ;;  %2139 = vst [vmem:[%s3691_s22 + $0x368] sm:$0xff] (%p2730_p6), %v2138_v15  ;;  %v2154_v36 = vld [vmem:[%s3534_s14 + $0xd8] sm:$0xff] (%p2730_p6) }
 0x1c2   : > { %2074 = vst [vmem:[%s3534_s14 + $0xf8] sm:$0xff] %v2424_v7  ;;  %2155 = vst [vmem:[%s3691_s22 + $0x4e8] sm:$0xff] (%p2730_p6), %v2154_v36 }
 0x1c4   : > { %v2142_v28 = vld [vmem:[%s3534_s14 + $0xa8] sm:$0xff] }
 0x1c5   : > { %2143 = vst [vmem:[%s3691_s22 + $0x3c8] sm:$0xff] %v2142_v28  ;;  %v2158_v4 = vld [vmem:[%s3534_s14 + $0xe8] sm:$0xff] }
 0x1c6   : > { %2159 = vst [vmem:[%s3691_s22 + $0x548] sm:$0xff] %v2158_v4 }
 0x1c8   : > { %v2146_v22 = vld [vmem:[%s3534_s14 + $0xb8] sm:$0xff] }
 0x1c9   : > { %2147 = vst [vmem:[%s3691_s22 + $0x428] sm:$0xff] %v2146_v22  ;;  %v2162_v14 = vld [vmem:[%s3534_s14 + $0xf8] sm:$0xff] }
 0x1ca   : > { %2163 = vst [vmem:[%s3691_s22 + $0x5a8] sm:$0xff] %v2162_v14 }
 0x1cb PF: > { %s14_s19 = sadd.s32 1, %s2667_s19   ;;  %s3775_s15 = smov %s2655_s16 }
 0x1cc   : > { %p11_p11 = scmp.ge.s32.totalorder %s14_s19, 8   ;;  %s3776_s16 = smov %s2735_s25 }
 0x1cd   : > { %s3777_s17 = smov %s2663_s18  ;;  %s3778_s18 = smov %s3780_s20 }
 0x1ce   :  { %13 = sbr.rel (!%p11_p11) target bundleno = 3 (0x3), region = 120 }

// kernel: generator_forward.15
= control target key start
LH: loop header
LB: loop body
LE: loop exit
PB: predicated region body
PF: predicated region fallthrough
CT: control target
= control target key end

     0   :  { %v1288_v0 = vlaneseq  ;;  %v1310_v1 = vmov 0  ;;  %v620_v2 = vmov 0.0   ;;  %v621_v11 = vmov 1966171168   ;;  %s1285_s1 = inlined_call_operand.vmem [shape: f32[1,384], index: 1, kind: output, shape index: {0}]   ;;  %s1286_s2 = inlined_call_operand.vmem [shape: f32[1,384], index: 2, kind: output, shape index: {1}]   ;;  %s1287_s0 = inlined_call_operand.vmem [shape: bf16[256,384], index: 0, kind: input, shape index: {}]  }
   0x1   :  { %v656_v3 = vld [vmem:[%s1287_s0] sm:$0xff]  ;;  %v21_v4 = vld [vmem:[%s1287_s0 + $0x8] ss:$12 sps:$4 sm:$0xff]   ;;  %v664_v5 = vld [vmem:[%s1287_s0 + $0xc] sm:$0xff]  ;;  %v685_v12 = vunpack.c.l.s4 %v621_v11 }
   0x2   :  { %vm639_vm0 = vcmp.lt.s32.totalorder %v1288_v0, 384  ;;  %v669_v6 = vld [vmem:[%s1287_s0 + $0x18] sm:$0xff]  ;;  %v25_v7 = vld [vmem:[%s1287_s0 + $0x20] ss:$12 sps:$4 sm:$0xff]   ;;  %v677_v8 = vld [vmem:[%s1287_s0 + $0x24] sm:$0xff]  ;;  %v84_v10 = vunpack.c.l.bf16 %v656_v3  ;;  %v85_v15 = vunpack.c.h.bf16 %v656_v3  ;;  %v696_v16 = vunpack.c.l.bf16 %v21_v4 }
   0x3   :  { %v1311_v1 = vsel %vm639_vm0, 4294967295, %v1310_v1  ;;  %18 = vst.msk [vmem:[%s1285_s1] sm:$0x7] %vm639_vm0, %v620_v2  ;;  %19 = vst.msk [vmem:[%s1286_s2] sm:$0x7] %vm639_vm0, %v620_v2  ;;  %v682_v9 = vld [vmem:[%s1287_s0 + $0x30] sm:$0xff]  ;;  %v87_v17 = vunpack.c.l.bf16 %v664_v5  ;;  %v88_v18 = vunpack.c.h.bf16 %v664_v5  ;;  %v708_v21 = vunpack.c.h.bf16 %v21_v4 }
   0x4   :  { %1312 = vst [vmem:[#allocation2_spill] sm:$0xff] %v1311_v1  ;;  %v29_v13 = vld [vmem:[%s1287_s0 + $0x38] ss:$12 sps:$4 sm:$0xff]   ;;  %v693_v14 = vld [vmem:[%s1287_s0 + $0x3c] sm:$0xff]  ;;  %v703_v19 = vld [vmem:[%s1287_s0 + $0x48] sm:$0xff]  ;;  %v90_v22 = vunpack.c.l.bf16 %v669_v6  ;;  %v91_v23 = vunpack.c.h.bf16 %v669_v6  ;;  %v712_v24 = vunpack.c.l.bf16 %v25_v7  ;;  %v93_v27 = vunpack.c.l.bf16 %v677_v8 }
   0x5   :  { %1313 = vst [vmem:[#allocation3_spill] sm:$0xff] %v693_v14  ;;  %1314 = vst [vmem:[#allocation4_spill] sm:$0xff] %v703_v19  ;;  %v33_v20 = vld [vmem:[%s1287_s0 + $0x50] ss:$12 sps:$4 sm:$0xff]   ;;  %v717_v25 = vld [vmem:[%s1287_s0 + $0x54] sm:$0xff]  ;;  %v94_v28 = vunpack.c.h.bf16 %v677_v8  ;;  %v726_v29 = vunpack.c.h.bf16 %v25_v7  ;;  %v96_v30 = vunpack.c.l.bf16 %v682_v9  ;;  %v97_v31 = vunpack.c.h.bf16 %v682_v9 }
   0x6   :  { %1315 = vst [vmem:[#allocation5_spill] sm:$0xff] %v717_v25  ;;  %v722_v26 = vld [vmem:[%s1287_s0 + $0x60] sm:$0xff]  ;;  %v730_v32 = vunpack.c.l.bf16 %v29_v13  ;;  %v99_v33 = vunpack.c.l.bf16 %v693_v14  ;;  %v100_v34 = vunpack.c.h.bf16 %v693_v14  ;;  %v37_v35 = vld [vmem:[%s1287_s0 + $0x68] ss:$12 sps:$4 sm:$0xff]   ;;  %v740_v36 = vld [vmem:[%s1287_s0 + $0x6c] sm:$0xff]  ;;  %v742_v37 = vunpack.c.h.bf16 %v29_v13 }
   0x7   :  { %1316 = vst [vmem:[#allocation6_spill] sm:$0xff] %v722_v26  ;;  %1317 = vst [vmem:[#allocation7_spill] sm:$0xff] %v740_v36  ;;  %v102_v38 = vunpack.c.l.bf16 %v703_v19  ;;  %v103_v39 = vunpack.c.h.bf16 %v703_v19  ;;  %v746_v40 = vunpack.c.l.bf16 %v33_v20  ;;  %v751_v41 = vld [vmem:[%s1287_s0 + $0x78] sm:$0xff]  ;;  %v105_v42 = vunpack.c.l.bf16 %v717_v25  ;;  %v41_v46 = vld [vmem:[%s1287_s0 + $0x80] ss:$12 sps:$4 sm:$0xff]  }
   0x8   :  { %1318 = vst [vmem:[#allocation8_spill] sm:$0xff] %v751_v41  ;;  %v106_v43 = vunpack.c.h.bf16 %v717_v25  ;;  %v755_v44 = vunpack.c.h.bf16 %v33_v20  ;;  %v108_v45 = vunpack.c.l.bf16 %v722_v26  ;;  %v764_v47 = vld [vmem:[%s1287_s0 + $0x84] sm:$0xff]  ;;  %v109_v48 = vunpack.c.h.bf16 %v722_v26  ;;  %v778_v56 = vld [vmem:[%s1287_s0 + $0x90] sm:$0xff]  ;;  %v786_v58 = vld [vmem:[%s1287_s0 + $0x9c] sm:$0xff] }
   0x9   :  { %1319 = vst [vmem:[#allocation9_spill] sm:$0xff] %v764_v47  ;;  %v181_v49 = vadd.f32 %v87_v17, %v84_v10  ;;  %v218_v50 = vadd.f32 %v88_v18, %v85_v15  ;;  %v255_v51 = vadd.f32 %v708_v21, %v696_v16  ;;  %v769_v52 = vunpack.c.l.bf16 %v37_v35  ;;  %1320 = vst [vmem:[#allocation10_spill] sm:$0xff] %v778_v56  ;;  %v45_v57 = vld [vmem:[%s1287_s0 + $0x98] ss:$12 sps:$4 sm:$0xff]   ;;  %v798_v10 = vld [vmem:[%s1287_s0 + $0xa8] sm:$0xff] }
   0xa   :  { %v111_v53 = vunpack.c.l.bf16 %v740_v36  ;;  %v112_v54 = vunpack.c.h.bf16 %v740_v36  ;;  %v773_v55 = vunpack.c.h.bf16 %v37_v35  ;;  %1321 = vst [vmem:[#allocation11_spill] sm:$0xff] %v786_v58  ;;  %v791_v2 = vunpack.c.l.bf16 %v41_v46  ;;  %1322 = vst [vmem:[#allocation12_spill] sm:$0xff] %v798_v10  ;;  %v49_v11 = vld [vmem:[%s1287_s0 + $0xb0] ss:$12 sps:$4 sm:$0xff]   ;;  %v809_v20 = vld [vmem:[%s1287_s0 + $0xb4] sm:$0xff] }
   0xb   :  { %v182_v60 = vadd.f32 %v181_v49, %v90_v22  ;;  %v219_v61 = vadd.f32 %v218_v50, %v91_v23  ;;  %v256_v62 = vadd.f32 %v255_v51, %v712_v24  ;;  %v803_v13 = vunpack.c.h.bf16 %v41_v46  ;;  %v57_v22 = vld [vmem:[%s1287_s0 + $0xe0] ss:$12 sps:$4 sm:$0xff]  }
   0xc   :  { %v813_v35 = vunpack.c.l.bf16 %v45_v57  ;;  %v830_v49 = vunpack.c.l.bf16 %v49_v11  ;;  %v845_v0 = vunpack.c.h.bf16 %v49_v11  ;;  %v892_v7 = vunpack.c.h.bf16 %v57_v22  ;;  %v936_v63 = vld [vmem:[%s1287_s0 + $0x12c] sm:$0xff] }
   0xd   :  { %v183_v15 = vadd.f32 %v182_v60, %v93_v27  ;;  %v220_v17 = vadd.f32 %v219_v61, %v94_v28  ;;  %v257_v18 = vadd.f32 %v256_v62, %v726_v29  ;;  %v819_v27 = vld [vmem:[%s1287_s0 + $0xc0] sm:$0xff]  ;;  %v53_v60 = vld [vmem:[%s1287_s0 + $0xc8] ss:$12 sps:$4 sm:$0xff]   ;;  %v826_v61 = vunpack.c.h.bf16 %v45_v57  ;;  %v835_v28 = vld [vmem:[%s1287_s0 + $0xcc] sm:$0xff] }
   0xe   :  { %1323 = vst [vmem:[#allocation13_spill] sm:$0xff] %v813_v35  ;;  %v871_v62 = vunpack.c.h.bf16 %v53_v60  ;;  %v1002_v14 = vld [vmem:[%s1287_s0 + $0x168] sm:$0xff]  ;;  %572 = vmul.bf16.f32.vacc0 %v656_v3, %v656_v3  ;;  %v355_v3 = vmul.f32 %v773_v55, %v773_v55 }
   0xf   :  { %v184_v46 = vadd.f32 %v183_v15, %v96_v30  ;;  %v221_v50 = vadd.f32 %v220_v17, %v97_v31  ;;  %v258_v51 = vadd.f32 %v257_v18, %v730_v32  ;;  %1324 = vst [vmem:[#allocation14_spill] sm:$0xff] %v826_v61  ;;  %v840_v30 = vld [vmem:[%s1287_s0 + $0xd8] sm:$0xff]  ;;  %v855_v31 = vld [vmem:[%s1287_s0 + $0xe4] sm:$0xff]  ;;  %v888_v18 = vunpack.c.l.bf16 %v57_v22 }
  0x10   :  { %573 = vmac.bf16.f32.vacc0 %v664_v5, %v664_v5 }
  0x11   :  { %v185_v57 = vadd.f32 %v184_v46, %v99_v33  ;;  %v222_v15 = vadd.f32 %v221_v50, %v100_v34  ;;  %v259_v17 = vadd.f32 %v258_v51, %v742_v37  ;;  %v857_v33 = vunpack.c.l.bf16 %v53_v60  ;;  %v867_v50 = vld [vmem:[%s1287_s0 + $0xf0] sm:$0xff]  ;;  %v73_v51 = vld [vmem:[%s1287_s0 + $0x140] ss:$12 sps:$4 sm:$0xff]  }
  0x12   :  { %574 = vmac.bf16.f32.vacc0 %v669_v6, %v669_v6 }
  0x13   :  { %v186_v34 = vadd.f32 %v185_v57, %v102_v38  ;;  %v223_v11 = vadd.f32 %v222_v15, %v103_v39  ;;  %v260_v46 = vadd.f32 %v259_v17, %v746_v40  ;;  %v61_v38 = vld [vmem:[%s1287_s0 + $0xf8] ss:$12 sps:$4 sm:$0xff]   ;;  %v880_v39 = vld [vmem:[%s1287_s0 + $0xfc] sm:$0xff]  ;;  %v897_v57 = vld [vmem:[%s1287_s0 + $0x108] sm:$0xff]  ;;  %575 = vmac.bf16.f32.vacc0 %v677_v8, %v677_v8 }
  0x14   :  { %v914_v23 = vunpack.c.l.bf16 %v61_v38  ;;  %576 = vmac.bf16.f32.vacc0 %v682_v9, %v682_v9  ;;  %v1362_v8 = vunpack.c.h.bf16 %v936_v63 }
  0x15   :  { %v187_v15 = vadd.f32 %v186_v34, %v105_v42  ;;  %v224_v60 = vadd.f32 %v223_v11, %v106_v43  ;;  %v261_v17 = vadd.f32 %v260_v46, %v755_v44  ;;  %v65_v42 = vld [vmem:[%s1287_s0 + $0x110] ss:$12 sps:$4 sm:$0xff]   ;;  %v905_v43 = vld [vmem:[%s1287_s0 + $0x114] sm:$0xff]  ;;  %v921_v34 = vld [vmem:[%s1287_s0 + $0x120] sm:$0xff] }
  0x16   :  { %v940_v59 = vunpack.c.l.bf16 %v65_v42  ;;  %v1357_v5 = vunpack.c.l.bf16 %v905_v43  ;;  %v1360_v6 = vunpack.c.h.bf16 %v921_v34 }
  0x17   :  { %v188_v22 = vadd.f32 %v187_v15, %v108_v45  ;;  %v225_v11 = vadd.f32 %v224_v60, %v109_v48  ;;  %v262_v46 = vadd.f32 %v261_v17, %v769_v52  ;;  %v69_v45 = vld [vmem:[%s1287_s0 + $0x128] ss:$12 sps:$4 sm:$0xff]   ;;  %v926_v48 = vunpack.c.h.bf16 %v61_v38 }
  0x18   :  { %v957_v38 = vunpack.c.h.bf16 %v65_v42  ;;  %v961_v25 = vunpack.c.l.bf16 %v69_v45  ;;  %v1329_v42 = vunpack.c.l.bf16 %v764_v47 }
  0x19   :  { %v189_v15 = vadd.f32 %v188_v22, %v111_v53  ;;  %v226_v60 = vadd.f32 %v225_v11, %v112_v54  ;;  %v263_v17 = vadd.f32 %v262_v46, %v773_v55  ;;  %v946_v53 = vld [vmem:[%s1287_s0 + $0x138] sm:$0xff]  ;;  %v1326_v22 = vunpack.c.l.bf16 %v751_v41 }
  0x1a   :  { %1325 = vst [vmem:[#allocation15_spill] sm:$0xff] %v946_v53  ;;  %v1327_v46 = vunpack.c.h.bf16 %v751_v41  ;;  %v980_v41 = vunpack.c.h.bf16 %v69_v45  ;;  %v1333_v45 = vunpack.c.h.bf16 %v778_v56  ;;  %v1006_v53 = vunpack.c.h.bf16 %v73_v51 }
  0x1b   :  { %v190_v11 = vadd.f32 %v189_v15, %v1326_v22  ;;  %v264_v4 = vadd.f32 %v263_v17, %v791_v2  ;;  %v966_v15 = vld [vmem:[%s1287_s0 + $0x144] sm:$0xff] }
  0x1c   :  { %v227_v1 = vadd.f32 %v226_v60, %v1327_v46  ;;  %v971_v60 = vld [vmem:[%s1287_s0 + $0x150] sm:$0xff]  ;;  %v1330_v46 = vunpack.c.h.bf16 %v764_v47  ;;  %v77_v17 = vld [vmem:[%s1287_s0 + $0x158] ss:$12 sps:$4 sm:$0xff]   ;;  %v298_v47 = vunpack.c.0.s8 %v685_v12 }
  0x1d   :  { %1328 = vst [vmem:[#allocation16_spill] sm:$0xff] %v971_v60  ;;  %v191_v22 = vadd.f32 %v190_v11, %v1329_v42  ;;  %v265_v36 = vadd.f32 %v264_v4, %v803_v13  ;;  %v990_v11 = vld [vmem:[%s1287_s0 + $0x15c] sm:$0xff]  ;;  %v1332_v4 = vunpack.c.l.bf16 %v778_v56 }
  0x1e   :  { %v228_v26 = vadd.f32 %v227_v1, %v1330_v46  ;;  %v992_v1 = vunpack.c.l.bf16 %v73_v51  ;;  %v1021_v51 = vld [vmem:[%s1287_s0 + $0x174] sm:$0xff] }
  0x1f   :  { %v192_v42 = vadd.f32 %v191_v22, %v1332_v4  ;;  %v266_v19 = vadd.f32 %v265_v36, %v813_v35  ;;  %v81_v22 = vld [vmem:[%s1287_s0 + $0x170] ss:$12 sps:$4 sm:$0xff]   ;;  %v1334_v36 = vunpack.c.l.bf16 %v786_v58 }
  0x20   :  { %1331 = vst [vmem:[#allocation17_spill] sm:$0xff] %v992_v1  ;;  %v229_v46 = vadd.f32 %v228_v26, %v1333_v45  ;;  %v1335_v45 = vunpack.c.h.bf16 %v786_v58  ;;  %v1023_v1 = vunpack.c.l.bf16 %v77_v17  ;;  %v1027_v26 = vunpack.c.h.bf16 %v77_v17 }
  0x21   :  { %v193_v4 = vadd.f32 %v192_v42, %v1334_v36  ;;  %v267_v54 = vadd.f32 %v266_v19, %v826_v61  ;;  %v1338_v36 = vunpack.c.l.bf16 %v798_v10  ;;  %v1339_v19 = vunpack.c.h.bf16 %v798_v10  ;;  %v1364_v9 = vld [vmem:[#allocation15_spill] sm:$0xff] }
  0x22   :  { %v230_v56 = vadd.f32 %v229_v46, %v1335_v45  ;;  %1336 = vst [vmem:[#allocation18_spill] sm:$0xff] %v1023_v1  ;;  %1337 = vst [vmem:[#allocation19_spill] sm:$0xff] %v1027_v26  ;;  %v1036_v60 = vunpack.c.l.bf16 %v81_v22  ;;  %v1340_v1 = vlaneseq  ;;  %v1341_v42 = vunpack.c.l.bf16 %v809_v20 }
  0x23   :  { %v194_v46 = vadd.f32 %v193_v4, %v1338_v36  ;;  %v268_v58 = vadd.f32 %v267_v54, %v830_v49  ;;  %v1342_v4 = vunpack.c.h.bf16 %v809_v20  ;;  %v1343_v61 = vunpack.c.l.bf16 %v819_v27 }
  0x24   :  { %v231_v45 = vadd.f32 %v230_v56, %v1339_v19  ;;  %v1040_v35 = vshrl.u32 %v1340_v1, 7  ;;  %v1049_v19 = vunpack.c.h.bf16 %v81_v22  ;;  %v1344_v1 = vunpack.c.h.bf16 %v819_v27 }
  0x25   :  { %v195_v26 = vadd.f32 %v194_v46, %v1341_v42  ;;  %v269_v56 = vadd.f32 %v268_v58, %v845_v0  ;;  %v328_v42 = vmul.f32 %v696_v16, %v696_v16  ;;  %v331_v58 = vmul.f32 %v708_v21, %v708_v21 }
  0x26   :  { %v232_v36 = vadd.f32 %v231_v45, %v1342_v4  ;;  %v1059_v46 = vsub.s32 %v298_v47, %v1040_v35  ;;  %v1345_v22 = vunpack.c.l.bf16 %v835_v28  ;;  %v1346_v4 = vunpack.c.h.bf16 %v835_v28 }
  0x27   :  { %v196_v12 = vadd.f32 %v195_v26, %v1343_v61  ;;  %v270_v17 = vadd.f32 %v269_v56, %v857_v33  ;;  %v1347_v56 = vunpack.c.l.bf16 %v840_v30  ;;  %v1348_v47 = vunpack.c.h.bf16 %v840_v30 }
  0x28   :  { %v233_v10 = vadd.f32 %v232_v36, %v1344_v1  ;;  %v334_v36 = vmul.f32 %v712_v24, %v712_v24  ;;  %v337_v21 = vmul.f32 %v726_v29, %v726_v29 }
  0x29   :  { %v197_v45 = vadd.f32 %v196_v12, %v1345_v22  ;;  %v271_v26 = vadd.f32 %v270_v17, %v871_v62  ;;  %v340_v12 = vmul.f32 %v730_v32, %v730_v32  ;;  %v1350_v22 = vunpack.c.h.bf16 %v855_v31 }
  0x2a   :  { %v234_v61 = vadd.f32 %v233_v10, %v1346_v4  ;;  %v1349_v10 = vunpack.c.l.bf16 %v855_v31 }
  0x2b   :  { %v198_v16 = vadd.f32 %v197_v45, %v1347_v56  ;;  %v272_v54 = vadd.f32 %v271_v26, %v888_v18  ;;  %v343_v45 = vmul.f32 %v742_v37, %v742_v37  ;;  %v1351_v26 = vunpack.c.l.bf16 %v867_v50 }
  0x2c   :  { %v235_v1 = vadd.f32 %v234_v61, %v1348_v47  ;;  %v346_v61 = vmul.f32 %v746_v40, %v746_v40  ;;  %v1352_v56 = vunpack.c.h.bf16 %v867_v50  ;;  %v352_v40 = vmul.f32 %v769_v52, %v769_v52 }
  0x2d   :  { %v199_v17 = vadd.f32 %v198_v16, %v1349_v10  ;;  %v273_v4 = vadd.f32 %v272_v54, %v892_v7  ;;  %v349_v16 = vmul.f32 %v755_v44, %v755_v44  ;;  %v1354_v10 = vunpack.c.h.bf16 %v880_v39 }
  0x2e   :  { %v236_v24 = vadd.f32 %v235_v1, %v1350_v22  ;;  %v1353_v1 = vunpack.c.l.bf16 %v880_v39  ;;  %v1355_v44 = vunpack.c.l.bf16 %v897_v57  ;;  %v1358_v52 = vunpack.c.h.bf16 %v905_v43 }
  0x2f   :  { %v200_v29 = vadd.f32 %v199_v17, %v1351_v26  ;;  %v274_v47 = vadd.f32 %v273_v4, %v914_v23  ;;  %v496_v17 = vadd.f32 %v331_v58, %v328_v42  ;;  %v1356_v4 = vunpack.c.h.bf16 %v897_v57 }
  0x30   :  { %v237_v32 = vadd.f32 %v236_v24, %v1352_v56 }
  0x31   :  { %v201_v54 = vadd.f32 %v200_v29, %v1353_v1  ;;  %v275_v22 = vadd.f32 %v274_v47, %v926_v48  ;;  %v497_v56 = vadd.f32 %v496_v17, %v334_v36  ;;  %v1359_v1 = vunpack.c.l.bf16 %v921_v34 }
  0x32   :  { %v238_v37 = vadd.f32 %v237_v32, %v1354_v10  ;;  %v358_v36 = vmul.f32 %v791_v2, %v791_v2  ;;  %v1366_v2 = vunpack.c.h.bf16 %v1364_v9 }
  0x33   :  { %v202_v24 = vadd.f32 %v201_v54, %v1355_v44  ;;  %v276_v29 = vadd.f32 %v275_v22, %v940_v59  ;;  %v498_v47 = vadd.f32 %v497_v56, %v337_v21  ;;  %v1361_v22 = vunpack.c.l.bf16 %v936_v63 }
  0x34   :  { %v239_v26 = vadd.f32 %v238_v37, %v1356_v4  ;;  %v361_v4 = vmul.f32 %v803_v13, %v803_v13 }
  0x35   :  { %v203_v32 = vadd.f32 %v202_v24, %v1357_v5  ;;  %v277_v58 = vadd.f32 %v276_v29, %v957_v38  ;;  %v499_v37 = vadd.f32 %v498_v47, %v340_v12  ;;  %v1363_v24 = vld [vmem:[#allocation3_spill] sm:$0xff]  ;;  %v1365_v29 = vunpack.c.l.bf16 %v1364_v9  ;;  %v1367_v5 = vld [vmem:[#allocation17_spill] sm:$0xff] }
  0x36   :  { %v240_v42 = vadd.f32 %v239_v26, %v1358_v52  ;;  %577 = vmac.bf16.f32.vacc0 %v1363_v24, %v1363_v24  ;;  %v1368_v52 = vld [vmem:[#allocation4_spill] sm:$0xff]  ;;  %v1377_v24 = vld [vmem:[#allocation6_spill] sm:$0xff] }
  0x37   :  { %v204_v54 = vadd.f32 %v203_v32, %v1359_v1  ;;  %v278_v55 = vadd.f32 %v277_v58, %v961_v25  ;;  %v500_v26 = vadd.f32 %v499_v37, %v343_v45  ;;  %578 = vmac.bf16.f32.vacc0 %v1368_v52, %v1368_v52  ;;  %v1371_v45 = vld [vmem:[#allocation5_spill] sm:$0xff]  ;;  %v1373_v37 = vld [vmem:[#allocation16_spill] sm:$0xff]  ;;  %v1381_v52 = vld [vmem:[#allocation19_spill] sm:$0xff] }
  0x38   :  { %v241_v10 = vadd.f32 %v240_v42, %v1360_v6  ;;  %v1369_v58 = vunpack.c.l.bf16 %v966_v15  ;;  %v1370_v1 = vunpack.c.h.bf16 %v966_v15  ;;  %579 = vmac.bf16.f32.vacc0 %v1371_v45, %v1371_v45  ;;  %v1372_v6 = vld [vmem:[#allocation13_spill] sm:$0xff] }
  0x39   :  { %v205_v17 = vadd.f32 %v204_v54, %v1361_v22  ;;  %v279_v44 = vadd.f32 %v278_v55, %v980_v41  ;;  %v501_v42 = vadd.f32 %v500_v26, %v346_v61  ;;  %v1374_v22 = vunpack.c.l.bf16 %v1373_v37  ;;  %v1378_v26 = vld [vmem:[#allocation14_spill] sm:$0xff] }
  0x3a   :  { %v242_v21 = vadd.f32 %v241_v10, %v1362_v8  ;;  %v364_v10 = vmul.f32 %v1372_v6, %v1372_v6  ;;  %v1375_v61 = vunpack.c.h.bf16 %v1373_v37  ;;  %580 = vmac.bf16.f32.vacc0 %v1377_v24, %v1377_v24  ;;  %v1385_v6 = vld [vmem:[#allocation8_spill] sm:$0xff]  ;;  %v1388_v24 = vld [vmem:[#allocation9_spill] sm:$0xff] }
  0x3b   :  { %v206_v56 = vadd.f32 %v205_v17, %v1365_v29  ;;  %v280_v32 = vadd.f32 %v279_v44, %v1367_v5  ;;  %v502_v55 = vadd.f32 %v501_v42, %v349_v16  ;;  %v367_v29 = vmul.f32 %v1378_v26, %v1378_v26 }
  0x3c   :  { %v243_v12 = vadd.f32 %v242_v21, %v1366_v2  ;;  %v1376_v21 = vld [vmem:[#allocation18_spill] sm:$0xff]  ;;  %v1379_v2 = vunpack.c.l.bf16 %v990_v11  ;;  %v1380_v16 = vunpack.c.h.bf16 %v990_v11  ;;  %v373_v26 = vmul.f32 %v845_v0, %v845_v0 }
  0x3d   :  { %v207_v47 = vadd.f32 %v206_v56, %v1369_v58  ;;  %v281_v13 = vadd.f32 %v280_v32, %v1006_v53  ;;  %v503_v56 = vadd.f32 %v502_v55, %v352_v40  ;;  %v1382_v58 = vld [vmem:[#allocation7_spill] sm:$0xff]  ;;  %v370_v55 = vmul.f32 %v830_v49, %v830_v49  ;;  %v1389_v49 = vld [vmem:[#allocation10_spill] sm:$0xff] }
  0x3e   :  { %v244_v54 = vadd.f32 %v243_v12, %v1370_v1  ;;  %581 = vmac.bf16.f32.vacc0 %v1382_v58, %v1382_v58  ;;  %v1383_v1 = vunpack.c.l.bf16 %v1002_v14 }
  0x3f   :  { %v208_v17 = vadd.f32 %v207_v47, %v1374_v22  ;;  %v282_v44 = vadd.f32 %v281_v13, %v1376_v21  ;;  %v504_v47 = vadd.f32 %v503_v56, %v355_v3  ;;  %v1384_v13 = vunpack.c.h.bf16 %v1002_v14 }
  0x40   :  { %v245_v8 = vadd.f32 %v244_v54, %v1375_v61  ;;  %582 = vmac.bf16.f32.vacc0 %v1385_v6, %v1385_v6  ;;  %v1387_v3 = vunpack.c.h.bf16 %v1021_v51 }
  0x41   :  { %v209_v12 = vadd.f32 %v208_v17, %v1379_v2  ;;  %v283_v42 = vadd.f32 %v282_v44, %v1381_v52  ;;  %v505_v22 = vadd.f32 %v504_v47, %v358_v36  ;;  %v1386_v17 = vunpack.c.l.bf16 %v1021_v51  ;;  %v1390_v47 = vld [vmem:[#allocation11_spill] sm:$0xff] }
  0x42   :  { %v246_v32 = vadd.f32 %v245_v8, %v1380_v16  ;;  %583 = vmac.bf16.f32.vacc0 %v1388_v24, %v1388_v24 }
  0x43   :  { %v210_v54 = vadd.f32 %v209_v12, %v1383_v1  ;;  %v284_v40 = vadd.f32 %v283_v42, %v1036_v60  ;;  %v506_v56 = vadd.f32 %v505_v22, %v361_v4  ;;  %584 = vmac.bf16.f32.vacc0 %v1389_v49, %v1389_v49 }
  0x44   :  { %v247_v45 = vadd.f32 %v246_v32, %v1384_v13  ;;  %585 = vmac.bf16.f32.vacc0 %v1390_v47, %v1390_v47  ;;  %v376_v1 = vmul.f32 %v857_v33, %v857_v33 }
  0x45   :  { %v211_v61 = vadd.f32 %v210_v54, %v1386_v17  ;;  %v285_v44 = vadd.f32 %v284_v40, %v1049_v19  ;;  %v507_v36 = vadd.f32 %v506_v56, %v364_v10  ;;  %v379_v40 = vmul.f32 %v871_v62, %v871_v62 }
  0x46   :  { %v248_v8 = vadd.f32 %v247_v45, %v1387_v3  ;;  %v1391_v45 = vld [vmem:[#allocation12_spill] sm:$0xff] }
  0x47   :  { %v212_v2 = vrot.slane %v211_v61, 4  ;;  %v286_v16 = vrot.slane %v285_v44, 4  ;;  %v508_v54 = vadd.f32 %v507_v36, %v367_v29  ;;  %586 = vmac.bf16.f32.vacc0 %v1391_v45, %v1391_v45 }
  0x48   :  { %v249_v12 = vrot.slane %v248_v8, 4  ;;  %587 = vmac.bf16.f32.vacc0 %v809_v20, %v809_v20  ;;  %v385_v20 = vmul.f32 %v892_v7, %v892_v7 }
  0x49   :  { %v213_v32 = vadd.f32 %v212_v2, %v211_v61  ;;  %v287_v58 = vadd.f32 %v286_v16, %v285_v44  ;;  %v509_v10 = vadd.f32 %v508_v54, %v370_v55  ;;  %588 = vmac.bf16.f32.vacc0 %v819_v27, %v819_v27 }
  0x4a   :  { %v250_v42 = vadd.f32 %v249_v12, %v248_v8  ;;  %v382_v8 = vmul.f32 %v888_v18, %v888_v18  ;;  %589 = vmac.bf16.f32.vacc0 %v835_v28, %v835_v28  ;;  %v388_v27 = vmul.f32 %v914_v23, %v914_v23 }
  0x4b   :  { %v214_v13 = vrot.slane %v213_v32, 2  ;;  %v288_v4 = vrot.slane %v287_v58, 2  ;;  %v510_v61 = vadd.f32 %v509_v10, %v373_v26  ;;  %590 = vmac.bf16.f32.vacc0 %v840_v30, %v840_v30  ;;  %v180_v30 = vld [vmem:[%s1285_s1] sm:$0x7] }
  0x4c   :  { %v251_v0 = vrot.slane %v250_v42, 2  ;;  %591 = vmac.bf16.f32.vacc0 %v855_v31, %v855_v31  ;;  %v391_v28 = vmul.f32 %v926_v48, %v926_v48  ;;  %v394_v23 = vmul.f32 %v940_v59, %v940_v59 }
  0x4d   :  { %v215_v6 = vadd.f32 %v214_v13, %v213_v32  ;;  %v289_v17 = vadd.f32 %v288_v4, %v287_v58  ;;  %v511_v44 = vadd.f32 %v510_v61, %v376_v1  ;;  %592 = vmac.bf16.f32.vacc0 %v867_v50, %v867_v50 }
  0x4e   :  { %v252_v22 = vadd.f32 %v251_v0, %v250_v42  ;;  %593 = vmac.bf16.f32.vacc0 %v880_v39, %v880_v39  ;;  %v397_v31 = vmul.f32 %v957_v38, %v957_v38  ;;  %v400_v50 = vmul.f32 %v961_v25, %v961_v25 }
  0x4f   :  { %v216_v3 = vrot.slane %v215_v6, 1  ;;  %v290_v29 = vrot.slane %v289_v17, 1  ;;  %v512_v26 = vadd.f32 %v511_v44, %v379_v40  ;;  %594 = vmac.bf16.f32.vacc0 %v897_v57, %v897_v57 }
  0x50   :  { %v253_v33 = vrot.slane %v252_v22, 1  ;;  %595 = vmac.bf16.f32.vacc0 %v905_v43, %v905_v43  ;;  %v403_v59 = vmul.f32 %v980_v41, %v980_v41  ;;  %v406_v25 = vmul.f32 %v1367_v5, %v1367_v5 }
  0x51   :  { %v217_v24 = vadd.f32 %v216_v3, %v215_v6  ;;  %v291_v55 = vadd.f32 %v290_v29, %v289_v17  ;;  %v513_v18 = vadd.f32 %v512_v26, %v382_v8  ;;  %596 = vmac.bf16.f32.vacc0 %v921_v34, %v921_v34 }
  0x52   :  { %v254_v62 = vadd.f32 %v253_v33, %v252_v22  ;;  %597 = vmac.bf16.f32.vacc0 %v936_v63, %v936_v63  ;;  %v409_v38 = vmul.f32 %v1006_v53, %v1006_v53  ;;  %v412_v41 = vmul.f32 %v1376_v21, %v1376_v21 }
  0x53   :  { %v309_v2 = vrot.slane %v291_v55, %v1059_v46  ;;  %v514_v7 = vadd.f32 %v513_v18, %v385_v20  ;;  %598 = vmac.bf16.f32.vacc0 %v1364_v9, %v1364_v9  ;;  %v415_v34 = vmul.f32 %v1381_v52, %v1381_v52  ;;  %v325_v18 = vld [vmem:[%s1286_s2] sm:$0x7] }
  0x54   :  { %v295_v56 = vcombine.low %v217_v24, %v254_v62  ;;  %599 = vmac.bf16.f32.vacc0 %v966_v15, %v966_v15  ;;  %v418_v63 = vmul.f32 %v1036_v60, %v1036_v60  ;;  %v421_v9 = vmul.f32 %v1049_v19, %v1049_v19 }
  0x55   :  { %v515_v49 = vadd.f32 %v514_v7, %v388_v27  ;;  %600 = vmac.bf16.f32.vacc0 %v1373_v37, %v1373_v37  ;;  %v622_v60 = vmov 1935823168  }
  0x56   :  { %v302_v12 = vrot.slane %v295_v56, %v1059_v46  ;;  %601 = vmac.bf16.f32.vacc0 %v990_v11, %v990_v11  ;;  %v608_v13 = vunpack.c.l.s4 %v622_v60 }
  0x57   :  { %v516_v48 = vadd.f32 %v515_v49, %v391_v28  ;;  %602 = vmac.bf16.f32.vacc0 %v1002_v14, %v1002_v14 }
  0x58   :  { %v310_v16 = vcombine.low %v302_v12, %v309_v2  ;;  %603 = vmac.bf16.f32.vacc0 %v1021_v51, %v1021_v51  ;;  %v609_v0 = vunpack.c.0.s8 %v608_v13 }
  0x59   :  { %v517_v42 = vadd.f32 %v516_v48, %v394_v23 }
  0x5a   :  { %v317_v36 = vrot.slane %v310_v16, %v1059_v46  ;;  %v604_v52 = vmovacc.add.low.vacc0  ;;  %v612_v11 = vsub.s32 %v609_v0, %v1040_v35 }
  0x5b   :  { %v518_v39 = vadd.f32 %v517_v42, %v397_v31  ;;  %v605_v37 = vmovacc.add.high.vacc0 }
  0x5c   :  { %v319_v32 = vadd.f32 %v317_v36, %v180_v30 }
  0x5d   :  { %v519_v57 = vadd.f32 %v518_v39, %v400_v50  ;;  %v606_v1 = vcombine.low %v604_v52, %v605_v37  ;;  %v607_v54 = vcombine.high %v604_v52, %v605_v37 }
  0x5e   :  { %324 = vst.msk [vmem:[%s1285_s1] sm:$0x7] %vm639_vm0, %v319_v32 }
  0x5f   :  { %v520_v47 = vadd.f32 %v519_v57, %v403_v59  ;;  %v613_v4 = vrot.slane %v606_v1, %v612_v11  ;;  %v619_v45 = vrot.slane %v607_v54, %v612_v11 }
  0x61   :  { %v521_v43 = vadd.f32 %v520_v47, %v406_v25  ;;  %v453_v40 = vrot.slane %v613_v4, 4  ;;  %v490_v10 = vrot.slane %v619_v45, 4 }
  0x63   :  { %v522_v5 = vadd.f32 %v521_v43, %v409_v38  ;;  %v454_v14 = vadd.f32 %v613_v4, %v453_v40  ;;  %v491_v22 = vadd.f32 %v619_v45, %v490_v10 }
  0x65   :  { %v523_v53 = vadd.f32 %v522_v5, %v412_v41  ;;  %v455_v61 = vrot.slane %v454_v14, 2  ;;  %v492_v51 = vrot.slane %v491_v22, 2 }
  0x67   :  { %v524_v21 = vadd.f32 %v523_v53, %v415_v34  ;;  %v456_v33 = vadd.f32 %v455_v61, %v454_v14  ;;  %v493_v29 = vadd.f32 %v492_v51, %v491_v22 }
  0x69   :  { %v525_v15 = vadd.f32 %v524_v21, %v418_v63  ;;  %v457_v44 = vrot.slane %v456_v33, 1  ;;  %v494_v24 = vrot.slane %v493_v29, 1 }
  0x6b   :  { %v526_v19 = vadd.f32 %v525_v15, %v421_v9  ;;  %v458_v55 = vadd.f32 %v457_v44, %v456_v33  ;;  %v495_v35 = vadd.f32 %v494_v24, %v493_v29 }
  0x6d   :  { %v527_v6 = vrot.slane %v526_v19, 4  ;;  %v536_v26 = vcombine.low %v458_v55, %v495_v35 }
  0x6f   :  { %v528_v17 = vadd.f32 %v527_v6, %v526_v19  ;;  %v543_v2 = vrot.slane %v536_v26, %v1059_v46 }
  0x71   :  { %v529_v3 = vrot.slane %v528_v17, 2 }
  0x73   :  { %v530_v8 = vadd.f32 %v529_v3, %v528_v17 }
  0x75   :  { %v531_v62 = vrot.slane %v530_v8, 1 }
  0x77   :  { %v532_v20 = vadd.f32 %v531_v62, %v530_v8 }
  0x79   :  { %v550_v56 = vrot.slane %v532_v20, %v1059_v46 }
  0x7b   :  { %v551_v27 = vcombine.low %v543_v2, %v550_v56 }
  0x7d   :  { %v558_v12 = vrot.slane %v551_v27, %v1059_v46 }
  0x7f   :  { %v560_v28 = vadd.f32 %v558_v12, %v325_v18 }
  0x81   :  { %561 = vst.msk [vmem:[%s1286_s2] sm:$0x7] %vm639_vm0, %v560_v28 }

// kernel: generator_forward.16
= control target key start
LH: loop header
LB: loop body
LE: loop exit
PB: predicated region body
PF: predicated region fallthrough
CT: control target
= control target key end

     0   :  { %s2703_s15 = smov 0   ;;  %s2705_s16 = smov 0   ;;  %s3407_s0 = inlined_call_operand.vmem [shape: bf16[512,192], index: 0, kind: input, shape index: {}]   ;;  %s3408_s1 = inlined_call_operand.vmem [shape: f32[1,192], index: 1, kind: input, shape index: {}]   ;;  %s3409_s2 = inlined_call_operand.vmem [shape: f32[1,192], index: 2, kind: input, shape index: {}]   ;;  %s3410_s3 = inlined_call_operand.vmem [shape: bf16[192,1536], index: 3, kind: input, shape index: {}]   ;;  %s3411_s4 = inlined_call_operand.vmem [shape: bf16[512,1536], index: 4, kind: output, shape index: {}]  }
   0x1   :  { %s2707_s17 = smov 0   ;;  %s2709_s18 = smov 0  }
   0x2   :  { %s2711_s19 = smov 0   ;;  %s2713_s20 = smov 0  }
   0x3   :  { %s2715_s21 = smov 0   ;;  %s2717_s22 = smov 0  }
   0x4   :  { %s2719_s23 = smov 0  }
   0x5 LB: > { %s2231_s24 = sadd.s32 4294967295, %s2676_s23   ;;  %s23_s25 = sadd.s32 1, %s2668_s21  ;;  %s2676_s23 = sphi %s2719_s23, %s14_s23   ;;  %s2672_s22 = sphi %s2717_s22, %s3420_s22   ;;  %s2668_s21 = sphi %s2715_s21, %s3419_s21   ;;  %s2664_s20 = sphi %s2713_s20, %s3418_s20   ;;  %s2660_s19 = sphi %s2711_s19, %s3417_s19   ;;  %s2656_s18 = sphi %s2709_s18, %s3416_s18   ;;  %s2652_s17 = sphi %s2707_s17, %s3415_s17   ;;  %s2648_s16 = sphi %s2705_s16, %s3414_s16   ;;  %s2644_s15 = sphi %s2703_s15, %s3413_s15  }
   0x6   : > { %p24_p0 = scmp.ge.s32.totalorder %s23_s25, 3  ;;  %s26_s26 = sadd.s32 1, %s2672_s22 }
   0x7   : > { %s101_s27 = sadd.s32 1, %s2656_s18  ;;  %p108_p1 = scmp.ne.s32.totalorder %s2656_s18, %s2652_s17 }
   0x8   : > { %s3422_s25 = smov (%p24_p0, %s23_s25), 0  ;;  %s3424_s26 = smov (!%p24_p0, %s26_s26), %s2672_s22 }
   0x9   : > { %s98_s28 = ssub.s32 %s2668_s21, %s3422_s25  ;;  %p109_p2 = scmp.eq.s32.totalorder %s2676_s23, 0 }
   0xa   : > { %p28_p3 = scmp.ge.s32.totalorder %s3424_s26, 2  ;;  %p99_p4 = scmp.eq.s32.totalorder %s98_s28, 0 }
   0xb   : > { %p110_p5 = por %p109_p2, %p108_p1  ;;  %s129_s29 = sadd.s32 1, %s2648_s16 }
   0xc   : > { %s3426_s26 = smov (%p28_p3, %s3424_s26), 0  ;;  %p139_p6 = scmp.ne.s32.totalorder %s2648_s16, %s2644_s15 }
   0xd   : > { %s2764_s30 = scalar_select %p99_p4, %s2656_s18, %s101_s27  }
   0xe   : > { %s124_s5 = ssub.s32 %s2672_s22, %s3426_s26  ;;  %p140_p7 = scmp.eq.s32.totalorder %s2231_s24, 5 }
   0xf   : > { %s126_s6 = sor.u32 %s124_s5, %s98_s28  ;;  %p2234_p10 = scmp.ge.s32.totalorder %s2676_s23, 6 }
  0x10   : > { %p127_p8 = scmp.eq.s32.totalorder %s126_s6, 0  ;;  %p2770_p9 = por %p140_p7, %p139_p6 }
  0x11   : > { %168 = sbr.rel (%p2234_p10) target bundleno = 51 (0x33), region = 24 }
  0x12   : > { %s2775_s8 = scalar_select %p127_p8, %s2648_s16, %s129_s29  }
  0x16   : > { %181 = sbr.rel (!%p110_p5) target bundleno = 51 (0x33), region = 32  ;;  %s183_s9 = sand.u32 (%p110_p5), 1, %s2656_s18  }
  0x17   : > { %s2393_s10 = sshll.u32 (%p110_p5), %s2668_s21, 4  ;;  %s2459_s11 = smul.u32 (%p110_p5), 384, %s183_s9 }
  0x18   : > { %s2783_s14 = scalar_lea.vmem (%p110_p5), %s3410_s3, %s2393_s10 }
  0x19   : > { %v201_v0 = vld [vmem:[%s2783_s14] sm:$0xff] (%p110_p5)  ;;  %v203_v1 = vld [vmem:[%s2783_s14 + $0x8] sm:$0xff] (%p110_p5)  ;;  %v205_v2 = vld [vmem:[%s2783_s14 + $0x30] sm:$0xff] (%p110_p5)  ;;  %s2791_s24 = scalar_lea.vmem (%p110_p5), [#allocation2], %s2459_s11 }
  0x1a   : > { %v207_v3 = vld [vmem:[%s2783_s14 + $0x38] sm:$0xff] (%p110_p5)  ;;  %v209_v4 = vld [vmem:[%s2783_s14 + $0x60] sm:$0xff] (%p110_p5)  ;;  %v211_v5 = vld [vmem:[%s2783_s14 + $0x68] sm:$0xff] (%p110_p5)  ;;  %202 = vst [vmem:[%s2791_s24] sm:$0xff] (%p110_p5), %v201_v0 }
  0x1b   : > { %204 = vst [vmem:[%s2791_s24 + $0x8] sm:$0xff] %v203_v1  ;;  %206 = vst [vmem:[%s2791_s24 + $0x10] sm:$0xff] %v205_v2  ;;  %v213_v6 = vld [vmem:[%s2783_s14 + $0x90] sm:$0xff]  ;;  %v215_v7 = vld [vmem:[%s2783_s14 + $0x98] sm:$0xff] }
  0x1c   : > { %208 = vst [vmem:[%s2791_s24 + $0x18] sm:$0xff] %v207_v3  ;;  %210 = vst [vmem:[%s2791_s24 + $0x20] sm:$0xff] %v209_v4  ;;  %v217_v8 = vld [vmem:[%s2783_s14 + $0xc0] sm:$0xff]  ;;  %v219_v9 = vld [vmem:[%s2783_s14 + $0xc8] sm:$0xff] }
  0x1d   : > { %212 = vst [vmem:[%s2791_s24 + $0x28] sm:$0xff] %v211_v5  ;;  %214 = vst [vmem:[%s2791_s24 + $0x30] sm:$0xff] %v213_v6  ;;  %v221_v10 = vld [vmem:[%s2783_s14 + $0xf0] sm:$0xff]  ;;  %v223_v11 = vld [vmem:[%s2783_s14 + $0xf8] sm:$0xff] }
  0x1e   : > { %216 = vst [vmem:[%s2791_s24 + $0x38] sm:$0xff] %v215_v7  ;;  %218 = vst [vmem:[%s2791_s24 + $0x40] sm:$0xff] %v217_v8  ;;  %v225_v12 = vld [vmem:[%s2783_s14 + $0x120] sm:$0xff]  ;;  %v227_v13 = vld [vmem:[%s2783_s14 + $0x128] sm:$0xff] }
  0x1f   : > { %220 = vst [vmem:[%s2791_s24 + $0x48] sm:$0xff] %v219_v9  ;;  %222 = vst [vmem:[%s2791_s24 + $0x50] sm:$0xff] %v221_v10  ;;  %v229_v14 = vld [vmem:[%s2783_s14 + $0x150] sm:$0xff]  ;;  %v231_v15 = vld [vmem:[%s2783_s14 + $0x158] sm:$0xff] }
  0x20   : > { %224 = vst [vmem:[%s2791_s24 + $0x58] sm:$0xff] %v223_v11  ;;  %226 = vst [vmem:[%s2791_s24 + $0x60] sm:$0xff] %v225_v12  ;;  %v233_v16 = vld [vmem:[%s2783_s14 + $0x180] sm:$0xff]  ;;  %v235_v17 = vld [vmem:[%s2783_s14 + $0x188] sm:$0xff] }
  0x21   : > { %228 = vst [vmem:[%s2791_s24 + $0x68] sm:$0xff] %v227_v13  ;;  %230 = vst [vmem:[%s2791_s24 + $0x70] sm:$0xff] %v229_v14  ;;  %v237_v18 = vld [vmem:[%s2783_s14 + $0x1b0] sm:$0xff]  ;;  %v239_v19 = vld [vmem:[%s2783_s14 + $0x1b8] sm:$0xff] }
  0x22   : > { %232 = vst [vmem:[%s2791_s24 + $0x78] sm:$0xff] %v231_v15  ;;  %234 = vst [vmem:[%s2791_s24 + $0x80] sm:$0xff] %v233_v16  ;;  %v241_v20 = vld [vmem:[%s2783_s14 + $0x1e0] sm:$0xff]  ;;  %v243_v21 = vld [vmem:[%s2783_s14 + $0x1e8] sm:$0xff] }
  0x23   : > { %236 = vst [vmem:[%s2791_s24 + $0x88] sm:$0xff] %v235_v17  ;;  %238 = vst [vmem:[%s2791_s24 + $0x90] sm:$0xff] %v237_v18  ;;  %v245_v22 = vld [vmem:[%s2783_s14 + $0x210] sm:$0xff]  ;;  %v247_v23 = vld [vmem:[%s2783_s14 + $0x218] sm:$0xff] }
  0x24   : > { %240 = vst [vmem:[%s2791_s24 + $0x98] sm:$0xff] %v239_v19  ;;  %242 = vst [vmem:[%s2791_s24 + $0xa0] sm:$0xff] %v241_v20  ;;  %v249_v24 = vld [vmem:[%s2783_s14 + $0x240] sm:$0xff]  ;;  %v251_v25 = vld [vmem:[%s2783_s14 + $0x248] sm:$0xff] }
  0x25   : > { %244 = vst [vmem:[%s2791_s24 + $0xa8] sm:$0xff] %v243_v21  ;;  %246 = vst [vmem:[%s2791_s24 + $0xb0] sm:$0xff] %v245_v22  ;;  %v253_v26 = vld [vmem:[%s2783_s14 + $0x270] sm:$0xff]  ;;  %v255_v27 = vld [vmem:[%s2783_s14 + $0x278] sm:$0xff] }
  0x26   : > { %248 = vst [vmem:[%s2791_s24 + $0xb8] sm:$0xff] %v247_v23  ;;  %250 = vst [vmem:[%s2791_s24 + $0xc0] sm:$0xff] %v249_v24  ;;  %v257_v28 = vld [vmem:[%s2783_s14 + $0x2a0] sm:$0xff]  ;;  %v259_v29 = vld [vmem:[%s2783_s14 + $0x2a8] sm:$0xff] }
  0x27   : > { %252 = vst [vmem:[%s2791_s24 + $0xc8] sm:$0xff] %v251_v25  ;;  %254 = vst [vmem:[%s2791_s24 + $0xd0] sm:$0xff] %v253_v26  ;;  %v261_v30 = vld [vmem:[%s2783_s14 + $0x2d0] sm:$0xff]  ;;  %v263_v31 = vld [vmem:[%s2783_s14 + $0x2d8] sm:$0xff] }
  0x28   : > { %256 = vst [vmem:[%s2791_s24 + $0xd8] sm:$0xff] %v255_v27  ;;  %258 = vst [vmem:[%s2791_s24 + $0xe0] sm:$0xff] %v257_v28  ;;  %v265_v32 = vld [vmem:[%s2783_s14 + $0x300] sm:$0xff]  ;;  %v267_v33 = vld [vmem:[%s2783_s14 + $0x308] sm:$0xff] }
  0x29   : > { %260 = vst [vmem:[%s2791_s24 + $0xe8] sm:$0xff] %v259_v29  ;;  %262 = vst [vmem:[%s2791_s24 + $0xf0] sm:$0xff] %v261_v30  ;;  %v269_v34 = vld [vmem:[%s2783_s14 + $0x330] sm:$0xff]  ;;  %v271_v35 = vld [vmem:[%s2783_s14 + $0x338] sm:$0xff] }
  0x2a   : > { %264 = vst [vmem:[%s2791_s24 + $0xf8] sm:$0xff] %v263_v31  ;;  %266 = vst [vmem:[%s2791_s24 + $0x100] sm:$0xff] %v265_v32  ;;  %v273_v36 = vld [vmem:[%s2783_s14 + $0x360] sm:$0xff]  ;;  %v275_v37 = vld [vmem:[%s2783_s14 + $0x368] sm:$0xff] }
  0x2b   : > { %268 = vst [vmem:[%s2791_s24 + $0x108] sm:$0xff] %v267_v33  ;;  %270 = vst [vmem:[%s2791_s24 + $0x110] sm:$0xff] %v269_v34  ;;  %v277_v38 = vld [vmem:[%s2783_s14 + $0x390] sm:$0xff]  ;;  %v279_v39 = vld [vmem:[%s2783_s14 + $0x398] sm:$0xff] }
  0x2c   : > { %272 = vst [vmem:[%s2791_s24 + $0x118] sm:$0xff] %v271_v35  ;;  %274 = vst [vmem:[%s2791_s24 + $0x120] sm:$0xff] %v273_v36  ;;  %v281_v40 = vld [vmem:[%s2783_s14 + $0x3c0] sm:$0xff]  ;;  %v283_v41 = vld [vmem:[%s2783_s14 + $0x3c8] sm:$0xff] }
  0x2d   : > { %276 = vst [vmem:[%s2791_s24 + $0x128] sm:$0xff] %v275_v37  ;;  %278 = vst [vmem:[%s2791_s24 + $0x130] sm:$0xff] %v277_v38  ;;  %v285_v42 = vld [vmem:[%s2783_s14 + $0x3f0] sm:$0xff]  ;;  %v287_v43 = vld [vmem:[%s2783_s14 + $0x3f8] sm:$0xff] }
  0x2e   : > { %280 = vst [vmem:[%s2791_s24 + $0x138] sm:$0xff] %v279_v39  ;;  %282 = vst [vmem:[%s2791_s24 + $0x140] sm:$0xff] %v281_v40  ;;  %v289_v44 = vld [vmem:[%s2783_s14 + $0x420] sm:$0xff]  ;;  %v291_v45 = vld [vmem:[%s2783_s14 + $0x428] sm:$0xff] }
  0x2f   : > { %284 = vst [vmem:[%s2791_s24 + $0x148] sm:$0xff] %v283_v41  ;;  %286 = vst [vmem:[%s2791_s24 + $0x150] sm:$0xff] %v285_v42  ;;  %v293_v46 = vld [vmem:[%s2783_s14 + $0x450] sm:$0xff]  ;;  %v295_v47 = vld [vmem:[%s2783_s14 + $0x458] sm:$0xff] }
  0x30   : > { %288 = vst [vmem:[%s2791_s24 + $0x158] sm:$0xff] %v287_v43  ;;  %290 = vst [vmem:[%s2791_s24 + $0x160] sm:$0xff] %v289_v44 }
  0x31   : > { %292 = vst [vmem:[%s2791_s24 + $0x168] sm:$0xff] %v291_v45  ;;  %294 = vst [vmem:[%s2791_s24 + $0x170] sm:$0xff] %v293_v46 }
  0x32   : > { %296 = vst [vmem:[%s2791_s24 + $0x178] sm:$0xff] %v295_v47 }
  0x33 PF: > { %p2237_p11 = scmp.ge.s32.totalorder %s2676_s23, 1  ;;  %p301_p12 = scmp.lt.s32.totalorder %s2676_s23, 7 }
  0x35   : > { %p302_p13 = pnand %p2237_p11, %p301_p12 }
  0x36   : > { %s308_s27 = sand.u32 (!%p302_p13), 1, %s2652_s17   ;;  %s2239_s17 = sshll.u32 (!%p302_p13), %s2664_s20, 5 }
  0x37   : > { %305 = sbr.rel (%p302_p13) target bundleno = 439 (0x1b7), region = 55  ;;  %p339_p0 = scmp.lt.s32.totalorder (!%p302_p13), %s2239_s17, 63 }
  0x38   : > { %s2460_s28 = smul.u32 (!%p302_p13), 384, %s308_s27  ;;  %s335_s24 = sand.u32 (!%p302_p13), 1, %s2644_s15  }
  0x39   : > { %s2238_s27 = sshll.u32 (!%p302_p13), %s335_s24, 9 }
  0x3a   : > { %s2886_s29 = scalar_lea.vmem (!%p302_p13), [#allocation2], %s2460_s28  ;;  %s3177_s28 = scalar_lea.vmem (!%p302_p13), [#allocation3], %s2238_s27 }
  0x3c   : > { %v2534_v48 = vld [vmem:[%s2886_s29 + $0xe4] ss:$16 sps:$4 sm:$0xff]   ;;  %v2536_v49 = vld [vmem:[%s2886_s29 + $0xec] ss:$16 sps:$4 sm:$0xff]   ;;  %v2538_v50 = vld [vmem:[%s2886_s29 + $0xe0] ss:$16 sps:$4 sm:$0xff]   ;;  %v447_v7 = vlaneseq }
  0x3d   : > { %1158 = vmatprep.subr.bf16.mxu0 %v2534_v48  ;;  %v2539_v51 = vld [vmem:[%s2886_s29 + $0xe8] ss:$16 sps:$4 sm:$0xff]   ;;  %1351 = vmatprep.subr.bf16.mxu1 %v2536_v49  ;;  %v2540_v52 = vld [vmem:[%s2886_s29 + $0xc4] ss:$16 sps:$4 sm:$0xff]   ;;  %v2542_v53 = vld [vmem:[%s2886_s29 + $0xcc] ss:$16 sps:$4 sm:$0xff]  }
  0x3e   : > { %1159 = vmatpush1.bf16.msra.mxu0 %v2538_v50  ;;  %1352 = vmatpush1.bf16.msra.mxu1 %v2539_v51  ;;  %v2544_v54 = vld [vmem:[%s2886_s29 + $0xc0] ss:$16 sps:$4 sm:$0xff]   ;;  %v2545_v55 = vld [vmem:[%s2886_s29 + $0xc8] ss:$16 sps:$4 sm:$0xff]   ;;  %v2546_v56 = vld [vmem:[%s2886_s29 + $0xa4] ss:$16 sps:$4 sm:$0xff]  }
  0x3f   : > { %1160 = vmatprep.subr.bf16.mxu0 %v2540_v52  ;;  %1353 = vmatprep.subr.bf16.mxu1 %v2542_v53  ;;  %v2548_v57 = vld [vmem:[%s2886_s29 + $0xac] ss:$16 sps:$4 sm:$0xff]   ;;  %v2550_v58 = vld [vmem:[%s2886_s29 + $0xa0] ss:$16 sps:$4 sm:$0xff]   ;;  %v2551_v59 = vld [vmem:[%s2886_s29 + $0xa8] ss:$16 sps:$4 sm:$0xff]  }
  0x40   : > { %v2552_v60 = vld [vmem:[%s2886_s29 + $0x84] ss:$16 sps:$4 sm:$0xff]   ;;  %v2554_v61 = vld [vmem:[%s2886_s29 + $0x8c] ss:$16 sps:$4 sm:$0xff]   ;;  %v2556_v62 = vld [vmem:[%s2886_s29 + $0x80] ss:$16 sps:$4 sm:$0xff]  }
  0x41   : > { %v2557_v63 = vld [vmem:[%s2886_s29 + $0x88] ss:$16 sps:$4 sm:$0xff]   ;;  %v2558_v0 = vld [vmem:[%s2886_s29 + $0x64] ss:$16 sps:$4 sm:$0xff]   ;;  %v2560_v1 = vld [vmem:[%s2886_s29 + $0x6c] ss:$16 sps:$4 sm:$0xff]  }
  0x42   : > { %1161 = vmatpush1.bf16.msra.mxu0 %v2544_v54  ;;  %1354 = vmatpush1.bf16.msra.mxu1 %v2545_v55  ;;  %v2562_v2 = vld [vmem:[%s2886_s29 + $0x60] ss:$16 sps:$4 sm:$0xff]   ;;  %v2563_v3 = vld [vmem:[%s2886_s29 + $0x68] ss:$16 sps:$4 sm:$0xff]   ;;  %v2564_v4 = vld [vmem:[%s2886_s29 + $0x44] ss:$16 sps:$4 sm:$0xff]  }
  0x43   : > { %1162 = vmatprep.subr.bf16.mxu0 %v2546_v56  ;;  %1355 = vmatprep.subr.bf16.mxu1 %v2548_v57  ;;  %v2566_v5 = vld [vmem:[%s2886_s29 + $0x4c] ss:$16 sps:$4 sm:$0xff]   ;;  %v2568_v6 = vld [vmem:[%s2886_s29 + $0x40] ss:$16 sps:$4 sm:$0xff]   ;;  %v2569_v8 = vld [vmem:[%s2886_s29 + $0x48] ss:$16 sps:$4 sm:$0xff]  }
  0x44   : > { %v2570_v9 = vld [vmem:[%s2886_s29 + $0x24] ss:$16 sps:$4 sm:$0xff]   ;;  %v2572_v10 = vld [vmem:[%s2886_s29 + $0x2c] ss:$16 sps:$4 sm:$0xff]   ;;  %s3428_s17 = smov (!%p339_p0, %s2239_s17), 63  ;;  %v448_v13 = vshrl.u32 %v447_v7, 7 }
  0x45   : > { %v2574_v11 = vld [vmem:[%s2886_s29 + $0x20] ss:$16 sps:$4 sm:$0xff]   ;;  %v2575_v12 = vld [vmem:[%s2886_s29 + $0x28] ss:$16 sps:$4 sm:$0xff]   ;;  %v2576_v14 = vld [vmem:[%s2886_s29 + $0x4] ss:$16 sps:$4 sm:$0xff]  }
  0x46   : > { %1163 = vmatpush1.bf16.msra.mxu0 %v2550_v58  ;;  %1356 = vmatpush1.bf16.msra.mxu1 %v2551_v59  ;;  %v2578_v15 = vld [vmem:[%s2886_s29 + $0xc] ss:$16 sps:$4 sm:$0xff]   ;;  %s2394_s5 = sshll.u32 %s3428_s17, 3  ;;  %v445_v16 = vld [vmem:[%s3408_s1] sm:$0x3]  ;;  %v449_v18 = vsub.s32 0, %v448_v13 }
  0x47   : > { %1164 = vmatprep.subr.bf16.mxu0 %v2552_v60  ;;  %1357 = vmatprep.subr.bf16.mxu1 %v2554_v61  ;;  %v2580_v17 = vld [vmem:[%s2886_s29] ss:$16 sps:$4 sm:$0xff]   ;;  %v453_v19 = vsub.s32 1, %v448_v13  ;;  %v2581_v21 = vld [vmem:[%s2886_s29 + $0x8] ss:$16 sps:$4 sm:$0xff]   ;;  %s2932_s14 = scalar_lea.vmem %s3407_s0, %s2394_s5  ;;  %vm1109_vm4 = vcmask 523264  }
  0x48   : > { %v521_v20 = vld [vmem:[%s3409_s2] sm:$0x3]  ;;  %v2582_v22 = vld [vmem:[%s2886_s29 + $0x164] ss:$16 sps:$4 sm:$0xff]   ;;  %v2584_v23 = vld [vmem:[%s2886_s29 + $0x16c] ss:$16 sps:$4 sm:$0xff]   ;;  %v2937_v27 = vrot.slane %v445_v16, %v449_v18 }
  0x49   : > { %v2586_v24 = vld [vmem:[%s2886_s29 + $0x160] ss:$16 sps:$4 sm:$0xff]   ;;  %v2587_v25 = vld [vmem:[%s2886_s29 + $0x168] ss:$16 sps:$4 sm:$0xff]   ;;  %v2588_v26 = vld [vmem:[%s2886_s29 + $0x144] ss:$16 sps:$4 sm:$0xff]   ;;  %v2939_v28 = vrot.slane %v445_v16, %v453_v19  ;;  %v2943_v31 = vrot.slane %v521_v20, %v449_v18  ;;  %v2945_v32 = vrot.slane %v521_v20, %v453_v19 }
  0x4a   : > { %1165 = vmatpush1.bf16.msra.mxu0 %v2556_v62  ;;  %1358 = vmatpush1.bf16.msra.mxu1 %v2557_v63  ;;  %v349_v29 = vld [vmem:[%s2932_s14] sm:$0xff]  ;;  %v350_v30 = vld [vmem:[%s2932_s14 + $0x8] sm:$0xff]  ;;  %v351_v33 = vld [vmem:[%s2932_s14 + $0x10] sm:$0xff]  ;;  %s2388_s15 = sshll.u32 (%p2770_p9), %s2660_s19, 2 }
  0x4b   : > { %1166 = vmatprep.subr.bf16.mxu0 %v2558_v0  ;;  %1359 = vmatprep.subr.bf16.mxu1 %v2560_v1  ;;  %v2590_v34 = vld [vmem:[%s2886_s29 + $0x14c] ss:$16 sps:$4 sm:$0xff]   ;;  %v381_v35 = vunpack.c.l.bf16 %v349_v29  ;;  %v382_v36 = vunpack.c.h.bf16 %v349_v29  ;;  %v383_v37 = vunpack.c.l.bf16 %v350_v30  ;;  %v384_v38 = vunpack.c.h.bf16 %v350_v30  ;;  %v2951_v40 = vld [vmem:[%s2932_s14 + $0x20] sm:$0xff]  ;;  %v2593_v51 = vld [vmem:[%s2886_s29 + $0x148] ss:$16 sps:$4 sm:$0xff]  }
  0x4c   : > { %v352_v39 = vld [vmem:[%s2932_s14 + $0x18] sm:$0xff]  ;;  %v386_v41 = vunpack.c.h.bf16 %v351_v33  ;;  %v385_v43 = vunpack.c.l.bf16 %v351_v33  ;;  %v2954_v45 = vld [vmem:[%s2932_s14 + $0x28] sm:$0xff]  ;;  %v2592_v50 = vld [vmem:[%s2886_s29 + $0x140] ss:$16 sps:$4 sm:$0xff]   ;;  %v390_v55 = vunpack.c.h.bf16 %v2951_v40 }
  0x4d   : > { %v388_v42 = vunpack.c.h.bf16 %v352_v39  ;;  %v387_v44 = vunpack.c.l.bf16 %v352_v39  ;;  %v458_v46 = vmul.f32 %v2939_v28, %v382_v36  ;;  %v460_v47 = vmul.f32 %v2939_v28, %v384_v38  ;;  %v2594_v56 = vld [vmem:[%s2886_s29 + $0x124] ss:$16 sps:$4 sm:$0xff]   ;;  %v2596_v57 = vld [vmem:[%s2886_s29 + $0x12c] ss:$16 sps:$4 sm:$0xff]   ;;  %v2598_v62 = vld [vmem:[%s2886_s29 + $0x120] ss:$16 sps:$4 sm:$0xff]  }
  0x4e   : > { %1167 = vmatpush1.bf16.msra.mxu0 %v2562_v2  ;;  %1360 = vmatpush1.bf16.msra.mxu1 %v2563_v3  ;;  %v457_v48 = vmul.f32 %v2937_v27, %v381_v35  ;;  %v459_v49 = vmul.f32 %v2937_v27, %v383_v37  ;;  %v462_v52 = vmul.f32 %v2939_v28, %v386_v41  ;;  %v392_v61 = vunpack.c.h.bf16 %v2954_v45  ;;  %v2599_v63 = vld [vmem:[%s2886_s29 + $0x128] ss:$16 sps:$4 sm:$0xff]   ;;  %v2604_v19 = vld [vmem:[%s2886_s29 + $0x100] ss:$16 sps:$4 sm:$0xff]  }
  0x4f   : > { %1168 = vmatprep.subr.bf16.mxu0 %v2564_v4  ;;  %1361 = vmatprep.subr.bf16.mxu1 %v2566_v5  ;;  %v464_v53 = vmul.f32 %v2939_v28, %v388_v42  ;;  %v461_v54 = vmul.f32 %v2937_v27, %v385_v43  ;;  %v534_v58 = vadd.f32 %v2945_v32, %v458_v46  ;;  %v2605_v20 = vld [vmem:[%s2886_s29 + $0x108] ss:$16 sps:$4 sm:$0xff]   ;;  %v391_v36 = vunpack.c.l.bf16 %v2954_v45 }
  0x50   : > { %v536_v59 = vadd.f32 %v2945_v32, %v460_v47  ;;  %v533_v60 = vadd.f32 %v2943_v31, %v457_v48  ;;  %v535_v0 = vadd.f32 %v2943_v31, %v459_v49  ;;  %v538_v1 = vadd.f32 %v2945_v32, %v462_v52  ;;  %v356_v38 = vld [vmem:[%s2932_s14 + $0x38] sm:$0xff] }
  0x51   : > { %v540_v2 = vadd.f32 %v2945_v32, %v464_v53  ;;  %v463_v3 = vmul.f32 %v2937_v27, %v387_v44  ;;  %vm598_vm0 = vcmp.ge.f32.partialorder %v534_v58, 0.0  ;;  %v662_v4 = vmul.f32 0.2, %v534_v58 }
  0x52   : > { %1169 = vmatpush1.bf16.msra.mxu0 %v2568_v6  ;;  %1362 = vmatpush1.bf16.msra.mxu1 %v2569_v8  ;;  %vm600_vm1 = vcmp.ge.f32.partialorder %v536_v59, 0.0  ;;  %v664_v5 = vmul.f32 0.2, %v536_v59  ;;  %vm597_vm2 = vcmp.ge.f32.partialorder %v533_v60, 0.0  ;;  %vm599_vm3 = vcmp.ge.f32.partialorder %v535_v0, 0.0 }
  0x53   : > { %1170 = vmatprep.subr.bf16.mxu0 %v2570_v9  ;;  %1363 = vmatprep.subr.bf16.mxu1 %v2572_v10  ;;  %v661_v6 = vmul.f32 0.2, %v533_v60  ;;  %v663_v7 = vmul.f32 0.2, %v535_v0  ;;  %v2600_v8 = vld [vmem:[%s2886_s29 + $0x104] ss:$16 sps:$4 sm:$0xff]   ;;  %v726_v10 = vsel %vm598_vm0, %v534_v58, %v662_v4  ;;  %v539_v18 = vadd.f32 %v2943_v31, %v463_v3 }
  0x54   : > { %v2602_v9 = vld [vmem:[%s2886_s29 + $0x10c] ss:$16 sps:$4 sm:$0xff]   ;;  %vm602_vm5 = vcmp.ge.f32.partialorder %v538_v1, 0.0  ;;  %vm604_vm6 = vcmp.ge.f32.partialorder %v540_v2, 0.0  ;;  %v668_v16 = vmul.f32 0.2, %v540_v2  ;;  %v467_v43 = vmul.f32 %v2937_v27, %v391_v36 }
  0x55   : > { %v725_v13 = vsel %vm597_vm2, %v533_v60, %v661_v6  ;;  %v667_v35 = vmul.f32 0.2, %v539_v18  ;;  %vm603_vm8 = vcmp.ge.f32.partialorder %v539_v18, 0.0  ;;  %v396_v45 = vunpack.c.h.bf16 %v356_v38  ;;  %s2461_s29 = smul.u32 (%p2770_p9), 384, %s2664_s20 }
  0x56   : > { %1171 = vmatpush1.bf16.msra.mxu0 %v2574_v11  ;;  %1364 = vmatpush1.bf16.msra.mxu1 %v2575_v12  ;;  %v728_v11 = vsel %vm600_vm1, %v536_v59, %v664_v5  ;;  %v543_v49 = vadd.f32 %v2943_v31, %v467_v43  ;;  %v395_v53 = vunpack.c.l.bf16 %v356_v38 }
  0x57   : > { %1172 = vmatprep.subr.bf16.mxu0 %v2576_v14  ;;  %1365 = vmatprep.subr.bf16.mxu1 %v2578_v15  ;;  %v790_v12 = vpack.c.bf16 %v728_v11, %v726_v10  ;;  %v666_v14 = vmul.f32 0.2, %v538_v1  ;;  %v727_v15 = vsel %vm599_vm3, %v535_v0, %v663_v7  ;;  %v731_v48 = vsel %vm603_vm8, %v539_v18, %v667_v35  ;;  %s2002_s7 = sadd.s32 (%p2770_p9), %s2461_s29, %s2388_s15 }
  0x58   : > { %v789_v29 = vpack.c.bf16 %v727_v15, %v725_v13  ;;  %vm607_vm12 = vcmp.ge.f32.partialorder %v543_v49, 0.0  ;;  %v471_v3 = vmul.f32 %v2937_v27, %v395_v53  ;;  %s2390_s17 = sshll.u32 (%p2770_p9), %s2002_s7, 2 }
  0x59   : > { %2290 = vmatprep.mubr.msk.bf16.mxu0 %vm1109_vm4, %v790_v12  ;;  %2306 = vmatprep.mubr.msk.bf16.mxu1 %vm1109_vm4, %v790_v12  ;;  %s3262_s20 = scalar_lea.vmem (%p2770_p9), %s3411_s4, %s2390_s17 }
  0x5a   : > { %1173 = vmatpush1.bf16.msra.mxu0 %v2580_v17  ;;  %1366 = vmatpush1.bf16.msra.mxu1 %v2581_v21  ;;  %v537_v17 = vadd.f32 %v2943_v31, %v461_v54  ;;  %v466_v21 = vmul.f32 %v2939_v28, %v390_v55  ;;  %v357_v54 = vld [vmem:[%s2932_s14 + $0x40] sm:$0xff]  ;;  %v358_v55 = vld [vmem:[%s2932_s14 + $0x48] sm:$0xff]  ;;  %v547_v15 = vadd.f32 %v2943_v31, %v471_v3 }
  0x5b   : > { %1182 = vmatprep.subr.bf16.mxu0 %v2582_v22  ;;  %1375 = vmatprep.subr.bf16.mxu1 %v2584_v23  ;;  %v468_v22 = vmul.f32 %v2939_v28, %v392_v61  ;;  %v389_v23 = vunpack.c.l.bf16 %v2951_v40  ;;  %v671_v61 = vmul.f32 0.2, %v543_v49  ;;  %v400_v0 = vunpack.c.h.bf16 %v358_v55 }
  0x5c   : > { %v665_v30 = vmul.f32 0.2, %v537_v17  ;;  %v542_v33 = vadd.f32 %v2945_v32, %v466_v21  ;;  %vm601_vm7 = vcmp.ge.f32.partialorder %v537_v17, 0.0  ;;  %v397_v7 = vunpack.c.l.bf16 %v357_v54 }
  0x5d   : > { %v465_v37 = vmul.f32 %v2937_v27, %v389_v23  ;;  %v476_v6 = vmul.f32 %v2939_v28, %v400_v0  ;;  %v735_v11 = vsel %vm607_vm12, %v543_v49, %v671_v61  ;;  %v399_v13 = vunpack.c.l.bf16 %v358_v55 }
  0x5e   : > { %1183 = vmatpush2.bf16.msra.mxu0 %v2586_v24  ;;  %1376 = vmatpush2.bf16.msra.mxu1 %v2587_v25  ;;  %v355_v24 = vld [vmem:[%s2932_s14 + $0x30] sm:$0xff]  ;;  %v730_v25 = vsel %vm602_vm5, %v538_v1, %v666_v14  ;;  %vm606_vm9 = vcmp.ge.f32.partialorder %v542_v33, 0.0  ;;  %v670_v41 = vmul.f32 0.2, %v542_v33  ;;  %v729_v47 = vsel %vm601_vm7, %v537_v17, %v665_v30 }
  0x5f   : > { %1184 = vmatprep.subr.bf16.mxu0 %v2588_v26  ;;  %1377 = vmatprep.subr.bf16.mxu1 %v2590_v34  ;;  %v732_v26 = vsel %vm604_vm6, %v540_v2, %v668_v16  ;;  %v544_v34 = vadd.f32 %v2945_v32, %v468_v22  ;;  %v394_v39 = vunpack.c.h.bf16 %v355_v24  ;;  %v541_v44 = vadd.f32 %v2943_v31, %v465_v37  ;;  %v361_v37 = vld [vmem:[%s2932_s14 + $0x60] sm:$0xff] }
  0x60   : > { %v792_v40 = vpack.c.bf16 %v732_v26, %v730_v25  ;;  %v791_v58 = vpack.c.bf16 %v731_v48, %v729_v47  ;;  %v552_v18 = vadd.f32 %v2945_v32, %v476_v6  ;;  %v473_v21 = vmul.f32 %v2937_v27, %v397_v7 }
  0x61   : > { %v672_v42 = vmul.f32 0.2, %v544_v34  ;;  %vm608_vm10 = vcmp.ge.f32.partialorder %v544_v34, 0.0  ;;  %v470_v46 = vmul.f32 %v2939_v28, %v394_v39  ;;  %vm605_vm11 = vcmp.ge.f32.partialorder %v541_v44, 0.0 }
  0x62   : > { %1185 = vmatpush2.bf16.msra.mxu0 %v2592_v50  ;;  %1378 = vmatpush2.bf16.msra.mxu1 %v2593_v51  ;;  %v393_v50 = vunpack.c.l.bf16 %v355_v24  ;;  %v472_v51 = vmul.f32 %v2939_v28, %v396_v45  ;;  %v669_v59 = vmul.f32 0.2, %v541_v44  ;;  %v475_v24 = vmul.f32 %v2937_v27, %v399_v13 }
  0x63   : > { %1186 = vmatprep.subr.bf16.mxu0 %v2594_v56  ;;  %1379 = vmatprep.subr.bf16.mxu1 %v2596_v57  ;;  %v546_v52 = vadd.f32 %v2945_v32, %v470_v46  ;;  %v734_v56 = vsel %vm606_vm9, %v542_v33, %v670_v41  ;;  %v736_v57 = vsel %vm608_vm10, %v544_v34, %v672_v42  ;;  %vm611_vm0 = vcmp.ge.f32.partialorder %v547_v15, 0.0 }
  0x64   : > { %v548_v60 = vadd.f32 %v2945_v32, %v472_v51  ;;  %v794_v1 = vpack.c.bf16 %v736_v57, %v734_v56  ;;  %v733_v10 = vsel %vm605_vm11, %v541_v44, %v669_v59  ;;  %v675_v26 = vmul.f32 0.2, %v547_v15  ;;  %v363_v59 = vld [vmem:[%s2932_s14 + $0x70] sm:$0xff] }
  0x65   : > { %v674_v2 = vmul.f32 0.2, %v546_v52  ;;  %vm610_vm13 = vcmp.ge.f32.partialorder %v546_v52, 0.0  ;;  %v793_v22 = vpack.c.bf16 %v735_v11, %v733_v10  ;;  %v680_v30 = vmul.f32 0.2, %v552_v18 }
  0x66   : > { %1187 = vmatpush2.bf16.msra.mxu0 %v2598_v62  ;;  %1380 = vmatpush2.bf16.msra.mxu1 %v2599_v63  ;;  %v469_v62 = vmul.f32 %v2937_v27, %v393_v50  ;;  %v398_v63 = vunpack.c.h.bf16 %v357_v54  ;;  %v676_v4 = vmul.f32 0.2, %v548_v60  ;;  %vm612_vm14 = vcmp.ge.f32.partialorder %v548_v60, 0.0 }
  0x67   : > { %1188 = vmatprep.subr.bf16.mxu0 %v2600_v8  ;;  %1381 = vmatprep.subr.bf16.mxu1 %v2602_v9  ;;  %v359_v8 = vld [vmem:[%s2932_s14 + $0x50] sm:$0xff]  ;;  %v360_v9 = vld [vmem:[%s2932_s14 + $0x58] sm:$0xff]  ;;  %v738_v14 = vsel %vm610_vm13, %v546_v52, %v674_v2  ;;  %vm616_vm2 = vcmp.ge.f32.partialorder %v552_v18, 0.0  ;;  %v549_v35 = vadd.f32 %v2943_v31, %v473_v21  ;;  %v551_v38 = vadd.f32 %v2943_v31, %v475_v24  ;;  %v365_v21 = vld [vmem:[%s2932_s14 + $0x80] sm:$0xff] }
  0x68   : > { %v474_v5 = vmul.f32 %v2939_v28, %v398_v63  ;;  %v545_v12 = vadd.f32 %v2943_v31, %v469_v62  ;;  %v740_v17 = vsel %vm612_vm14, %v548_v60, %v676_v4  ;;  %v401_v36 = vunpack.c.l.bf16 %v359_v8  ;;  %v364_v60 = vld [vmem:[%s2932_s14 + $0x78] sm:$0xff] }
  0x69   : > { %v796_v25 = vpack.c.bf16 %v740_v17, %v738_v14  ;;  %v403_v39 = vunpack.c.l.bf16 %v360_v9  ;;  %v739_v42 = vsel %vm611_vm0, %v547_v15, %v675_v26  ;;  %v744_v44 = vsel %vm616_vm2, %v552_v18, %v680_v30 }
  0x6a   : > { %1189 = vmatpush2.bf16.msra.mxu0 %v2604_v19  ;;  %1382 = vmatpush2.bf16.msra.mxu1 %v2605_v20  ;;  %v550_v16 = vadd.f32 %v2945_v32, %v474_v5  ;;  %v402_v19 = vunpack.c.h.bf16 %v359_v8  ;;  %v404_v20 = vunpack.c.h.bf16 %v360_v9  ;;  %vm609_vm15 = vcmp.ge.f32.partialorder %v545_v12, 0.0 }
  0x6b   : > { %v673_v23 = vmul.f32 0.2, %v545_v12  ;;  %v406_v47 = vunpack.c.h.bf16 %v361_v37  ;;  %v677_v48 = vmul.f32 0.2, %v549_v35  ;;  %v477_v49 = vmul.f32 %v2937_v27, %v401_v36 }
  0x6c   : > { %vm614_vm1 = vcmp.ge.f32.partialorder %v550_v16, 0.0  ;;  %v478_v33 = vmul.f32 %v2939_v28, %v402_v19  ;;  %v480_v34 = vmul.f32 %v2939_v28, %v404_v20  ;;  %vm613_vm3 = vcmp.ge.f32.partialorder %v549_v35, 0.0 }
  0x6d   : > { %1191 = vmatmul.mubr.bf16.vlgmr.msra.gmra.mxu0 %v789_v29  ;;  %1384 = vmatmul.mubr.bf16.vlgmr.msra.gmra.mxu1 %v789_v29  ;;  %v678_v29 = vmul.f32 0.2, %v550_v16  ;;  %v737_v41 = vsel %vm609_vm15, %v545_v12, %v673_v23  ;;  %v679_v52 = vmul.f32 0.2, %v551_v38  ;;  %v479_v53 = vmul.f32 %v2937_v27, %v403_v39 }
  0x6e   : > { %2291 = vmatprep.mubr.msk.bf16.mxu0 %vm1109_vm4, %v792_v40  ;;  %2307 = vmatprep.mubr.msk.bf16.mxu1 %vm1109_vm4, %v792_v40  ;;  %v362_v40 = vld [vmem:[%s2932_s14 + $0x68] sm:$0xff]  ;;  %v554_v45 = vadd.f32 %v2945_v32, %v478_v33  ;;  %v556_v46 = vadd.f32 %v2945_v32, %v480_v34  ;;  %v795_v51 = vpack.c.bf16 %v739_v42, %v737_v41  ;;  %vm615_vm5 = vcmp.ge.f32.partialorder %v551_v38, 0.0 }
  0x6f   : > { %v742_v43 = vsel %vm614_vm1, %v550_v16, %v678_v29  ;;  %v408_v50 = vunpack.c.h.bf16 %v362_v40  ;;  %v482_v57 = vmul.f32 %v2939_v28, %v406_v47  ;;  %v741_v61 = vsel %vm613_vm3, %v549_v35, %v677_v48 }
  0x70   : > { %v798_v54 = vpack.c.bf16 %v744_v44, %v742_v43  ;;  %v682_v55 = vmul.f32 0.2, %v554_v45  ;;  %v684_v56 = vmul.f32 0.2, %v556_v46  ;;  %vm618_vm6 = vcmp.ge.f32.partialorder %v554_v45, 0.0 }
  0x71   : > { %vm620_vm7 = vcmp.ge.f32.partialorder %v556_v46, 0.0  ;;  %v553_v62 = vadd.f32 %v2943_v31, %v477_v49  ;;  %v743_v63 = vsel %vm615_vm5, %v551_v38, %v679_v52  ;;  %v555_v0 = vadd.f32 %v2943_v31, %v479_v53  ;;  %v367_v49 = vld [vmem:[%s2932_s14 + $0x90] sm:$0xff] }
  0x72   : > { %v407_v2 = vunpack.c.l.bf16 %v362_v40  ;;  %v410_v3 = vunpack.c.h.bf16 %v363_v59  ;;  %v412_v4 = vunpack.c.h.bf16 %v364_v60  ;;  %v746_v5 = vsel %vm618_vm6, %v554_v45, %v682_v55 }
  0x73   : > { %v748_v6 = vsel %vm620_vm7, %v556_v46, %v684_v56  ;;  %v558_v7 = vadd.f32 %v2945_v32, %v482_v57  ;;  %v797_v9 = vpack.c.bf16 %v743_v63, %v741_v61  ;;  %v681_v10 = vmul.f32 0.2, %v553_v62 }
  0x74   : > { %vm617_vm8 = vcmp.ge.f32.partialorder %v553_v62, 0.0  ;;  %v683_v11 = vmul.f32 0.2, %v555_v0  ;;  %v483_v13 = vmul.f32 %v2937_v27, %v407_v2  ;;  %v800_v14 = vpack.c.bf16 %v748_v6, %v746_v5 }
  0x75   : > { %1201 = vmatmul.mubr.bf16.gmra.mxu0 %v791_v58  ;;  %1394 = vmatmul.mubr.bf16.gmra.mxu1 %v791_v58  ;;  %v484_v58 = vmul.f32 %v2939_v28, %v408_v50  ;;  %vm619_vm9 = vcmp.ge.f32.partialorder %v555_v0, 0.0  ;;  %v486_v15 = vmul.f32 %v2939_v28, %v410_v3  ;;  %v488_v16 = vmul.f32 %v2939_v28, %v412_v4  ;;  %v368_v50 = vld [vmem:[%s2932_s14 + $0x98] sm:$0xff] }
  0x76   : > { %2292 = vmatprep.mubr.msk.bf16.mxu0 %vm1109_vm4, %v794_v1  ;;  %2308 = vmatprep.mubr.msk.bf16.mxu1 %vm1109_vm4, %v794_v1  ;;  %v405_v1 = vunpack.c.l.bf16 %v361_v37  ;;  %v686_v17 = vmul.f32 0.2, %v558_v7  ;;  %v745_v19 = vsel %vm617_vm8, %v553_v62, %v681_v10  ;;  %vm622_vm10 = vcmp.ge.f32.partialorder %v558_v7, 0.0 }
  0x77   : > { %v560_v8 = vadd.f32 %v2945_v32, %v484_v58  ;;  %v409_v20 = vunpack.c.l.bf16 %v363_v59  ;;  %v747_v23 = vsel %vm619_vm9, %v555_v0, %v683_v11  ;;  %v411_v26 = vunpack.c.l.bf16 %v364_v60 }
  0x78   : > { %v481_v12 = vmul.f32 %v2937_v27, %v405_v1  ;;  %v562_v29 = vadd.f32 %v2945_v32, %v486_v15  ;;  %v564_v30 = vadd.f32 %v2945_v32, %v488_v16  ;;  %v750_v33 = vsel %vm622_vm10, %v558_v7, %v686_v17  ;;  %v369_v7 = vld [vmem:[%s2932_s14 + $0xa0] sm:$0xff] }
  0x79   : > { %v688_v18 = vmul.f32 0.2, %v560_v8  ;;  %vm624_vm11 = vcmp.ge.f32.partialorder %v560_v8, 0.0  ;;  %v414_v35 = vunpack.c.h.bf16 %v365_v21  ;;  %v799_v37 = vpack.c.bf16 %v747_v23, %v745_v19 }
  0x7a   : > { %v557_v24 = vadd.f32 %v2943_v31, %v481_v12  ;;  %v485_v38 = vmul.f32 %v2937_v27, %v409_v20  ;;  %v487_v40 = vmul.f32 %v2937_v27, %v411_v26  ;;  %v690_v43 = vmul.f32 0.2, %v562_v29 }
  0x7b   : > { %v752_v34 = vsel %vm624_vm11, %v560_v8, %v688_v18  ;;  %v692_v44 = vmul.f32 0.2, %v564_v30  ;;  %vm626_vm14 = vcmp.ge.f32.partialorder %v562_v29, 0.0  ;;  %vm628_vm15 = vcmp.ge.f32.partialorder %v564_v30, 0.0  ;;  %v370_v8 = vld [vmem:[%s2932_s14 + $0xa8] sm:$0xff] }
  0x7c   : > { %vm621_vm12 = vcmp.ge.f32.partialorder %v557_v24, 0.0  ;;  %v685_v39 = vmul.f32 0.2, %v557_v24  ;;  %v802_v41 = vpack.c.bf16 %v752_v34, %v750_v33  ;;  %v490_v45 = vmul.f32 %v2939_v28, %v414_v35 }
  0x7d   : > { %1211 = vmatmul.mubr.bf16.gmra.mxu0 %v793_v22  ;;  %1404 = vmatmul.mubr.bf16.gmra.mxu1 %v793_v22  ;;  %v366_v22 = vld [vmem:[%s2932_s14 + $0x88] sm:$0xff]  ;;  %v561_v47 = vadd.f32 %v2943_v31, %v485_v38  ;;  %v413_v48 = vunpack.c.l.bf16 %v365_v21  ;;  %v563_v52 = vadd.f32 %v2943_v31, %v487_v40  ;;  %v754_v55 = vsel %vm626_vm14, %v562_v29, %v690_v43  ;;  %v372_v38 = vld [vmem:[%s2932_s14 + $0xb8] sm:$0xff] }
  0x7e   : > { %2293 = vmatprep.mubr.msk.bf16.mxu0 %vm1109_vm4, %v796_v25  ;;  %2309 = vmatprep.mubr.msk.bf16.mxu1 %vm1109_vm4, %v796_v25  ;;  %v559_v25 = vadd.f32 %v2943_v31, %v483_v13  ;;  %v416_v36 = vunpack.c.h.bf16 %v366_v22  ;;  %v415_v53 = vunpack.c.l.bf16 %v366_v22  ;;  %v756_v56 = vsel %vm628_vm15, %v564_v30, %v692_v44 }
  0x7f   : > { %v566_v57 = vadd.f32 %v2945_v32, %v490_v45  ;;  %v418_v59 = vunpack.c.h.bf16 %v367_v49  ;;  %v420_v60 = vunpack.c.h.bf16 %v368_v50  ;;  %v689_v61 = vmul.f32 0.2, %v561_v47 }
  0x80   : > { %vm623_vm13 = vcmp.ge.f32.partialorder %v559_v25, 0.0  ;;  %v687_v42 = vmul.f32 0.2, %v559_v25  ;;  %v492_v46 = vmul.f32 %v2939_v28, %v416_v36  ;;  %v489_v62 = vmul.f32 %v2937_v27, %v413_v48 }
  0x81   : > { %vm625_vm0 = vcmp.ge.f32.partialorder %v561_v47, 0.0  ;;  %v691_v0 = vmul.f32 0.2, %v563_v52  ;;  %v491_v1 = vmul.f32 %v2937_v27, %v415_v53  ;;  %v804_v2 = vpack.c.bf16 %v756_v56, %v754_v55 }
  0x82   : > { %v568_v58 = vadd.f32 %v2945_v32, %v492_v46  ;;  %vm627_vm1 = vcmp.ge.f32.partialorder %v563_v52, 0.0  ;;  %v694_v3 = vmul.f32 0.2, %v566_v57  ;;  %v494_v5 = vmul.f32 %v2939_v28, %v418_v59 }
  0x83   : > { %v496_v6 = vmul.f32 %v2939_v28, %v420_v60  ;;  %vm630_vm2 = vcmp.ge.f32.partialorder %v566_v57, 0.0  ;;  %v565_v10 = vadd.f32 %v2943_v31, %v489_v62  ;;  %v755_v11 = vsel %vm627_vm1, %v563_v52, %v691_v0  ;;  %v374_v62 = vld [vmem:[%s2932_s14 + $0xc8] sm:$0xff] }
  0x84   : > { %v696_v4 = vmul.f32 0.2, %v568_v58  ;;  %vm632_vm3 = vcmp.ge.f32.partialorder %v568_v58, 0.0  ;;  %v567_v12 = vadd.f32 %v2943_v31, %v491_v1  ;;  %v417_v13 = vunpack.c.l.bf16 %v367_v49 }
  0x85   : > { %1221 = vmatmul.mubr.bf16.gmra.mxu0 %v795_v51  ;;  %1414 = vmatmul.mubr.bf16.gmra.mxu1 %v795_v51  ;;  %v749_v51 = vsel %vm621_vm12, %v557_v24, %v685_v39  ;;  %v422_v15 = vunpack.c.h.bf16 %v369_v7  ;;  %v424_v16 = vunpack.c.h.bf16 %v370_v8  ;;  %v758_v17 = vsel %vm630_vm2, %v566_v57, %v694_v3 }
  0x86   : > { %2294 = vmatprep.mubr.msk.bf16.mxu0 %vm1109_vm4, %v798_v54  ;;  %2310 = vmatprep.mubr.msk.bf16.mxu1 %vm1109_vm4, %v798_v54  ;;  %v751_v54 = vsel %vm623_vm13, %v559_v25, %v687_v42  ;;  %v760_v18 = vsel %vm632_vm3, %v568_v58, %v696_v4  ;;  %v570_v19 = vadd.f32 %v2945_v32, %v494_v5  ;;  %v693_v22 = vmul.f32 0.2, %v565_v10 }
  0x87   : > { %v801_v63 = vpack.c.bf16 %v751_v54, %v749_v51  ;;  %v572_v20 = vadd.f32 %v2945_v32, %v496_v6  ;;  %vm629_vm5 = vcmp.ge.f32.partialorder %v565_v10, 0.0  ;;  %v695_v23 = vmul.f32 0.2, %v567_v12 }
  0x88   : > { %v493_v24 = vmul.f32 %v2937_v27, %v417_v13  ;;  %v806_v26 = vpack.c.bf16 %v760_v18, %v758_v17  ;;  %vm631_vm6 = vcmp.ge.f32.partialorder %v567_v12, 0.0  ;;  %v498_v29 = vmul.f32 %v2939_v28, %v422_v15 }
  0x89   : > { %v500_v30 = vmul.f32 %v2939_v28, %v424_v16  ;;  %v698_v33 = vmul.f32 0.2, %v570_v19  ;;  %v700_v34 = vmul.f32 0.2, %v572_v20  ;;  %v757_v35 = vsel %vm629_vm5, %v565_v10, %v693_v22 }
  0x8a   : > { %vm634_vm7 = vcmp.ge.f32.partialorder %v570_v19, 0.0  ;;  %vm636_vm8 = vcmp.ge.f32.partialorder %v572_v20, 0.0  ;;  %v421_v36 = vunpack.c.l.bf16 %v369_v7  ;;  %v759_v39 = vsel %vm631_vm6, %v567_v12, %v695_v23 }
  0x8b   : > { %v569_v40 = vadd.f32 %v2943_v31, %v493_v24  ;;  %v423_v42 = vunpack.c.l.bf16 %v370_v8  ;;  %v574_v43 = vadd.f32 %v2945_v32, %v498_v29  ;;  %v576_v44 = vadd.f32 %v2945_v32, %v500_v30 }
  0x8c   : > { %v762_v45 = vsel %vm634_vm7, %v570_v19, %v698_v33  ;;  %v764_v46 = vsel %vm636_vm8, %v572_v20, %v700_v34  ;;  %v428_v48 = vunpack.c.h.bf16 %v372_v38  ;;  %v805_v49 = vpack.c.bf16 %v759_v39, %v757_v35  ;;  %v375_v19 = vld [vmem:[%s2932_s14 + $0xd0] sm:$0xff]  ;;  %v376_v20 = vld [vmem:[%s2932_s14 + $0xd8] sm:$0xff] }
  0x8d   : > { %1231 = vmatmul.mubr.bf16.gmra.mxu0 %v797_v9  ;;  %1424 = vmatmul.mubr.bf16.gmra.mxu1 %v797_v9  ;;  %v753_v9 = vsel %vm625_vm0, %v561_v47, %v689_v61  ;;  %vm633_vm9 = vcmp.ge.f32.partialorder %v569_v40, 0.0  ;;  %v697_v51 = vmul.f32 0.2, %v569_v40  ;;  %v499_v52 = vmul.f32 %v2937_v27, %v423_v42  ;;  %v373_v61 = vld [vmem:[%s2932_s14 + $0xc0] sm:$0xff] }
  0x8e   : > { %2295 = vmatprep.mubr.msk.bf16.mxu0 %vm1109_vm4, %v800_v14  ;;  %2311 = vmatprep.mubr.msk.bf16.mxu1 %vm1109_vm4, %v800_v14  ;;  %v419_v14 = vunpack.c.l.bf16 %v368_v50  ;;  %v803_v21 = vpack.c.bf16 %v755_v11, %v753_v9  ;;  %v497_v50 = vmul.f32 %v2937_v27, %v421_v36  ;;  %v808_v53 = vpack.c.bf16 %v764_v46, %v762_v45 }
  0x8f   : > { %v702_v55 = vmul.f32 0.2, %v574_v43  ;;  %v704_v56 = vmul.f32 0.2, %v576_v44  ;;  %vm638_vm11 = vcmp.ge.f32.partialorder %v574_v43, 0.0  ;;  %vm640_vm12 = vcmp.ge.f32.partialorder %v576_v44, 0.0 }
  0x90   : > { %v495_v25 = vmul.f32 %v2937_v27, %v419_v14  ;;  %v504_v58 = vmul.f32 %v2939_v28, %v428_v48  ;;  %v573_v59 = vadd.f32 %v2943_v31, %v497_v50  ;;  %v575_v0 = vadd.f32 %v2943_v31, %v499_v52  ;;  %v378_v50 = vld [vmem:[%s2932_s14 + $0xe8] sm:$0xff] }
  0x91   : > { %v427_v1 = vunpack.c.l.bf16 %v372_v38  ;;  %v766_v3 = vsel %vm638_vm11, %v574_v43, %v702_v55  ;;  %v768_v4 = vsel %vm640_vm12, %v576_v44, %v704_v56  ;;  %v430_v7 = vunpack.c.h.bf16 %v373_v61 }
  0x92   : > { %v580_v6 = vadd.f32 %v2945_v32, %v504_v58  ;;  %v432_v8 = vunpack.c.h.bf16 %v374_v62  ;;  %v701_v9 = vmul.f32 0.2, %v573_v59  ;;  %vm637_vm13 = vcmp.ge.f32.partialorder %v573_v59, 0.0 }
  0x93   : > { %v703_v12 = vmul.f32 0.2, %v575_v0  ;;  %v503_v13 = vmul.f32 %v2937_v27, %v427_v1  ;;  %v810_v14 = vpack.c.bf16 %v768_v4, %v766_v3  ;;  %vm639_vm14 = vcmp.ge.f32.partialorder %v575_v0, 0.0 }
  0x94   : > { %v708_v16 = vmul.f32 0.2, %v580_v6  ;;  %v506_v17 = vmul.f32 %v2939_v28, %v430_v7  ;;  %v508_v18 = vmul.f32 %v2939_v28, %v432_v8  ;;  %vm644_vm0 = vcmp.ge.f32.partialorder %v580_v6, 0.0  ;;  %v379_v7 = vld [vmem:[%s2932_s14 + $0xf0] sm:$0xff]  ;;  %v380_v8 = vld [vmem:[%s2932_s14 + $0xf8] sm:$0xff] }
  0x95   : > { %1241 = vmatmul.mubr.bf16.gmra.mxu0 %v799_v37  ;;  %1434 = vmatmul.mubr.bf16.gmra.mxu1 %v799_v37  ;;  %v371_v37 = vld [vmem:[%s2932_s14 + $0xb0] sm:$0xff]  ;;  %v767_v23 = vsel %vm639_vm14, %v575_v0, %v703_v12  ;;  %v579_v24 = vadd.f32 %v2943_v31, %v503_v13  ;;  %v434_v29 = vunpack.c.h.bf16 %v375_v19  ;;  %v436_v30 = vunpack.c.h.bf16 %v376_v20 }
  0x96   : > { %2296 = vmatprep.mubr.msk.bf16.mxu0 %vm1109_vm4, %v802_v41  ;;  %2312 = vmatprep.mubr.msk.bf16.mxu1 %vm1109_vm4, %v802_v41  ;;  %v571_v41 = vadd.f32 %v2943_v31, %v495_v25  ;;  %v426_v47 = vunpack.c.h.bf16 %v371_v37  ;;  %v425_v60 = vunpack.c.l.bf16 %v371_v37  ;;  %v429_v25 = vunpack.c.l.bf16 %v373_v61 }
  0x97   : > { %v772_v34 = vsel %vm644_vm0, %v580_v6, %v708_v16  ;;  %v582_v35 = vadd.f32 %v2945_v32, %v506_v17  ;;  %v584_v36 = vadd.f32 %v2945_v32, %v508_v18  ;;  %v707_v39 = vmul.f32 0.2, %v579_v24 }
  0x98   : > { %vm635_vm10 = vcmp.ge.f32.partialorder %v571_v41, 0.0  ;;  %v699_v54 = vmul.f32 0.2, %v571_v41  ;;  %v502_v57 = vmul.f32 %v2939_v28, %v426_v47  ;;  %v501_v10 = vmul.f32 %v2937_v27, %v425_v60 }
  0x99   : > { %vm643_vm2 = vcmp.ge.f32.partialorder %v579_v24, 0.0  ;;  %v510_v43 = vmul.f32 %v2939_v28, %v434_v29  ;;  %v512_v44 = vmul.f32 %v2939_v28, %v436_v30  ;;  %v710_v45 = vmul.f32 0.2, %v582_v35 }
  0x9a   : > { %v578_v5 = vadd.f32 %v2945_v32, %v502_v57  ;;  %v577_v22 = vadd.f32 %v2943_v31, %v501_v10  ;;  %v712_v46 = vmul.f32 0.2, %v584_v36  ;;  %vm646_vm3 = vcmp.ge.f32.partialorder %v582_v35, 0.0 }
  0x9b   : > { %vm648_vm5 = vcmp.ge.f32.partialorder %v584_v36, 0.0  ;;  %v433_v48 = vunpack.c.l.bf16 %v375_v19  ;;  %v588_v55 = vadd.f32 %v2945_v32, %v512_v44  ;;  %v435_v56 = vunpack.c.l.bf16 %v376_v20 }
  0x9c   : > { %v706_v15 = vmul.f32 0.2, %v578_v5  ;;  %vm642_vm15 = vcmp.ge.f32.partialorder %v578_v5, 0.0  ;;  %v705_v38 = vmul.f32 0.2, %v577_v22  ;;  %vm641_vm1 = vcmp.ge.f32.partialorder %v577_v22, 0.0 }
  0x9d   : > { %1251 = vmatmul.mubr.bf16.gmra.mxu0 %v801_v63  ;;  %1444 = vmatmul.mubr.bf16.gmra.mxu1 %v801_v63  ;;  %v761_v63 = vsel %vm633_vm9, %v569_v40, %v697_v51  ;;  %v505_v40 = vmul.f32 %v2937_v27, %v429_v25  ;;  %v771_v51 = vsel %vm643_vm2, %v579_v24, %v707_v39  ;;  %v440_v60 = vunpack.c.h.bf16 %v378_v50 }
  0x9e   : > { %2297 = vmatprep.mubr.msk.bf16.mxu0 %vm1109_vm4, %v804_v2  ;;  %2313 = vmatprep.mubr.msk.bf16.mxu1 %vm1109_vm4, %v804_v2  ;;  %v763_v2 = vsel %vm635_vm10, %v571_v41, %v699_v54  ;;  %v770_v33 = vsel %vm642_vm15, %v578_v5, %v706_v15  ;;  %v769_v47 = vsel %vm641_vm1, %v577_v22, %v705_v38  ;;  %v716_v3 = vmul.f32 0.2, %v588_v55 }
  0x9f   : > { %v807_v11 = vpack.c.bf16 %v763_v2, %v761_v63  ;;  %v812_v42 = vpack.c.bf16 %v772_v34, %v770_v33  ;;  %v581_v52 = vadd.f32 %v2943_v31, %v505_v40  ;;  %v586_v54 = vadd.f32 %v2945_v32, %v510_v43 }
  0xa0   : > { %v774_v57 = vsel %vm646_vm3, %v582_v35, %v710_v45  ;;  %v776_v58 = vsel %vm648_vm5, %v584_v36, %v712_v46  ;;  %v811_v61 = vpack.c.bf16 %v771_v51, %v769_v47  ;;  %v511_v4 = vmul.f32 %v2937_v27, %v435_v56 }
  0xa1   : > { %vm645_vm6 = vcmp.ge.f32.partialorder %v581_v52, 0.0  ;;  %v709_v63 = vmul.f32 0.2, %v581_v52  ;;  %v814_v1 = vpack.c.bf16 %v776_v58, %v774_v57  ;;  %v714_v2 = vmul.f32 0.2, %v586_v54 }
  0xa2   : > { %vm650_vm8 = vcmp.ge.f32.partialorder %v586_v54, 0.0  ;;  %vm652_vm9 = vcmp.ge.f32.partialorder %v588_v55, 0.0  ;;  %v516_v6 = vmul.f32 %v2939_v28, %v440_v60  ;;  %v587_v15 = vadd.f32 %v2943_v31, %v511_v4 }
  0xa3   : > { %v778_v13 = vsel %vm650_vm8, %v586_v54, %v714_v2  ;;  %v439_v16 = vunpack.c.l.bf16 %v378_v50  ;;  %v442_v19 = vunpack.c.h.bf16 %v379_v7  ;;  %v444_v20 = vunpack.c.h.bf16 %v380_v8 }
  0xa4   : > { %v592_v18 = vadd.f32 %v2945_v32, %v516_v6  ;;  %vm651_vm11 = vcmp.ge.f32.partialorder %v587_v15, 0.0  ;;  %v715_v25 = vmul.f32 0.2, %v587_v15  ;;  %v441_v39 = vunpack.c.l.bf16 %v379_v7 }
  0xa5   : > { %1261 = vmatmul.mubr.bf16.gmra.mxu0 %v803_v21  ;;  %1454 = vmatmul.mubr.bf16.gmra.mxu1 %v803_v21  ;;  %v765_v21 = vsel %vm637_vm13, %v573_v59, %v701_v9  ;;  %v773_v9 = vsel %vm645_vm6, %v581_v52, %v709_v63  ;;  %v518_v33 = vmul.f32 %v2939_v28, %v442_v19  ;;  %v443_v40 = vunpack.c.l.bf16 %v380_v8 }
  0xa6   : > { %2298 = vmatprep.mubr.msk.bf16.mxu0 %vm1109_vm4, %v806_v26  ;;  %2314 = vmatprep.mubr.msk.bf16.mxu1 %vm1109_vm4, %v806_v26  ;;  %v431_v26 = vunpack.c.l.bf16 %v374_v62  ;;  %v809_v37 = vpack.c.bf16 %v767_v23, %v765_v21  ;;  %v509_v62 = vmul.f32 %v2937_v27, %v433_v48  ;;  %v720_v30 = vmul.f32 0.2, %v592_v18 }
  0xa7   : > { %v520_v34 = vmul.f32 %v2939_v28, %v444_v20  ;;  %vm656_vm13 = vcmp.ge.f32.partialorder %v592_v18, 0.0  ;;  %v517_v48 = vmul.f32 %v2937_v27, %v441_v39 }
  0xa8   : > { %v507_v41 = vmul.f32 %v2937_v27, %v431_v26  ;;  %v515_v26 = vmul.f32 %v2937_v27, %v439_v16 }
  0xa9   : > { %v596_v43 = vadd.f32 %v2945_v32, %v520_v34 }
  0xaa   : > { %v591_v38 = vadd.f32 %v2943_v31, %v515_v26 }
  0xab   : > { %v724_v51 = vmul.f32 0.2, %v596_v43  ;;  %vm660_vm1 = vcmp.ge.f32.partialorder %v596_v43, 0.0 }
  0xac   : > { %v719_v47 = vmul.f32 0.2, %v591_v38  ;;  %vm655_vm15 = vcmp.ge.f32.partialorder %v591_v38, 0.0 }
  0xad   : > { %1271 = vmatmul.mubr.bf16.gmra.mxu0 %v805_v49  ;;  %1464 = vmatmul.mubr.bf16.gmra.mxu1 %v805_v49  ;;  %v377_v49 = vld [vmem:[%s2932_s14 + $0xe0] sm:$0xff]  ;;  %v788_v56 = vsel %vm660_vm1, %v596_v43, %v724_v51 }
  0xae   : > { %2299 = vmatprep.mubr.msk.bf16.mxu0 %vm1109_vm4, %v808_v53  ;;  %2315 = vmatprep.mubr.msk.bf16.mxu1 %vm1109_vm4, %v808_v53  ;;  %v583_v53 = vadd.f32 %v2943_v31, %v507_v41  ;;  %v438_v59 = vunpack.c.h.bf16 %v377_v49  ;;  %v437_v12 = vunpack.c.l.bf16 %v377_v49  ;;  %v519_v49 = vmul.f32 %v2937_v27, %v443_v40 }
  0xb0   : > { %vm647_vm7 = vcmp.ge.f32.partialorder %v583_v53, 0.0  ;;  %v711_v0 = vmul.f32 0.2, %v583_v53  ;;  %v514_v5 = vmul.f32 %v2939_v28, %v438_v59  ;;  %v513_v23 = vmul.f32 %v2937_v27, %v437_v12 }
  0xb1   : > { %v594_v28 = vadd.f32 %v2945_v32, %v518_v33  ;;  %v595_v54 = vadd.f32 %v2943_v31, %v519_v49 }
  0xb2   : > { %v775_v10 = vsel %vm647_vm7, %v583_v53, %v711_v0  ;;  %v590_v17 = vadd.f32 %v2945_v32, %v514_v5  ;;  %v589_v36 = vadd.f32 %v2943_v31, %v513_v23  ;;  %v783_v32 = vsel %vm655_vm15, %v591_v38, %v719_v47 }
  0xb3   : > { %v813_v21 = vpack.c.bf16 %v775_v10, %v773_v9  ;;  %v722_v50 = vmul.f32 0.2, %v594_v28  ;;  %vm658_vm0 = vcmp.ge.f32.partialorder %v594_v28, 0.0  ;;  %v593_v53 = vadd.f32 %v2943_v31, %v517_v48 }
  0xb4   : > { %v718_v29 = vmul.f32 0.2, %v590_v17  ;;  %vm654_vm12 = vcmp.ge.f32.partialorder %v590_v17, 0.0  ;;  %vm653_vm14 = vcmp.ge.f32.partialorder %v589_v36, 0.0  ;;  %v717_v45 = vmul.f32 0.2, %v589_v36 }
  0xb5   : > { %1281 = vmatmul.mubr.bf16.gmra.mxu0 %v807_v11  ;;  %1474 = vmatmul.mubr.bf16.gmra.mxu1 %v807_v11  ;;  %v585_v11 = vadd.f32 %v2943_v31, %v509_v62  ;;  %v721_v58 = vmul.f32 0.2, %v593_v53  ;;  %v723_v59 = vmul.f32 0.2, %v595_v54  ;;  %vm657_vm2 = vcmp.ge.f32.partialorder %v593_v53, 0.0 }
  0xb6   : > { %2300 = vmatprep.mubr.msk.bf16.mxu0 %vm1109_vm4, %v810_v14  ;;  %2316 = vmatprep.mubr.msk.bf16.mxu1 %vm1109_vm4, %v810_v14  ;;  %v780_v14 = vsel %vm652_vm9, %v588_v55, %v716_v3  ;;  %v782_v41 = vsel %vm654_vm12, %v590_v17, %v718_v29  ;;  %v781_v52 = vsel %vm653_vm14, %v589_v36, %v717_v45  ;;  %vm659_vm3 = vcmp.ge.f32.partialorder %v595_v54, 0.0 }
  0xb7   : > { %vm649_vm10 = vcmp.ge.f32.partialorder %v585_v11, 0.0  ;;  %v713_v22 = vmul.f32 0.2, %v585_v11  ;;  %v816_v24 = vpack.c.bf16 %v780_v14, %v778_v13  ;;  %v786_v55 = vsel %vm658_vm0, %v594_v28, %v722_v50 }
  0xb8   : > { %v817_v27 = vpack.c.bf16 %v783_v32, %v781_v52  ;;  %v820_v57 = vpack.c.bf16 %v788_v56, %v786_v55  ;;  %v785_v60 = vsel %vm657_vm2, %v593_v53, %v721_v58 }
  0xb9   : > { %v777_v35 = vsel %vm649_vm10, %v585_v11, %v713_v22 }
  0xbd   : > { %1291 = vmatmul.mubr.bf16.gmra.mxu0 %v809_v37  ;;  %1484 = vmatmul.mubr.bf16.gmra.mxu1 %v809_v37  ;;  %v779_v37 = vsel %vm651_vm11, %v587_v15, %v715_v25 }
  0xbe   : > { %2301 = vmatprep.mubr.msk.bf16.mxu0 %vm1109_vm4, %v812_v42  ;;  %2317 = vmatprep.mubr.msk.bf16.mxu1 %vm1109_vm4, %v812_v42  ;;  %v784_v42 = vsel %vm656_vm13, %v592_v18, %v720_v30  ;;  %v815_v44 = vpack.c.bf16 %v779_v37, %v777_v35 }
  0xbf   : > { %v818_v46 = vpack.c.bf16 %v784_v42, %v782_v41 }
  0xc5   : > { %1301 = vmatmul.mubr.bf16.gmra.mxu0 %v811_v61  ;;  %1494 = vmatmul.mubr.bf16.gmra.mxu1 %v811_v61  ;;  %v787_v61 = vsel %vm659_vm3, %v595_v54, %v723_v59 }
  0xc6   : > { %2302 = vmatprep.mubr.msk.bf16.mxu0 %vm1109_vm4, %v814_v1  ;;  %2318 = vmatprep.mubr.msk.bf16.mxu1 %vm1109_vm4, %v814_v1  ;;  %v819_v62 = vpack.c.bf16 %v787_v61, %v785_v60 }
  0xcd   : > { %1311 = vmatmul.mubr.bf16.gmra.mxu0 %v813_v21  ;;  %1504 = vmatmul.mubr.bf16.gmra.mxu1 %v813_v21 }
  0xce   : > { %2303 = vmatprep.mubr.msk.bf16.mxu0 %vm1109_vm4, %v816_v24  ;;  %2319 = vmatprep.mubr.msk.bf16.mxu1 %vm1109_vm4, %v816_v24 }
  0xd5   : > { %1321 = vmatmul.mubr.bf16.gmra.mxu0 %v815_v44  ;;  %1514 = vmatmul.mubr.bf16.gmra.mxu1 %v815_v44 }
  0xd6   : > { %2304 = vmatprep.mubr.msk.bf16.mxu0 %vm1109_vm4, %v818_v46  ;;  %2320 = vmatprep.mubr.msk.bf16.mxu1 %vm1109_vm4, %v818_v46 }
  0xdd   : > { %1331 = vmatmul.mubr.bf16.gmra.mxu0 %v817_v27  ;;  %1524 = vmatmul.mubr.bf16.gmra.mxu1 %v817_v27 }
  0xde   : > { %2305 = vmatprep.mubr.msk.bf16.mxu0 %vm1109_vm4, %v820_v57  ;;  %2321 = vmatprep.mubr.msk.bf16.mxu1 %vm1109_vm4, %v820_v57 }
  0xe5   : > { %1341 = vmatmul.mubr.bf16.gmra.mxu0 %v819_v62  ;;  %1534 = vmatmul.mubr.bf16.gmra.mxu1 %v819_v62 }
 0x12d   : > { %v1192_v31 = vpop.f32.mrf.mxu0  ;;  %v1385_v63 = vpop.f32.mrf.mxu1 }
 0x12f   : > { %v1194_v0 = vpop.f32.mrf.mxu0  ;;  %v1387_v1 = vpop.f32.mrf.mxu1 }
 0x130   : > { %v2395_v2 = vpack.c.bf16 %v1194_v0, %v1192_v31  ;;  %v2396_v3 = vpack.c.bf16 %v1387_v1, %v1385_v63 }
 0x131   : > { %v1196_v4 = vpop.f32.mrf.mxu0  ;;  %v1389_v5 = vpop.f32.mrf.mxu1 }
 0x132   : > { %1928 = vst [vmem:[%s3177_s28] sm:$0xff] %v2395_v2  ;;  %1929 = vst [vmem:[%s3177_s28 + $0x8] sm:$0xff] %v2396_v3 }
 0x133   : > { %v1198_v6 = vpop.f32.mrf.mxu0  ;;  %v1391_v7 = vpop.f32.mrf.mxu1 }
 0x134   : > { %v2397_v8 = vpack.c.bf16 %v1198_v6, %v1196_v4  ;;  %v2398_v9 = vpack.c.bf16 %v1391_v7, %v1389_v5 }
 0x135   : > { %v1202_v10 = vpop.f32.mrf.mxu0  ;;  %v1395_v11 = vpop.f32.mrf.mxu1 }
 0x136   : > { %1930 = vst [vmem:[%s3177_s28 + $0x10] sm:$0xff] %v2397_v8  ;;  %1931 = vst [vmem:[%s3177_s28 + $0x18] sm:$0xff] %v2398_v9 }
 0x137   : > { %v1204_v12 = vpop.f32.mrf.mxu0  ;;  %v1397_v13 = vpop.f32.mrf.mxu1 }
 0x138   : > { %v2399_v14 = vpack.c.bf16 %v1204_v12, %v1202_v10  ;;  %v2400_v15 = vpack.c.bf16 %v1397_v13, %v1395_v11 }
 0x139   : > { %v1206_v16 = vpop.f32.mrf.mxu0  ;;  %v1399_v17 = vpop.f32.mrf.mxu1 }
 0x13a   : > { %1932 = vst [vmem:[%s3177_s28 + $0x20] sm:$0xff] %v2399_v14  ;;  %1933 = vst [vmem:[%s3177_s28 + $0x28] sm:$0xff] %v2400_v15 }
 0x13b   : > { %v1208_v18 = vpop.f32.mrf.mxu0  ;;  %v1401_v19 = vpop.f32.mrf.mxu1 }
 0x13c   : > { %v2401_v20 = vpack.c.bf16 %v1208_v18, %v1206_v16  ;;  %v2402_v21 = vpack.c.bf16 %v1401_v19, %v1399_v17 }
 0x13d   : > { %v1212_v22 = vpop.f32.mrf.mxu0  ;;  %v1405_v23 = vpop.f32.mrf.mxu1 }
 0x13e   : > { %1934 = vst [vmem:[%s3177_s28 + $0x30] sm:$0xff] %v2401_v20  ;;  %1935 = vst [vmem:[%s3177_s28 + $0x38] sm:$0xff] %v2402_v21 }
 0x13f   : > { %v1214_v24 = vpop.f32.mrf.mxu0  ;;  %v1407_v25 = vpop.f32.mrf.mxu1 }
 0x140   : > { %v2403_v26 = vpack.c.bf16 %v1214_v24, %v1212_v22  ;;  %v2404_v29 = vpack.c.bf16 %v1407_v25, %v1405_v23 }
 0x141   : > { %v1216_v30 = vpop.f32.mrf.mxu0  ;;  %v1409_v33 = vpop.f32.mrf.mxu1 }
 0x142   : > { %1936 = vst [vmem:[%s3177_s28 + $0x40] sm:$0xff] %v2403_v26  ;;  %1937 = vst [vmem:[%s3177_s28 + $0x48] sm:$0xff] %v2404_v29 }
 0x143   : > { %v1218_v34 = vpop.f32.mrf.mxu0  ;;  %v1411_v35 = vpop.f32.mrf.mxu1 }
 0x144   : > { %v2405_v36 = vpack.c.bf16 %v1218_v34, %v1216_v30  ;;  %v2406_v37 = vpack.c.bf16 %v1411_v35, %v1409_v33 }
 0x145   : > { %v1222_v38 = vpop.f32.mrf.mxu0  ;;  %v1415_v39 = vpop.f32.mrf.mxu1 }
 0x146   : > { %1938 = vst [vmem:[%s3177_s28 + $0x50] sm:$0xff] %v2405_v36  ;;  %1939 = vst [vmem:[%s3177_s28 + $0x58] sm:$0xff] %v2406_v37 }
 0x147   : > { %v1224_v40 = vpop.f32.mrf.mxu0  ;;  %v1417_v41 = vpop.f32.mrf.mxu1 }
 0x148   : > { %v2407_v42 = vpack.c.bf16 %v1224_v40, %v1222_v38  ;;  %v2408_v28 = vpack.c.bf16 %v1417_v41, %v1415_v39 }
 0x149   : > { %v1226_v43 = vpop.f32.mrf.mxu0  ;;  %v1419_v44 = vpop.f32.mrf.mxu1 }
 0x14a   : > { %1940 = vst [vmem:[%s3177_s28 + $0x60] sm:$0xff] %v2407_v42  ;;  %1941 = vst [vmem:[%s3177_s28 + $0x68] sm:$0xff] %v2408_v28 }
 0x14b   : > { %v1228_v45 = vpop.f32.mrf.mxu0  ;;  %v1421_v46 = vpop.f32.mrf.mxu1 }
 0x14c   : > { %v2409_v47 = vpack.c.bf16 %v1228_v45, %v1226_v43  ;;  %v2410_v48 = vpack.c.bf16 %v1421_v46, %v1419_v44 }
 0x14d   : > { %v1232_v49 = vpop.f32.mrf.mxu0  ;;  %v1425_v50 = vpop.f32.mrf.mxu1 }
 0x14e   : > { %1942 = vst [vmem:[%s3177_s28 + $0x70] sm:$0xff] %v2409_v47  ;;  %1943 = vst [vmem:[%s3177_s28 + $0x78] sm:$0xff] %v2410_v48 }
 0x14f   : > { %v1234_v51 = vpop.f32.mrf.mxu0  ;;  %v1427_v52 = vpop.f32.mrf.mxu1 }
 0x150   : > { %v2411_v32 = vpack.c.bf16 %v1234_v51, %v1232_v49  ;;  %v2412_v53 = vpack.c.bf16 %v1427_v52, %v1425_v50 }
 0x151   : > { %v1236_v54 = vpop.f32.mrf.mxu0  ;;  %v1429_v55 = vpop.f32.mrf.mxu1 }
 0x152   : > { %1944 = vst [vmem:[%s3177_s28 + $0x80] sm:$0xff] %v2411_v32  ;;  %1945 = vst [vmem:[%s3177_s28 + $0x88] sm:$0xff] %v2412_v53 }
 0x153   : > { %v1238_v56 = vpop.f32.mrf.mxu0  ;;  %v1431_v27 = vpop.f32.mrf.mxu1 }
 0x154   : > { %v2413_v57 = vpack.c.bf16 %v1238_v56, %v1236_v54  ;;  %v2414_v58 = vpack.c.bf16 %v1431_v27, %v1429_v55 }
 0x155   : > { %v1242_v59 = vpop.f32.mrf.mxu0  ;;  %v1435_v60 = vpop.f32.mrf.mxu1 }
 0x156   : > { %1946 = vst [vmem:[%s3177_s28 + $0x90] sm:$0xff] %v2413_v57  ;;  %1947 = vst [vmem:[%s3177_s28 + $0x98] sm:$0xff] %v2414_v58 }
 0x157   : > { %v1244_v61 = vpop.f32.mrf.mxu0  ;;  %v1437_v62 = vpop.f32.mrf.mxu1 }
 0x158   : > { %v2415_v31 = vpack.c.bf16 %v1244_v61, %v1242_v59  ;;  %v2416_v63 = vpack.c.bf16 %v1437_v62, %v1435_v60 }
 0x159   : > { %v1246_v0 = vpop.f32.mrf.mxu0  ;;  %v1439_v1 = vpop.f32.mrf.mxu1 }
 0x15a   : > { %1948 = vst [vmem:[%s3177_s28 + $0xa0] sm:$0xff] %v2415_v31  ;;  %1949 = vst [vmem:[%s3177_s28 + $0xa8] sm:$0xff] %v2416_v63 }
 0x15b   : > { %v1248_v2 = vpop.f32.mrf.mxu0  ;;  %v1441_v3 = vpop.f32.mrf.mxu1 }
 0x15c   : > { %v2417_v4 = vpack.c.bf16 %v1248_v2, %v1246_v0  ;;  %v2418_v5 = vpack.c.bf16 %v1441_v3, %v1439_v1 }
 0x15d   : > { %v1252_v6 = vpop.f32.mrf.mxu0  ;;  %v1445_v7 = vpop.f32.mrf.mxu1 }
 0x15e   : > { %1950 = vst [vmem:[%s3177_s28 + $0xb0] sm:$0xff] %v2417_v4  ;;  %1951 = vst [vmem:[%s3177_s28 + $0xb8] sm:$0xff] %v2418_v5 }
 0x15f   : > { %v1254_v8 = vpop.f32.mrf.mxu0  ;;  %v1447_v9 = vpop.f32.mrf.mxu1 }
 0x160   : > { %v2419_v10 = vpack.c.bf16 %v1254_v8, %v1252_v6  ;;  %v2420_v11 = vpack.c.bf16 %v1447_v9, %v1445_v7 }
 0x161   : > { %v1256_v12 = vpop.f32.mrf.mxu0  ;;  %v1449_v13 = vpop.f32.mrf.mxu1 }
 0x162   : > { %1952 = vst [vmem:[%s3177_s28 + $0xc0] sm:$0xff] %v2419_v10  ;;  %1953 = vst [vmem:[%s3177_s28 + $0xc8] sm:$0xff] %v2420_v11 }
 0x163   : > { %v1258_v14 = vpop.f32.mrf.mxu0  ;;  %v1451_v15 = vpop.f32.mrf.mxu1 }
 0x164   : > { %v2421_v16 = vpack.c.bf16 %v1258_v14, %v1256_v12  ;;  %v2422_v17 = vpack.c.bf16 %v1451_v15, %v1449_v13 }
 0x165   : > { %v1262_v18 = vpop.f32.mrf.mxu0  ;;  %v1455_v19 = vpop.f32.mrf.mxu1 }
 0x166   : > { %1954 = vst [vmem:[%s3177_s28 + $0xd0] sm:$0xff] %v2421_v16  ;;  %1955 = vst [vmem:[%s3177_s28 + $0xd8] sm:$0xff] %v2422_v17 }
 0x167   : > { %v1264_v20 = vpop.f32.mrf.mxu0  ;;  %v1457_v21 = vpop.f32.mrf.mxu1 }
 0x168   : > { %v2423_v22 = vpack.c.bf16 %v1264_v20, %v1262_v18  ;;  %v2424_v23 = vpack.c.bf16 %v1457_v21, %v1455_v19 }
 0x169   : > { %v1266_v24 = vpop.f32.mrf.mxu0  ;;  %v1459_v25 = vpop.f32.mrf.mxu1 }
 0x16a   : > { %1956 = vst [vmem:[%s3177_s28 + $0xe0] sm:$0xff] %v2423_v22  ;;  %1957 = vst [vmem:[%s3177_s28 + $0xe8] sm:$0xff] %v2424_v23 }
 0x16b   : > { %v1268_v26 = vpop.f32.mrf.mxu0  ;;  %v1461_v29 = vpop.f32.mrf.mxu1 }
 0x16c   : > { %v2425_v30 = vpack.c.bf16 %v1268_v26, %v1266_v24  ;;  %v2426_v33 = vpack.c.bf16 %v1461_v29, %v1459_v25 }
 0x16d   : > { %v1272_v34 = vpop.f32.mrf.mxu0  ;;  %v1465_v35 = vpop.f32.mrf.mxu1 }
 0x16e   : > { %1958 = vst [vmem:[%s3177_s28 + $0xf0] sm:$0xff] %v2425_v30  ;;  %1959 = vst [vmem:[%s3177_s28 + $0xf8] sm:$0xff] %v2426_v33 }
 0x16f   : > { %v1274_v36 = vpop.f32.mrf.mxu0  ;;  %v1467_v37 = vpop.f32.mrf.mxu1 }
 0x170   : > { %v2427_v38 = vpack.c.bf16 %v1274_v36, %v1272_v34  ;;  %v2428_v39 = vpack.c.bf16 %v1467_v37, %v1465_v35 }
 0x171   : > { %v1276_v40 = vpop.f32.mrf.mxu0  ;;  %v1469_v41 = vpop.f32.mrf.mxu1 }
 0x172   : > { %1960 = vst [vmem:[%s3177_s28 + $0x100] sm:$0xff] %v2427_v38  ;;  %1961 = vst [vmem:[%s3177_s28 + $0x108] sm:$0xff] %v2428_v39 }
 0x173   : > { %v1278_v42 = vpop.f32.mrf.mxu0  ;;  %v1471_v28 = vpop.f32.mrf.mxu1 }
 0x174   : > { %v2429_v43 = vpack.c.bf16 %v1278_v42, %v1276_v40  ;;  %v2430_v44 = vpack.c.bf16 %v1471_v28, %v1469_v41 }
 0x175   : > { %v1282_v45 = vpop.f32.mrf.mxu0  ;;  %v1475_v46 = vpop.f32.mrf.mxu1 }
 0x176   : > { %1962 = vst [vmem:[%s3177_s28 + $0x110] sm:$0xff] %v2429_v43  ;;  %1963 = vst [vmem:[%s3177_s28 + $0x118] sm:$0xff] %v2430_v44 }
 0x177   : > { %v1284_v47 = vpop.f32.mrf.mxu0  ;;  %v1477_v48 = vpop.f32.mrf.mxu1 }
 0x178   : > { %v2431_v49 = vpack.c.bf16 %v1284_v47, %v1282_v45  ;;  %v2432_v50 = vpack.c.bf16 %v1477_v48, %v1475_v46 }
 0x179   : > { %v1286_v51 = vpop.f32.mrf.mxu0  ;;  %v1479_v52 = vpop.f32.mrf.mxu1 }
 0x17a   : > { %1964 = vst [vmem:[%s3177_s28 + $0x120] sm:$0xff] %v2431_v49  ;;  %1965 = vst [vmem:[%s3177_s28 + $0x128] sm:$0xff] %v2432_v50 }
 0x17b   : > { %v1288_v32 = vpop.f32.mrf.mxu0  ;;  %v1481_v53 = vpop.f32.mrf.mxu1 }
 0x17c   : > { %v2433_v54 = vpack.c.bf16 %v1288_v32, %v1286_v51  ;;  %v2434_v55 = vpack.c.bf16 %v1481_v53, %v1479_v52 }
 0x17d   : > { %v1292_v56 = vpop.f32.mrf.mxu0  ;;  %v1485_v27 = vpop.f32.mrf.mxu1 }
 0x17e   : > { %1966 = vst [vmem:[%s3177_s28 + $0x130] sm:$0xff] %v2433_v54  ;;  %1967 = vst [vmem:[%s3177_s28 + $0x138] sm:$0xff] %v2434_v55 }
 0x17f   : > { %v1294_v57 = vpop.f32.mrf.mxu0  ;;  %v1487_v58 = vpop.f32.mrf.mxu1 }
 0x180   : > { %v2435_v59 = vpack.c.bf16 %v1294_v57, %v1292_v56  ;;  %v2436_v60 = vpack.c.bf16 %v1487_v58, %v1485_v27 }
 0x181   : > { %v1296_v61 = vpop.f32.mrf.mxu0  ;;  %v1489_v62 = vpop.f32.mrf.mxu1 }
 0x182   : > { %1968 = vst [vmem:[%s3177_s28 + $0x140] sm:$0xff] %v2435_v59  ;;  %1969 = vst [vmem:[%s3177_s28 + $0x148] sm:$0xff] %v2436_v60 }
 0x183   : > { %v1298_v31 = vpop.f32.mrf.mxu0  ;;  %v1491_v63 = vpop.f32.mrf.mxu1 }
 0x184   : > { %v2437_v0 = vpack.c.bf16 %v1298_v31, %v1296_v61  ;;  %v2438_v1 = vpack.c.bf16 %v1491_v63, %v1489_v62  ;;  %v2017_v31 = vld [vmem:[%s3177_s28] sm:$0xff] (%p2770_p9)  ;;  %v2019_v63 = vld [vmem:[%s3177_s28 + $0x8] sm:$0xff] (%p2770_p9) }
 0x185   : > { %v1302_v2 = vpop.f32.mrf.mxu0  ;;  %v1495_v3 = vpop.f32.mrf.mxu1  ;;  %2018 = vst [vmem:[%s3262_s20] sm:$0xff] (%p2770_p9), %v2017_v31  ;;  %2020 = vst [vmem:[%s3262_s20 + $0x8] sm:$0xff] (%p2770_p9), %v2019_v63 }
 0x186   : > { %1970 = vst [vmem:[%s3177_s28 + $0x150] sm:$0xff] %v2437_v0  ;;  %1971 = vst [vmem:[%s3177_s28 + $0x158] sm:$0xff] %v2438_v1  ;;  %v2021_v0 = vld [vmem:[%s3177_s28 + $0x10] sm:$0xff] (%p2770_p9)  ;;  %v2023_v1 = vld [vmem:[%s3177_s28 + $0x18] sm:$0xff] (%p2770_p9) }
 0x187   : > { %v1304_v4 = vpop.f32.mrf.mxu0  ;;  %v1497_v5 = vpop.f32.mrf.mxu1  ;;  %2022 = vst [vmem:[%s3262_s20 + $0x30] sm:$0xff] (%p2770_p9), %v2021_v0  ;;  %2024 = vst [vmem:[%s3262_s20 + $0x38] sm:$0xff] (%p2770_p9), %v2023_v1 }
 0x188   : > { %v2439_v6 = vpack.c.bf16 %v1304_v4, %v1302_v2  ;;  %v2440_v7 = vpack.c.bf16 %v1497_v5, %v1495_v3  ;;  %v2025_v2 = vld [vmem:[%s3177_s28 + $0x20] sm:$0xff] (%p2770_p9)  ;;  %v2027_v3 = vld [vmem:[%s3177_s28 + $0x28] sm:$0xff] (%p2770_p9)  ;;  %v2029_v4 = vld [vmem:[%s3177_s28 + $0x30] sm:$0xff] (%p2770_p9) }
 0x189   : > { %v1306_v8 = vpop.f32.mrf.mxu0  ;;  %v1499_v9 = vpop.f32.mrf.mxu1  ;;  %v2031_v5 = vld [vmem:[%s3177_s28 + $0x38] sm:$0xff] (%p2770_p9)  ;;  %2026 = vst [vmem:[%s3262_s20 + $0x60] sm:$0xff] (%p2770_p9), %v2025_v2  ;;  %2028 = vst [vmem:[%s3262_s20 + $0x68] sm:$0xff] (%p2770_p9), %v2027_v3 }
 0x18a   : > { %1972 = vst [vmem:[%s3177_s28 + $0x160] sm:$0xff] %v2439_v6  ;;  %1973 = vst [vmem:[%s3177_s28 + $0x168] sm:$0xff] %v2440_v7  ;;  %v2033_v6 = vld [vmem:[%s3177_s28 + $0x40] sm:$0xff] (%p2770_p9)  ;;  %v2035_v7 = vld [vmem:[%s3177_s28 + $0x48] sm:$0xff] (%p2770_p9) }
 0x18b   : > { %v1308_v10 = vpop.f32.mrf.mxu0  ;;  %v1501_v11 = vpop.f32.mrf.mxu1  ;;  %2030 = vst [vmem:[%s3262_s20 + $0x90] sm:$0xff] (%p2770_p9), %v2029_v4  ;;  %2032 = vst [vmem:[%s3262_s20 + $0x98] sm:$0xff] (%p2770_p9), %v2031_v5 }
 0x18c   : > { %v2441_v12 = vpack.c.bf16 %v1308_v10, %v1306_v8  ;;  %v2442_v13 = vpack.c.bf16 %v1501_v11, %v1499_v9  ;;  %v2037_v8 = vld [vmem:[%s3177_s28 + $0x50] sm:$0xff] (%p2770_p9)  ;;  %v2039_v9 = vld [vmem:[%s3177_s28 + $0x58] sm:$0xff] (%p2770_p9)  ;;  %v2041_v10 = vld [vmem:[%s3177_s28 + $0x60] sm:$0xff] (%p2770_p9)  ;;  %2034 = vst [vmem:[%s3262_s20 + $0xc0] sm:$0xff] (%p2770_p9), %v2033_v6 }
 0x18d   : > { %v1312_v14 = vpop.f32.mrf.mxu0  ;;  %v1505_v15 = vpop.f32.mrf.mxu1  ;;  %v2043_v11 = vld [vmem:[%s3177_s28 + $0x68] sm:$0xff] (%p2770_p9)  ;;  %2036 = vst [vmem:[%s3262_s20 + $0xc8] sm:$0xff] (%p2770_p9), %v2035_v7  ;;  %2038 = vst [vmem:[%s3262_s20 + $0xf0] sm:$0xff] (%p2770_p9), %v2037_v8 }
 0x18e   : > { %1974 = vst [vmem:[%s3177_s28 + $0x170] sm:$0xff] %v2441_v12  ;;  %1975 = vst [vmem:[%s3177_s28 + $0x178] sm:$0xff] %v2442_v13  ;;  %v2045_v12 = vld [vmem:[%s3177_s28 + $0x70] sm:$0xff] (%p2770_p9)  ;;  %v2047_v13 = vld [vmem:[%s3177_s28 + $0x78] sm:$0xff] (%p2770_p9) }
 0x18f   : > { %v1314_v16 = vpop.f32.mrf.mxu0  ;;  %v1507_v17 = vpop.f32.mrf.mxu1  ;;  %2040 = vst [vmem:[%s3262_s20 + $0xf8] sm:$0xff] (%p2770_p9), %v2039_v9  ;;  %2042 = vst [vmem:[%s3262_s20 + $0x120] sm:$0xff] (%p2770_p9), %v2041_v10 }
 0x190   : > { %v2443_v18 = vpack.c.bf16 %v1314_v16, %v1312_v14  ;;  %v2444_v19 = vpack.c.bf16 %v1507_v17, %v1505_v15  ;;  %2044 = vst [vmem:[%s3262_s20 + $0x128] sm:$0xff] (%p2770_p9), %v2043_v11  ;;  %2046 = vst [vmem:[%s3262_s20 + $0x150] sm:$0xff] (%p2770_p9), %v2045_v12  ;;  %v2049_v14 = vld [vmem:[%s3177_s28 + $0x80] sm:$0xff] (%p2770_p9)  ;;  %v2051_v15 = vld [vmem:[%s3177_s28 + $0x88] sm:$0xff] (%p2770_p9) }
 0x191   : > { %v1316_v20 = vpop.f32.mrf.mxu0  ;;  %v1509_v21 = vpop.f32.mrf.mxu1  ;;  %2048 = vst [vmem:[%s3262_s20 + $0x158] sm:$0xff] (%p2770_p9), %v2047_v13  ;;  %2050 = vst [vmem:[%s3262_s20 + $0x180] sm:$0xff] (%p2770_p9), %v2049_v14  ;;  %v2053_v16 = vld [vmem:[%s3177_s28 + $0x90] sm:$0xff] (%p2770_p9)  ;;  %v2055_v17 = vld [vmem:[%s3177_s28 + $0x98] sm:$0xff] (%p2770_p9) }
 0x192   : > { %1976 = vst [vmem:[%s3177_s28 + $0x180] sm:$0xff] %v2443_v18  ;;  %1977 = vst [vmem:[%s3177_s28 + $0x188] sm:$0xff] %v2444_v19  ;;  %v2057_v18 = vld [vmem:[%s3177_s28 + $0xa0] sm:$0xff] (%p2770_p9)  ;;  %v2059_v19 = vld [vmem:[%s3177_s28 + $0xa8] sm:$0xff] (%p2770_p9) }
 0x193   : > { %v1318_v22 = vpop.f32.mrf.mxu0  ;;  %v1511_v23 = vpop.f32.mrf.mxu1  ;;  %2052 = vst [vmem:[%s3262_s20 + $0x188] sm:$0xff] (%p2770_p9), %v2051_v15  ;;  %2054 = vst [vmem:[%s3262_s20 + $0x1b0] sm:$0xff] (%p2770_p9), %v2053_v16 }
 0x194   : > { %v2445_v24 = vpack.c.bf16 %v1318_v22, %v1316_v20  ;;  %v2446_v25 = vpack.c.bf16 %v1511_v23, %v1509_v21  ;;  %2056 = vst [vmem:[%s3262_s20 + $0x1b8] sm:$0xff] (%p2770_p9), %v2055_v17  ;;  %2058 = vst [vmem:[%s3262_s20 + $0x1e0] sm:$0xff] (%p2770_p9), %v2057_v18  ;;  %v2061_v20 = vld [vmem:[%s3177_s28 + $0xb0] sm:$0xff] (%p2770_p9)  ;;  %v2063_v21 = vld [vmem:[%s3177_s28 + $0xb8] sm:$0xff] (%p2770_p9) }
 0x195   : > { %v1322_v26 = vpop.f32.mrf.mxu0  ;;  %v1515_v29 = vpop.f32.mrf.mxu1  ;;  %2060 = vst [vmem:[%s3262_s20 + $0x1e8] sm:$0xff] (%p2770_p9), %v2059_v19  ;;  %2062 = vst [vmem:[%s3262_s20 + $0x210] sm:$0xff] (%p2770_p9), %v2061_v20  ;;  %v2065_v22 = vld [vmem:[%s3177_s28 + $0xc0] sm:$0xff] (%p2770_p9)  ;;  %v2067_v23 = vld [vmem:[%s3177_s28 + $0xc8] sm:$0xff] (%p2770_p9) }
 0x196   : > { %1978 = vst [vmem:[%s3177_s28 + $0x190] sm:$0xff] %v2445_v24  ;;  %1979 = vst [vmem:[%s3177_s28 + $0x198] sm:$0xff] %v2446_v25  ;;  %v2069_v24 = vld [vmem:[%s3177_s28 + $0xd0] sm:$0xff] (%p2770_p9)  ;;  %v2071_v25 = vld [vmem:[%s3177_s28 + $0xd8] sm:$0xff] (%p2770_p9) }
 0x197   : > { %v1324_v30 = vpop.f32.mrf.mxu0  ;;  %v1517_v33 = vpop.f32.mrf.mxu1  ;;  %2064 = vst [vmem:[%s3262_s20 + $0x218] sm:$0xff] (%p2770_p9), %v2063_v21  ;;  %2066 = vst [vmem:[%s3262_s20 + $0x240] sm:$0xff] (%p2770_p9), %v2065_v22 }
 0x198   : > { %v2447_v34 = vpack.c.bf16 %v1324_v30, %v1322_v26  ;;  %v2448_v35 = vpack.c.bf16 %v1517_v33, %v1515_v29  ;;  %2068 = vst [vmem:[%s3262_s20 + $0x248] sm:$0xff] (%p2770_p9), %v2067_v23  ;;  %2070 = vst [vmem:[%s3262_s20 + $0x270] sm:$0xff] (%p2770_p9), %v2069_v24  ;;  %v2073_v26 = vld [vmem:[%s3177_s28 + $0xe0] sm:$0xff] (%p2770_p9)  ;;  %v2075_v29 = vld [vmem:[%s3177_s28 + $0xe8] sm:$0xff] (%p2770_p9) }
 0x199   : > { %v1326_v36 = vpop.f32.mrf.mxu0  ;;  %v1519_v37 = vpop.f32.mrf.mxu1  ;;  %2072 = vst [vmem:[%s3262_s20 + $0x278] sm:$0xff] (%p2770_p9), %v2071_v25  ;;  %2074 = vst [vmem:[%s3262_s20 + $0x2a0] sm:$0xff] (%p2770_p9), %v2073_v26  ;;  %v2077_v30 = vld [vmem:[%s3177_s28 + $0xf0] sm:$0xff] (%p2770_p9)  ;;  %v2079_v33 = vld [vmem:[%s3177_s28 + $0xf8] sm:$0xff] (%p2770_p9) }
 0x19a   : > { %1980 = vst [vmem:[%s3177_s28 + $0x1a0] sm:$0xff] %v2447_v34  ;;  %1981 = vst [vmem:[%s3177_s28 + $0x1a8] sm:$0xff] %v2448_v35  ;;  %v2081_v34 = vld [vmem:[%s3177_s28 + $0x100] sm:$0xff] (%p2770_p9)  ;;  %v2083_v35 = vld [vmem:[%s3177_s28 + $0x108] sm:$0xff] (%p2770_p9) }
 0x19b   : > { %v1328_v38 = vpop.f32.mrf.mxu0  ;;  %v1521_v39 = vpop.f32.mrf.mxu1  ;;  %2076 = vst [vmem:[%s3262_s20 + $0x2a8] sm:$0xff] (%p2770_p9), %v2075_v29  ;;  %2078 = vst [vmem:[%s3262_s20 + $0x2d0] sm:$0xff] (%p2770_p9), %v2077_v30 }
 0x19c   : > { %v2449_v40 = vpack.c.bf16 %v1328_v38, %v1326_v36  ;;  %v2450_v41 = vpack.c.bf16 %v1521_v39, %v1519_v37  ;;  %2080 = vst [vmem:[%s3262_s20 + $0x2d8] sm:$0xff] (%p2770_p9), %v2079_v33  ;;  %2082 = vst [vmem:[%s3262_s20 + $0x300] sm:$0xff] (%p2770_p9), %v2081_v34  ;;  %v2085_v36 = vld [vmem:[%s3177_s28 + $0x110] sm:$0xff] (%p2770_p9)  ;;  %v2087_v37 = vld [vmem:[%s3177_s28 + $0x118] sm:$0xff] (%p2770_p9) }
 0x19d   : > { %v1332_v42 = vpop.f32.mrf.mxu0  ;;  %v1525_v28 = vpop.f32.mrf.mxu1  ;;  %2084 = vst [vmem:[%s3262_s20 + $0x308] sm:$0xff] (%p2770_p9), %v2083_v35  ;;  %2086 = vst [vmem:[%s3262_s20 + $0x330] sm:$0xff] (%p2770_p9), %v2085_v36  ;;  %v2089_v38 = vld [vmem:[%s3177_s28 + $0x120] sm:$0xff] (%p2770_p9)  ;;  %v2091_v39 = vld [vmem:[%s3177_s28 + $0x128] sm:$0xff] (%p2770_p9) }
 0x19e   : > { %1982 = vst [vmem:[%s3177_s28 + $0x1b0] sm:$0xff] %v2449_v40  ;;  %1983 = vst [vmem:[%s3177_s28 + $0x1b8] sm:$0xff] %v2450_v41  ;;  %v2093_v40 = vld [vmem:[%s3177_s28 + $0x130] sm:$0xff] (%p2770_p9)  ;;  %v2095_v41 = vld [vmem:[%s3177_s28 + $0x138] sm:$0xff] (%p2770_p9) }
 0x19f   : > { %v1334_v43 = vpop.f32.mrf.mxu0  ;;  %v1527_v44 = vpop.f32.mrf.mxu1  ;;  %2088 = vst [vmem:[%s3262_s20 + $0x338] sm:$0xff] (%p2770_p9), %v2087_v37  ;;  %2090 = vst [vmem:[%s3262_s20 + $0x360] sm:$0xff] (%p2770_p9), %v2089_v38 }
 0x1a0   : > { %v2451_v45 = vpack.c.bf16 %v1334_v43, %v1332_v42  ;;  %v2452_v46 = vpack.c.bf16 %v1527_v44, %v1525_v28  ;;  %2092 = vst [vmem:[%s3262_s20 + $0x368] sm:$0xff] (%p2770_p9), %v2091_v39  ;;  %2094 = vst [vmem:[%s3262_s20 + $0x390] sm:$0xff] (%p2770_p9), %v2093_v40  ;;  %v2097_v42 = vld [vmem:[%s3177_s28 + $0x140] sm:$0xff] (%p2770_p9)  ;;  %v2099_v28 = vld [vmem:[%s3177_s28 + $0x148] sm:$0xff] (%p2770_p9) }
 0x1a1   : > { %v1336_v47 = vpop.f32.mrf.mxu0  ;;  %v1529_v48 = vpop.f32.mrf.mxu1  ;;  %2096 = vst [vmem:[%s3262_s20 + $0x398] sm:$0xff] (%p2770_p9), %v2095_v41  ;;  %2098 = vst [vmem:[%s3262_s20 + $0x3c0] sm:$0xff] (%p2770_p9), %v2097_v42  ;;  %v2101_v43 = vld [vmem:[%s3177_s28 + $0x150] sm:$0xff] (%p2770_p9)  ;;  %v2103_v44 = vld [vmem:[%s3177_s28 + $0x158] sm:$0xff] (%p2770_p9) }
 0x1a2   : > { %1984 = vst [vmem:[%s3177_s28 + $0x1c0] sm:$0xff] %v2451_v45  ;;  %1985 = vst [vmem:[%s3177_s28 + $0x1c8] sm:$0xff] %v2452_v46  ;;  %v2105_v45 = vld [vmem:[%s3177_s28 + $0x160] sm:$0xff] (%p2770_p9)  ;;  %v2107_v46 = vld [vmem:[%s3177_s28 + $0x168] sm:$0xff] (%p2770_p9) }
 0x1a3   : > { %v1338_v49 = vpop.f32.mrf.mxu0  ;;  %v1531_v50 = vpop.f32.mrf.mxu1  ;;  %2100 = vst [vmem:[%s3262_s20 + $0x3c8] sm:$0xff] (%p2770_p9), %v2099_v28  ;;  %2102 = vst [vmem:[%s3262_s20 + $0x3f0] sm:$0xff] (%p2770_p9), %v2101_v43 }
 0x1a4   : > { %v2453_v51 = vpack.c.bf16 %v1338_v49, %v1336_v47  ;;  %v2454_v52 = vpack.c.bf16 %v1531_v50, %v1529_v48  ;;  %2104 = vst [vmem:[%s3262_s20 + $0x3f8] sm:$0xff] (%p2770_p9), %v2103_v44  ;;  %2106 = vst [vmem:[%s3262_s20 + $0x420] sm:$0xff] (%p2770_p9), %v2105_v45  ;;  %v2109_v47 = vld [vmem:[%s3177_s28 + $0x170] sm:$0xff] (%p2770_p9)  ;;  %v2111_v48 = vld [vmem:[%s3177_s28 + $0x178] sm:$0xff] (%p2770_p9) }
 0x1a5   : > { %v1342_v32 = vpop.f32.mrf.mxu0  ;;  %v1535_v53 = vpop.f32.mrf.mxu1  ;;  %2108 = vst [vmem:[%s3262_s20 + $0x428] sm:$0xff] (%p2770_p9), %v2107_v46  ;;  %2110 = vst [vmem:[%s3262_s20 + $0x450] sm:$0xff] (%p2770_p9), %v2109_v47  ;;  %v2113_v49 = vld [vmem:[%s3177_s28 + $0x180] sm:$0xff] (%p2770_p9)  ;;  %v2115_v50 = vld [vmem:[%s3177_s28 + $0x188] sm:$0xff] (%p2770_p9) }
 0x1a6   : > { %1986 = vst [vmem:[%s3177_s28 + $0x1d0] sm:$0xff] %v2453_v51  ;;  %1987 = vst [vmem:[%s3177_s28 + $0x1d8] sm:$0xff] %v2454_v52  ;;  %v2117_v51 = vld [vmem:[%s3177_s28 + $0x190] sm:$0xff] (%p2770_p9)  ;;  %v2119_v52 = vld [vmem:[%s3177_s28 + $0x198] sm:$0xff] (%p2770_p9) }
 0x1a7   : > { %v1344_v54 = vpop.f32.mrf.mxu0  ;;  %v1537_v55 = vpop.f32.mrf.mxu1  ;;  %2112 = vst [vmem:[%s3262_s20 + $0x458] sm:$0xff] (%p2770_p9), %v2111_v48  ;;  %2114 = vst [vmem:[%s3262_s20 + $0x480] sm:$0xff] (%p2770_p9), %v2113_v49 }
 0x1a8   : > { %v2455_v56 = vpack.c.bf16 %v1344_v54, %v1342_v32  ;;  %v2456_v27 = vpack.c.bf16 %v1537_v55, %v1535_v53  ;;  %2116 = vst [vmem:[%s3262_s20 + $0x488] sm:$0xff] (%p2770_p9), %v2115_v50  ;;  %2118 = vst [vmem:[%s3262_s20 + $0x4b0] sm:$0xff] (%p2770_p9), %v2117_v51  ;;  %v2121_v32 = vld [vmem:[%s3177_s28 + $0x1a0] sm:$0xff] (%p2770_p9)  ;;  %v2123_v53 = vld [vmem:[%s3177_s28 + $0x1a8] sm:$0xff] (%p2770_p9) }
 0x1a9   : > { %v1346_v57 = vpop.f32.mrf.mxu0  ;;  %v1539_v58 = vpop.f32.mrf.mxu1  ;;  %2120 = vst [vmem:[%s3262_s20 + $0x4b8] sm:$0xff] (%p2770_p9), %v2119_v52  ;;  %2122 = vst [vmem:[%s3262_s20 + $0x4e0] sm:$0xff] (%p2770_p9), %v2121_v32  ;;  %v2125_v54 = vld [vmem:[%s3177_s28 + $0x1b0] sm:$0xff] (%p2770_p9)  ;;  %v2127_v55 = vld [vmem:[%s3177_s28 + $0x1b8] sm:$0xff] (%p2770_p9) }
 0x1aa   : > { %1988 = vst [vmem:[%s3177_s28 + $0x1e0] sm:$0xff] %v2455_v56  ;;  %1989 = vst [vmem:[%s3177_s28 + $0x1e8] sm:$0xff] %v2456_v27  ;;  %1998 = sbr.rel (!%p2770_p9) target bundleno = 439 (0x1b7), region = 63  ;;  %v2129_v56 = vld [vmem:[%s3177_s28 + $0x1c0] sm:$0xff] (%p2770_p9)  ;;  %v2131_v27 = vld [vmem:[%s3177_s28 + $0x1c8] sm:$0xff] (%p2770_p9) }
 0x1ab   : > { %v1348_v59 = vpop.f32.mrf.mxu0  ;;  %v1541_v60 = vpop.f32.mrf.mxu1  ;;  %2124 = vst [vmem:[%s3262_s20 + $0x4e8] sm:$0xff] (%p2770_p9), %v2123_v53  ;;  %2126 = vst [vmem:[%s3262_s20 + $0x510] sm:$0xff] (%p2770_p9), %v2125_v54 }
 0x1ac   : > { %v2457_v61 = vpack.c.bf16 %v1348_v59, %v1346_v57  ;;  %v2458_v62 = vpack.c.bf16 %v1541_v60, %v1539_v58  ;;  %2128 = vst [vmem:[%s3262_s20 + $0x518] sm:$0xff] (%p2770_p9), %v2127_v55  ;;  %2130 = vst [vmem:[%s3262_s20 + $0x540] sm:$0xff] (%p2770_p9), %v2129_v56 }
 0x1ad   : > { %v2133_v57 = vld [vmem:[%s3177_s28 + $0x1d0] sm:$0xff] (%p2770_p9)  ;;  %v2135_v58 = vld [vmem:[%s3177_s28 + $0x1d8] sm:$0xff] (%p2770_p9)  ;;  %2132 = vst [vmem:[%s3262_s20 + $0x548] sm:$0xff] (%p2770_p9), %v2131_v27 }
 0x1ae   : > { %1990 = vst [vmem:[%s3177_s28 + $0x1f0] sm:$0xff] %v2457_v61  ;;  %1991 = vst [vmem:[%s3177_s28 + $0x1f8] sm:$0xff] %v2458_v62 }
 0x1af   : > { %2134 = vst [vmem:[%s3262_s20 + $0x570] sm:$0xff] %v2133_v57  ;;  %2136 = vst [vmem:[%s3262_s20 + $0x578] sm:$0xff] %v2135_v58 }
 0x1b1   : > { %v2137_v59 = vld [vmem:[%s3177_s28 + $0x1e0] sm:$0xff]  ;;  %v2139_v60 = vld [vmem:[%s3177_s28 + $0x1e8] sm:$0xff] }
 0x1b2   : > { %2138 = vst [vmem:[%s3262_s20 + $0x5a0] sm:$0xff] %v2137_v59  ;;  %2140 = vst [vmem:[%s3262_s20 + $0x5a8] sm:$0xff] %v2139_v60 }
 0x1b5   : > { %v2141_v61 = vld [vmem:[%s3177_s28 + $0x1f0] sm:$0xff]  ;;  %v2143_v62 = vld [vmem:[%s3177_s28 + $0x1f8] sm:$0xff] }
 0x1b6   : > { %2142 = vst [vmem:[%s3262_s20 + $0x5d0] sm:$0xff] %v2141_v61  ;;  %2144 = vst [vmem:[%s3262_s20 + $0x5d8] sm:$0xff] %v2143_v62 }
 0x1b7 PF: > { %s14_s23 = sadd.s32 1, %s2676_s23   ;;  %s3413_s15 = smov %s2648_s16 }
 0x1b8   : > { %p11_p1 = scmp.ge.s32.totalorder %s14_s23, 8   ;;  %s3414_s16 = smov %s2775_s8 }
 0x1b9   : > { %s3415_s17 = smov %s2656_s18  ;;  %s3416_s18 = smov %s2764_s30 }
 0x1ba   : > { %s3417_s19 = smov %s2668_s21  ;;  %s3418_s20 = smov %s2672_s22 }
 0x1bb   : > { %s3419_s21 = smov %s3422_s25  ;;  %s3420_s22 = smov %s3426_s26 }
 0x1bc   :  { %13 = sbr.rel (!%p11_p1) target bundleno = 5 (0x5), region = 120 }

// kernel: generator_forward.17
= control target key start
LH: loop header
LB: loop body
LE: loop exit
PB: predicated region body
PF: predicated region fallthrough
CT: control target
= control target key end

     0   :  { %v2410_v0 = vlaneseq  ;;  %v2531_v1 = vmov 0  ;;  %v1100_v2 = vmov 0.0   ;;  %s2407_s1 = inlined_call_operand.vmem [shape: f32[1,384], index: 1, kind: output, shape index: {0}]   ;;  %s2408_s2 = inlined_call_operand.vmem [shape: f32[1,384], index: 2, kind: output, shape index: {1}]   ;;  %s2409_s0 = inlined_call_operand.vmem [shape: bf16[512,384], index: 0, kind: input, shape index: {}]  }
   0x1   :  { %v1136_v3 = vld [vmem:[%s2409_s0] sm:$0xff]  ;;  %v21_v4 = vld [vmem:[%s2409_s0 + $0x8] ss:$12 sps:$4 sm:$0xff]   ;;  %v1144_v5 = vld [vmem:[%s2409_s0 + $0xc] sm:$0xff] }
   0x2   :  { %vm1119_vm0 = vcmp.lt.s32.totalorder %v2410_v0, 384  ;;  %2534 = vst [vmem:[#allocation3_spill] sm:$0xff] %v1136_v3  ;;  %2535 = vst [vmem:[#allocation4_spill] sm:$0xff] %v1144_v5  ;;  %v1149_v6 = vld [vmem:[%s2409_s0 + $0x18] sm:$0xff]  ;;  %v25_v7 = vld [vmem:[%s2409_s0 + $0x20] ss:$12 sps:$4 sm:$0xff]   ;;  %v148_v11 = vunpack.c.l.bf16 %v1136_v3  ;;  %v149_v12 = vunpack.c.h.bf16 %v1136_v3  ;;  %v1169_v13 = vunpack.c.l.bf16 %v21_v4 }
   0x3   :  { %v2532_v1 = vsel %vm1119_vm0, 4294967295, %v2531_v1  ;;  %18 = vst.msk [vmem:[%s2407_s1] sm:$0x7] %vm1119_vm0, %v1100_v2  ;;  %19 = vst.msk [vmem:[%s2408_s2] sm:$0x7] %vm1119_vm0, %v1100_v2  ;;  %v1157_v8 = vld [vmem:[%s2409_s0 + $0x24] sm:$0xff]  ;;  %v151_v16 = vunpack.c.l.bf16 %v1144_v5  ;;  %v152_v17 = vunpack.c.h.bf16 %v1144_v5  ;;  %v1183_v18 = vunpack.c.h.bf16 %v21_v4 }
   0x4   :  { %2533 = vst [vmem:[#allocation2_spill] sm:$0xff] %v2532_v1  ;;  %2536 = vst [vmem:[#allocation5_spill] sm:$0xff] %v1149_v6  ;;  %v1162_v9 = vld [vmem:[%s2409_s0 + $0x30] sm:$0xff]  ;;  %v29_v10 = vld [vmem:[%s2409_s0 + $0x38] ss:$12 sps:$4 sm:$0xff]   ;;  %v154_v19 = vunpack.c.l.bf16 %v1149_v6  ;;  %v155_v22 = vunpack.c.h.bf16 %v1149_v6  ;;  %v1195_v23 = vunpack.c.l.bf16 %v25_v7  ;;  %v157_v24 = vunpack.c.l.bf16 %v1157_v8 }
   0x5   :  { %2537 = vst [vmem:[#allocation6_spill] sm:$0xff] %v1157_v8  ;;  %2538 = vst [vmem:[#allocation7_spill] sm:$0xff] %v1162_v9  ;;  %v1174_v14 = vld [vmem:[%s2409_s0 + $0x3c] sm:$0xff]  ;;  %v1179_v15 = vld [vmem:[%s2409_s0 + $0x48] sm:$0xff]  ;;  %v158_v25 = vunpack.c.h.bf16 %v1157_v8  ;;  %v1207_v28 = vunpack.c.h.bf16 %v25_v7  ;;  %v160_v29 = vunpack.c.l.bf16 %v1162_v9  ;;  %v161_v30 = vunpack.c.h.bf16 %v1162_v9 }
   0x6   :  { %2539 = vst [vmem:[#allocation8_spill] sm:$0xff] %v1174_v14  ;;  %2540 = vst [vmem:[#allocation9_spill] sm:$0xff] %v1179_v15  ;;  %v33_v20 = vld [vmem:[%s2409_s0 + $0x50] ss:$12 sps:$4 sm:$0xff]   ;;  %v1192_v21 = vld [vmem:[%s2409_s0 + $0x54] sm:$0xff]  ;;  %v1211_v31 = vunpack.c.l.bf16 %v29_v10  ;;  %v163_v34 = vunpack.c.l.bf16 %v1174_v14  ;;  %v164_v35 = vunpack.c.h.bf16 %v1174_v14  ;;  %v1225_v36 = vunpack.c.h.bf16 %v29_v10 }
   0x7   :  { %2541 = vst [vmem:[#allocation10_spill] sm:$0xff] %v1192_v21  ;;  %v1202_v26 = vld [vmem:[%s2409_s0 + $0x60] sm:$0xff]  ;;  %v37_v27 = vld [vmem:[%s2409_s0 + $0x68] ss:$12 sps:$4 sm:$0xff]   ;;  %v1216_v32 = vld [vmem:[%s2409_s0 + $0x6c] sm:$0xff]  ;;  %v166_v37 = vunpack.c.l.bf16 %v1179_v15  ;;  %v167_v40 = vunpack.c.h.bf16 %v1179_v15  ;;  %v1237_v41 = vunpack.c.l.bf16 %v33_v20  ;;  %v169_v42 = vunpack.c.l.bf16 %v1192_v21 }
   0x8   :  { %2542 = vst [vmem:[#allocation11_spill] sm:$0xff] %v1202_v26  ;;  %2543 = vst [vmem:[#allocation12_spill] sm:$0xff] %v1211_v31  ;;  %v1221_v33 = vld [vmem:[%s2409_s0 + $0x78] sm:$0xff]  ;;  %v41_v38 = vld [vmem:[%s2409_s0 + $0x80] ss:$12 sps:$4 sm:$0xff]   ;;  %v1249_v46 = vunpack.c.h.bf16 %v33_v20  ;;  %v1253_v49 = vunpack.c.l.bf16 %v37_v27  ;;  %v1262_v53 = vunpack.c.h.bf16 %v37_v27  ;;  %v341_v20 = vadd.f32 %v151_v16, %v148_v11 }
   0x9   :  { %2544 = vst [vmem:[#allocation13_spill] sm:$0xff] %v1216_v32  ;;  %2545 = vst [vmem:[#allocation14_spill] sm:$0xff] %v1221_v33  ;;  %v1234_v39 = vld [vmem:[%s2409_s0 + $0x84] sm:$0xff]  ;;  %v1244_v44 = vld [vmem:[%s2409_s0 + $0x90] sm:$0xff]  ;;  %v1271_v57 = vunpack.c.l.bf16 %v41_v38  ;;  %v1278_v61 = vunpack.c.h.bf16 %v41_v38  ;;  %v410_v27 = vadd.f32 %v152_v17, %v149_v12  ;;  %v479_v38 = vadd.f32 %v1183_v18, %v1169_v13 }
   0xa   :  { %2546 = vst [vmem:[#allocation15_spill] sm:$0xff] %v1225_v36  ;;  %2547 = vst [vmem:[#allocation16_spill] sm:$0xff] %v1234_v39  ;;  %v45_v45 = vld [vmem:[%s2409_s0 + $0x98] ss:$12 sps:$4 sm:$0xff]   ;;  %v1258_v50 = vld [vmem:[%s2409_s0 + $0x9c] sm:$0xff]  ;;  %v342_v16 = vadd.f32 %v341_v20, %v154_v19 }
   0xb   :  { %2548 = vst [vmem:[#allocation17_spill] sm:$0xff] %v1237_v41  ;;  %2549 = vst [vmem:[#allocation18_spill] sm:$0xff] %v1244_v44  ;;  %v1268_v55 = vld [vmem:[%s2409_s0 + $0xa8] sm:$0xff]  ;;  %v49_v60 = vld [vmem:[%s2409_s0 + $0xb0] ss:$12 sps:$4 sm:$0xff]   ;;  %v1282_v2 = vunpack.c.l.bf16 %v45_v45  ;;  %v1298_v63 = vunpack.c.h.bf16 %v45_v45  ;;  %v411_v17 = vadd.f32 %v410_v27, %v155_v22  ;;  %v480_v45 = vadd.f32 %v479_v38, %v1195_v23 }
   0xc   :  { %2550 = vst [vmem:[#allocation19_spill] sm:$0xff] %v1249_v46  ;;  %2551 = vst [vmem:[#allocation20_spill] sm:$0xff] %v1253_v49  ;;  %v1287_v4 = vld [vmem:[%s2409_s0 + $0xb4] sm:$0xff]  ;;  %v1292_v7 = vld [vmem:[%s2409_s0 + $0xc0] sm:$0xff]  ;;  %v1310_v12 = vunpack.c.l.bf16 %v49_v60  ;;  %v1320_v10 = vunpack.c.h.bf16 %v49_v60  ;;  %v343_v27 = vadd.f32 %v342_v16, %v157_v24 }
   0xd   :  { %2552 = vst [vmem:[#allocation21_spill] sm:$0xff] %v1258_v50  ;;  %2553 = vst [vmem:[#allocation22_spill] sm:$0xff] %v1262_v53  ;;  %v53_v58 = vld [vmem:[%s2409_s0 + $0xc8] ss:$12 sps:$4 sm:$0xff]   ;;  %v1308_v11 = vld [vmem:[%s2409_s0 + $0xcc] sm:$0xff]  ;;  %v412_v60 = vadd.f32 %v411_v17, %v158_v25  ;;  %v481_v38 = vadd.f32 %v480_v45, %v1207_v28 }
   0xe   :  { %2554 = vst [vmem:[#allocation23_spill] sm:$0xff] %v1268_v55  ;;  %2555 = vst [vmem:[#allocation24_spill] sm:$0xff] %v1271_v57  ;;  %v1316_v62 = vld [vmem:[%s2409_s0 + $0xd8] sm:$0xff]  ;;  %v57_v19 = vld [vmem:[%s2409_s0 + $0xe0] ss:$12 sps:$4 sm:$0xff]   ;;  %v1337_v56 = vunpack.c.l.bf16 %v53_v58  ;;  %v1341_v54 = vunpack.c.h.bf16 %v53_v58  ;;  %v344_v58 = vadd.f32 %v343_v27, %v160_v29 }
   0xf   :  { %2556 = vst [vmem:[#allocation25_spill] sm:$0xff] %v1278_v61  ;;  %2557 = vst [vmem:[#allocation26_spill] sm:$0xff] %v1282_v2  ;;  %v1329_v22 = vld [vmem:[%s2409_s0 + $0xe4] sm:$0xff]  ;;  %v1346_v20 = vld [vmem:[%s2409_s0 + $0xf0] sm:$0xff]  ;;  %v413_v17 = vadd.f32 %v412_v60, %v161_v30  ;;  %v482_v45 = vadd.f32 %v481_v38, %v1211_v31  ;;  %v1363_v0 = vunpack.c.l.bf16 %v57_v19  ;;  %v1375_v30 = vunpack.c.h.bf16 %v57_v19 }
  0x10   :  { %2558 = vst [vmem:[#allocation27_spill] sm:$0xff] %v1287_v4  ;;  %2559 = vst [vmem:[#allocation28_spill] sm:$0xff] %v1292_v7  ;;  %v61_v24 = vld [vmem:[%s2409_s0 + $0xf8] ss:$12 sps:$4 sm:$0xff]   ;;  %v1354_v25 = vld [vmem:[%s2409_s0 + $0xfc] sm:$0xff]  ;;  %v345_v27 = vadd.f32 %v344_v58, %v163_v34 }
  0x11   :  { %2560 = vst [vmem:[#allocation29_spill] sm:$0xff] %v1298_v63  ;;  %2561 = vst [vmem:[#allocation30_spill] sm:$0xff] %v1308_v11  ;;  %v1370_v16 = vld [vmem:[%s2409_s0 + $0x108] sm:$0xff]  ;;  %v65_v29 = vld [vmem:[%s2409_s0 + $0x110] ss:$12 sps:$4 sm:$0xff]   ;;  %v414_v60 = vadd.f32 %v413_v17, %v164_v35  ;;  %v483_v38 = vadd.f32 %v482_v45, %v1225_v36  ;;  %v1389_v48 = vunpack.c.l.bf16 %v61_v24  ;;  %v1406_v19 = vunpack.c.h.bf16 %v61_v24 }
  0x12   :  { %2562 = vst [vmem:[#allocation31_spill] sm:$0xff] %v1310_v12  ;;  %2563 = vst [vmem:[#allocation32_spill] sm:$0xff] %v1316_v62  ;;  %v1385_v51 = vld [vmem:[%s2409_s0 + $0x114] sm:$0xff]  ;;  %v1395_v34 = vld [vmem:[%s2409_s0 + $0x120] sm:$0xff]  ;;  %v346_v58 = vadd.f32 %v345_v27, %v166_v37  ;;  %v1410_v43 = vunpack.c.l.bf16 %v65_v29  ;;  %v1429_v35 = vunpack.c.h.bf16 %v65_v29  ;;  %v2585_v29 = vunpack.c.h.bf16 %v1202_v26 }
  0x13   :  { %2564 = vst [vmem:[#allocation33_spill] sm:$0xff] %v1320_v10  ;;  %2565 = vst [vmem:[#allocation34_spill] sm:$0xff] %v1329_v22  ;;  %v415_v17 = vadd.f32 %v414_v60, %v167_v40  ;;  %v484_v45 = vadd.f32 %v483_v38, %v1237_v41  ;;  %v69_v59 = vld [vmem:[%s2409_s0 + $0x128] ss:$12 sps:$4 sm:$0xff]   ;;  %v1415_v37 = vld [vmem:[%s2409_s0 + $0x12c] sm:$0xff]  ;;  %v2580_v60 = vunpack.c.h.bf16 %v1192_v21  ;;  %v2590_v21 = vunpack.c.h.bf16 %v1216_v32 }
  0x14   :  { %2566 = vst [vmem:[#allocation35_spill] sm:$0xff] %v1337_v56  ;;  %2567 = vst [vmem:[#allocation36_spill] sm:$0xff] %v1341_v54  ;;  %v1420_v40 = vld [vmem:[%s2409_s0 + $0x138] sm:$0xff]  ;;  %v347_v24 = vadd.f32 %v346_v58, %v169_v42  ;;  %v73_v27 = vld [vmem:[%s2409_s0 + $0x140] ss:$12 sps:$4 sm:$0xff]   ;;  %v1441_v58 = vunpack.c.l.bf16 %v69_v59  ;;  %v1455_v14 = vunpack.c.h.bf16 %v69_v59 }
  0x15   :  { %2568 = vst [vmem:[#allocation37_spill] sm:$0xff] %v1346_v20  ;;  %2569 = vst [vmem:[#allocation38_spill] sm:$0xff] %v1354_v25  ;;  %v416_v38 = vadd.f32 %v415_v17, %v2580_v60  ;;  %v485_v47 = vadd.f32 %v484_v45, %v1249_v46  ;;  %v1439_v42 = vld [vmem:[%s2409_s0 + $0x144] sm:$0xff]  ;;  %v2584_v17 = vunpack.c.l.bf16 %v1202_v26  ;;  %v1451_v15 = vld [vmem:[%s2409_s0 + $0x150] sm:$0xff]  ;;  %v1472_v9 = vunpack.c.l.bf16 %v73_v27 }
  0x16   :  { %2570 = vst [vmem:[#allocation39_spill] sm:$0xff] %v1363_v0  ;;  %2571 = vst [vmem:[#allocation40_spill] sm:$0xff] %v1370_v16  ;;  %v1476_v6 = vunpack.c.h.bf16 %v73_v27  ;;  %v1586_v36 = vld [vmem:[%s2409_s0 + $0x1c8] sm:$0xff] }
  0x17   :  { %2572 = vst [vmem:[#allocation41_spill] sm:$0xff] %v1375_v30  ;;  %2573 = vst [vmem:[#allocation42_spill] sm:$0xff] %v1385_v51  ;;  %v348_v45 = vadd.f32 %v347_v24, %v2584_v17  ;;  %v417_v60 = vadd.f32 %v416_v38, %v2585_v29  ;;  %v486_v1 = vadd.f32 %v485_v47, %v1253_v49  ;;  %v77_v24 = vld [vmem:[%s2409_s0 + $0x158] ss:$12 sps:$4 sm:$0xff]   ;;  %v1464_v47 = vld [vmem:[%s2409_s0 + $0x15c] sm:$0xff]  ;;  %v2589_v17 = vunpack.c.l.bf16 %v1216_v32 }
  0x18   :  { %2574 = vst [vmem:[#allocation43_spill] sm:$0xff] %v1389_v48  ;;  %2575 = vst [vmem:[#allocation44_spill] sm:$0xff] %v1395_v34  ;;  %v1481_v38 = vld [vmem:[%s2409_s0 + $0x168] sm:$0xff]  ;;  %v1498_v5 = vunpack.c.l.bf16 %v77_v24 }
  0x19   :  { %2576 = vst [vmem:[#allocation45_spill] sm:$0xff] %v1406_v19  ;;  %2577 = vst [vmem:[#allocation46_spill] sm:$0xff] %v1410_v43  ;;  %v349_v29 = vadd.f32 %v348_v45, %v2589_v17  ;;  %v418_v59 = vadd.f32 %v417_v60, %v2590_v21  ;;  %v487_v52 = vadd.f32 %v486_v1, %v1262_v53  ;;  %v81_v45 = vld [vmem:[%s2409_s0 + $0x170] ss:$12 sps:$4 sm:$0xff]   ;;  %v1489_v1 = vld [vmem:[%s2409_s0 + $0x174] sm:$0xff]  ;;  %v2594_v60 = vunpack.c.l.bf16 %v1221_v33 }
  0x1a   :  { %2578 = vst [vmem:[#allocation47_spill] sm:$0xff] %v1415_v37  ;;  %2579 = vst [vmem:[#allocation48_spill] sm:$0xff] %v1420_v40  ;;  %v2595_v17 = vunpack.c.h.bf16 %v1221_v33  ;;  %v1505_v21 = vld [vmem:[%s2409_s0 + $0x180] sm:$0xff]  ;;  %v1520_v53 = vld [vmem:[%s2409_s0 + $0x18c] sm:$0xff]  ;;  %v1524_v49 = vunpack.c.l.bf16 %v81_v45 }
  0x1b   :  { %2581 = vst [vmem:[#allocation49_spill] sm:$0xff] %v1429_v35  ;;  %2582 = vst [vmem:[#allocation50_spill] sm:$0xff] %v1439_v42  ;;  %v350_v27 = vadd.f32 %v349_v29, %v2594_v60  ;;  %v488_v26 = vadd.f32 %v487_v52, %v1271_v57  ;;  %v85_v29 = vld [vmem:[%s2409_s0 + $0x188] ss:$12 sps:$4 sm:$0xff]   ;;  %v2599_v52 = vunpack.c.l.bf16 %v1234_v39  ;;  %v89_v57 = vld [vmem:[%s2409_s0 + $0x1a0] ss:$12 sps:$4 sm:$0xff]  }
  0x1c   :  { %2583 = vst [vmem:[#allocation51_spill] sm:$0xff] %v1441_v58  ;;  %2586 = vst [vmem:[#allocation52_spill] sm:$0xff] %v1451_v15  ;;  %v419_v8 = vadd.f32 %v418_v59, %v2595_v17  ;;  %v1510_v59 = vunpack.c.h.bf16 %v77_v24  ;;  %v2600_v17 = vunpack.c.h.bf16 %v1234_v39  ;;  %v1541_v24 = vunpack.c.h.bf16 %v81_v45 }
  0x1d   :  { %2587 = vst [vmem:[#allocation53_spill] sm:$0xff] %v1455_v14  ;;  %2588 = vst [vmem:[#allocation54_spill] sm:$0xff] %v1464_v47  ;;  %v351_v60 = vadd.f32 %v350_v27, %v2599_v52  ;;  %v489_v3 = vadd.f32 %v488_v26, %v1278_v61  ;;  %v1530_v27 = vld [vmem:[%s2409_s0 + $0x198] sm:$0xff]  ;;  %v2603_v26 = vunpack.c.l.bf16 %v1244_v44  ;;  %v1545_v41 = vunpack.c.l.bf16 %v85_v29 }
  0x1e   :  { %2591 = vst [vmem:[#allocation55_spill] sm:$0xff] %v1472_v9  ;;  %2592 = vst [vmem:[#allocation56_spill] sm:$0xff] %v1476_v6  ;;  %v420_v32 = vadd.f32 %v419_v8, %v2600_v17  ;;  %v2604_v17 = vunpack.c.h.bf16 %v1244_v44  ;;  %v2607_v45 = vunpack.c.l.bf16 %v1258_v50  ;;  %v1564_v44 = vunpack.c.h.bf16 %v85_v29 }
  0x1f   :  { %2593 = vst [vmem:[#allocation57_spill] sm:$0xff] %v1481_v38  ;;  %2596 = vst [vmem:[#allocation58_spill] sm:$0xff] %v1498_v5  ;;  %v352_v52 = vadd.f32 %v351_v60, %v2603_v26  ;;  %v490_v33 = vadd.f32 %v489_v3, %v1282_v2  ;;  %v1550_v60 = vld [vmem:[%s2409_s0 + $0x1a4] sm:$0xff]  ;;  %v1555_v3 = vld [vmem:[%s2409_s0 + $0x1b0] sm:$0xff]  ;;  %v2613_v29 = vunpack.c.h.bf16 %v1268_v55 }
  0x20   :  { %2597 = vst [vmem:[#allocation59_spill] sm:$0xff] %v1505_v21  ;;  %2598 = vst [vmem:[#allocation60_spill] sm:$0xff] %v1510_v59  ;;  %v421_v39 = vadd.f32 %v420_v32, %v2604_v17  ;;  %v2608_v17 = vunpack.c.h.bf16 %v1258_v50  ;;  %v93_v32 = vld [vmem:[%s2409_s0 + $0x1b8] ss:$12 sps:$4 sm:$0xff]   ;;  %v2618_v50 = vunpack.c.h.bf16 %v1287_v4 }
  0x21   :  { %2601 = vst [vmem:[#allocation61_spill] sm:$0xff] %v1520_v53  ;;  %2602 = vst [vmem:[#allocation62_spill] sm:$0xff] %v1530_v27  ;;  %v353_v26 = vadd.f32 %v352_v52, %v2607_v45  ;;  %v491_v61 = vadd.f32 %v490_v33, %v1298_v63  ;;  %v1574_v52 = vld [vmem:[%s2409_s0 + $0x1bc] sm:$0xff]  ;;  %v2612_v33 = vunpack.c.l.bf16 %v1268_v55  ;;  %v1590_v63 = vunpack.c.h.bf16 %v89_v57 }
  0x22   :  { %2605 = vst [vmem:[#allocation63_spill] sm:$0xff] %v1550_v60  ;;  %2606 = vst [vmem:[#allocation64_spill] sm:$0xff] %v1555_v3  ;;  %v422_v46 = vadd.f32 %v421_v39, %v2608_v17  ;;  %v1576_v39 = vunpack.c.l.bf16 %v89_v57  ;;  %v1607_v31 = vunpack.c.l.bf16 %v93_v32 }
  0x23   :  { %2609 = vst [vmem:[#allocation65_spill] sm:$0xff] %v1564_v44  ;;  %2610 = vst [vmem:[#allocation66_spill] sm:$0xff] %v1574_v52  ;;  %v354_v45 = vadd.f32 %v353_v26, %v2612_v33  ;;  %v492_v2 = vadd.f32 %v491_v61, %v1310_v12  ;;  %v97_v26 = vld [vmem:[%s2409_s0 + $0x1d0] ss:$12 sps:$4 sm:$0xff]   ;;  %v2617_v33 = vunpack.c.l.bf16 %v1287_v4  ;;  %v1616_v61 = vld [vmem:[%s2409_s0 + $0x1e0] sm:$0xff] }
  0x24   :  { %2611 = vst [vmem:[#allocation67_spill] sm:$0xff] %v1576_v39  ;;  %v423_v17 = vadd.f32 %v422_v46, %v2613_v29  ;;  %2614 = vst [vmem:[#allocation68_spill] sm:$0xff] %v1586_v36  ;;  %v1599_v46 = vld [vmem:[%s2409_s0 + $0x1d4] sm:$0xff]  ;;  %v1655_v52 = vld [vmem:[%s2409_s0 + $0x204] sm:$0xff] }
  0x25   :  { %2615 = vst [vmem:[#allocation69_spill] sm:$0xff] %v1590_v63  ;;  %2616 = vst [vmem:[#allocation70_spill] sm:$0xff] %v1599_v46  ;;  %v355_v29 = vadd.f32 %v354_v45, %v2617_v33  ;;  %v493_v8 = vadd.f32 %v492_v2, %v1320_v10  ;;  %v1611_v63 = vunpack.c.h.bf16 %v93_v32  ;;  %v101_v45 = vld [vmem:[%s2409_s0 + $0x1e8] ss:$12 sps:$4 sm:$0xff]   ;;  %v2624_v33 = vunpack.c.h.bf16 %v1292_v7  ;;  %v1640_v2 = vld [vmem:[%s2409_s0 + $0x1f8] sm:$0xff] }
  0x26   :  { %v424_v57 = vadd.f32 %v423_v17, %v2618_v50  ;;  %2619 = vst [vmem:[#allocation71_spill] sm:$0xff] %v1607_v31  ;;  %2621 = vst [vmem:[#allocation73_spill] sm:$0xff] %v1616_v61  ;;  %v1624_v50 = vld [vmem:[%s2409_s0 + $0x1ec] sm:$0xff]  ;;  %v2623_v17 = vunpack.c.l.bf16 %v1292_v7  ;;  %v1633_v10 = vunpack.c.l.bf16 %v97_v26  ;;  %v1659_v46 = vunpack.c.l.bf16 %v101_v45 }
  0x27   :  { %2620 = vst [vmem:[#allocation72_spill] sm:$0xff] %v1611_v63  ;;  %2622 = vst [vmem:[#allocation74_spill] sm:$0xff] %v1624_v50  ;;  %v494_v55 = vadd.f32 %v493_v8, %v1337_v56  ;;  %v2626_v8 = vunpack.c.l.bf16 %v1308_v11  ;;  %v109_v56 = vld [vmem:[%s2409_s0 + $0x218] ss:$12 sps:$4 sm:$0xff]  }
  0x28   :  { %v356_v32 = vadd.f32 %v355_v29, %v2623_v17  ;;  %v425_v12 = vadd.f32 %v424_v57, %v2624_v33  ;;  %2625 = vst [vmem:[#allocation75_spill] sm:$0xff] %v1633_v10  ;;  %v105_v29 = vld [vmem:[%s2409_s0 + $0x200] ss:$12 sps:$4 sm:$0xff]   ;;  %v1645_v57 = vunpack.c.h.bf16 %v97_v26  ;;  %v2627_v33 = vunpack.c.h.bf16 %v1308_v11  ;;  %2628 = vst [vmem:[#allocation76_spill] sm:$0xff] %v1659_v46 }
  0x29   :  { %v495_v63 = vadd.f32 %v494_v55, %v1341_v54  ;;  %v1676_v26 = vunpack.c.h.bf16 %v101_v45  ;;  %v1680_v61 = vunpack.c.l.bf16 %v105_v29  ;;  %v2635_v45 = vunpack.c.l.bf16 %v1329_v22 }
  0x2a   :  { %v357_v17 = vadd.f32 %v356_v32, %v2626_v8  ;;  %v426_v4 = vadd.f32 %v425_v12, %v2627_v33  ;;  %v1665_v32 = vld [vmem:[%s2409_s0 + $0x210] sm:$0xff]  ;;  %v2630_v12 = vunpack.c.l.bf16 %v1316_v62  ;;  %v2631_v33 = vunpack.c.h.bf16 %v1316_v62 }
  0x2b   :  { %2629 = vst [vmem:[#allocation77_spill] sm:$0xff] %v1665_v32  ;;  %v496_v7 = vadd.f32 %v495_v63, %v1363_v0  ;;  %2632 = vst [vmem:[#allocation78_spill] sm:$0xff] %v1676_v26  ;;  %v1690_v63 = vld [vmem:[%s2409_s0 + $0x228] sm:$0xff]  ;;  %v1699_v62 = vunpack.c.h.bf16 %v105_v29  ;;  %v2640_v29 = vunpack.c.h.bf16 %v1346_v20 }
  0x2c   :  { %v358_v8 = vadd.f32 %v357_v17, %v2630_v12  ;;  %v427_v11 = vadd.f32 %v426_v4, %v2631_v33  ;;  %2633 = vst [vmem:[#allocation79_spill] sm:$0xff] %v1680_v61  ;;  %v1685_v17 = vld [vmem:[%s2409_s0 + $0x21c] sm:$0xff]  ;;  %2634 = vst [vmem:[#allocation80_spill] sm:$0xff] %v1690_v63  ;;  %v2636_v33 = vunpack.c.h.bf16 %v1329_v22  ;;  %v2644_v22 = vunpack.c.h.bf16 %v1354_v25 }
  0x2d   :  { %v497_v54 = vadd.f32 %v496_v7, %v1375_v30  ;;  %v113_v4 = vld [vmem:[%s2409_s0 + $0x230] ss:$12 sps:$4 sm:$0xff]   ;;  %v2639_v7 = vunpack.c.l.bf16 %v1346_v20  ;;  %v1721_v61 = vld [vmem:[%s2409_s0 + $0x240] sm:$0xff]  ;;  %v1725_v30 = vunpack.c.h.bf16 %v109_v56 }
  0x2e   :  { %v359_v12 = vadd.f32 %v358_v8, %v2635_v45  ;;  %v428_v46 = vadd.f32 %v427_v11, %v2636_v33  ;;  %v1709_v8 = vld [vmem:[%s2409_s0 + $0x234] sm:$0xff]  ;;  %v1711_v11 = vunpack.c.l.bf16 %v109_v56 }
  0x2f   :  { %2637 = vst [vmem:[#allocation81_spill] sm:$0xff] %v1709_v8  ;;  %v498_v0 = vadd.f32 %v497_v54, %v1389_v48  ;;  %2641 = vst [vmem:[#allocation83_spill] sm:$0xff] %v1725_v30  ;;  %v1734_v54 = vld [vmem:[%s2409_s0 + $0x24c] sm:$0xff]  ;;  %v1746_v30 = vunpack.c.h.bf16 %v113_v4  ;;  %v1790_v8 = vld [vmem:[%s2409_s0 + $0x27c] sm:$0xff] }
  0x30   :  { %2638 = vst [vmem:[#allocation82_spill] sm:$0xff] %v1711_v11  ;;  %v360_v45 = vadd.f32 %v359_v12, %v2639_v7  ;;  %v429_v33 = vadd.f32 %v428_v46, %v2640_v29  ;;  %v117_v12 = vld [vmem:[%s2409_s0 + $0x248] ss:$12 sps:$4 sm:$0xff]   ;;  %2642 = vst [vmem:[#allocation84_spill] sm:$0xff] %v1734_v54  ;;  %v2643_v7 = vunpack.c.l.bf16 %v1354_v25  ;;  %v1742_v11 = vunpack.c.l.bf16 %v113_v4  ;;  %v1751_v46 = vld [vmem:[%s2409_s0 + $0x258] sm:$0xff] }
  0x31   :  { %v499_v55 = vadd.f32 %v498_v0, %v1406_v19  ;;  %2645 = vst [vmem:[#allocation85_spill] sm:$0xff] %v1746_v30  ;;  %2646 = vst [vmem:[#allocation86_spill] sm:$0xff] %v1751_v46  ;;  %v1759_v0 = vld [vmem:[%s2409_s0 + $0x264] sm:$0xff]  ;;  %v1768_v19 = vunpack.c.l.bf16 %v117_v12 }
  0x32   :  { %v361_v29 = vadd.f32 %v360_v45, %v2643_v7  ;;  %v430_v56 = vadd.f32 %v429_v33, %v2644_v22  ;;  %v121_v45 = vld [vmem:[%s2409_s0 + $0x260] ss:$12 sps:$4 sm:$0xff]   ;;  %v2647_v33 = vunpack.c.l.bf16 %v1370_v16  ;;  %v2648_v7 = vunpack.c.h.bf16 %v1370_v16  ;;  %v1775_v22 = vld [vmem:[%s2409_s0 + $0x270] sm:$0xff]  ;;  %2652 = vst [vmem:[#allocation88_spill] sm:$0xff] %v1790_v8 }
  0x33   :  { %v500_v20 = vadd.f32 %v499_v55, %v1410_v43  ;;  %2649 = vst [vmem:[#allocation87_spill] sm:$0xff] %v1775_v22  ;;  %v2650_v55 = vunpack.c.l.bf16 %v1385_v51  ;;  %v1794_v54 = vunpack.c.l.bf16 %v121_v45  ;;  %v129_v43 = vld [vmem:[%s2409_s0 + $0x290] ss:$12 sps:$4 sm:$0xff]  }
  0x34   :  { %v362_v4 = vadd.f32 %v361_v29, %v2647_v33  ;;  %v431_v48 = vadd.f32 %v430_v56, %v2648_v7  ;;  %v125_v29 = vld [vmem:[%s2409_s0 + $0x278] ss:$12 sps:$4 sm:$0xff]   ;;  %v1780_v56 = vunpack.c.h.bf16 %v117_v12  ;;  %v2651_v7 = vunpack.c.h.bf16 %v1385_v51 }
  0x35   :  { %v501_v30 = vadd.f32 %v500_v20, %v1429_v35  ;;  %2653 = vst [vmem:[#allocation89_spill] sm:$0xff] %v1794_v54  ;;  %v2654_v20 = vunpack.c.l.bf16 %v1395_v34  ;;  %v1811_v12 = vunpack.c.h.bf16 %v121_v45  ;;  %v1815_v46 = vunpack.c.l.bf16 %v125_v29 }
  0x36   :  { %v363_v33 = vadd.f32 %v362_v4, %v2650_v55  ;;  %v432_v25 = vadd.f32 %v431_v48, %v2651_v7  ;;  %v1800_v4 = vld [vmem:[%s2409_s0 + $0x288] sm:$0xff]  ;;  %v2655_v7 = vunpack.c.h.bf16 %v1395_v34  ;;  %v2658_v45 = vunpack.c.l.bf16 %v1415_v37 }
  0x37   :  { %v502_v16 = vadd.f32 %v501_v30, %v1441_v58  ;;  %2656 = vst [vmem:[#allocation90_spill] sm:$0xff] %v1815_v46  ;;  %v1834_v34 = vunpack.c.h.bf16 %v125_v29  ;;  %v133_v30 = vld [vmem:[%s2409_s0 + $0x2a8] ss:$12 sps:$4 sm:$0xff]   ;;  %v2663_v29 = vunpack.c.h.bf16 %v1420_v40  ;;  %v1856_v46 = vld [vmem:[%s2409_s0 + $0x2b8] sm:$0xff] }
  0x38   :  { %v364_v55 = vadd.f32 %v363_v33, %v2654_v20  ;;  %v433_v51 = vadd.f32 %v432_v25, %v2655_v7  ;;  %v1820_v33 = vld [vmem:[%s2409_s0 + $0x294] sm:$0xff]  ;;  %v1825_v25 = vld [vmem:[%s2409_s0 + $0x2a0] sm:$0xff]  ;;  %v2659_v7 = vunpack.c.h.bf16 %v1415_v37  ;;  %2664 = vst [vmem:[#allocation94_spill] sm:$0xff] %v1856_v46  ;;  %v2668_v37 = vunpack.c.h.bf16 %v1439_v42 }
  0x39   :  { %2657 = vst [vmem:[#allocation91_spill] sm:$0xff] %v1825_v25  ;;  %v503_v35 = vadd.f32 %v502_v16, %v1455_v14  ;;  %v2662_v16 = vunpack.c.l.bf16 %v1420_v40  ;;  %v1860_v14 = vunpack.c.h.bf16 %v129_v43 }
  0x3a   :  { %v365_v20 = vadd.f32 %v364_v55, %v2658_v45  ;;  %v434_v54 = vadd.f32 %v433_v51, %v2659_v7  ;;  %v1844_v55 = vld [vmem:[%s2409_s0 + $0x2ac] sm:$0xff]  ;;  %v1846_v51 = vunpack.c.l.bf16 %v129_v43 }
  0x3b   :  { %2660 = vst [vmem:[#allocation92_spill] sm:$0xff] %v1844_v55  ;;  %v504_v58 = vadd.f32 %v503_v35, %v1472_v9  ;;  %2665 = vst [vmem:[#allocation95_spill] sm:$0xff] %v1860_v14  ;;  %v1869_v35 = vld [vmem:[%s2409_s0 + $0x2c4] sm:$0xff]  ;;  %v1881_v14 = vunpack.c.h.bf16 %v133_v30 }
  0x3c   :  { %2661 = vst [vmem:[#allocation93_spill] sm:$0xff] %v1846_v51  ;;  %v366_v45 = vadd.f32 %v365_v20, %v2662_v16  ;;  %v435_v7 = vadd.f32 %v434_v54, %v2663_v29  ;;  %v137_v20 = vld [vmem:[%s2409_s0 + $0x2c0] ss:$12 sps:$4 sm:$0xff]   ;;  %2666 = vst [vmem:[#allocation96_spill] sm:$0xff] %v1869_v35  ;;  %v2667_v16 = vunpack.c.l.bf16 %v1439_v42  ;;  %v1877_v51 = vunpack.c.l.bf16 %v133_v30  ;;  %v1886_v54 = vld [vmem:[%s2409_s0 + $0x2d0] sm:$0xff] }
  0x3d   :  { %v505_v48 = vadd.f32 %v504_v58, %v1476_v6  ;;  %2669 = vst [vmem:[#allocation97_spill] sm:$0xff] %v1881_v14  ;;  %2670 = vst [vmem:[#allocation98_spill] sm:$0xff] %v1886_v54  ;;  %v1903_v6 = vunpack.c.l.bf16 %v137_v20  ;;  %v1910_v58 = vld [vmem:[%s2409_s0 + $0x2e8] sm:$0xff]  ;;  %v2685_v35 = vunpack.c.h.bf16 %v1505_v21 }
  0x3e   :  { %v367_v29 = vadd.f32 %v366_v45, %v2667_v16  ;;  %v436_v43 = vadd.f32 %v435_v7, %v2668_v37  ;;  %v141_v45 = vld [vmem:[%s2409_s0 + $0x2d8] ss:$12 sps:$4 sm:$0xff]   ;;  %v1894_v37 = vld [vmem:[%s2409_s0 + $0x2dc] sm:$0xff]  ;;  %v2672_v7 = vunpack.c.l.bf16 %v1451_v15  ;;  %v2673_v16 = vunpack.c.h.bf16 %v1451_v15  ;;  %2674 = vst [vmem:[#allocation100_spill] sm:$0xff] %v1910_v58 }
  0x3f   :  { %2671 = vst [vmem:[#allocation99_spill] sm:$0xff] %v1894_v37  ;;  %v506_v40 = vadd.f32 %v505_v48, %v1498_v5  ;;  %v2676_v48 = vunpack.c.l.bf16 %v1464_v47  ;;  %v1924_v5 = vunpack.c.l.bf16 %v141_v45  ;;  %v1938_v15 = vunpack.c.h.bf16 %v141_v45 }
  0x40   :  { %v368_v30 = vadd.f32 %v367_v29, %v2672_v7  ;;  %v437_v9 = vadd.f32 %v436_v43, %v2673_v16  ;;  %v145_v29 = vld [vmem:[%s2409_s0 + $0x2f0] ss:$12 sps:$4 sm:$0xff]   ;;  %v1915_v43 = vunpack.c.h.bf16 %v137_v20  ;;  %v2677_v16 = vunpack.c.h.bf16 %v1464_v47  ;;  %v1930_v20 = vld [vmem:[%s2409_s0 + $0x2f4] sm:$0xff] }
  0x41   :  { %v507_v14 = vadd.f32 %v506_v40, %v1510_v59  ;;  %2678 = vst [vmem:[#allocation102_spill] sm:$0xff] %v1924_v5  ;;  %2679 = vst [vmem:[#allocation103_spill] sm:$0xff] %v1930_v20  ;;  %v2681_v40 = vunpack.c.h.bf16 %v1481_v38  ;;  %v1942_v59 = vunpack.c.l.bf16 %v145_v29  ;;  %v2682_v5 = vunpack.c.l.bf16 %v1489_v1 }
  0x42   :  { %2675 = vst [vmem:[#allocation101_spill] sm:$0xff] %v1915_v43  ;;  %v369_v7 = vadd.f32 %v368_v30, %v2676_v48  ;;  %v438_v42 = vadd.f32 %v437_v9, %v2677_v16  ;;  %v2680_v48 = vunpack.c.l.bf16 %v1481_v38  ;;  %v2683_v30 = vunpack.c.h.bf16 %v1489_v1 }
  0x43   :  { %v508_v55 = vadd.f32 %v507_v14, %v1524_v49  ;;  %v1951_v45 = vunpack.c.h.bf16 %v145_v29  ;;  %v2687_v14 = vunpack.c.h.bf16 %v1520_v53 }
  0x44   :  { %v370_v9 = vadd.f32 %v369_v7, %v2680_v48  ;;  %v439_v16 = vadd.f32 %v438_v42, %v2681_v40  ;;  %v2684_v48 = vunpack.c.l.bf16 %v1505_v21  ;;  %v2694_v21 = vld [vmem:[#allocation69_spill] sm:$0xff] }
  0x45   :  { %v509_v7 = vadd.f32 %v508_v55, %v1541_v24  ;;  %v2686_v55 = vunpack.c.l.bf16 %v1520_v53 }
  0x46   :  { %v371_v54 = vadd.f32 %v370_v9, %v2682_v5  ;;  %v440_v37 = vadd.f32 %v439_v16, %v2683_v30  ;;  %v1101_v5 = vmov 1966171168   ;;  %v584_v30 = vmul.f32 %v1169_v13, %v1169_v13 }
  0x47   :  { %v510_v38 = vadd.f32 %v509_v7, %v1545_v41  ;;  %v553_v9 = vunpack.c.l.s4 %v1101_v5 }
  0x48   :  { %v372_v40 = vadd.f32 %v371_v54, %v2684_v48  ;;  %v441_v47 = vadd.f32 %v440_v37, %v2685_v35  ;;  %v587_v54 = vmul.f32 %v1183_v18, %v1183_v18  ;;  %v590_v35 = vmul.f32 %v1195_v23, %v1195_v23 }
  0x49   :  { %v511_v42 = vadd.f32 %v510_v38, %v1564_v44  ;;  %v2688_v37 = vunpack.c.l.bf16 %v1530_v27  ;;  %v2689_v48 = vunpack.c.h.bf16 %v1530_v27  ;;  %v2692_v18 = vunpack.c.l.bf16 %v1550_v60 }
  0x4a   :  { %v373_v16 = vadd.f32 %v372_v40, %v2686_v55  ;;  %v442_v29 = vadd.f32 %v441_v47, %v2687_v14  ;;  %v554_v40 = vunpack.c.0.s8 %v553_v9  ;;  %v2690_v55 = vlaneseq }
  0x4b   :  { %v512_v5 = vadd.f32 %v511_v42, %v1576_v39  ;;  %v593_v47 = vmul.f32 %v1207_v28, %v1207_v28  ;;  %v2693_v23 = vunpack.c.h.bf16 %v1550_v60  ;;  %v2697_v9 = vunpack.c.l.bf16 %v1555_v3 }
  0x4c   :  { %v374_v7 = vadd.f32 %v373_v16, %v2688_v37  ;;  %v443_v13 = vadd.f32 %v442_v29, %v2689_v48  ;;  %v1975_v53 = vshrl.u32 %v2690_v55, 7  ;;  %v2695_v37 = vld [vmem:[#allocation12_spill] sm:$0xff]  ;;  %v2696_v48 = vld [vmem:[#allocation15_spill] sm:$0xff]  ;;  %v2698_v27 = vunpack.c.h.bf16 %v1555_v3 }
  0x4d   :  { %v513_v16 = vadd.f32 %v512_v5, %v2694_v21  ;;  %v596_v29 = vmul.f32 %v2695_v37, %v2695_v37  ;;  %v599_v42 = vmul.f32 %v2696_v48, %v2696_v48  ;;  %v2703_v21 = vld [vmem:[#allocation72_spill] sm:$0xff] }
  0x4e   :  { %2691 = vst [vmem:[#allocation104_spill] sm:$0xff] %v1975_v53  ;;  %v375_v38 = vadd.f32 %v374_v7, %v2692_v18  ;;  %v444_v14 = vadd.f32 %v443_v13, %v2693_v23  ;;  %v1994_v7 = vsub.s32 %v554_v40, %v1975_v53  ;;  %v2699_v13 = vld [vmem:[#allocation17_spill] sm:$0xff]  ;;  %v2700_v18 = vld [vmem:[#allocation66_spill] sm:$0xff]  ;;  %v2706_v40 = vunpack.c.l.bf16 %v1586_v36 }
  0x4f   :  { %v514_v39 = vadd.f32 %v513_v16, %v1607_v31  ;;  %v602_v5 = vmul.f32 %v2699_v13, %v2699_v13  ;;  %v2701_v23 = vunpack.c.l.bf16 %v2700_v18  ;;  %v2702_v60 = vunpack.c.h.bf16 %v2700_v18 }
  0x50   :  { %v376_v55 = vadd.f32 %v375_v38, %v2697_v9  ;;  %v445_v28 = vadd.f32 %v444_v14, %v2698_v27  ;;  %v2704_v38 = vld [vmem:[#allocation19_spill] sm:$0xff]  ;;  %v2705_v27 = vld [vmem:[#allocation20_spill] sm:$0xff]  ;;  %v2707_v53 = vunpack.c.h.bf16 %v1586_v36 }
  0x51   :  { %v515_v44 = vadd.f32 %v514_v39, %v2703_v21  ;;  %v605_v9 = vmul.f32 %v2704_v38, %v2704_v38  ;;  %v608_v14 = vmul.f32 %v2705_v27, %v2705_v27  ;;  %v2712_v27 = vld [vmem:[#allocation24_spill] sm:$0xff] }
  0x52   :  { %v377_v37 = vadd.f32 %v376_v55, %v2701_v23  ;;  %v446_v48 = vadd.f32 %v445_v28, %v2702_v60  ;;  %v2708_v55 = vld [vmem:[#allocation22_spill] sm:$0xff]  ;;  %v614_v31 = vmul.f32 %v2712_v27, %v2712_v27  ;;  %v2721_v27 = vunpack.c.l.bf16 %v1624_v50 }
  0x53   :  { %v516_v3 = vadd.f32 %v515_v44, %v1633_v10  ;;  %v611_v23 = vmul.f32 %v2708_v55, %v2708_v55  ;;  %v2709_v60 = vld [vmem:[#allocation70_spill] sm:$0xff]  ;;  %v2717_v10 = vld [vmem:[#allocation76_spill] sm:$0xff] }
  0x54   :  { %v378_v16 = vadd.f32 %v377_v37, %v2706_v40  ;;  %v447_v13 = vadd.f32 %v446_v48, %v2707_v53  ;;  %v2710_v28 = vunpack.c.l.bf16 %v2709_v60  ;;  %v2711_v18 = vunpack.c.h.bf16 %v2709_v60  ;;  %v2713_v37 = vld [vmem:[#allocation25_spill] sm:$0xff] }
  0x55   :  { %v517_v21 = vadd.f32 %v516_v3, %v1645_v57  ;;  %v2023_v40 = vmul.f32 %v2713_v37, %v2713_v37  ;;  %v2714_v53 = vld [vmem:[#allocation73_spill] sm:$0xff]  ;;  %v2719_v3 = vld [vmem:[#allocation3_spill] sm:$0xff] }
  0x56   :  { %v379_v39 = vadd.f32 %v378_v16, %v2710_v28  ;;  %v448_v38 = vadd.f32 %v447_v13, %v2711_v18  ;;  %v2715_v44 = vunpack.c.l.bf16 %v2714_v53  ;;  %v2716_v55 = vunpack.c.h.bf16 %v2714_v53  ;;  %v2718_v28 = vld [vmem:[#allocation26_spill] sm:$0xff]  ;;  %v2720_v13 = vld [vmem:[#allocation4_spill] sm:$0xff] }
  0x57   :  { %v518_v16 = vadd.f32 %v517_v21, %v2717_v10  ;;  %v2032_v18 = vmul.f32 %v2718_v28, %v2718_v28  ;;  %1020 = vmul.bf16.f32.vacc0 %v2719_v3, %v2719_v3  ;;  %v2723_v21 = vld [vmem:[#allocation29_spill] sm:$0xff]  ;;  %v2725_v3 = vunpack.c.l.bf16 %v1640_v2 }
  0x58   :  { %v380_v48 = vadd.f32 %v379_v39, %v2715_v44  ;;  %v449_v36 = vadd.f32 %v448_v38, %v2716_v55  ;;  %1021 = vmac.bf16.f32.vacc0 %v2720_v13, %v2720_v13  ;;  %v2722_v39 = vunpack.c.h.bf16 %v1624_v50  ;;  %v2724_v28 = vld [vmem:[#allocation5_spill] sm:$0xff] }
  0x59   :  { %v519_v38 = vadd.f32 %v518_v16, %v1676_v26  ;;  %v912_v55 = vadd.f32 %v587_v54, %v584_v30  ;;  %v2045_v53 = vmul.f32 %v2723_v21, %v2723_v21  ;;  %1022 = vmac.bf16.f32.vacc0 %v2724_v28, %v2724_v28  ;;  %v2731_v26 = vld [vmem:[#allocation31_spill] sm:$0xff] }
  0x5a   :  { %v381_v37 = vadd.f32 %v380_v48, %v2721_v27  ;;  %v450_v44 = vadd.f32 %v449_v36, %v2722_v39  ;;  %v2726_v13 = vunpack.c.h.bf16 %v1640_v2  ;;  %v2727_v48 = vld [vmem:[#allocation79_spill] sm:$0xff]  ;;  %v2728_v36 = vld [vmem:[#allocation6_spill] sm:$0xff]  ;;  %v2729_v30 = vunpack.c.l.bf16 %v1655_v52 }
  0x5b   :  { %v520_v27 = vadd.f32 %v519_v38, %v2727_v48  ;;  %v913_v50 = vadd.f32 %v912_v55, %v590_v35  ;;  %1023 = vmac.bf16.f32.vacc0 %v2728_v36, %v2728_v36  ;;  %v2730_v16 = vunpack.c.h.bf16 %v1655_v52 }
  0x5c   :  { %v382_v60 = vadd.f32 %v381_v37, %v2725_v3  ;;  %v451_v10 = vadd.f32 %v450_v44, %v2726_v13  ;;  %v626_v37 = vmul.f32 %v2731_v26, %v2731_v26  ;;  %v2732_v3 = vld [vmem:[#allocation7_spill] sm:$0xff]  ;;  %v2733_v35 = vunpack.c.l.bf16 %v1665_v32  ;;  %v2735_v13 = vld [vmem:[#allocation82_spill] sm:$0xff] }
  0x5d   :  { %v521_v21 = vadd.f32 %v520_v27, %v1699_v62  ;;  %v914_v28 = vadd.f32 %v913_v50, %v593_v47  ;;  %1024 = vmac.bf16.f32.vacc0 %v2732_v3, %v2732_v3  ;;  %v2734_v38 = vunpack.c.h.bf16 %v1665_v32  ;;  %v2737_v27 = vld [vmem:[#allocation8_spill] sm:$0xff]  ;;  %v2740_v3 = vld [vmem:[#allocation83_spill] sm:$0xff]  ;;  %v2741_v32 = vld [vmem:[#allocation9_spill] sm:$0xff] }
  0x5e   :  { %v383_v54 = vadd.f32 %v382_v60, %v2729_v30  ;;  %v452_v39 = vadd.f32 %v451_v10, %v2730_v16  ;;  %v2736_v30 = vld [vmem:[#allocation33_spill] sm:$0xff]  ;;  %1025 = vmac.bf16.f32.vacc0 %v2737_v27, %v2737_v27  ;;  %v2738_v50 = vunpack.c.l.bf16 %v1685_v17  ;;  %v2744_v27 = vld [vmem:[#allocation35_spill] sm:$0xff] }
  0x5f   :  { %v522_v60 = vadd.f32 %v521_v21, %v2735_v13  ;;  %v915_v36 = vadd.f32 %v914_v28, %v596_v29  ;;  %v629_v10 = vmul.f32 %v2736_v30, %v2736_v30  ;;  %v2739_v47 = vunpack.c.h.bf16 %v1685_v17 }
  0x60   :  { %v384_v44 = vadd.f32 %v383_v54, %v2733_v35  ;;  %v453_v55 = vadd.f32 %v452_v39, %v2734_v38  ;;  %1026 = vmac.bf16.f32.vacc0 %v2741_v32, %v2741_v32  ;;  %v2742_v29 = vunpack.c.l.bf16 %v1690_v63 }
  0x61   :  { %v523_v54 = vadd.f32 %v522_v60, %v2740_v3  ;;  %v916_v35 = vadd.f32 %v915_v36, %v599_v42  ;;  %v2743_v21 = vunpack.c.h.bf16 %v1690_v63  ;;  %v2750_v63 = vld [vmem:[#allocation36_spill] sm:$0xff] }
  0x62   :  { %v385_v26 = vadd.f32 %v384_v44, %v2738_v50  ;;  %v454_v16 = vadd.f32 %v453_v55, %v2739_v47  ;;  %v632_v44 = vmul.f32 %v2744_v27, %v2744_v27  ;;  %v2745_v50 = vld [vmem:[#allocation10_spill] sm:$0xff]  ;;  %v2746_v55 = vld [vmem:[#allocation81_spill] sm:$0xff] }
  0x63   :  { %v524_v38 = vadd.f32 %v523_v54, %v1742_v11  ;;  %v917_v30 = vadd.f32 %v916_v35, %v602_v5  ;;  %1027 = vmac.bf16.f32.vacc0 %v2745_v50, %v2745_v50  ;;  %v2747_v42 = vunpack.c.l.bf16 %v2746_v55  ;;  %v2749_v47 = vld [vmem:[#allocation85_spill] sm:$0xff]  ;;  %v2751_v54 = vld [vmem:[#allocation11_spill] sm:$0xff] }
  0x64   :  { %v386_v39 = vadd.f32 %v385_v26, %v2742_v29  ;;  %v455_v28 = vadd.f32 %v454_v16, %v2743_v21  ;;  %v2748_v32 = vunpack.c.h.bf16 %v2746_v55  ;;  %v635_v16 = vmul.f32 %v2750_v63, %v2750_v63  ;;  %v2758_v55 = vld [vmem:[#allocation39_spill] sm:$0xff] }
  0x65   :  { %v525_v26 = vadd.f32 %v524_v38, %v2749_v47  ;;  %v918_v29 = vadd.f32 %v917_v30, %v605_v9  ;;  %1028 = vmac.bf16.f32.vacc0 %v2751_v54, %v2751_v54  ;;  %v2752_v5 = vunpack.c.l.bf16 %v1721_v61 }
  0x66   :  { %v387_v60 = vadd.f32 %v386_v39, %v2747_v42  ;;  %v456_v36 = vadd.f32 %v455_v28, %v2748_v32  ;;  %v2753_v21 = vunpack.c.h.bf16 %v1721_v61  ;;  %v2754_v42 = vld [vmem:[#allocation13_spill] sm:$0xff]  ;;  %v2755_v28 = vld [vmem:[#allocation84_spill] sm:$0xff] }
  0x67   :  { %v526_v39 = vadd.f32 %v525_v26, %v1768_v19  ;;  %v919_v50 = vadd.f32 %v918_v29, %v608_v14  ;;  %1029 = vmac.bf16.f32.vacc0 %v2754_v42, %v2754_v42  ;;  %v2756_v9 = vunpack.c.l.bf16 %v2755_v28  ;;  %v2763_v42 = vld [vmem:[#allocation89_spill] sm:$0xff] }
  0x68   :  { %v388_v35 = vadd.f32 %v387_v60, %v2752_v5  ;;  %v457_v27 = vadd.f32 %v456_v36, %v2753_v21  ;;  %v2757_v63 = vunpack.c.h.bf16 %v2755_v28  ;;  %v638_v60 = vmul.f32 %v2758_v55, %v2758_v55  ;;  %v2759_v5 = vld [vmem:[#allocation14_spill] sm:$0xff]  ;;  %v2764_v28 = vld [vmem:[#allocation41_spill] sm:$0xff] }
  0x69   :  { %v527_v32 = vadd.f32 %v526_v39, %v1780_v56  ;;  %v920_v54 = vadd.f32 %v919_v50, %v611_v23  ;;  %1030 = vmac.bf16.f32.vacc0 %v2759_v5, %v2759_v5  ;;  %v2760_v36 = vld [vmem:[#allocation86_spill] sm:$0xff]  ;;  %v2765_v39 = vld [vmem:[#allocation16_spill] sm:$0xff]  ;;  %v2766_v23 = vunpack.c.l.bf16 %v1759_v0 }
  0x6a   :  { %v389_v38 = vadd.f32 %v388_v35, %v2756_v9  ;;  %v458_v30 = vadd.f32 %v457_v27, %v2757_v63  ;;  %v2761_v14 = vunpack.c.l.bf16 %v2760_v36  ;;  %v2762_v29 = vunpack.c.h.bf16 %v2760_v36 }
  0x6b   :  { %v528_v35 = vadd.f32 %v527_v32, %v2763_v42  ;;  %v921_v9 = vadd.f32 %v920_v54, %v614_v31  ;;  %v641_v27 = vmul.f32 %v2764_v28, %v2764_v28  ;;  %1031 = vmac.bf16.f32.vacc0 %v2765_v39, %v2765_v39  ;;  %v2772_v39 = vld [vmem:[#allocation43_spill] sm:$0xff] }
  0x6c   :  { %v390_v26 = vadd.f32 %v389_v38, %v2761_v14  ;;  %v459_v21 = vadd.f32 %v458_v30, %v2762_v29  ;;  %v2767_v50 = vunpack.c.h.bf16 %v1759_v0  ;;  %v2768_v30 = vld [vmem:[#allocation18_spill] sm:$0xff]  ;;  %v2769_v31 = vunpack.c.l.bf16 %v1775_v22 }
  0x6d   :  { %v529_v38 = vadd.f32 %v528_v35, %v1811_v12  ;;  %v922_v5 = vadd.f32 %v921_v9, %v2023_v40  ;;  %1032 = vmac.bf16.f32.vacc0 %v2768_v30, %v2768_v30  ;;  %v2770_v28 = vunpack.c.h.bf16 %v1775_v22  ;;  %v2771_v14 = vld [vmem:[#allocation90_spill] sm:$0xff]  ;;  %v2776_v30 = vld [vmem:[#allocation45_spill] sm:$0xff] }
  0x6e   :  { %v391_v55 = vadd.f32 %v390_v26, %v2766_v23  ;;  %v460_v63 = vadd.f32 %v459_v21, %v2767_v50  ;;  %v644_v21 = vmul.f32 %v2772_v39, %v2772_v39  ;;  %v2773_v23 = vld [vmem:[#allocation21_spill] sm:$0xff]  ;;  %v2774_v40 = vunpack.c.l.bf16 %v1790_v8  ;;  %v2785_v22 = vld [vmem:[#allocation46_spill] sm:$0xff] }
  0x6f   :  { %v530_v29 = vadd.f32 %v529_v38, %v2771_v14  ;;  %v923_v26 = vadd.f32 %v922_v5, %v2032_v18  ;;  %1033 = vmac.bf16.f32.vacc0 %v2773_v23, %v2773_v23  ;;  %v2775_v9 = vunpack.c.h.bf16 %v1790_v8  ;;  %v2777_v18 = vld [vmem:[#allocation23_spill] sm:$0xff] }
  0x70   :  { %v392_v32 = vadd.f32 %v391_v55, %v2769_v31  ;;  %v461_v54 = vadd.f32 %v460_v63, %v2770_v28  ;;  %v647_v38 = vmul.f32 %v2776_v30, %v2776_v30  ;;  %1034 = vmac.bf16.f32.vacc0 %v2777_v18, %v2777_v18  ;;  %v2784_v30 = vld [vmem:[#allocation95_spill] sm:$0xff] }
  0x71   :  { %v531_v55 = vadd.f32 %v530_v29, %v1834_v34  ;;  %v924_v63 = vadd.f32 %v923_v26, %v2045_v53  ;;  %v2778_v5 = vunpack.c.l.bf16 %v1800_v4  ;;  %v2779_v28 = vunpack.c.h.bf16 %v1800_v4 }
  0x72   :  { %v393_v35 = vadd.f32 %v392_v32, %v2774_v40  ;;  %v462_v50 = vadd.f32 %v461_v54, %v2775_v9  ;;  %v2780_v32 = vld [vmem:[#allocation93_spill] sm:$0xff]  ;;  %v2781_v54 = vld [vmem:[#allocation27_spill] sm:$0xff]  ;;  %v2782_v53 = vunpack.c.l.bf16 %v1820_v33  ;;  %v2783_v26 = vunpack.c.h.bf16 %v1820_v33 }
  0x73   :  { %v532_v23 = vadd.f32 %v531_v55, %v2780_v32  ;;  %v925_v40 = vadd.f32 %v924_v63, %v626_v37  ;;  %1035 = vmac.bf16.f32.vacc0 %v2781_v54, %v2781_v54  ;;  %v2787_v37 = vunpack.c.l.bf16 %v1825_v25  ;;  %v2789_v54 = vld [vmem:[#allocation49_spill] sm:$0xff] }
  0x74   :  { %v394_v31 = vadd.f32 %v393_v35, %v2778_v5  ;;  %v463_v39 = vadd.f32 %v462_v50, %v2779_v28  ;;  %v650_v35 = vmul.f32 %v2785_v22, %v2785_v22  ;;  %v2786_v5 = vld [vmem:[#allocation28_spill] sm:$0xff]  ;;  %v2788_v55 = vunpack.c.h.bf16 %v1825_v25 }
  0x75   :  { %v533_v18 = vadd.f32 %v532_v23, %v2784_v30  ;;  %v926_v8 = vadd.f32 %v925_v40, %v629_v10  ;;  %1036 = vmac.bf16.f32.vacc0 %v2786_v5, %v2786_v5  ;;  %v2790_v23 = vld [vmem:[#allocation30_spill] sm:$0xff]  ;;  %v2791_v10 = vld [vmem:[#allocation92_spill] sm:$0xff]  ;;  %v2794_v5 = vld [vmem:[#allocation97_spill] sm:$0xff] }
  0x76   :  { %v395_v29 = vadd.f32 %v394_v31, %v2782_v53  ;;  %v464_v9 = vadd.f32 %v463_v39, %v2783_v26  ;;  %v653_v39 = vmul.f32 %v2789_v54, %v2789_v54  ;;  %1037 = vmac.bf16.f32.vacc0 %v2790_v23, %v2790_v23  ;;  %v2795_v25 = vld [vmem:[#allocation32_spill] sm:$0xff]  ;;  %v2798_v23 = vld [vmem:[#allocation51_spill] sm:$0xff] }
  0x77   :  { %v534_v31 = vadd.f32 %v533_v18, %v1877_v51  ;;  %v927_v28 = vadd.f32 %v926_v8, %v632_v44  ;;  %v2792_v22 = vunpack.c.l.bf16 %v2791_v10  ;;  %v2793_v53 = vunpack.c.h.bf16 %v2791_v10 }
  0x78   :  { %v396_v50 = vadd.f32 %v395_v29, %v2787_v37  ;;  %v465_v63 = vadd.f32 %v464_v9, %v2788_v55  ;;  %1038 = vmac.bf16.f32.vacc0 %v2795_v25, %v2795_v25  ;;  %v2796_v8 = vunpack.c.l.bf16 %v1856_v46 }
  0x79   :  { %v535_v29 = vadd.f32 %v534_v31, %v2794_v5  ;;  %v928_v37 = vadd.f32 %v927_v28, %v635_v16  ;;  %v2797_v9 = vunpack.c.h.bf16 %v1856_v46  ;;  %v2808_v46 = vld [vmem:[#allocation102_spill] sm:$0xff] }
  0x7a   :  { %v397_v40 = vadd.f32 %v396_v50, %v2792_v22  ;;  %v466_v26 = vadd.f32 %v465_v63, %v2793_v53  ;;  %v656_v50 = vmul.f32 %v2798_v23, %v2798_v23  ;;  %v2799_v22 = vld [vmem:[#allocation34_spill] sm:$0xff]  ;;  %v2800_v63 = vld [vmem:[#allocation96_spill] sm:$0xff] }
  0x7b   :  { %v536_v55 = vadd.f32 %v535_v29, %v1903_v6  ;;  %v929_v54 = vadd.f32 %v928_v37, %v638_v60  ;;  %1039 = vmac.bf16.f32.vacc0 %v2799_v22, %v2799_v22  ;;  %v2801_v16 = vunpack.c.l.bf16 %v2800_v63  ;;  %v2804_v29 = vld [vmem:[#allocation37_spill] sm:$0xff]  ;;  %v2805_v60 = vld [vmem:[#allocation98_spill] sm:$0xff] }
  0x7c   :  { %v398_v44 = vadd.f32 %v397_v40, %v2796_v8  ;;  %v467_v18 = vadd.f32 %v466_v26, %v2797_v9  ;;  %v2802_v25 = vunpack.c.h.bf16 %v2800_v63  ;;  %v2803_v8 = vld [vmem:[#allocation53_spill] sm:$0xff]  ;;  %1040 = vmac.bf16.f32.vacc0 %v2804_v29, %v2804_v29  ;;  %v2809_v63 = vld [vmem:[#allocation38_spill] sm:$0xff] }
  0x7d   :  { %v537_v40 = vadd.f32 %v536_v55, %v1915_v43  ;;  %v930_v53 = vadd.f32 %v929_v54, %v641_v27  ;;  %v659_v26 = vmul.f32 %v2803_v8, %v2803_v8  ;;  %v2806_v37 = vunpack.c.l.bf16 %v2805_v60  ;;  %v2813_v43 = vld [vmem:[#allocation55_spill] sm:$0xff] }
  0x7e   :  { %v399_v31 = vadd.f32 %v398_v44, %v2801_v16  ;;  %v468_v28 = vadd.f32 %v467_v18, %v2802_v25  ;;  %v2807_v23 = vunpack.c.h.bf16 %v2805_v60  ;;  %1041 = vmac.bf16.f32.vacc0 %v2809_v63, %v2809_v63  ;;  %v2810_v18 = vld [vmem:[#allocation99_spill] sm:$0xff] }
  0x7f   :  { %v538_v44 = vadd.f32 %v537_v40, %v2808_v46  ;;  %v931_v16 = vadd.f32 %v930_v53, %v644_v21  ;;  %v2811_v27 = vunpack.c.l.bf16 %v2810_v18  ;;  %v2812_v54 = vunpack.c.h.bf16 %v2810_v18 }
  0x80   :  { %v400_v9 = vadd.f32 %v399_v31, %v2806_v37  ;;  %v469_v22 = vadd.f32 %v468_v28, %v2807_v23  ;;  %v662_v31 = vmul.f32 %v2813_v43, %v2813_v43  ;;  %v2814_v37 = vld [vmem:[#allocation40_spill] sm:$0xff]  ;;  %v2815_v21 = vunpack.c.l.bf16 %v1910_v58 }
  0x81   :  { %v539_v8 = vadd.f32 %v538_v44, %v1938_v15  ;;  %v932_v29 = vadd.f32 %v931_v16, %v647_v38  ;;  %1042 = vmac.bf16.f32.vacc0 %v2814_v37, %v2814_v37  ;;  %v2816_v63 = vunpack.c.h.bf16 %v1910_v58  ;;  %v2817_v23 = vld [vmem:[#allocation56_spill] sm:$0xff]  ;;  %v2818_v44 = vld [vmem:[#allocation42_spill] sm:$0xff] }
  0x82   :  { %v401_v55 = vadd.f32 %v400_v9, %v2811_v27  ;;  %v470_v25 = vadd.f32 %v469_v22, %v2812_v54  ;;  %v665_v22 = vmul.f32 %v2817_v23, %v2817_v23  ;;  %1043 = vmac.bf16.f32.vacc0 %v2818_v44, %v2818_v44  ;;  %v2821_v37 = vld [vmem:[#allocation44_spill] sm:$0xff]  ;;  %v2823_v23 = vld [vmem:[#allocation47_spill] sm:$0xff] }
  0x83   :  { %v540_v53 = vadd.f32 %v539_v8, %v1942_v59  ;;  %v933_v9 = vadd.f32 %v932_v29, %v650_v35  ;;  %v2819_v43 = vunpack.c.l.bf16 %v1930_v20  ;;  %v2820_v16 = vunpack.c.h.bf16 %v1930_v20 }
  0x84   :  { %v402_v28 = vadd.f32 %v401_v55, %v2815_v21  ;;  %v471_v40 = vadd.f32 %v470_v25, %v2816_v63  ;;  %1044 = vmac.bf16.f32.vacc0 %v2821_v37, %v2821_v37  ;;  %v2822_v21 = vld [vmem:[#allocation58_spill] sm:$0xff] }
  0x85   :  { %v541_v55 = vadd.f32 %v540_v53, %v1951_v45  ;;  %v934_v54 = vadd.f32 %v933_v9, %v653_v39  ;;  %v668_v63 = vmul.f32 %v2822_v21, %v2822_v21  ;;  %1045 = vmac.bf16.f32.vacc0 %v2823_v23, %v2823_v23  ;;  %v2825_v53 = vld [vmem:[#allocation48_spill] sm:$0xff] }
  0x86   :  { %v403_v38 = vadd.f32 %v402_v28, %v2819_v43  ;;  %v472_v27 = vadd.f32 %v471_v40, %v2820_v16  ;;  %v2824_v16 = vld [vmem:[#allocation60_spill] sm:$0xff]  ;;  %1046 = vmac.bf16.f32.vacc0 %v2825_v53, %v2825_v53  ;;  %v2830_v53 = vld [vmem:[#allocation65_spill] sm:$0xff] }
  0x87   :  { %v542_v8 = vrot.slane %v541_v55, 4  ;;  %v935_v29 = vadd.f32 %v934_v54, %v656_v50  ;;  %v671_v39 = vmul.f32 %v2824_v16, %v2824_v16  ;;  %v2826_v54 = vld [vmem:[#allocation50_spill] sm:$0xff]  ;;  %v680_v16 = vmul.f32 %v1545_v41, %v1545_v41 }
  0x88   :  { %v404_v25 = vrot.slane %v403_v38, 4  ;;  %v473_v35 = vrot.slane %v472_v27, 4  ;;  %1047 = vmac.bf16.f32.vacc0 %v2826_v54, %v2826_v54  ;;  %v340_v41 = vld [vmem:[%s2407_s1] sm:$0x7] }
  0x89   :  { %v543_v43 = vadd.f32 %v542_v8, %v541_v55  ;;  %v936_v40 = vadd.f32 %v935_v29, %v659_v26  ;;  %v674_v26 = vmul.f32 %v1524_v49, %v1524_v49  ;;  %v2828_v29 = vld [vmem:[#allocation54_spill] sm:$0xff] }
  0x8a   :  { %v405_v28 = vadd.f32 %v404_v25, %v403_v38  ;;  %v474_v44 = vadd.f32 %v473_v35, %v472_v27  ;;  %v2827_v27 = vld [vmem:[#allocation52_spill] sm:$0xff] }
  0x8b   :  { %v544_v20 = vrot.slane %v543_v43, 2  ;;  %v937_v50 = vadd.f32 %v936_v40, %v662_v31  ;;  %1048 = vmac.bf16.f32.vacc0 %v2827_v27, %v2827_v27  ;;  %v677_v31 = vmul.f32 %v1541_v24, %v1541_v24 }
  0x8c   :  { %v406_v9 = vrot.slane %v405_v28, 2  ;;  %v475_v37 = vrot.slane %v474_v44, 2  ;;  %1049 = vmac.bf16.f32.vacc0 %v2828_v29, %v2828_v29  ;;  %v2837_v29 = vld [vmem:[#allocation63_spill] sm:$0xff] }
  0x8d   :  { %v545_v23 = vadd.f32 %v544_v20, %v543_v43  ;;  %v938_v38 = vadd.f32 %v937_v50, %v665_v22  ;;  %v2829_v43 = vld [vmem:[#allocation57_spill] sm:$0xff]  ;;  %v2832_v50 = vld [vmem:[#allocation67_spill] sm:$0xff] }
  0x8e   :  { %v407_v21 = vadd.f32 %v406_v9, %v405_v28  ;;  %v476_v58 = vadd.f32 %v475_v37, %v474_v44  ;;  %1050 = vmac.bf16.f32.vacc0 %v2829_v43, %v2829_v43  ;;  %v686_v54 = vmul.f32 %v2832_v50, %v2832_v50  ;;  %v2840_v43 = vld [vmem:[#allocation64_spill] sm:$0xff]  ;;  %v2845_v50 = vld [vmem:[#allocation70_spill] sm:$0xff] }
  0x8f   :  { %v546_v35 = vrot.slane %v545_v23, 1  ;;  %v939_v8 = vadd.f32 %v938_v38, %v668_v63  ;;  %1051 = vmac.bf16.f32.vacc0 %v1489_v1, %v1489_v1  ;;  %v2834_v38 = vld [vmem:[#allocation69_spill] sm:$0xff] }
  0x90   :  { %v408_v55 = vrot.slane %v407_v21, 1  ;;  %v477_v25 = vrot.slane %v476_v58, 1 }
  0x91   :  { %v547_v20 = vadd.f32 %v546_v35, %v545_v23  ;;  %v940_v22 = vadd.f32 %v939_v8, %v671_v39  ;;  %v2831_v39 = vld [vmem:[#allocation59_spill] sm:$0xff]  ;;  %v2833_v23 = vld [vmem:[#allocation61_spill] sm:$0xff] }
  0x92   :  { %v409_v28 = vadd.f32 %v408_v55, %v407_v21  ;;  %v478_v44 = vadd.f32 %v477_v25, %v476_v58  ;;  %v683_v58 = vmul.f32 %v2830_v53, %v2830_v53  ;;  %1052 = vmac.bf16.f32.vacc0 %v2831_v39, %v2831_v39  ;;  %v2835_v55 = vld [vmem:[#allocation62_spill] sm:$0xff]  ;;  %v2836_v35 = vld [vmem:[#allocation71_spill] sm:$0xff] }
  0x93   :  { %v565_v40 = vrot.slane %v547_v20, %v1994_v7  ;;  %v941_v63 = vadd.f32 %v940_v22, %v674_v26  ;;  %1053 = vmac.bf16.f32.vacc0 %v2833_v23, %v2833_v23  ;;  %v689_v26 = vmul.f32 %v2834_v38, %v2834_v38  ;;  %v2847_v23 = vld [vmem:[#allocation73_spill] sm:$0xff]  ;;  %v2848_v38 = vld [vmem:[#allocation74_spill] sm:$0xff] }
  0x94   :  { %v551_v49 = vcombine.low %v409_v28, %v478_v44  ;;  %1054 = vmac.bf16.f32.vacc0 %v2835_v55, %v2835_v55  ;;  %v692_v8 = vmul.f32 %v2836_v35, %v2836_v35  ;;  %v2839_v44 = vld [vmem:[#allocation72_spill] sm:$0xff]  ;;  %v716_v55 = vmul.f32 %v2735_v13, %v2735_v13 }
  0x95   :  { %v942_v9 = vadd.f32 %v941_v63, %v677_v31  ;;  %1055 = vmac.bf16.f32.vacc0 %v2837_v29, %v2837_v29  ;;  %v695_v20 = vmul.f32 %v2839_v44, %v2839_v44  ;;  %v2842_v63 = vld [vmem:[#allocation66_spill] sm:$0xff]  ;;  %v2850_v29 = vld [vmem:[#allocation80_spill] sm:$0xff]  ;;  %v2851_v44 = vld [vmem:[#allocation81_spill] sm:$0xff] }
  0x96   :  { %v558_v24 = vrot.slane %v551_v49, %v1994_v7  ;;  %1056 = vmac.bf16.f32.vacc0 %v2840_v43, %v2840_v43  ;;  %v2841_v49 = vld [vmem:[#allocation75_spill] sm:$0xff] }
  0x97   :  { %v943_v21 = vadd.f32 %v942_v9, %v680_v16  ;;  %1057 = vmac.bf16.f32.vacc0 %v2842_v63, %v2842_v63  ;;  %v2844_v9 = vld [vmem:[#allocation76_spill] sm:$0xff] }
  0x98   :  { %v566_v37 = vcombine.low %v558_v24, %v565_v40  ;;  %v698_v40 = vmul.f32 %v2841_v49, %v2841_v49  ;;  %v701_v24 = vmul.f32 %v1645_v57, %v1645_v57  ;;  %v704_v39 = vmul.f32 %v2844_v9, %v2844_v9  ;;  %v2854_v63 = vld [vmem:[#allocation88_spill] sm:$0xff] }
  0x99   :  { %v944_v27 = vadd.f32 %v943_v21, %v683_v58  ;;  %v2843_v58 = vld [vmem:[#allocation68_spill] sm:$0xff]  ;;  %v710_v57 = vmul.f32 %v2727_v48, %v2727_v48  ;;  %v719_v48 = vmul.f32 %v2740_v3, %v2740_v3 }
  0x9a   :  { %v573_v1 = vrot.slane %v566_v37, %v1994_v7  ;;  %1058 = vmac.bf16.f32.vacc0 %v2843_v58, %v2843_v58 }
  0x9b   :  { %v945_v31 = vadd.f32 %v944_v27, %v686_v54  ;;  %1059 = vmac.bf16.f32.vacc0 %v2845_v50, %v2845_v50  ;;  %v2846_v54 = vld [vmem:[#allocation78_spill] sm:$0xff] }
  0x9c   :  { %v575_v25 = vadd.f32 %v573_v1, %v340_v41  ;;  %v707_v21 = vmul.f32 %v2846_v54, %v2846_v54  ;;  %1060 = vmac.bf16.f32.vacc0 %v2847_v23, %v2847_v23 }
  0x9d   :  { %v946_v22 = vadd.f32 %v945_v31, %v689_v26  ;;  %1061 = vmac.bf16.f32.vacc0 %v2848_v38, %v2848_v38  ;;  %v713_v26 = vmul.f32 %v1699_v62, %v1699_v62  ;;  %v722_v62 = vmul.f32 %v1742_v11, %v1742_v11 }
  0x9e   :  { %580 = vst.msk [vmem:[%s2407_s1] sm:$0x7] %vm1119_vm0, %v575_v25  ;;  %1062 = vmac.bf16.f32.vacc0 %v1640_v2, %v1640_v2  ;;  %v725_v2 = vmul.f32 %v2749_v47, %v2749_v47  ;;  %v731_v11 = vmul.f32 %v1780_v56, %v1780_v56  ;;  %v740_v56 = vmul.f32 %v2771_v14, %v2771_v14 }
  0x9f   :  { %v947_v16 = vadd.f32 %v946_v22, %v692_v8  ;;  %1063 = vmac.bf16.f32.vacc0 %v1655_v52, %v1655_v52  ;;  %v2849_v8 = vld [vmem:[#allocation77_spill] sm:$0xff]  ;;  %v728_v52 = vmul.f32 %v1768_v19, %v1768_v19  ;;  %v2852_v22 = vld [vmem:[#allocation84_spill] sm:$0xff]  ;;  %v737_v19 = vmul.f32 %v1811_v12, %v1811_v12 }
  0xa0   :  { %1064 = vmac.bf16.f32.vacc0 %v2849_v8, %v2849_v8  ;;  %v746_v12 = vmul.f32 %v2780_v32, %v2780_v32  ;;  %v755_v32 = vmul.f32 %v2794_v5, %v2794_v5 }
  0xa1   :  { %v948_v53 = vadd.f32 %v947_v16, %v695_v20  ;;  %1065 = vmac.bf16.f32.vacc0 %v1685_v17, %v1685_v17  ;;  %v734_v17 = vmul.f32 %v2763_v42, %v2763_v42 }
  0xa2   :  { %1066 = vmac.bf16.f32.vacc0 %v2850_v29, %v2850_v29 }
  0xa3   :  { %v949_v37 = vadd.f32 %v948_v53, %v698_v40  ;;  %1067 = vmac.bf16.f32.vacc0 %v2851_v44, %v2851_v44  ;;  %v2853_v40 = vld [vmem:[#allocation87_spill] sm:$0xff] }
  0xa4   :  { %1068 = vmac.bf16.f32.vacc0 %v1721_v61, %v1721_v61  ;;  %v743_v61 = vmul.f32 %v1834_v34, %v1834_v34  ;;  %v752_v34 = vmul.f32 %v1877_v51, %v1877_v51  ;;  %v2855_v53 = vld [vmem:[#allocation91_spill] sm:$0xff] }
  0xa5   :  { %v950_v41 = vadd.f32 %v949_v37, %v701_v24  ;;  %1069 = vmac.bf16.f32.vacc0 %v2852_v22, %v2852_v22  ;;  %v2858_v37 = vld [vmem:[#allocation96_spill] sm:$0xff] }
  0xa6   :  { %1070 = vmac.bf16.f32.vacc0 %v2760_v36, %v2760_v36  ;;  %v749_v36 = vmul.f32 %v2784_v30, %v2784_v30  ;;  %v758_v30 = vmul.f32 %v1903_v6, %v1903_v6  ;;  %v767_v6 = vmul.f32 %v1938_v15, %v1938_v15  ;;  %v2860_v15 = vld [vmem:[#allocation103_spill] sm:$0xff] }
  0xa7   :  { %v951_v1 = vadd.f32 %v950_v41, %v704_v39  ;;  %1071 = vmac.bf16.f32.vacc0 %v1759_v0, %v1759_v0  ;;  %v2857_v39 = vld [vmem:[#allocation94_spill] sm:$0xff]  ;;  %v2859_v41 = vld [vmem:[#allocation100_spill] sm:$0xff] }
  0xa8   :  { %1072 = vmac.bf16.f32.vacc0 %v2853_v40, %v2853_v40 }
  0xa9   :  { %v952_v27 = vadd.f32 %v951_v1, %v707_v21  ;;  %1073 = vmac.bf16.f32.vacc0 %v2854_v63, %v2854_v63 }
  0xaa   :  { %1074 = vmac.bf16.f32.vacc0 %v1800_v4, %v1800_v4  ;;  %v2856_v4 = vld [vmem:[#allocation101_spill] sm:$0xff] }
  0xab   :  { %v953_v25 = vadd.f32 %v952_v27, %v710_v57  ;;  %1075 = vmac.bf16.f32.vacc0 %v1820_v33, %v1820_v33  ;;  %v761_v51 = vmul.f32 %v2856_v4, %v2856_v4  ;;  %v764_v33 = vmul.f32 %v2808_v46, %v2808_v46 }
  0xac   :  { %1076 = vmac.bf16.f32.vacc0 %v2855_v53, %v2855_v53  ;;  %v773_v46 = vmul.f32 %v1951_v45, %v1951_v45 }
  0xad   :  { %v954_v35 = vadd.f32 %v953_v25, %v713_v26  ;;  %1077 = vmac.bf16.f32.vacc0 %v2791_v10, %v2791_v10  ;;  %v770_v10 = vmul.f32 %v1942_v59, %v1942_v59  ;;  %v1102_v59 = vmov 1935823168  }
  0xae   :  { %1078 = vmac.bf16.f32.vacc0 %v2857_v39, %v2857_v39  ;;  %v1088_v26 = vunpack.c.l.s4 %v1102_v59 }
  0xaf   :  { %v955_v31 = vadd.f32 %v954_v35, %v716_v55  ;;  %1079 = vmac.bf16.f32.vacc0 %v2858_v37, %v2858_v37  ;;  %v2861_v55 = vld [vmem:[#allocation104_spill] sm:$0xff] }
  0xb0   :  { %1080 = vmac.bf16.f32.vacc0 %v2805_v60, %v2805_v60  ;;  %v1089_v27 = vunpack.c.0.s8 %v1088_v26 }
  0xb1   :  { %v956_v13 = vadd.f32 %v955_v31, %v719_v48  ;;  %1081 = vmac.bf16.f32.vacc0 %v2810_v18, %v2810_v18 }
  0xb2   :  { %1082 = vmac.bf16.f32.vacc0 %v2859_v41, %v2859_v41  ;;  %v1092_v18 = vsub.s32 %v1089_v27, %v2861_v55 }
  0xb3   :  { %v957_v3 = vadd.f32 %v956_v13, %v722_v62  ;;  %1083 = vmac.bf16.f32.vacc0 %v2860_v15, %v2860_v15 }
  0xb5   :  { %v958_v20 = vadd.f32 %v957_v3, %v725_v2  ;;  %v1084_v57 = vmovacc.add.low.vacc0 }
  0xb6   :  { %v1085_v60 = vmovacc.add.high.vacc0 }
  0xb7   :  { %v959_v47 = vadd.f32 %v958_v20, %v728_v52 }
  0xb8   :  { %v1086_v1 = vcombine.low %v1084_v57, %v1085_v60  ;;  %v1087_v38 = vcombine.high %v1084_v57, %v1085_v60 }
  0xb9   :  { %v960_v43 = vadd.f32 %v959_v47, %v731_v11 }
  0xba   :  { %v1093_v25 = vrot.slane %v1086_v1, %v1092_v18  ;;  %v1099_v48 = vrot.slane %v1087_v38, %v1092_v18 }
  0xbb   :  { %v961_v49 = vadd.f32 %v960_v43, %v734_v17 }
  0xbc   :  { %v837_v35 = vrot.slane %v1093_v25, 4  ;;  %v906_v8 = vrot.slane %v1099_v48, 4 }
  0xbd   :  { %v962_v42 = vadd.f32 %v961_v49, %v737_v19 }
  0xbe   :  { %v838_v31 = vadd.f32 %v1093_v25, %v837_v35  ;;  %v907_v2 = vadd.f32 %v1099_v48, %v906_v8 }
  0xbf   :  { %v963_v16 = vadd.f32 %v962_v42, %v740_v56 }
  0xc0   :  { %v839_v29 = vrot.slane %v838_v31, 2  ;;  %v908_v52 = vrot.slane %v907_v2, 2 }
  0xc1   :  { %v964_v14 = vadd.f32 %v963_v16, %v743_v61 }
  0xc2   :  { %v840_v44 = vadd.f32 %v839_v29, %v838_v31  ;;  %v909_v11 = vadd.f32 %v908_v52, %v907_v2 }
  0xc3   :  { %v965_v0 = vadd.f32 %v964_v14, %v746_v12  ;;  %v581_v12 = vld [vmem:[%s2408_s2] sm:$0x7] }
  0xc4   :  { %v841_v17 = vrot.slane %v840_v44, 1  ;;  %v910_v47 = vrot.slane %v909_v11, 1 }
  0xc5   :  { %v966_v24 = vadd.f32 %v965_v0, %v749_v36 }
  0xc6   :  { %v842_v19 = vadd.f32 %v841_v17, %v840_v44  ;;  %v911_v43 = vadd.f32 %v910_v47, %v909_v11 }
  0xc7   :  { %v967_v58 = vadd.f32 %v966_v24, %v752_v34 }
  0xc8   :  { %v984_v49 = vcombine.low %v842_v19, %v911_v43 }
  0xc9   :  { %v968_v9 = vadd.f32 %v967_v58, %v755_v32 }
  0xca   :  { %v991_v42 = vrot.slane %v984_v49, %v1994_v7 }
  0xcb   :  { %v969_v5 = vadd.f32 %v968_v9, %v758_v30 }
  0xcd   :  { %v970_v50 = vadd.f32 %v969_v5, %v761_v51 }
  0xcf   :  { %v971_v54 = vadd.f32 %v970_v50, %v764_v33 }
  0xd1   :  { %v972_v21 = vadd.f32 %v971_v54, %v767_v6 }
  0xd3   :  { %v973_v23 = vadd.f32 %v972_v21, %v770_v10 }
  0xd5   :  { %v974_v45 = vadd.f32 %v973_v23, %v773_v46 }
  0xd7   :  { %v975_v62 = vrot.slane %v974_v45, 4 }
  0xd9   :  { %v976_v13 = vadd.f32 %v975_v62, %v974_v45 }
  0xdb   :  { %v977_v3 = vrot.slane %v976_v13, 2 }
  0xdd   :  { %v978_v20 = vadd.f32 %v977_v3, %v976_v13 }
  0xdf   :  { %v979_v22 = vrot.slane %v978_v20, 1 }
  0xe1   :  { %v980_v56 = vadd.f32 %v979_v22, %v978_v20 }
  0xe3   :  { %v998_v61 = vrot.slane %v980_v56, %v1994_v7 }
  0xe5   :  { %v999_v40 = vcombine.low %v991_v42, %v998_v61 }
  0xe7   :  { %v1006_v16 = vrot.slane %v999_v40, %v1994_v7 }
  0xe9   :  { %v1008_v63 = vadd.f32 %v1006_v16, %v581_v12 }
  0xeb   :  { %1009 = vst.msk [vmem:[%s2408_s2] sm:$0x7] %vm1119_vm0, %v1008_v63 }

// kernel: generator_forward.18
= control target key start
LH: loop header
LB: loop body
LE: loop exit
PB: predicated region body
PF: predicated region fallthrough
CT: control target
= control target key end

     0   :  { %s2311_s15 = smov 0   ;;  %s2313_s16 = smov 0   ;;  %s2917_s0 = inlined_call_operand.vmem [shape: bf16[2048,96], index: 0, kind: input, shape index: {}]   ;;  %s2918_s1 = inlined_call_operand.vmem [shape: f32[1,96], index: 1, kind: input, shape index: {}]   ;;  %s2919_s2 = inlined_call_operand.vmem [shape: f32[1,96], index: 2, kind: input, shape index: {}]   ;;  %s2920_s3 = inlined_call_operand.vmem [shape: bf16[96,1024], index: 3, kind: input, shape index: {}]   ;;  %s2921_s4 = inlined_call_operand.vmem [shape: bf16[2048,1024], index: 4, kind: output, shape index: {}]  }
   0x1   :  { %s2315_s17 = smov 0   ;;  %s2317_s18 = smov 0  }
   0x2   :  { %s2319_s19 = smov 0   ;;  %s2321_s20 = smov 0  }
   0x3   :  { %s2323_s21 = smov 0   ;;  %s2325_s22 = smov 0  }
   0x4   :  { %s2327_s23 = smov 0  }
   0x5 LB: > { %s1818_s24 = sadd.s32 4294967295, %s2283_s23   ;;  %s23_s25 = sadd.s32 1, %s2275_s21  ;;  %s2283_s23 = sphi %s2327_s23, %s14_s23   ;;  %s2279_s22 = sphi %s2325_s22, %s2930_s22   ;;  %s2275_s21 = sphi %s2323_s21, %s2929_s21   ;;  %s2271_s20 = sphi %s2321_s20, %s2928_s20   ;;  %s2267_s19 = sphi %s2319_s19, %s2927_s19   ;;  %s2263_s18 = sphi %s2317_s18, %s2926_s18   ;;  %s2259_s17 = sphi %s2315_s17, %s2925_s17   ;;  %s2255_s16 = sphi %s2313_s16, %s2924_s16   ;;  %s2251_s15 = sphi %s2311_s15, %s2923_s15  }
   0x6   : > { %p24_p0 = scmp.ge.s32.totalorder %s23_s25, 2  ;;  %s26_s26 = sadd.s32 1, %s2279_s22 }
   0x7   : > { %s101_s27 = sadd.s32 1, %s2263_s18  ;;  %p108_p1 = scmp.ne.s32.totalorder %s2263_s18, %s2259_s17 }
   0x8   : > { %s2932_s25 = smov (%p24_p0, %s23_s25), 0  ;;  %s2934_s26 = smov (!%p24_p0, %s26_s26), %s2279_s22 }
   0x9   : > { %s98_s28 = ssub.s32 %s2275_s21, %s2932_s25  ;;  %p109_p2 = scmp.eq.s32.totalorder %s2283_s23, 0 }
   0xa   : > { %p28_p3 = scmp.ge.s32.totalorder %s2934_s26, 8  ;;  %p99_p4 = scmp.eq.s32.totalorder %s98_s28, 0 }
   0xb   : > { %p110_p5 = por %p109_p2, %p108_p1  ;;  %s129_s29 = sadd.s32 1, %s2255_s16 }
   0xc   : > { %s2936_s26 = smov (%p28_p3, %s2934_s26), 0  ;;  %p139_p6 = scmp.ne.s32.totalorder %s2255_s16, %s2251_s15 }
   0xd   : > { %s2372_s30 = scalar_select %p99_p4, %s2263_s18, %s101_s27  }
   0xe   : > { %s124_s5 = ssub.s32 %s2279_s22, %s2936_s26  ;;  %p140_p7 = scmp.eq.s32.totalorder %s1818_s24, 15 }
   0xf   : > { %s126_s6 = sor.u32 %s124_s5, %s98_s28  ;;  %p1821_p10 = scmp.ge.s32.totalorder %s2283_s23, 16 }
  0x10   : > { %p127_p8 = scmp.eq.s32.totalorder %s126_s6, 0  ;;  %p2378_p9 = por %p140_p7, %p139_p6 }
  0x11   : > { %168 = sbr.rel (%p1821_p10) target bundleno = 38 (0x26), region = 24 }
  0x12   : > { %s2383_s8 = scalar_select %p127_p8, %s2255_s16, %s129_s29  }
  0x16   : > { %180 = sbr.rel (!%p110_p5) target bundleno = 38 (0x26), region = 32  ;;  %s182_s9 = sand.u32 (%p110_p5), 1, %s2263_s18  }
  0x17   : > { %s1957_s10 = sshll.u32 (%p110_p5), %s2275_s21, 4  ;;  %s2102_s11 = smul.u32 (%p110_p5), 192, %s182_s9 }
  0x18   : > { %s2391_s14 = scalar_lea.vmem (%p110_p5), %s2920_s3, %s1957_s10 }
  0x19   : > { %v200_v0 = vld [vmem:[%s2391_s14] sm:$0xff] (%p110_p5)  ;;  %v202_v1 = vld [vmem:[%s2391_s14 + $0x8] sm:$0xff] (%p110_p5)  ;;  %s2399_s24 = scalar_lea.vmem (%p110_p5), [#allocation2], %s2102_s11 }
  0x1a   : > { %v204_v2 = vld [vmem:[%s2391_s14 + $0x20] sm:$0xff] (%p110_p5)  ;;  %v206_v3 = vld [vmem:[%s2391_s14 + $0x28] sm:$0xff] (%p110_p5)  ;;  %201 = vst [vmem:[%s2399_s24] sm:$0xff] (%p110_p5), %v200_v0  ;;  %203 = vst [vmem:[%s2399_s24 + $0x8] sm:$0xff] (%p110_p5), %v202_v1 }
  0x1b   : > { %v208_v4 = vld [vmem:[%s2391_s14 + $0x40] sm:$0xff]  ;;  %v210_v5 = vld [vmem:[%s2391_s14 + $0x48] sm:$0xff]  ;;  %205 = vst [vmem:[%s2399_s24 + $0x10] sm:$0xff] %v204_v2  ;;  %207 = vst [vmem:[%s2399_s24 + $0x18] sm:$0xff] %v206_v3 }
  0x1c   : > { %209 = vst [vmem:[%s2399_s24 + $0x20] sm:$0xff] %v208_v4  ;;  %211 = vst [vmem:[%s2399_s24 + $0x28] sm:$0xff] %v210_v5  ;;  %v212_v6 = vld [vmem:[%s2391_s14 + $0x60] sm:$0xff]  ;;  %v214_v7 = vld [vmem:[%s2391_s14 + $0x68] sm:$0xff] }
  0x1d   : > { %v216_v8 = vld [vmem:[%s2391_s14 + $0x80] sm:$0xff]  ;;  %213 = vst [vmem:[%s2399_s24 + $0x30] sm:$0xff] %v212_v6  ;;  %215 = vst [vmem:[%s2399_s24 + $0x38] sm:$0xff] %v214_v7  ;;  %v218_v9 = vld [vmem:[%s2391_s14 + $0x88] sm:$0xff] }
  0x1e   : > { %217 = vst [vmem:[%s2399_s24 + $0x40] sm:$0xff] %v216_v8  ;;  %v220_v10 = vld [vmem:[%s2391_s14 + $0xa0] sm:$0xff]  ;;  %v222_v11 = vld [vmem:[%s2391_s14 + $0xa8] sm:$0xff]  ;;  %219 = vst [vmem:[%s2399_s24 + $0x48] sm:$0xff] %v218_v9 }
  0x1f   : > { %221 = vst [vmem:[%s2399_s24 + $0x50] sm:$0xff] %v220_v10  ;;  %223 = vst [vmem:[%s2399_s24 + $0x58] sm:$0xff] %v222_v11  ;;  %v224_v12 = vld [vmem:[%s2391_s14 + $0xc0] sm:$0xff]  ;;  %v226_v13 = vld [vmem:[%s2391_s14 + $0xc8] sm:$0xff] }
  0x20   : > { %v228_v14 = vld [vmem:[%s2391_s14 + $0xe0] sm:$0xff]  ;;  %225 = vst [vmem:[%s2399_s24 + $0x60] sm:$0xff] %v224_v12  ;;  %227 = vst [vmem:[%s2399_s24 + $0x68] sm:$0xff] %v226_v13  ;;  %v230_v15 = vld [vmem:[%s2391_s14 + $0xe8] sm:$0xff] }
  0x21   : > { %229 = vst [vmem:[%s2399_s24 + $0x70] sm:$0xff] %v228_v14  ;;  %v232_v16 = vld [vmem:[%s2391_s14 + $0x100] sm:$0xff]  ;;  %v234_v17 = vld [vmem:[%s2391_s14 + $0x108] sm:$0xff]  ;;  %231 = vst [vmem:[%s2399_s24 + $0x78] sm:$0xff] %v230_v15 }
  0x22   : > { %233 = vst [vmem:[%s2399_s24 + $0x80] sm:$0xff] %v232_v16  ;;  %235 = vst [vmem:[%s2399_s24 + $0x88] sm:$0xff] %v234_v17  ;;  %v236_v18 = vld [vmem:[%s2391_s14 + $0x120] sm:$0xff]  ;;  %v238_v19 = vld [vmem:[%s2391_s14 + $0x128] sm:$0xff] }
  0x23   : > { %v240_v20 = vld [vmem:[%s2391_s14 + $0x140] sm:$0xff]  ;;  %237 = vst [vmem:[%s2399_s24 + $0x90] sm:$0xff] %v236_v18  ;;  %239 = vst [vmem:[%s2399_s24 + $0x98] sm:$0xff] %v238_v19  ;;  %v242_v21 = vld [vmem:[%s2391_s14 + $0x148] sm:$0xff] }
  0x24   : > { %241 = vst [vmem:[%s2399_s24 + $0xa0] sm:$0xff] %v240_v20  ;;  %v244_v22 = vld [vmem:[%s2391_s14 + $0x160] sm:$0xff]  ;;  %v246_v23 = vld [vmem:[%s2391_s14 + $0x168] sm:$0xff]  ;;  %243 = vst [vmem:[%s2399_s24 + $0xa8] sm:$0xff] %v242_v21 }
  0x25   : > { %245 = vst [vmem:[%s2399_s24 + $0xb0] sm:$0xff] %v244_v22  ;;  %247 = vst [vmem:[%s2399_s24 + $0xb8] sm:$0xff] %v246_v23 }
  0x26 PF: > { %p1824_p11 = scmp.ge.s32.totalorder %s2283_s23, 1  ;;  %p252_p12 = scmp.lt.s32.totalorder %s2283_s23, 17 }
  0x28   : > { %p253_p13 = pnand %p1824_p11, %p252_p12 }
  0x29   : > { %s259_s27 = sand.u32 (!%p253_p13), 1, %s2259_s17   ;;  %s1826_s29 = sshll.u32 (!%p253_p13), %s2271_s20, 5 }
  0x2a   : > { %256 = sbr.rel (%p253_p13) target bundleno = 403 (0x193), region = 55  ;;  %p289_p0 = scmp.lt.s32.totalorder (!%p253_p13), %s1826_s29, 255 }
  0x2b   : > { %s2103_s28 = smul.u32 (!%p253_p13), 192, %s259_s27  ;;  %s285_s24 = sand.u32 (!%p253_p13), 1, %s2251_s15  }
  0x2c   : > { %s1825_s27 = sshll.u32 (!%p253_p13), %s285_s24, 9 }
  0x2d   : > { %s2449_s5 = scalar_lea.vmem (!%p253_p13), [#allocation2], %s2103_s28  ;;  %s2687_s28 = scalar_lea.vmem (!%p253_p13), [#allocation3], %s1825_s27 }
  0x2f   : > { %v2285_v24 = vmov 0   ;;  %v2177_v25 = vld [vmem:[%s2449_s5 + $0xa4] ss:$16 sps:$4 sm:$0xff]   ;;  %v2179_v26 = vld [vmem:[%s2449_s5 + $0xac] ss:$16 sps:$4 sm:$0xff]   ;;  %s2938_s29 = smov (!%p289_p0, %s1826_s29), 255 }
  0x30   : > { %777 = vmatprep.mubr.bf16.mxu0 %v2285_v24  ;;  %970 = vmatprep.mubr.bf16.mxu1 %v2285_v24  ;;  %v2181_v27 = vld [vmem:[%s2449_s5 + $0xa0] ss:$16 sps:$4 sm:$0xff]   ;;  %v2182_v28 = vld [vmem:[%s2449_s5 + $0xa8] ss:$16 sps:$4 sm:$0xff]   ;;  %v2183_v29 = vld [vmem:[%s2449_s5 + $0x84] ss:$16 sps:$4 sm:$0xff]  }
  0x31   : > { %749 = vmatprep.subr.bf16.mxu0 %v2177_v25  ;;  %942 = vmatprep.subr.bf16.mxu1 %v2179_v26  ;;  %v2185_v30 = vld [vmem:[%s2449_s5 + $0x8c] ss:$16 sps:$4 sm:$0xff]   ;;  %v2187_v31 = vld [vmem:[%s2449_s5 + $0x80] ss:$16 sps:$4 sm:$0xff]   ;;  %v2188_v32 = vld [vmem:[%s2449_s5 + $0x88] ss:$16 sps:$4 sm:$0xff]  }
  0x32   : > { %750 = vmatpush1.bf16.msra.mxu0 %v2181_v27  ;;  %943 = vmatpush1.bf16.msra.mxu1 %v2182_v28  ;;  %v2189_v33 = vld [vmem:[%s2449_s5 + $0x64] ss:$16 sps:$4 sm:$0xff]   ;;  %v2191_v34 = vld [vmem:[%s2449_s5 + $0x6c] ss:$16 sps:$4 sm:$0xff]   ;;  %v2193_v35 = vld [vmem:[%s2449_s5 + $0x60] ss:$16 sps:$4 sm:$0xff]  }
  0x33   : > { %751 = vmatprep.subr.bf16.mxu0 %v2183_v29  ;;  %944 = vmatprep.subr.bf16.mxu1 %v2185_v30  ;;  %v2194_v36 = vld [vmem:[%s2449_s5 + $0x68] ss:$16 sps:$4 sm:$0xff]   ;;  %v2195_v37 = vld [vmem:[%s2449_s5 + $0x44] ss:$16 sps:$4 sm:$0xff]   ;;  %v2197_v38 = vld [vmem:[%s2449_s5 + $0x4c] ss:$16 sps:$4 sm:$0xff]  }
  0x34   : > { %s1827_s17 = sshll.u32 %s2938_s29, 2  ;;  %v2199_v39 = vld [vmem:[%s2449_s5 + $0x40] ss:$16 sps:$4 sm:$0xff]   ;;  %v2200_v40 = vld [vmem:[%s2449_s5 + $0x48] ss:$16 sps:$4 sm:$0xff]   ;;  %vm696_vm4 = vcmask 785408  }
  0x35   : > { %v2201_v41 = vld [vmem:[%s2449_s5 + $0x24] ss:$16 sps:$4 sm:$0xff]   ;;  %v2203_v42 = vld [vmem:[%s2449_s5 + $0x2c] ss:$16 sps:$4 sm:$0xff]   ;;  %s2472_s10 = scalar_lea.vmem %s2917_s0, %s1827_s17  ;;  %v2205_v43 = vld [vmem:[%s2449_s5 + $0x20] ss:$16 sps:$4 sm:$0xff]  }
  0x36   : > { %752 = vmatpush1.bf16.msra.mxu0 %v2187_v31  ;;  %945 = vmatpush1.bf16.msra.mxu1 %v2188_v32  ;;  %v2206_v44 = vld [vmem:[%s2449_s5 + $0x28] ss:$16 sps:$4 sm:$0xff]   ;;  %v2479_v45 = vld [vmem:[%s2918_s1] ss:$0 sm:$0xff]  ;;  %v2088_v48 = vld [vmem:[%s2472_s10 + $0x10] sm:$0xff]   ;;  %s1952_s15 = sshll.u32 (%p2378_p9), %s2267_s19, 2 }
  0x37   : > { %753 = vmatprep.subr.bf16.mxu0 %v2189_v33  ;;  %946 = vmatprep.subr.bf16.mxu1 %v2191_v34  ;;  %v2024_v46 = vld [vmem:[%s2472_s10] sm:$0xff]   ;;  %v2087_v47 = vld [vmem:[%s2472_s10 + $0x8] sm:$0xff]   ;;  %v2089_v55 = vld [vmem:[%s2472_s10 + $0x18] sm:$0xff]   ;;  %v2033_v57 = vunpack.c.l.bf16 %v2088_v48  ;;  %v2034_v58 = vunpack.c.h.bf16 %v2088_v48  ;;  %s2022_s29 = sshll.u32 (%p2378_p9), %s2271_s20, 8 }
  0x38   : > { %v2207_v49 = vld [vmem:[%s2449_s5 + $0x4] ss:$16 sps:$4 sm:$0xff]   ;;  %v2209_v50 = vld [vmem:[%s2449_s5 + $0xc] ss:$16 sps:$4 sm:$0xff]   ;;  %v2025_v51 = vunpack.c.l.bf16 %v2024_v46  ;;  %v2026_v52 = vunpack.c.h.bf16 %v2024_v46  ;;  %v2029_v53 = vunpack.c.l.bf16 %v2087_v47  ;;  %v2030_v54 = vunpack.c.h.bf16 %v2087_v47  ;;  %v2490_v56 = vld [vmem:[%s2919_s2] ss:$0 sm:$0xff]  ;;  %s1589_s7 = sadd.s32 (%p2378_p9), %s2022_s29, %s1952_s15 }
  0x39   : > { %v2037_v59 = vunpack.c.l.bf16 %v2089_v55  ;;  %v2038_v60 = vunpack.c.h.bf16 %v2089_v55  ;;  %v2090_v1 = vld [vmem:[%s2472_s10 + $0x20] sm:$0xff]   ;;  %v2212_v3 = vld [vmem:[%s2449_s5 + $0x8] ss:$16 sps:$4 sm:$0xff]   ;;  %v373_v4 = vmul.f32 %v2033_v57, %v2479_v45  ;;  %v374_v5 = vmul.f32 %v2034_v58, %v2479_v45  ;;  %v2092_v32 = vld [vmem:[%s2472_s10 + $0x30] sm:$0xff]  }
  0x3a   : > { %754 = vmatpush1.bf16.msra.mxu0 %v2193_v35  ;;  %947 = vmatpush1.bf16.msra.mxu1 %v2194_v36  ;;  %v369_v61 = vmul.f32 %v2025_v51, %v2479_v45  ;;  %v370_v62 = vmul.f32 %v2026_v52, %v2479_v45  ;;  %v371_v63 = vmul.f32 %v2029_v53, %v2479_v45  ;;  %v2211_v2 = vld [vmem:[%s2449_s5] ss:$16 sps:$4 sm:$0xff]   ;;  %v2041_v12 = vunpack.c.l.bf16 %v2090_v1  ;;  %v2091_v20 = vld [vmem:[%s2472_s10 + $0x28] sm:$0xff]   ;;  %v2093_v51 = vld [vmem:[%s2472_s10 + $0x38] sm:$0xff]   ;;  %s1954_s5 = sshll.u32 (%p2378_p9), %s1589_s7, 2 }
  0x3b   : > { %755 = vmatprep.subr.bf16.mxu0 %v2195_v37  ;;  %948 = vmatprep.subr.bf16.mxu1 %v2197_v38  ;;  %v372_v0 = vmul.f32 %v2030_v54, %v2479_v45  ;;  %v375_v6 = vmul.f32 %v2037_v59, %v2479_v45  ;;  %v376_v11 = vmul.f32 %v2038_v60, %v2479_v45  ;;  %v2042_v13 = vunpack.c.h.bf16 %v2090_v1  ;;  %v2094_v57 = vld [vmem:[%s2472_s10 + $0x40] sm:$0xff]   ;;  %s2769_s9 = scalar_lea.vmem (%p2378_p9), %s2921_s4, %s1954_s5 }
  0x3c   : > { %v408_v7 = vadd.f32 %v2490_v56, %v369_v61  ;;  %v409_v8 = vadd.f32 %v2490_v56, %v370_v62  ;;  %v410_v9 = vadd.f32 %v2490_v56, %v371_v63  ;;  %v412_v22 = vadd.f32 %v2490_v56, %v373_v4 }
  0x3d   : > { %v411_v10 = vadd.f32 %v2490_v56, %v372_v0  ;;  %v413_v23 = vadd.f32 %v2490_v56, %v374_v5  ;;  %v414_v27 = vadd.f32 %v2490_v56, %v375_v6  ;;  %v415_v28 = vadd.f32 %v2490_v56, %v376_v11 }
  0x3e   : > { %756 = vmatpush1.bf16.msra.mxu0 %v2199_v39  ;;  %949 = vmatpush1.bf16.msra.mxu1 %v2200_v40  ;;  %vm440_vm0 = vcmp.ge.f32.partialorder %v408_v7, 0.0  ;;  %vm441_vm1 = vcmp.ge.f32.partialorder %v409_v8, 0.0  ;;  %v472_v14 = vmul.f32 0.2, %v408_v7  ;;  %v473_v15 = vmul.f32 0.2, %v409_v8 }
  0x3f   : > { %757 = vmatprep.subr.bf16.mxu0 %v2201_v41  ;;  %950 = vmatprep.subr.bf16.mxu1 %v2203_v42  ;;  %vm442_vm2 = vcmp.ge.f32.partialorder %v410_v9, 0.0  ;;  %vm443_vm3 = vcmp.ge.f32.partialorder %v411_v10, 0.0  ;;  %v474_v16 = vmul.f32 0.2, %v410_v9  ;;  %v475_v17 = vmul.f32 0.2, %v411_v10 }
  0x40   : > { %v504_v18 = vsel %vm440_vm0, %v408_v7, %v472_v14  ;;  %v505_v19 = vsel %vm441_vm1, %v409_v8, %v473_v15  ;;  %v377_v29 = vmul.f32 %v2041_v12, %v2479_v45  ;;  %v378_v30 = vmul.f32 %v2042_v13, %v2479_v45  ;;  %v2097_v15 = vld [vmem:[%s2472_s10 + $0x58] sm:$0xff]  }
  0x41   : > { %v536_v21 = vpack.c.bf16 %v505_v19, %v504_v18  ;;  %v506_v25 = vsel %vm442_vm2, %v410_v9, %v474_v16  ;;  %v507_v26 = vsel %vm443_vm3, %v411_v10, %v475_v17  ;;  %v2045_v31 = vunpack.c.l.bf16 %v2091_v20  ;;  %v2096_v10 = vld [vmem:[%s2472_s10 + $0x50] sm:$0xff]  }
  0x42   : > { %758 = vmatpush1.bf16.msra.mxu0 %v2205_v43  ;;  %951 = vmatpush1.bf16.msra.mxu1 %v2206_v44  ;;  %v537_v33 = vpack.c.bf16 %v507_v26, %v506_v25  ;;  %vm444_vm5 = vcmp.ge.f32.partialorder %v412_v22, 0.0  ;;  %vm445_vm6 = vcmp.ge.f32.partialorder %v413_v23, 0.0  ;;  %v476_v34 = vmul.f32 0.2, %v412_v22 }
  0x43   : > { %759 = vmatprep.subr.bf16.mxu0 %v2207_v49  ;;  %952 = vmatprep.subr.bf16.mxu1 %v2209_v50  ;;  %v477_v35 = vmul.f32 0.2, %v413_v23  ;;  %v2046_v36 = vunpack.c.h.bf16 %v2091_v20  ;;  %v379_v37 = vmul.f32 %v2045_v31, %v2479_v45  ;;  %v2049_v38 = vunpack.c.l.bf16 %v2092_v32 }
  0x44   : > { %v478_v39 = vmul.f32 0.2, %v414_v27  ;;  %v479_v40 = vmul.f32 0.2, %v415_v28  ;;  %v416_v41 = vadd.f32 %v2490_v56, %v377_v29  ;;  %v417_v42 = vadd.f32 %v2490_v56, %v378_v30 }
  0x45   : > { %vm446_vm7 = vcmp.ge.f32.partialorder %v414_v27, 0.0  ;;  %vm447_vm8 = vcmp.ge.f32.partialorder %v415_v28, 0.0  ;;  %v380_v43 = vmul.f32 %v2046_v36, %v2479_v45  ;;  %v418_v44 = vadd.f32 %v2490_v56, %v379_v37 }
  0x46   : > { %760 = vmatpush1.bf16.msra.mxu0 %v2211_v2  ;;  %953 = vmatpush1.bf16.msra.mxu1 %v2212_v3  ;;  %v2050_v46 = vunpack.c.h.bf16 %v2092_v32  ;;  %v381_v47 = vmul.f32 %v2049_v38, %v2479_v45  ;;  %v508_v48 = vsel %vm444_vm5, %v412_v22, %v476_v34  ;;  %v509_v49 = vsel %vm445_vm6, %v413_v23, %v477_v35  ;;  %v2095_v2 = vld [vmem:[%s2472_s10 + $0x48] sm:$0xff]  }
  0x47   : > { %v419_v50 = vadd.f32 %v2490_v56, %v380_v43  ;;  %v510_v52 = vsel %vm446_vm7, %v414_v27, %v478_v39  ;;  %v511_v53 = vsel %vm447_vm8, %v415_v28, %v479_v40  ;;  %v480_v54 = vmul.f32 0.2, %v416_v41  ;;  %v2098_v39 = vld [vmem:[%s2472_s10 + $0x60] sm:$0xff]  }
  0x48   : > { %v481_v55 = vmul.f32 0.2, %v417_v42  ;;  %vm448_vm9 = vcmp.ge.f32.partialorder %v416_v41, 0.0  ;;  %vm449_vm10 = vcmp.ge.f32.partialorder %v417_v42, 0.0  ;;  %v482_v58 = vmul.f32 0.2, %v418_v44 }
  0x49   : > { %1854 = vmatmul.mubr.msk.bf16.vlgmr.msra.gmra.mxu0 %vm696_vm4, %v536_v21  ;;  %1870 = vmatmul.mubr.msk.bf16.vlgmr.msra.gmra.mxu1 %vm696_vm4, %v536_v21  ;;  %v382_v59 = vmul.f32 %v2050_v46, %v2479_v45  ;;  %vm450_vm11 = vcmp.ge.f32.partialorder %v418_v44, 0.0  ;;  %v483_v60 = vmul.f32 0.2, %v419_v50  ;;  %v2536_v61 = vadd.f32 %v2490_v56, %v381_v47 }
  0x4a   : > { %787 = vmatprep.mubr.bf16.mxu0 %v2285_v24  ;;  %980 = vmatprep.mubr.bf16.mxu1 %v2285_v24  ;;  %v2053_v62 = vunpack.c.l.bf16 %v2093_v51  ;;  %vm451_vm12 = vcmp.ge.f32.partialorder %v419_v50, 0.0  ;;  %v2054_v63 = vunpack.c.h.bf16 %v2093_v51  ;;  %v2057_v0 = vunpack.c.l.bf16 %v2094_v57 }
  0x4b   : > { %v2058_v1 = vunpack.c.h.bf16 %v2094_v57  ;;  %v538_v3 = vpack.c.bf16 %v509_v49, %v508_v48  ;;  %v512_v4 = vsel %vm448_vm9, %v416_v41, %v480_v54  ;;  %v513_v5 = vsel %vm449_vm10, %v417_v42, %v481_v55 }
  0x4c   : > { %v539_v6 = vpack.c.bf16 %v511_v53, %v510_v52  ;;  %v514_v7 = vsel %vm450_vm11, %v418_v44, %v482_v58  ;;  %v2540_v8 = vadd.f32 %v2490_v56, %v382_v59  ;;  %v385_v9 = vmul.f32 %v2057_v0, %v2479_v45  ;;  %v2099_v53 = vld [vmem:[%s2472_s10 + $0x68] sm:$0xff]  }
  0x4d   : > { %v515_v11 = vsel %vm451_vm12, %v419_v50, %v483_v60  ;;  %v386_v12 = vmul.f32 %v2058_v1, %v2479_v45  ;;  %v2061_v13 = vunpack.c.l.bf16 %v2095_v2  ;;  %v2062_v14 = vunpack.c.h.bf16 %v2095_v2 }
  0x4e   : > { %v2546_v16 = vpack.c.bf16 %v513_v5, %v512_v4  ;;  %v2549_v17 = vmul.f32 0.2, %v2536_v61  ;;  %v2552_v18 = vmul.f32 %v2053_v62, %v2479_v45  ;;  %v2555_v19 = vmul.f32 %v2054_v63, %v2479_v45  ;;  %v2100_v63 = vld [vmem:[%s2472_s10 + $0x70] sm:$0xff]  }
  0x4f   : > { %v424_v20 = vadd.f32 %v2490_v56, %v385_v9  ;;  %v425_v21 = vadd.f32 %v2490_v56, %v386_v12  ;;  %v387_v22 = vmul.f32 %v2061_v13, %v2479_v45  ;;  %v2065_v23 = vunpack.c.l.bf16 %v2096_v10  ;;  %v2101_v12 = vld [vmem:[%s2472_s10 + $0x78] sm:$0xff]  }
  0x50   : > { %v2564_v25 = vpack.c.bf16 %v515_v11, %v514_v7  ;;  %v388_v26 = vmul.f32 %v2062_v14, %v2479_v45  ;;  %v2066_v27 = vunpack.c.h.bf16 %v2096_v10  ;;  %v2069_v28 = vunpack.c.l.bf16 %v2097_v15 }
  0x51   : > { %1855 = vmatmul.mubr.msk.bf16.gmra.mxu0 %vm696_vm4, %v537_v33  ;;  %1871 = vmatmul.mubr.msk.bf16.gmra.mxu1 %vm696_vm4, %v537_v33  ;;  %v2568_v29 = vmul.f32 0.2, %v2540_v8  ;;  %vm456_vm13 = vcmp.ge.f32.partialorder %v424_v20, 0.0  ;;  %vm457_vm14 = vcmp.ge.f32.partialorder %v425_v21, 0.0  ;;  %v488_v30 = vmul.f32 0.2, %v424_v20 }
  0x52   : > { %797 = vmatprep.mubr.bf16.mxu0 %v2285_v24  ;;  %990 = vmatprep.mubr.bf16.mxu1 %v2285_v24  ;;  %v489_v31 = vmul.f32 0.2, %v425_v21  ;;  %v426_v32 = vadd.f32 %v2490_v56, %v387_v22  ;;  %v427_v33 = vadd.f32 %v2490_v56, %v388_v26  ;;  %v389_v34 = vmul.f32 %v2065_v23, %v2479_v45 }
  0x53   : > { %v520_v35 = vsel %vm456_vm13, %v424_v20, %v488_v30  ;;  %v390_v36 = vmul.f32 %v2066_v27, %v2479_v45  ;;  %v2070_v37 = vunpack.c.h.bf16 %v2097_v15  ;;  %v391_v38 = vmul.f32 %v2069_v28, %v2479_v45 }
  0x54   : > { %v521_v40 = vsel %vm457_vm14, %v425_v21, %v489_v31  ;;  %vm458_vm15 = vcmp.ge.f32.partialorder %v426_v32, 0.0  ;;  %vm459_vm0 = vcmp.ge.f32.partialorder %v427_v33, 0.0  ;;  %v490_v41 = vmul.f32 0.2, %v426_v32 }
  0x55   : > { %v2576_v42 = vpack.c.bf16 %v521_v40, %v520_v35  ;;  %v491_v43 = vmul.f32 0.2, %v427_v33  ;;  %v428_v44 = vadd.f32 %v2490_v56, %v389_v34  ;;  %v429_v46 = vadd.f32 %v2490_v56, %v390_v36 }
  0x56   : > { %v522_v47 = vsel %vm458_vm15, %v426_v32, %v490_v41  ;;  %v392_v48 = vmul.f32 %v2070_v37, %v2479_v45  ;;  %v430_v49 = vadd.f32 %v2490_v56, %v391_v38  ;;  %v2073_v50 = vunpack.c.l.bf16 %v2098_v39 }
  0x57   : > { %v523_v51 = vsel %vm459_vm0, %v427_v33, %v491_v43  ;;  %vm460_vm1 = vcmp.ge.f32.partialorder %v428_v44, 0.0  ;;  %vm461_vm2 = vcmp.ge.f32.partialorder %v429_v46, 0.0  ;;  %v492_v52 = vmul.f32 0.2, %v428_v44 }
  0x58   : > { %v2587_v54 = vpack.c.bf16 %v523_v51, %v522_v47  ;;  %v493_v55 = vmul.f32 0.2, %v429_v46  ;;  %v431_v57 = vadd.f32 %v2490_v56, %v392_v48  ;;  %vm462_vm3 = vcmp.ge.f32.partialorder %v430_v49, 0.0 }
  0x59   : > { %1856 = vmatmul.mubr.msk.bf16.gmra.mxu0 %vm696_vm4, %v538_v3  ;;  %1872 = vmatmul.mubr.msk.bf16.gmra.mxu1 %vm696_vm4, %v538_v3  ;;  %v524_v58 = vsel %vm460_vm1, %v428_v44, %v492_v52  ;;  %v494_v59 = vmul.f32 0.2, %v430_v49  ;;  %v2074_v60 = vunpack.c.h.bf16 %v2098_v39  ;;  %v393_v62 = vmul.f32 %v2073_v50, %v2479_v45 }
  0x5a   : > { %807 = vmatprep.mubr.bf16.mxu0 %v2285_v24  ;;  %1000 = vmatprep.mubr.bf16.mxu1 %v2285_v24  ;;  %v525_v0 = vsel %vm461_vm2, %v429_v46, %v493_v55  ;;  %vm463_vm5 = vcmp.ge.f32.partialorder %v431_v57, 0.0  ;;  %v495_v1 = vmul.f32 0.2, %v431_v57  ;;  %v2077_v2 = vunpack.c.l.bf16 %v2099_v53 }
  0x5b   : > { %vm452_vm6 = vcmp.ge.f32.partialorder %v2536_v61, 0.0  ;;  %v2593_v3 = vpack.c.bf16 %v525_v0, %v524_v58  ;;  %v526_v4 = vsel %vm462_vm3, %v430_v49, %v494_v59  ;;  %v394_v5 = vmul.f32 %v2074_v60, %v2479_v45 }
  0x5c   : > { %v527_v7 = vsel %vm463_vm5, %v431_v57, %v495_v1  ;;  %v2078_v9 = vunpack.c.h.bf16 %v2099_v53  ;;  %v395_v10 = vmul.f32 %v2077_v2, %v2479_v45  ;;  %v2081_v11 = vunpack.c.l.bf16 %v2100_v63 }
  0x5d   : > { %v2599_v13 = vpack.c.bf16 %v527_v7, %v526_v4  ;;  %v433_v14 = vadd.f32 %v2490_v56, %v394_v5  ;;  %v2082_v22 = vunpack.c.h.bf16 %v2100_v63  ;;  %v2085_v28 = vunpack.c.l.bf16 %v2101_v12 }
  0x5e   : > { %v396_v20 = vmul.f32 %v2078_v9, %v2479_v45  ;;  %v434_v21 = vadd.f32 %v2490_v56, %v395_v10  ;;  %v397_v23 = vmul.f32 %v2081_v11, %v2479_v45  ;;  %v2086_v35 = vunpack.c.h.bf16 %v2101_v12 }
  0x5f   : > { %vm465_vm8 = vcmp.ge.f32.partialorder %v433_v14, 0.0  ;;  %v497_v26 = vmul.f32 0.2, %v433_v14  ;;  %v398_v32 = vmul.f32 %v2082_v22, %v2479_v45  ;;  %vm453_vm12 = vcmp.ge.f32.partialorder %v2540_v8, 0.0 }
  0x60   : > { %v435_v30 = vadd.f32 %v2490_v56, %v396_v20  ;;  %vm466_vm9 = vcmp.ge.f32.partialorder %v434_v21, 0.0  ;;  %v498_v31 = vmul.f32 0.2, %v434_v21  ;;  %v436_v34 = vadd.f32 %v2490_v56, %v397_v23 }
  0x61   : > { %1857 = vmatmul.mubr.msk.bf16.gmra.mxu0 %vm696_vm4, %v539_v6  ;;  %1873 = vmatmul.mubr.msk.bf16.gmra.mxu1 %vm696_vm4, %v539_v6  ;;  %v432_v6 = vadd.f32 %v2490_v56, %v393_v62  ;;  %v529_v33 = vsel %vm465_vm8, %v433_v14, %v497_v26  ;;  %v437_v39 = vadd.f32 %v2490_v56, %v398_v32 }
  0x62   : > { %817 = vmatprep.mubr.bf16.mxu0 %v2285_v24  ;;  %1010 = vmatprep.mubr.bf16.mxu1 %v2285_v24  ;;  %vm467_vm10 = vcmp.ge.f32.partialorder %v435_v30, 0.0  ;;  %v499_v37 = vmul.f32 0.2, %v435_v30  ;;  %v530_v38 = vsel %vm466_vm9, %v434_v21, %v498_v31  ;;  %vm468_vm11 = vcmp.ge.f32.partialorder %v436_v34, 0.0 }
  0x63   : > { %vm464_vm7 = vcmp.ge.f32.partialorder %v432_v6, 0.0  ;;  %v496_v15 = vmul.f32 0.2, %v432_v6  ;;  %v500_v40 = vmul.f32 0.2, %v436_v34  ;;  %v400_v41 = vmul.f32 %v2086_v35, %v2479_v45 }
  0x64   : > { %v422_v43 = vadd.f32 %v2490_v56, %v2552_v18  ;;  %v531_v44 = vsel %vm467_vm10, %v435_v30, %v499_v37  ;;  %vm469_vm13 = vcmp.ge.f32.partialorder %v437_v39, 0.0  ;;  %v501_v48 = vmul.f32 0.2, %v437_v39 }
  0x65   : > { %v528_v27 = vsel %vm464_vm7, %v432_v6, %v496_v15  ;;  %v549_v47 = vpack.c.bf16 %v531_v44, %v530_v38  ;;  %v532_v49 = vsel %vm468_vm11, %v436_v34, %v500_v40  ;;  %v516_v50 = vsel %vm452_vm6, %v2536_v61, %v2549_v17 }
  0x66   : > { %v2615_v36 = vpack.c.bf16 %v529_v33, %v528_v27  ;;  %v439_v51 = vadd.f32 %v2490_v56, %v400_v41  ;;  %v517_v18 = vsel %vm453_vm12, %v2540_v8, %v2568_v29  ;;  %v423_v52 = vadd.f32 %v2490_v56, %v2555_v19 }
  0x67   : > { %v533_v53 = vsel %vm469_vm13, %v437_v39, %v501_v48  ;;  %v542_v58 = vpack.c.bf16 %v517_v18, %v516_v50  ;;  %v486_v60 = vmul.f32 0.2, %v422_v43  ;;  %vm454_vm0 = vcmp.ge.f32.partialorder %v422_v43, 0.0 }
  0x68   : > { %v550_v61 = vpack.c.bf16 %v533_v53, %v532_v49  ;;  %vm471_vm15 = vcmp.ge.f32.partialorder %v439_v51, 0.0  ;;  %v503_v17 = vmul.f32 0.2, %v439_v51  ;;  %vm455_vm1 = vcmp.ge.f32.partialorder %v423_v52, 0.0 }
  0x69   : > { %1858 = vmatmul.mubr.msk.bf16.gmra.mxu0 %vm696_vm4, %v2546_v16  ;;  %1874 = vmatmul.mubr.msk.bf16.gmra.mxu1 %vm696_vm4, %v2546_v16  ;;  %v399_v16 = vmul.f32 %v2085_v28, %v2479_v45 }
  0x6a   : > { %827 = vmatprep.mubr.bf16.mxu0 %v2285_v24  ;;  %1020 = vmatprep.mubr.bf16.mxu1 %v2285_v24  ;;  %v535_v57 = vsel %vm471_vm15, %v439_v51, %v503_v17 }
  0x6b   : > { %v438_v46 = vadd.f32 %v2490_v56, %v399_v16  ;;  %v518_v56 = vsel %vm454_vm0, %v422_v43, %v486_v60 }
  0x6d   : > { %vm470_vm14 = vcmp.ge.f32.partialorder %v438_v46, 0.0  ;;  %v502_v45 = vmul.f32 0.2, %v438_v46 }
  0x6f   : > { %v534_v55 = vsel %vm470_vm14, %v438_v46, %v502_v45 }
  0x70   : > { %v551_v59 = vpack.c.bf16 %v535_v57, %v534_v55 }
  0x71   : > { %1859 = vmatmul.mubr.msk.bf16.gmra.mxu0 %vm696_vm4, %v2564_v25  ;;  %1875 = vmatmul.mubr.msk.bf16.gmra.mxu1 %vm696_vm4, %v2564_v25  ;;  %v487_v25 = vmul.f32 0.2, %v423_v52 }
  0x72   : > { %837 = vmatprep.mubr.bf16.mxu0 %v2285_v24  ;;  %1030 = vmatprep.mubr.bf16.mxu1 %v2285_v24 }
  0x73   : > { %v519_v8 = vsel %vm455_vm1, %v423_v52, %v487_v25 }
  0x74   : > { %v543_v19 = vpack.c.bf16 %v519_v8, %v518_v56 }
  0x79   : > { %1860 = vmatmul.mubr.msk.bf16.gmra.mxu0 %vm696_vm4, %v542_v58  ;;  %1876 = vmatmul.mubr.msk.bf16.gmra.mxu1 %vm696_vm4, %v542_v58 }
  0x7a   : > { %847 = vmatprep.mubr.bf16.mxu0 %v2285_v24  ;;  %1040 = vmatprep.mubr.bf16.mxu1 %v2285_v24 }
  0x81   : > { %1861 = vmatmul.mubr.msk.bf16.gmra.mxu0 %vm696_vm4, %v543_v19  ;;  %1877 = vmatmul.mubr.msk.bf16.gmra.mxu1 %vm696_vm4, %v543_v19 }
  0x82   : > { %857 = vmatprep.mubr.bf16.mxu0 %v2285_v24  ;;  %1050 = vmatprep.mubr.bf16.mxu1 %v2285_v24 }
  0x89   : > { %1862 = vmatmul.mubr.msk.bf16.gmra.mxu0 %vm696_vm4, %v2576_v42  ;;  %1878 = vmatmul.mubr.msk.bf16.gmra.mxu1 %vm696_vm4, %v2576_v42 }
  0x8a   : > { %867 = vmatprep.mubr.bf16.mxu0 %v2285_v24  ;;  %1060 = vmatprep.mubr.bf16.mxu1 %v2285_v24 }
  0x91   : > { %1863 = vmatmul.mubr.msk.bf16.gmra.mxu0 %vm696_vm4, %v2587_v54  ;;  %1879 = vmatmul.mubr.msk.bf16.gmra.mxu1 %vm696_vm4, %v2587_v54 }
  0x92   : > { %877 = vmatprep.mubr.bf16.mxu0 %v2285_v24  ;;  %1070 = vmatprep.mubr.bf16.mxu1 %v2285_v24 }
  0x99   : > { %1864 = vmatmul.mubr.msk.bf16.gmra.mxu0 %vm696_vm4, %v2593_v3  ;;  %1880 = vmatmul.mubr.msk.bf16.gmra.mxu1 %vm696_vm4, %v2593_v3 }
  0x9a   : > { %887 = vmatprep.mubr.bf16.mxu0 %v2285_v24  ;;  %1080 = vmatprep.mubr.bf16.mxu1 %v2285_v24 }
  0xa1   : > { %1865 = vmatmul.mubr.msk.bf16.gmra.mxu0 %vm696_vm4, %v2599_v13  ;;  %1881 = vmatmul.mubr.msk.bf16.gmra.mxu1 %vm696_vm4, %v2599_v13 }
  0xa2   : > { %897 = vmatprep.mubr.bf16.mxu0 %v2285_v24  ;;  %1090 = vmatprep.mubr.bf16.mxu1 %v2285_v24 }
  0xa9   : > { %1866 = vmatmul.mubr.msk.bf16.gmra.mxu0 %vm696_vm4, %v2615_v36  ;;  %1882 = vmatmul.mubr.msk.bf16.gmra.mxu1 %vm696_vm4, %v2615_v36 }
  0xaa   : > { %907 = vmatprep.mubr.bf16.mxu0 %v2285_v24  ;;  %1100 = vmatprep.mubr.bf16.mxu1 %v2285_v24 }
  0xb1   : > { %1867 = vmatmul.mubr.msk.bf16.gmra.mxu0 %vm696_vm4, %v549_v47  ;;  %1883 = vmatmul.mubr.msk.bf16.gmra.mxu1 %vm696_vm4, %v549_v47 }
  0xb2   : > { %917 = vmatprep.mubr.bf16.mxu0 %v2285_v24  ;;  %1110 = vmatprep.mubr.bf16.mxu1 %v2285_v24 }
  0xb9   : > { %1868 = vmatmul.mubr.msk.bf16.gmra.mxu0 %vm696_vm4, %v550_v61  ;;  %1884 = vmatmul.mubr.msk.bf16.gmra.mxu1 %vm696_vm4, %v550_v61 }
  0xba   : > { %927 = vmatprep.mubr.bf16.mxu0 %v2285_v24  ;;  %1120 = vmatprep.mubr.bf16.mxu1 %v2285_v24 }
  0xc1   : > { %1869 = vmatmul.mubr.msk.bf16.gmra.mxu0 %vm696_vm4, %v551_v59  ;;  %1885 = vmatmul.mubr.msk.bf16.gmra.mxu1 %vm696_vm4, %v551_v59 }
 0x109   : > { %v779_v29 = vpop.f32.mrf.mxu0  ;;  %v972_v42 = vpop.f32.mrf.mxu1 }
 0x10b   : > { %v781_v54 = vpop.f32.mrf.mxu0  ;;  %v974_v62 = vpop.f32.mrf.mxu1 }
 0x10c   : > { %v1958_v63 = vpack.c.bf16 %v781_v54, %v779_v29  ;;  %v1959_v0 = vpack.c.bf16 %v974_v62, %v972_v42 }
 0x10d   : > { %v783_v1 = vpop.f32.mrf.mxu0  ;;  %v976_v2 = vpop.f32.mrf.mxu1 }
 0x10e   : > { %1515 = vst [vmem:[%s2687_s28] sm:$0xff] %v1958_v63  ;;  %1516 = vst [vmem:[%s2687_s28 + $0x8] sm:$0xff] %v1959_v0 }
 0x10f   : > { %v785_v24 = vpop.f32.mrf.mxu0  ;;  %v978_v3 = vpop.f32.mrf.mxu1 }
 0x110   : > { %v1960_v4 = vpack.c.bf16 %v785_v24, %v783_v1  ;;  %v1961_v5 = vpack.c.bf16 %v978_v3, %v976_v2 }
 0x111   : > { %v789_v6 = vpop.f32.mrf.mxu0  ;;  %v982_v7 = vpop.f32.mrf.mxu1 }
 0x112   : > { %1517 = vst [vmem:[%s2687_s28 + $0x10] sm:$0xff] %v1960_v4  ;;  %1518 = vst [vmem:[%s2687_s28 + $0x18] sm:$0xff] %v1961_v5 }
 0x113   : > { %v791_v9 = vpop.f32.mrf.mxu0  ;;  %v984_v10 = vpop.f32.mrf.mxu1 }
 0x114   : > { %v1962_v11 = vpack.c.bf16 %v791_v9, %v789_v6  ;;  %v1963_v12 = vpack.c.bf16 %v984_v10, %v982_v7 }
 0x115   : > { %v793_v13 = vpop.f32.mrf.mxu0  ;;  %v986_v14 = vpop.f32.mrf.mxu1 }
 0x116   : > { %1519 = vst [vmem:[%s2687_s28 + $0x20] sm:$0xff] %v1962_v11  ;;  %1520 = vst [vmem:[%s2687_s28 + $0x28] sm:$0xff] %v1963_v12 }
 0x117   : > { %v795_v15 = vpop.f32.mrf.mxu0  ;;  %v988_v20 = vpop.f32.mrf.mxu1 }
 0x118   : > { %v1964_v21 = vpack.c.bf16 %v795_v15, %v793_v13  ;;  %v1965_v22 = vpack.c.bf16 %v988_v20, %v986_v14 }
 0x119   : > { %v799_v23 = vpop.f32.mrf.mxu0  ;;  %v992_v26 = vpop.f32.mrf.mxu1 }
 0x11a   : > { %1521 = vst [vmem:[%s2687_s28 + $0x30] sm:$0xff] %v1964_v21  ;;  %1522 = vst [vmem:[%s2687_s28 + $0x38] sm:$0xff] %v1965_v22 }
 0x11b   : > { %v801_v27 = vpop.f32.mrf.mxu0  ;;  %v994_v28 = vpop.f32.mrf.mxu1 }
 0x11c   : > { %v1966_v30 = vpack.c.bf16 %v801_v27, %v799_v23  ;;  %v1967_v31 = vpack.c.bf16 %v994_v28, %v992_v26 }
 0x11d   : > { %v803_v32 = vpop.f32.mrf.mxu0  ;;  %v996_v33 = vpop.f32.mrf.mxu1 }
 0x11e   : > { %1523 = vst [vmem:[%s2687_s28 + $0x40] sm:$0xff] %v1966_v30  ;;  %1524 = vst [vmem:[%s2687_s28 + $0x48] sm:$0xff] %v1967_v31 }
 0x11f   : > { %v805_v34 = vpop.f32.mrf.mxu0  ;;  %v998_v35 = vpop.f32.mrf.mxu1 }
 0x120   : > { %v1968_v16 = vpack.c.bf16 %v805_v34, %v803_v32  ;;  %v1969_v36 = vpack.c.bf16 %v998_v35, %v996_v33 }
 0x121   : > { %v809_v37 = vpop.f32.mrf.mxu0  ;;  %v1002_v38 = vpop.f32.mrf.mxu1 }
 0x122   : > { %1525 = vst [vmem:[%s2687_s28 + $0x50] sm:$0xff] %v1968_v16  ;;  %1526 = vst [vmem:[%s2687_s28 + $0x58] sm:$0xff] %v1969_v36 }
 0x123   : > { %v811_v39 = vpop.f32.mrf.mxu0  ;;  %v1004_v40 = vpop.f32.mrf.mxu1 }
 0x124   : > { %v1970_v41 = vpack.c.bf16 %v811_v39, %v809_v37  ;;  %v1971_v43 = vpack.c.bf16 %v1004_v40, %v1002_v38 }
 0x125   : > { %v813_v44 = vpop.f32.mrf.mxu0  ;;  %v1006_v46 = vpop.f32.mrf.mxu1 }
 0x126   : > { %1527 = vst [vmem:[%s2687_s28 + $0x60] sm:$0xff] %v1970_v41  ;;  %1528 = vst [vmem:[%s2687_s28 + $0x68] sm:$0xff] %v1971_v43 }
 0x127   : > { %v815_v47 = vpop.f32.mrf.mxu0  ;;  %v1008_v48 = vpop.f32.mrf.mxu1 }
 0x128   : > { %v1972_v49 = vpack.c.bf16 %v815_v47, %v813_v44  ;;  %v1973_v50 = vpack.c.bf16 %v1008_v48, %v1006_v46 }
 0x129   : > { %v819_v51 = vpop.f32.mrf.mxu0  ;;  %v1012_v45 = vpop.f32.mrf.mxu1 }
 0x12a   : > { %1529 = vst [vmem:[%s2687_s28 + $0x70] sm:$0xff] %v1972_v49  ;;  %1530 = vst [vmem:[%s2687_s28 + $0x78] sm:$0xff] %v1973_v50 }
 0x12b   : > { %v821_v18 = vpop.f32.mrf.mxu0  ;;  %v1014_v52 = vpop.f32.mrf.mxu1 }
 0x12c   : > { %v1974_v53 = vpack.c.bf16 %v821_v18, %v819_v51  ;;  %v1975_v61 = vpack.c.bf16 %v1014_v52, %v1012_v45 }
 0x12d   : > { %v823_v17 = vpop.f32.mrf.mxu0  ;;  %v1016_v55 = vpop.f32.mrf.mxu1 }
 0x12e   : > { %1531 = vst [vmem:[%s2687_s28 + $0x80] sm:$0xff] %v1974_v53  ;;  %1532 = vst [vmem:[%s2687_s28 + $0x88] sm:$0xff] %v1975_v61 }
 0x12f   : > { %v825_v57 = vpop.f32.mrf.mxu0  ;;  %v1018_v58 = vpop.f32.mrf.mxu1 }
 0x130   : > { %v1976_v59 = vpack.c.bf16 %v825_v57, %v823_v17  ;;  %v1977_v60 = vpack.c.bf16 %v1018_v58, %v1016_v55 }
 0x131   : > { %v829_v25 = vpop.f32.mrf.mxu0  ;;  %v1022_v56 = vpop.f32.mrf.mxu1 }
 0x132   : > { %1533 = vst [vmem:[%s2687_s28 + $0x90] sm:$0xff] %v1976_v59  ;;  %1534 = vst [vmem:[%s2687_s28 + $0x98] sm:$0xff] %v1977_v60 }
 0x133   : > { %v831_v8 = vpop.f32.mrf.mxu0  ;;  %v1024_v19 = vpop.f32.mrf.mxu1 }
 0x134   : > { %v1978_v29 = vpack.c.bf16 %v831_v8, %v829_v25  ;;  %v1979_v42 = vpack.c.bf16 %v1024_v19, %v1022_v56 }
 0x135   : > { %v833_v54 = vpop.f32.mrf.mxu0  ;;  %v1026_v62 = vpop.f32.mrf.mxu1 }
 0x136   : > { %1535 = vst [vmem:[%s2687_s28 + $0xa0] sm:$0xff] %v1978_v29  ;;  %1536 = vst [vmem:[%s2687_s28 + $0xa8] sm:$0xff] %v1979_v42 }
 0x137   : > { %v835_v63 = vpop.f32.mrf.mxu0  ;;  %v1028_v0 = vpop.f32.mrf.mxu1 }
 0x138   : > { %v1980_v1 = vpack.c.bf16 %v835_v63, %v833_v54  ;;  %v1981_v2 = vpack.c.bf16 %v1028_v0, %v1026_v62 }
 0x139   : > { %v839_v24 = vpop.f32.mrf.mxu0  ;;  %v1032_v3 = vpop.f32.mrf.mxu1 }
 0x13a   : > { %1537 = vst [vmem:[%s2687_s28 + $0xb0] sm:$0xff] %v1980_v1  ;;  %1538 = vst [vmem:[%s2687_s28 + $0xb8] sm:$0xff] %v1981_v2 }
 0x13b   : > { %v841_v4 = vpop.f32.mrf.mxu0  ;;  %v1034_v5 = vpop.f32.mrf.mxu1 }
 0x13c   : > { %v1982_v6 = vpack.c.bf16 %v841_v4, %v839_v24  ;;  %v1983_v7 = vpack.c.bf16 %v1034_v5, %v1032_v3 }
 0x13d   : > { %v843_v9 = vpop.f32.mrf.mxu0  ;;  %v1036_v10 = vpop.f32.mrf.mxu1 }
 0x13e   : > { %1539 = vst [vmem:[%s2687_s28 + $0xc0] sm:$0xff] %v1982_v6  ;;  %1540 = vst [vmem:[%s2687_s28 + $0xc8] sm:$0xff] %v1983_v7 }
 0x13f   : > { %v845_v11 = vpop.f32.mrf.mxu0  ;;  %v1038_v12 = vpop.f32.mrf.mxu1 }
 0x140   : > { %v1984_v13 = vpack.c.bf16 %v845_v11, %v843_v9  ;;  %v1985_v14 = vpack.c.bf16 %v1038_v12, %v1036_v10 }
 0x141   : > { %v849_v15 = vpop.f32.mrf.mxu0  ;;  %v1042_v20 = vpop.f32.mrf.mxu1 }
 0x142   : > { %1541 = vst [vmem:[%s2687_s28 + $0xd0] sm:$0xff] %v1984_v13  ;;  %1542 = vst [vmem:[%s2687_s28 + $0xd8] sm:$0xff] %v1985_v14 }
 0x143   : > { %v851_v21 = vpop.f32.mrf.mxu0  ;;  %v1044_v22 = vpop.f32.mrf.mxu1 }
 0x144   : > { %v1986_v23 = vpack.c.bf16 %v851_v21, %v849_v15  ;;  %v1987_v26 = vpack.c.bf16 %v1044_v22, %v1042_v20 }
 0x145   : > { %v853_v27 = vpop.f32.mrf.mxu0  ;;  %v1046_v28 = vpop.f32.mrf.mxu1 }
 0x146   : > { %1543 = vst [vmem:[%s2687_s28 + $0xe0] sm:$0xff] %v1986_v23  ;;  %1544 = vst [vmem:[%s2687_s28 + $0xe8] sm:$0xff] %v1987_v26 }
 0x147   : > { %v855_v30 = vpop.f32.mrf.mxu0  ;;  %v1048_v31 = vpop.f32.mrf.mxu1 }
 0x148   : > { %v1988_v32 = vpack.c.bf16 %v855_v30, %v853_v27  ;;  %v1989_v33 = vpack.c.bf16 %v1048_v31, %v1046_v28 }
 0x149   : > { %v859_v34 = vpop.f32.mrf.mxu0  ;;  %v1052_v35 = vpop.f32.mrf.mxu1 }
 0x14a   : > { %1545 = vst [vmem:[%s2687_s28 + $0xf0] sm:$0xff] %v1988_v32  ;;  %1546 = vst [vmem:[%s2687_s28 + $0xf8] sm:$0xff] %v1989_v33 }
 0x14b   : > { %v861_v16 = vpop.f32.mrf.mxu0  ;;  %v1054_v36 = vpop.f32.mrf.mxu1 }
 0x14c   : > { %v1990_v37 = vpack.c.bf16 %v861_v16, %v859_v34  ;;  %v1991_v38 = vpack.c.bf16 %v1054_v36, %v1052_v35 }
 0x14d   : > { %v863_v39 = vpop.f32.mrf.mxu0  ;;  %v1056_v40 = vpop.f32.mrf.mxu1 }
 0x14e   : > { %1547 = vst [vmem:[%s2687_s28 + $0x100] sm:$0xff] %v1990_v37  ;;  %1548 = vst [vmem:[%s2687_s28 + $0x108] sm:$0xff] %v1991_v38 }
 0x14f   : > { %v865_v41 = vpop.f32.mrf.mxu0  ;;  %v1058_v43 = vpop.f32.mrf.mxu1 }
 0x150   : > { %v1992_v44 = vpack.c.bf16 %v865_v41, %v863_v39  ;;  %v1993_v46 = vpack.c.bf16 %v1058_v43, %v1056_v40 }
 0x151   : > { %v869_v47 = vpop.f32.mrf.mxu0  ;;  %v1062_v48 = vpop.f32.mrf.mxu1 }
 0x152   : > { %1549 = vst [vmem:[%s2687_s28 + $0x110] sm:$0xff] %v1992_v44  ;;  %1550 = vst [vmem:[%s2687_s28 + $0x118] sm:$0xff] %v1993_v46 }
 0x153   : > { %v871_v49 = vpop.f32.mrf.mxu0  ;;  %v1064_v50 = vpop.f32.mrf.mxu1 }
 0x154   : > { %v1994_v51 = vpack.c.bf16 %v871_v49, %v869_v47  ;;  %v1995_v45 = vpack.c.bf16 %v1064_v50, %v1062_v48 }
 0x155   : > { %v873_v18 = vpop.f32.mrf.mxu0  ;;  %v1066_v52 = vpop.f32.mrf.mxu1 }
 0x156   : > { %1551 = vst [vmem:[%s2687_s28 + $0x120] sm:$0xff] %v1994_v51  ;;  %1552 = vst [vmem:[%s2687_s28 + $0x128] sm:$0xff] %v1995_v45 }
 0x157   : > { %v875_v53 = vpop.f32.mrf.mxu0  ;;  %v1068_v61 = vpop.f32.mrf.mxu1 }
 0x158   : > { %v1996_v17 = vpack.c.bf16 %v875_v53, %v873_v18  ;;  %v1997_v55 = vpack.c.bf16 %v1068_v61, %v1066_v52 }
 0x159   : > { %v879_v57 = vpop.f32.mrf.mxu0  ;;  %v1072_v58 = vpop.f32.mrf.mxu1 }
 0x15a   : > { %1553 = vst [vmem:[%s2687_s28 + $0x130] sm:$0xff] %v1996_v17  ;;  %1554 = vst [vmem:[%s2687_s28 + $0x138] sm:$0xff] %v1997_v55 }
 0x15b   : > { %v881_v59 = vpop.f32.mrf.mxu0  ;;  %v1074_v60 = vpop.f32.mrf.mxu1 }
 0x15c   : > { %v1998_v25 = vpack.c.bf16 %v881_v59, %v879_v57  ;;  %v1999_v56 = vpack.c.bf16 %v1074_v60, %v1072_v58 }
 0x15d   : > { %v883_v8 = vpop.f32.mrf.mxu0  ;;  %v1076_v19 = vpop.f32.mrf.mxu1 }
 0x15e   : > { %1555 = vst [vmem:[%s2687_s28 + $0x140] sm:$0xff] %v1998_v25  ;;  %1556 = vst [vmem:[%s2687_s28 + $0x148] sm:$0xff] %v1999_v56 }
 0x15f   : > { %v885_v29 = vpop.f32.mrf.mxu0  ;;  %v1078_v42 = vpop.f32.mrf.mxu1 }
 0x160   : > { %v2000_v54 = vpack.c.bf16 %v885_v29, %v883_v8  ;;  %v2001_v62 = vpack.c.bf16 %v1078_v42, %v1076_v19  ;;  %v1604_v29 = vld [vmem:[%s2687_s28] sm:$0xff] (%p2378_p9)  ;;  %v1606_v42 = vld [vmem:[%s2687_s28 + $0x8] sm:$0xff] (%p2378_p9) }
 0x161   : > { %v889_v63 = vpop.f32.mrf.mxu0  ;;  %v1082_v0 = vpop.f32.mrf.mxu1  ;;  %1605 = vst [vmem:[%s2769_s9] sm:$0xff] (%p2378_p9), %v1604_v29  ;;  %1607 = vst [vmem:[%s2769_s9 + $0x8] sm:$0xff] (%p2378_p9), %v1606_v42 }
 0x162   : > { %1557 = vst [vmem:[%s2687_s28 + $0x150] sm:$0xff] %v2000_v54  ;;  %1558 = vst [vmem:[%s2687_s28 + $0x158] sm:$0xff] %v2001_v62  ;;  %v1608_v54 = vld [vmem:[%s2687_s28 + $0x10] sm:$0xff] (%p2378_p9)  ;;  %v1610_v62 = vld [vmem:[%s2687_s28 + $0x18] sm:$0xff] (%p2378_p9) }
 0x163   : > { %v891_v1 = vpop.f32.mrf.mxu0  ;;  %v1084_v2 = vpop.f32.mrf.mxu1  ;;  %1609 = vst [vmem:[%s2769_s9 + $0x20] sm:$0xff] (%p2378_p9), %v1608_v54  ;;  %1611 = vst [vmem:[%s2769_s9 + $0x28] sm:$0xff] (%p2378_p9), %v1610_v62 }
 0x164   : > { %v2002_v24 = vpack.c.bf16 %v891_v1, %v889_v63  ;;  %v2003_v3 = vpack.c.bf16 %v1084_v2, %v1082_v0  ;;  %v1612_v63 = vld [vmem:[%s2687_s28 + $0x20] sm:$0xff] (%p2378_p9)  ;;  %v1614_v0 = vld [vmem:[%s2687_s28 + $0x28] sm:$0xff] (%p2378_p9)  ;;  %v1616_v1 = vld [vmem:[%s2687_s28 + $0x30] sm:$0xff] (%p2378_p9) }
 0x165   : > { %v893_v4 = vpop.f32.mrf.mxu0  ;;  %v1086_v5 = vpop.f32.mrf.mxu1  ;;  %v1618_v2 = vld [vmem:[%s2687_s28 + $0x38] sm:$0xff] (%p2378_p9)  ;;  %1613 = vst [vmem:[%s2769_s9 + $0x40] sm:$0xff] (%p2378_p9), %v1612_v63  ;;  %1615 = vst [vmem:[%s2769_s9 + $0x48] sm:$0xff] (%p2378_p9), %v1614_v0 }
 0x166   : > { %1559 = vst [vmem:[%s2687_s28 + $0x160] sm:$0xff] %v2002_v24  ;;  %1560 = vst [vmem:[%s2687_s28 + $0x168] sm:$0xff] %v2003_v3  ;;  %v1620_v24 = vld [vmem:[%s2687_s28 + $0x40] sm:$0xff] (%p2378_p9)  ;;  %v1622_v3 = vld [vmem:[%s2687_s28 + $0x48] sm:$0xff] (%p2378_p9) }
 0x167   : > { %v895_v6 = vpop.f32.mrf.mxu0  ;;  %v1088_v7 = vpop.f32.mrf.mxu1  ;;  %1617 = vst [vmem:[%s2769_s9 + $0x60] sm:$0xff] (%p2378_p9), %v1616_v1  ;;  %1619 = vst [vmem:[%s2769_s9 + $0x68] sm:$0xff] (%p2378_p9), %v1618_v2 }
 0x168   : > { %v2004_v9 = vpack.c.bf16 %v895_v6, %v893_v4  ;;  %v2005_v10 = vpack.c.bf16 %v1088_v7, %v1086_v5  ;;  %v1624_v4 = vld [vmem:[%s2687_s28 + $0x50] sm:$0xff] (%p2378_p9)  ;;  %v1626_v5 = vld [vmem:[%s2687_s28 + $0x58] sm:$0xff] (%p2378_p9)  ;;  %1621 = vst [vmem:[%s2769_s9 + $0x80] sm:$0xff] (%p2378_p9), %v1620_v24  ;;  %1623 = vst [vmem:[%s2769_s9 + $0x88] sm:$0xff] (%p2378_p9), %v1622_v3 }
 0x169   : > { %v899_v11 = vpop.f32.mrf.mxu0  ;;  %v1092_v12 = vpop.f32.mrf.mxu1  ;;  %1625 = vst [vmem:[%s2769_s9 + $0xa0] sm:$0xff] (%p2378_p9), %v1624_v4  ;;  %1627 = vst [vmem:[%s2769_s9 + $0xa8] sm:$0xff] (%p2378_p9), %v1626_v5  ;;  %v1628_v6 = vld [vmem:[%s2687_s28 + $0x60] sm:$0xff] (%p2378_p9)  ;;  %v1630_v7 = vld [vmem:[%s2687_s28 + $0x68] sm:$0xff] (%p2378_p9) }
 0x16a   : > { %1561 = vst [vmem:[%s2687_s28 + $0x170] sm:$0xff] %v2004_v9  ;;  %1562 = vst [vmem:[%s2687_s28 + $0x178] sm:$0xff] %v2005_v10  ;;  %v1632_v9 = vld [vmem:[%s2687_s28 + $0x70] sm:$0xff] (%p2378_p9)  ;;  %v1634_v10 = vld [vmem:[%s2687_s28 + $0x78] sm:$0xff] (%p2378_p9) }
 0x16b   : > { %v901_v13 = vpop.f32.mrf.mxu0  ;;  %v1094_v14 = vpop.f32.mrf.mxu1  ;;  %1629 = vst [vmem:[%s2769_s9 + $0xc0] sm:$0xff] (%p2378_p9), %v1628_v6  ;;  %1631 = vst [vmem:[%s2769_s9 + $0xc8] sm:$0xff] (%p2378_p9), %v1630_v7 }
 0x16c   : > { %v2006_v15 = vpack.c.bf16 %v901_v13, %v899_v11  ;;  %v2007_v20 = vpack.c.bf16 %v1094_v14, %v1092_v12  ;;  %1633 = vst [vmem:[%s2769_s9 + $0xe0] sm:$0xff] (%p2378_p9), %v1632_v9  ;;  %v1636_v11 = vld [vmem:[%s2687_s28 + $0x80] sm:$0xff] (%p2378_p9)  ;;  %v1638_v12 = vld [vmem:[%s2687_s28 + $0x88] sm:$0xff] (%p2378_p9)  ;;  %1635 = vst [vmem:[%s2769_s9 + $0xe8] sm:$0xff] (%p2378_p9), %v1634_v10 }
 0x16d   : > { %v903_v21 = vpop.f32.mrf.mxu0  ;;  %v1096_v22 = vpop.f32.mrf.mxu1  ;;  %1637 = vst [vmem:[%s2769_s9 + $0x100] sm:$0xff] (%p2378_p9), %v1636_v11  ;;  %1639 = vst [vmem:[%s2769_s9 + $0x108] sm:$0xff] (%p2378_p9), %v1638_v12  ;;  %v1640_v13 = vld [vmem:[%s2687_s28 + $0x90] sm:$0xff] (%p2378_p9)  ;;  %v1642_v14 = vld [vmem:[%s2687_s28 + $0x98] sm:$0xff] (%p2378_p9) }
 0x16e   : > { %1563 = vst [vmem:[%s2687_s28 + $0x180] sm:$0xff] %v2006_v15  ;;  %1564 = vst [vmem:[%s2687_s28 + $0x188] sm:$0xff] %v2007_v20  ;;  %v1644_v15 = vld [vmem:[%s2687_s28 + $0xa0] sm:$0xff] (%p2378_p9)  ;;  %v1646_v20 = vld [vmem:[%s2687_s28 + $0xa8] sm:$0xff] (%p2378_p9) }
 0x16f   : > { %v905_v23 = vpop.f32.mrf.mxu0  ;;  %v1098_v26 = vpop.f32.mrf.mxu1  ;;  %1641 = vst [vmem:[%s2769_s9 + $0x120] sm:$0xff] (%p2378_p9), %v1640_v13  ;;  %1643 = vst [vmem:[%s2769_s9 + $0x128] sm:$0xff] (%p2378_p9), %v1642_v14 }
 0x170   : > { %v2008_v27 = vpack.c.bf16 %v905_v23, %v903_v21  ;;  %v2009_v28 = vpack.c.bf16 %v1098_v26, %v1096_v22  ;;  %1645 = vst [vmem:[%s2769_s9 + $0x140] sm:$0xff] (%p2378_p9), %v1644_v15  ;;  %v1648_v21 = vld [vmem:[%s2687_s28 + $0xb0] sm:$0xff] (%p2378_p9)  ;;  %v1650_v22 = vld [vmem:[%s2687_s28 + $0xb8] sm:$0xff] (%p2378_p9)  ;;  %1647 = vst [vmem:[%s2769_s9 + $0x148] sm:$0xff] (%p2378_p9), %v1646_v20 }
 0x171   : > { %v909_v30 = vpop.f32.mrf.mxu0  ;;  %v1102_v31 = vpop.f32.mrf.mxu1  ;;  %1649 = vst [vmem:[%s2769_s9 + $0x160] sm:$0xff] (%p2378_p9), %v1648_v21  ;;  %1651 = vst [vmem:[%s2769_s9 + $0x168] sm:$0xff] (%p2378_p9), %v1650_v22  ;;  %v1652_v23 = vld [vmem:[%s2687_s28 + $0xc0] sm:$0xff] (%p2378_p9)  ;;  %v1654_v26 = vld [vmem:[%s2687_s28 + $0xc8] sm:$0xff] (%p2378_p9) }
 0x172   : > { %1565 = vst [vmem:[%s2687_s28 + $0x190] sm:$0xff] %v2008_v27  ;;  %1566 = vst [vmem:[%s2687_s28 + $0x198] sm:$0xff] %v2009_v28  ;;  %v1656_v27 = vld [vmem:[%s2687_s28 + $0xd0] sm:$0xff] (%p2378_p9)  ;;  %v1658_v28 = vld [vmem:[%s2687_s28 + $0xd8] sm:$0xff] (%p2378_p9) }
 0x173   : > { %v911_v32 = vpop.f32.mrf.mxu0  ;;  %v1104_v33 = vpop.f32.mrf.mxu1  ;;  %1653 = vst [vmem:[%s2769_s9 + $0x180] sm:$0xff] (%p2378_p9), %v1652_v23  ;;  %1655 = vst [vmem:[%s2769_s9 + $0x188] sm:$0xff] (%p2378_p9), %v1654_v26 }
 0x174   : > { %v2010_v34 = vpack.c.bf16 %v911_v32, %v909_v30  ;;  %v2011_v35 = vpack.c.bf16 %v1104_v33, %v1102_v31  ;;  %1657 = vst [vmem:[%s2769_s9 + $0x1a0] sm:$0xff] (%p2378_p9), %v1656_v27  ;;  %v1660_v30 = vld [vmem:[%s2687_s28 + $0xe0] sm:$0xff] (%p2378_p9)  ;;  %v1662_v31 = vld [vmem:[%s2687_s28 + $0xe8] sm:$0xff] (%p2378_p9)  ;;  %1659 = vst [vmem:[%s2769_s9 + $0x1a8] sm:$0xff] (%p2378_p9), %v1658_v28 }
 0x175   : > { %v913_v16 = vpop.f32.mrf.mxu0  ;;  %v1106_v36 = vpop.f32.mrf.mxu1  ;;  %1661 = vst [vmem:[%s2769_s9 + $0x1c0] sm:$0xff] (%p2378_p9), %v1660_v30  ;;  %1663 = vst [vmem:[%s2769_s9 + $0x1c8] sm:$0xff] (%p2378_p9), %v1662_v31  ;;  %v1664_v32 = vld [vmem:[%s2687_s28 + $0xf0] sm:$0xff] (%p2378_p9)  ;;  %v1666_v33 = vld [vmem:[%s2687_s28 + $0xf8] sm:$0xff] (%p2378_p9) }
 0x176   : > { %1567 = vst [vmem:[%s2687_s28 + $0x1a0] sm:$0xff] %v2010_v34  ;;  %1568 = vst [vmem:[%s2687_s28 + $0x1a8] sm:$0xff] %v2011_v35  ;;  %v1668_v34 = vld [vmem:[%s2687_s28 + $0x100] sm:$0xff] (%p2378_p9)  ;;  %v1670_v35 = vld [vmem:[%s2687_s28 + $0x108] sm:$0xff] (%p2378_p9) }
 0x177   : > { %v915_v37 = vpop.f32.mrf.mxu0  ;;  %v1108_v38 = vpop.f32.mrf.mxu1  ;;  %1665 = vst [vmem:[%s2769_s9 + $0x1e0] sm:$0xff] (%p2378_p9), %v1664_v32  ;;  %1667 = vst [vmem:[%s2769_s9 + $0x1e8] sm:$0xff] (%p2378_p9), %v1666_v33 }
 0x178   : > { %v2012_v39 = vpack.c.bf16 %v915_v37, %v913_v16  ;;  %v2013_v40 = vpack.c.bf16 %v1108_v38, %v1106_v36  ;;  %1669 = vst [vmem:[%s2769_s9 + $0x200] sm:$0xff] (%p2378_p9), %v1668_v34  ;;  %v1672_v16 = vld [vmem:[%s2687_s28 + $0x110] sm:$0xff] (%p2378_p9)  ;;  %v1674_v36 = vld [vmem:[%s2687_s28 + $0x118] sm:$0xff] (%p2378_p9)  ;;  %1671 = vst [vmem:[%s2769_s9 + $0x208] sm:$0xff] (%p2378_p9), %v1670_v35 }
 0x179   : > { %v919_v41 = vpop.f32.mrf.mxu0  ;;  %v1112_v43 = vpop.f32.mrf.mxu1  ;;  %1673 = vst [vmem:[%s2769_s9 + $0x220] sm:$0xff] (%p2378_p9), %v1672_v16  ;;  %1675 = vst [vmem:[%s2769_s9 + $0x228] sm:$0xff] (%p2378_p9), %v1674_v36  ;;  %v1676_v37 = vld [vmem:[%s2687_s28 + $0x120] sm:$0xff] (%p2378_p9)  ;;  %v1678_v38 = vld [vmem:[%s2687_s28 + $0x128] sm:$0xff] (%p2378_p9) }
 0x17a   : > { %1569 = vst [vmem:[%s2687_s28 + $0x1b0] sm:$0xff] %v2012_v39  ;;  %1570 = vst [vmem:[%s2687_s28 + $0x1b8] sm:$0xff] %v2013_v40  ;;  %v1680_v39 = vld [vmem:[%s2687_s28 + $0x130] sm:$0xff] (%p2378_p9)  ;;  %v1682_v40 = vld [vmem:[%s2687_s28 + $0x138] sm:$0xff] (%p2378_p9) }
 0x17b   : > { %v921_v44 = vpop.f32.mrf.mxu0  ;;  %v1114_v46 = vpop.f32.mrf.mxu1  ;;  %1677 = vst [vmem:[%s2769_s9 + $0x240] sm:$0xff] (%p2378_p9), %v1676_v37  ;;  %1679 = vst [vmem:[%s2769_s9 + $0x248] sm:$0xff] (%p2378_p9), %v1678_v38 }
 0x17c   : > { %v2014_v47 = vpack.c.bf16 %v921_v44, %v919_v41  ;;  %v2015_v48 = vpack.c.bf16 %v1114_v46, %v1112_v43  ;;  %1681 = vst [vmem:[%s2769_s9 + $0x260] sm:$0xff] (%p2378_p9), %v1680_v39  ;;  %v1684_v41 = vld [vmem:[%s2687_s28 + $0x140] sm:$0xff] (%p2378_p9)  ;;  %v1686_v43 = vld [vmem:[%s2687_s28 + $0x148] sm:$0xff] (%p2378_p9)  ;;  %1683 = vst [vmem:[%s2769_s9 + $0x268] sm:$0xff] (%p2378_p9), %v1682_v40 }
 0x17d   : > { %v923_v49 = vpop.f32.mrf.mxu0  ;;  %v1116_v50 = vpop.f32.mrf.mxu1  ;;  %1685 = vst [vmem:[%s2769_s9 + $0x280] sm:$0xff] (%p2378_p9), %v1684_v41  ;;  %1687 = vst [vmem:[%s2769_s9 + $0x288] sm:$0xff] (%p2378_p9), %v1686_v43  ;;  %v1688_v44 = vld [vmem:[%s2687_s28 + $0x150] sm:$0xff] (%p2378_p9)  ;;  %v1690_v46 = vld [vmem:[%s2687_s28 + $0x158] sm:$0xff] (%p2378_p9) }
 0x17e   : > { %1571 = vst [vmem:[%s2687_s28 + $0x1c0] sm:$0xff] %v2014_v47  ;;  %1572 = vst [vmem:[%s2687_s28 + $0x1c8] sm:$0xff] %v2015_v48  ;;  %v1692_v47 = vld [vmem:[%s2687_s28 + $0x160] sm:$0xff] (%p2378_p9)  ;;  %v1694_v48 = vld [vmem:[%s2687_s28 + $0x168] sm:$0xff] (%p2378_p9) }
 0x17f   : > { %v925_v51 = vpop.f32.mrf.mxu0  ;;  %v1118_v45 = vpop.f32.mrf.mxu1  ;;  %1689 = vst [vmem:[%s2769_s9 + $0x2a0] sm:$0xff] (%p2378_p9), %v1688_v44  ;;  %1691 = vst [vmem:[%s2769_s9 + $0x2a8] sm:$0xff] (%p2378_p9), %v1690_v46 }
 0x180   : > { %v2016_v18 = vpack.c.bf16 %v925_v51, %v923_v49  ;;  %v2017_v52 = vpack.c.bf16 %v1118_v45, %v1116_v50  ;;  %1693 = vst [vmem:[%s2769_s9 + $0x2c0] sm:$0xff] (%p2378_p9), %v1692_v47  ;;  %v1696_v49 = vld [vmem:[%s2687_s28 + $0x170] sm:$0xff] (%p2378_p9)  ;;  %v1698_v50 = vld [vmem:[%s2687_s28 + $0x178] sm:$0xff] (%p2378_p9)  ;;  %1695 = vst [vmem:[%s2769_s9 + $0x2c8] sm:$0xff] (%p2378_p9), %v1694_v48 }
 0x181   : > { %v929_v53 = vpop.f32.mrf.mxu0  ;;  %v1122_v61 = vpop.f32.mrf.mxu1  ;;  %1697 = vst [vmem:[%s2769_s9 + $0x2e0] sm:$0xff] (%p2378_p9), %v1696_v49  ;;  %1699 = vst [vmem:[%s2769_s9 + $0x2e8] sm:$0xff] (%p2378_p9), %v1698_v50  ;;  %v1700_v51 = vld [vmem:[%s2687_s28 + $0x180] sm:$0xff] (%p2378_p9)  ;;  %v1702_v45 = vld [vmem:[%s2687_s28 + $0x188] sm:$0xff] (%p2378_p9) }
 0x182   : > { %1573 = vst [vmem:[%s2687_s28 + $0x1d0] sm:$0xff] %v2016_v18  ;;  %1574 = vst [vmem:[%s2687_s28 + $0x1d8] sm:$0xff] %v2017_v52  ;;  %v1704_v18 = vld [vmem:[%s2687_s28 + $0x190] sm:$0xff] (%p2378_p9)  ;;  %v1706_v52 = vld [vmem:[%s2687_s28 + $0x198] sm:$0xff] (%p2378_p9) }
 0x183   : > { %v931_v17 = vpop.f32.mrf.mxu0  ;;  %v1124_v55 = vpop.f32.mrf.mxu1  ;;  %1701 = vst [vmem:[%s2769_s9 + $0x300] sm:$0xff] (%p2378_p9), %v1700_v51  ;;  %1703 = vst [vmem:[%s2769_s9 + $0x308] sm:$0xff] (%p2378_p9), %v1702_v45 }
 0x184   : > { %v2018_v57 = vpack.c.bf16 %v931_v17, %v929_v53  ;;  %v2019_v58 = vpack.c.bf16 %v1124_v55, %v1122_v61  ;;  %1705 = vst [vmem:[%s2769_s9 + $0x320] sm:$0xff] (%p2378_p9), %v1704_v18  ;;  %v1708_v53 = vld [vmem:[%s2687_s28 + $0x1a0] sm:$0xff] (%p2378_p9)  ;;  %v1710_v61 = vld [vmem:[%s2687_s28 + $0x1a8] sm:$0xff] (%p2378_p9)  ;;  %1707 = vst [vmem:[%s2769_s9 + $0x328] sm:$0xff] (%p2378_p9), %v1706_v52 }
 0x185   : > { %v933_v59 = vpop.f32.mrf.mxu0  ;;  %v1126_v60 = vpop.f32.mrf.mxu1  ;;  %1709 = vst [vmem:[%s2769_s9 + $0x340] sm:$0xff] (%p2378_p9), %v1708_v53  ;;  %1711 = vst [vmem:[%s2769_s9 + $0x348] sm:$0xff] (%p2378_p9), %v1710_v61  ;;  %v1712_v17 = vld [vmem:[%s2687_s28 + $0x1b0] sm:$0xff] (%p2378_p9)  ;;  %v1714_v55 = vld [vmem:[%s2687_s28 + $0x1b8] sm:$0xff] (%p2378_p9) }
 0x186   : > { %1575 = vst [vmem:[%s2687_s28 + $0x1e0] sm:$0xff] %v2018_v57  ;;  %1576 = vst [vmem:[%s2687_s28 + $0x1e8] sm:$0xff] %v2019_v58  ;;  %1585 = sbr.rel (!%p2378_p9) target bundleno = 403 (0x193), region = 63  ;;  %v1716_v57 = vld [vmem:[%s2687_s28 + $0x1c0] sm:$0xff] (%p2378_p9)  ;;  %v1718_v58 = vld [vmem:[%s2687_s28 + $0x1c8] sm:$0xff] (%p2378_p9) }
 0x187   : > { %v935_v25 = vpop.f32.mrf.mxu0  ;;  %v1128_v56 = vpop.f32.mrf.mxu1  ;;  %1713 = vst [vmem:[%s2769_s9 + $0x360] sm:$0xff] (%p2378_p9), %v1712_v17  ;;  %1715 = vst [vmem:[%s2769_s9 + $0x368] sm:$0xff] (%p2378_p9), %v1714_v55 }
 0x188   : > { %v2020_v8 = vpack.c.bf16 %v935_v25, %v933_v59  ;;  %v2021_v19 = vpack.c.bf16 %v1128_v56, %v1126_v60  ;;  %1717 = vst [vmem:[%s2769_s9 + $0x380] sm:$0xff] (%p2378_p9), %v1716_v57  ;;  %1719 = vst [vmem:[%s2769_s9 + $0x388] sm:$0xff] (%p2378_p9), %v1718_v58 }
 0x189   : > { %v1720_v59 = vld [vmem:[%s2687_s28 + $0x1d0] sm:$0xff] (%p2378_p9)  ;;  %v1722_v60 = vld [vmem:[%s2687_s28 + $0x1d8] sm:$0xff] (%p2378_p9) }
 0x18a   : > { %1577 = vst [vmem:[%s2687_s28 + $0x1f0] sm:$0xff] %v2020_v8  ;;  %1578 = vst [vmem:[%s2687_s28 + $0x1f8] sm:$0xff] %v2021_v19 }
 0x18b   : > { %1721 = vst [vmem:[%s2769_s9 + $0x3a0] sm:$0xff] %v1720_v59  ;;  %1723 = vst [vmem:[%s2769_s9 + $0x3a8] sm:$0xff] %v1722_v60 }
 0x18d   : > { %v1724_v25 = vld [vmem:[%s2687_s28 + $0x1e0] sm:$0xff]  ;;  %v1726_v56 = vld [vmem:[%s2687_s28 + $0x1e8] sm:$0xff] }
 0x18e   : > { %1725 = vst [vmem:[%s2769_s9 + $0x3c0] sm:$0xff] %v1724_v25  ;;  %1727 = vst [vmem:[%s2769_s9 + $0x3c8] sm:$0xff] %v1726_v56 }
 0x191   : > { %v1728_v8 = vld [vmem:[%s2687_s28 + $0x1f0] sm:$0xff]  ;;  %v1730_v19 = vld [vmem:[%s2687_s28 + $0x1f8] sm:$0xff] }
 0x192   : > { %1729 = vst [vmem:[%s2769_s9 + $0x3e0] sm:$0xff] %v1728_v8  ;;  %1731 = vst [vmem:[%s2769_s9 + $0x3e8] sm:$0xff] %v1730_v19 }
 0x193 PF: > { %s14_s23 = sadd.s32 1, %s2283_s23   ;;  %s2923_s15 = smov %s2255_s16 }
 0x194   : > { %p11_p1 = scmp.ge.s32.totalorder %s14_s23, 18   ;;  %s2924_s16 = smov %s2383_s8 }
 0x195   : > { %s2925_s17 = smov %s2263_s18  ;;  %s2926_s18 = smov %s2372_s30 }
 0x196   : > { %s2927_s19 = smov %s2275_s21  ;;  %s2928_s20 = smov %s2279_s22 }
 0x197   : > { %s2929_s21 = smov %s2932_s25  ;;  %s2930_s22 = smov %s2936_s26 }
 0x198   :  { %13 = sbr.rel (!%p11_p1) target bundleno = 5 (0x5), region = 120 }

// kernel: generator_forward.19
= control target key start
LH: loop header
LB: loop body
LE: loop exit
PB: predicated region body
PF: predicated region fallthrough
CT: control target
= control target key end

     0   :  { %s706_s9 = smov 0   ;;  %s772_s0 = inlined_call_operand.vmem [shape: bf16[4096,128], index: 0, kind: input, shape index: {}]   ;;  %s773_s1 = inlined_call_operand.vmem [shape: f32[1,128], index: 1, kind: output, shape index: {0}]   ;;  %s774_s2 = inlined_call_operand.vmem [shape: f32[1,128], index: 2, kind: output, shape index: {1}]  }
   0x1 LB: > { %s505_s10 = sadd.s32 4294967295, %s688_s9   ;;  %p508_p0 = scmp.ge.s32.totalorder %s688_s9, 1  ;;  %s688_s9 = sphi %s706_s9, %s13_s9  }
   0x2   : > { %p106_p1 = scmp.lt.s32.totalorder %s688_s9, 9 }
   0x4   : > { %p107_p2 = pnand %p508_p0, %p106_p1 }
   0x5   : > { %s509_s11 = sshll.u32 (!%p107_p2), %s505_s10, 6  ;;  %p511_p4 = scmp.ne.s32.totalorder (!%p107_p2), %s505_s10, 0 }
   0x6   : > { %110 = sbr.rel (%p107_p2) target bundleno = 165 (0xa5), region = 24  ;;  %p124_p3 = scmp.lt.s32.totalorder (!%p107_p2), %s509_s11, 511 }
   0xb   : > { %s776_s11 = smov (!%p124_p3, %s509_s11), 511  ;;  %132 = sbr.rel (%p511_p4) target bundleno = 18 (0x12), region = 28 }
   0xc   : > { %s510_s12 = sshll.u32 %s776_s11, 2 }
   0xd   : > { %s717_s15 = scalar_lea.vmem %s772_s0, %s510_s12 }
  0x10   : > { %v690_v0 = vmov 0.0  }
  0x11   : > { %133 = vst [vmem:[%s773_s1] sm:$0x1] %v690_v0  ;;  %134 = vst [vmem:[%s774_s2] sm:$0x1] %v690_v0 }
  0x12 PF: > { %v515_v1 = vld [vmem:[%s717_s15] sm:$0xff]   ;;  %v642_v2 = vld [vmem:[%s717_s15 + $0x8] sm:$0xff]   ;;  %v643_v7 = vld [vmem:[%s717_s15 + $0x10] sm:$0xff]  }
  0x13   : > { %v516_v3 = vunpack.c.l.bf16 %v515_v1  ;;  %v517_v4 = vunpack.c.h.bf16 %v515_v1  ;;  %v520_v5 = vunpack.c.l.bf16 %v642_v2  ;;  %v521_v8 = vunpack.c.h.bf16 %v642_v2  ;;  %v644_v12 = vld [vmem:[%s717_s15 + $0x18] sm:$0xff]   ;;  %v645_v17 = vld [vmem:[%s717_s15 + $0x20] sm:$0xff]   ;;  %v646_v22 = vld [vmem:[%s717_s15 + $0x28] sm:$0xff]  }
  0x14   : > { %v524_v10 = vunpack.c.l.bf16 %v643_v7  ;;  %v525_v13 = vunpack.c.h.bf16 %v643_v7  ;;  %v528_v15 = vunpack.c.l.bf16 %v644_v12  ;;  %v529_v18 = vunpack.c.h.bf16 %v644_v12  ;;  %v647_v30 = vld [vmem:[%s717_s15 + $0x30] sm:$0xff]   ;;  %v648_v39 = vld [vmem:[%s717_s15 + $0x38] sm:$0xff]   ;;  %v649_v48 = vld [vmem:[%s717_s15 + $0x40] sm:$0xff]  }
  0x15   : > { %v264_v6 = vadd.f32 %v517_v4, %v516_v3  ;;  %v532_v20 = vunpack.c.l.bf16 %v645_v17  ;;  %v533_v23 = vunpack.c.h.bf16 %v645_v17  ;;  %v336_v25 = vmul.f32 %v516_v3, %v516_v3  ;;  %v650_v57 = vld [vmem:[%s717_s15 + $0x48] sm:$0xff]   ;;  %v651_v2 = vld [vmem:[%s717_s15 + $0x50] sm:$0xff]  }
  0x16   : > { %v337_v26 = vmul.f32 %v517_v4, %v517_v4  ;;  %v536_v27 = vunpack.c.l.bf16 %v646_v22  ;;  %v338_v29 = vmul.f32 %v520_v5, %v520_v5  ;;  %v537_v31 = vunpack.c.h.bf16 %v646_v22 }
  0x17   : > { %v265_v9 = vadd.f32 %v520_v5, %v264_v6  ;;  %v339_v33 = vmul.f32 %v521_v8, %v521_v8  ;;  %v540_v35 = vunpack.c.l.bf16 %v647_v30  ;;  %v340_v37 = vmul.f32 %v524_v10, %v524_v10 }
  0x18   : > { %v400_v34 = vadd.f32 %v337_v26, %v336_v25  ;;  %v541_v40 = vunpack.c.h.bf16 %v647_v30  ;;  %v341_v42 = vmul.f32 %v525_v13, %v525_v13  ;;  %v544_v44 = vunpack.c.l.bf16 %v648_v39 }
  0x19   : > { %v266_v11 = vadd.f32 %v521_v8, %v265_v9  ;;  %v342_v46 = vmul.f32 %v528_v15, %v528_v15  ;;  %v545_v49 = vunpack.c.h.bf16 %v648_v39  ;;  %v343_v51 = vmul.f32 %v529_v18, %v529_v18 }
  0x1a   : > { %v401_v38 = vadd.f32 %v400_v34, %v338_v29  ;;  %v548_v53 = vunpack.c.l.bf16 %v649_v48  ;;  %v344_v55 = vmul.f32 %v532_v20, %v532_v20  ;;  %v549_v58 = vunpack.c.h.bf16 %v649_v48  ;;  %v654_v29 = vld [vmem:[%s717_s15 + $0x68] sm:$0xff]  }
  0x1b   : > { %v267_v14 = vadd.f32 %v524_v10, %v266_v11  ;;  %v345_v60 = vmul.f32 %v533_v23, %v533_v23  ;;  %v552_v62 = vunpack.c.l.bf16 %v650_v57  ;;  %v346_v0 = vmul.f32 %v536_v27, %v536_v27  ;;  %v652_v11 = vld [vmem:[%s717_s15 + $0x58] sm:$0xff]  }
  0x1c   : > { %v402_v43 = vadd.f32 %v401_v38, %v339_v33  ;;  %v553_v3 = vunpack.c.h.bf16 %v650_v57  ;;  %v347_v5 = vmul.f32 %v537_v31, %v537_v31  ;;  %v556_v7 = vunpack.c.l.bf16 %v651_v2  ;;  %v655_v38 = vld [vmem:[%s717_s15 + $0x70] sm:$0xff]  }
  0x1d   : > { %v268_v16 = vadd.f32 %v525_v13, %v267_v14  ;;  %v348_v9 = vmul.f32 %v540_v35, %v540_v35  ;;  %v557_v12 = vunpack.c.h.bf16 %v651_v2  ;;  %v349_v14 = vmul.f32 %v541_v40, %v541_v40 }
  0x1e   : > { %v403_v47 = vadd.f32 %v402_v43, %v340_v37  ;;  %v568_v34 = vunpack.c.l.bf16 %v654_v29  ;;  %v569_v39 = vunpack.c.h.bf16 %v654_v29  ;;  %v572_v43 = vunpack.c.l.bf16 %v655_v38 }
  0x1f   : > { %v269_v19 = vadd.f32 %v528_v15, %v268_v16  ;;  %v560_v16 = vunpack.c.l.bf16 %v652_v11  ;;  %v573_v48 = vunpack.c.h.bf16 %v655_v38 }
  0x20   : > { %v404_v52 = vadd.f32 %v403_v47, %v341_v42  ;;  %v656_v47 = vld [vmem:[%s717_s15 + $0x78] sm:$0xff]  }
  0x21   : > { %v270_v21 = vadd.f32 %v529_v18, %v269_v19  ;;  %v350_v18 = vmul.f32 %v544_v44, %v544_v44  ;;  %v577_v57 = vunpack.c.h.bf16 %v656_v47 }
  0x22   : > { %v405_v56 = vadd.f32 %v404_v52, %v342_v46  ;;  %v576_v52 = vunpack.c.l.bf16 %v656_v47 }
  0x23   : > { %v271_v24 = vadd.f32 %v532_v20, %v270_v21  ;;  %v653_v20 = vld [vmem:[%s717_s15 + $0x60] sm:$0xff]   ;;  %v561_v21 = vunpack.c.h.bf16 %v652_v11 }
  0x24   : > { %v406_v61 = vadd.f32 %v405_v56, %v343_v51  ;;  %v564_v25 = vunpack.c.l.bf16 %v653_v20  ;;  %v565_v30 = vunpack.c.h.bf16 %v653_v20  ;;  %v657_v56 = vld [vmem:[%s717_s15 + $0x80] sm:$0xff]  }
  0x25   : > { %v272_v28 = vadd.f32 %v533_v23, %v271_v24  ;;  %v351_v23 = vmul.f32 %v545_v49, %v545_v49  ;;  %v581_v2 = vunpack.c.h.bf16 %v657_v56 }
  0x26   : > { %v407_v1 = vadd.f32 %v406_v61, %v344_v55  ;;  %v580_v61 = vunpack.c.l.bf16 %v657_v56 }
  0x27   : > { %v273_v32 = vadd.f32 %v536_v27, %v272_v28  ;;  %v352_v27 = vmul.f32 %v548_v53, %v548_v53 }
  0x28   : > { %v408_v6 = vadd.f32 %v407_v1, %v345_v60  ;;  %v658_v1 = vld [vmem:[%s717_s15 + $0x88] sm:$0xff]  }
  0x29   : > { %v274_v36 = vadd.f32 %v537_v31, %v273_v32  ;;  %v353_v32 = vmul.f32 %v549_v58, %v549_v58  ;;  %v585_v11 = vunpack.c.h.bf16 %v658_v1 }
  0x2a   : > { %v409_v10 = vadd.f32 %v408_v6, %v346_v0  ;;  %v584_v6 = vunpack.c.l.bf16 %v658_v1 }
  0x2b   : > { %v275_v41 = vadd.f32 %v540_v35, %v274_v36  ;;  %v354_v36 = vmul.f32 %v552_v62, %v552_v62 }
  0x2c   : > { %v410_v15 = vadd.f32 %v409_v10, %v347_v5  ;;  %v659_v10 = vld [vmem:[%s717_s15 + $0x90] sm:$0xff]  }
  0x2d   : > { %v276_v45 = vadd.f32 %v541_v40, %v275_v41  ;;  %v355_v41 = vmul.f32 %v553_v3, %v553_v3  ;;  %v589_v20 = vunpack.c.h.bf16 %v659_v10 }
  0x2e   : > { %v411_v19 = vadd.f32 %v410_v15, %v348_v9  ;;  %v588_v15 = vunpack.c.l.bf16 %v659_v10 }
  0x2f   : > { %v277_v50 = vadd.f32 %v544_v44, %v276_v45  ;;  %v356_v45 = vmul.f32 %v556_v7, %v556_v7 }
  0x30   : > { %v412_v24 = vadd.f32 %v411_v19, %v349_v14  ;;  %v660_v19 = vld [vmem:[%s717_s15 + $0x98] sm:$0xff]  }
  0x31   : > { %v278_v54 = vadd.f32 %v545_v49, %v277_v50  ;;  %v357_v50 = vmul.f32 %v557_v12, %v557_v12  ;;  %v593_v29 = vunpack.c.h.bf16 %v660_v19 }
  0x32   : > { %v413_v28 = vadd.f32 %v412_v24, %v350_v18  ;;  %v592_v24 = vunpack.c.l.bf16 %v660_v19 }
  0x33   : > { %v279_v59 = vadd.f32 %v548_v53, %v278_v54  ;;  %v358_v54 = vmul.f32 %v560_v16, %v560_v16 }
  0x34   : > { %v414_v33 = vadd.f32 %v413_v28, %v351_v23  ;;  %v661_v28 = vld [vmem:[%s717_s15 + $0xa0] sm:$0xff]  }
  0x35   : > { %v280_v63 = vadd.f32 %v549_v58, %v279_v59  ;;  %v359_v59 = vmul.f32 %v561_v21, %v561_v21  ;;  %v597_v38 = vunpack.c.h.bf16 %v661_v28 }
  0x36   : > { %v415_v37 = vadd.f32 %v414_v33, %v352_v27  ;;  %v596_v33 = vunpack.c.l.bf16 %v661_v28 }
  0x37   : > { %v281_v4 = vadd.f32 %v552_v62, %v280_v63  ;;  %v360_v63 = vmul.f32 %v564_v25, %v564_v25 }
  0x38   : > { %v416_v42 = vadd.f32 %v415_v37, %v353_v32  ;;  %v662_v37 = vld [vmem:[%s717_s15 + $0xa8] sm:$0xff]  }
  0x39   : > { %v282_v8 = vadd.f32 %v553_v3, %v281_v4  ;;  %v361_v4 = vmul.f32 %v565_v30, %v565_v30  ;;  %v601_v47 = vunpack.c.h.bf16 %v662_v37 }
  0x3a   : > { %v417_v46 = vadd.f32 %v416_v42, %v354_v36  ;;  %v600_v42 = vunpack.c.l.bf16 %v662_v37 }
  0x3b   : > { %v283_v13 = vadd.f32 %v556_v7, %v282_v8  ;;  %v362_v8 = vmul.f32 %v568_v34, %v568_v34 }
  0x3c   : > { %v418_v51 = vadd.f32 %v417_v46, %v355_v41  ;;  %v663_v46 = vld [vmem:[%s717_s15 + $0xb0] sm:$0xff]  }
  0x3d   : > { %v284_v17 = vadd.f32 %v557_v12, %v283_v13  ;;  %v363_v13 = vmul.f32 %v569_v39, %v569_v39  ;;  %v605_v56 = vunpack.c.h.bf16 %v663_v46 }
  0x3e   : > { %v419_v55 = vadd.f32 %v418_v51, %v356_v45  ;;  %v604_v51 = vunpack.c.l.bf16 %v663_v46 }
  0x3f   : > { %v285_v22 = vadd.f32 %v560_v16, %v284_v17  ;;  %v364_v17 = vmul.f32 %v572_v43, %v572_v43 }
  0x40   : > { %v420_v60 = vadd.f32 %v419_v55, %v357_v50  ;;  %v664_v55 = vld [vmem:[%s717_s15 + $0xb8] sm:$0xff]  }
  0x41   : > { %v286_v26 = vadd.f32 %v561_v21, %v285_v22  ;;  %v365_v22 = vmul.f32 %v573_v48, %v573_v48  ;;  %v609_v1 = vunpack.c.h.bf16 %v664_v55 }
  0x42   : > { %v421_v0 = vadd.f32 %v420_v60, %v358_v54  ;;  %v608_v60 = vunpack.c.l.bf16 %v664_v55 }
  0x43   : > { %v287_v31 = vadd.f32 %v564_v25, %v286_v26  ;;  %v366_v26 = vmul.f32 %v576_v52, %v576_v52 }
  0x44   : > { %v422_v5 = vadd.f32 %v421_v0, %v359_v59  ;;  %v665_v0 = vld [vmem:[%s717_s15 + $0xc0] sm:$0xff]  }
  0x45   : > { %v288_v35 = vadd.f32 %v565_v30, %v287_v31  ;;  %v367_v31 = vmul.f32 %v577_v57, %v577_v57  ;;  %v613_v10 = vunpack.c.h.bf16 %v665_v0 }
  0x46   : > { %v423_v9 = vadd.f32 %v422_v5, %v360_v63  ;;  %v612_v5 = vunpack.c.l.bf16 %v665_v0 }
  0x47   : > { %v289_v40 = vadd.f32 %v568_v34, %v288_v35  ;;  %v368_v35 = vmul.f32 %v580_v61, %v580_v61 }
  0x48   : > { %v424_v14 = vadd.f32 %v423_v9, %v361_v4  ;;  %v666_v9 = vld [vmem:[%s717_s15 + $0xc8] sm:$0xff]  }
  0x49   : > { %v290_v44 = vadd.f32 %v569_v39, %v289_v40  ;;  %v369_v40 = vmul.f32 %v581_v2, %v581_v2  ;;  %v617_v19 = vunpack.c.h.bf16 %v666_v9 }
  0x4a   : > { %v425_v18 = vadd.f32 %v424_v14, %v362_v8  ;;  %v616_v14 = vunpack.c.l.bf16 %v666_v9 }
  0x4b   : > { %v291_v49 = vadd.f32 %v572_v43, %v290_v44  ;;  %v370_v44 = vmul.f32 %v584_v6, %v584_v6 }
  0x4c   : > { %v426_v23 = vadd.f32 %v425_v18, %v363_v13  ;;  %v667_v18 = vld [vmem:[%s717_s15 + $0xd0] sm:$0xff]  }
  0x4d   : > { %v292_v53 = vadd.f32 %v573_v48, %v291_v49  ;;  %v371_v49 = vmul.f32 %v585_v11, %v585_v11  ;;  %v621_v28 = vunpack.c.h.bf16 %v667_v18 }
  0x4e   : > { %v427_v27 = vadd.f32 %v426_v23, %v364_v17  ;;  %v620_v23 = vunpack.c.l.bf16 %v667_v18 }
  0x4f   : > { %v293_v58 = vadd.f32 %v576_v52, %v292_v53  ;;  %v372_v53 = vmul.f32 %v588_v15, %v588_v15 }
  0x50   : > { %v428_v32 = vadd.f32 %v427_v27, %v365_v22  ;;  %v668_v27 = vld [vmem:[%s717_s15 + $0xd8] sm:$0xff]  }
  0x51   : > { %v294_v62 = vadd.f32 %v577_v57, %v293_v58  ;;  %v373_v58 = vmul.f32 %v589_v20, %v589_v20  ;;  %v625_v37 = vunpack.c.h.bf16 %v668_v27 }
  0x52   : > { %v429_v36 = vadd.f32 %v428_v32, %v366_v26  ;;  %v624_v32 = vunpack.c.l.bf16 %v668_v27 }
  0x53   : > { %v295_v3 = vadd.f32 %v580_v61, %v294_v62  ;;  %v374_v62 = vmul.f32 %v592_v24, %v592_v24 }
  0x54   : > { %v430_v41 = vadd.f32 %v429_v36, %v367_v31  ;;  %v669_v36 = vld [vmem:[%s717_s15 + $0xe0] sm:$0xff]  }
  0x55   : > { %v296_v7 = vadd.f32 %v581_v2, %v295_v3  ;;  %v375_v3 = vmul.f32 %v593_v29, %v593_v29  ;;  %v629_v46 = vunpack.c.h.bf16 %v669_v36 }
  0x56   : > { %v431_v45 = vadd.f32 %v430_v41, %v368_v35  ;;  %v628_v41 = vunpack.c.l.bf16 %v669_v36 }
  0x57   : > { %v297_v12 = vadd.f32 %v584_v6, %v296_v7  ;;  %v376_v7 = vmul.f32 %v596_v33, %v596_v33 }
  0x58   : > { %v432_v50 = vadd.f32 %v431_v45, %v369_v40  ;;  %v670_v45 = vld [vmem:[%s717_s15 + $0xe8] sm:$0xff]  }
  0x59   : > { %v298_v16 = vadd.f32 %v585_v11, %v297_v12  ;;  %v377_v12 = vmul.f32 %v597_v38, %v597_v38  ;;  %v633_v55 = vunpack.c.h.bf16 %v670_v45 }
  0x5a   : > { %v433_v54 = vadd.f32 %v432_v50, %v370_v44  ;;  %v632_v50 = vunpack.c.l.bf16 %v670_v45 }
  0x5b   : > { %v299_v21 = vadd.f32 %v588_v15, %v298_v16  ;;  %v378_v16 = vmul.f32 %v600_v42, %v600_v42 }
  0x5c   : > { %v434_v59 = vadd.f32 %v433_v54, %v371_v49  ;;  %v671_v54 = vld [vmem:[%s717_s15 + $0xf0] sm:$0xff]  }
  0x5d   : > { %v300_v25 = vadd.f32 %v589_v20, %v299_v21  ;;  %v379_v21 = vmul.f32 %v601_v47, %v601_v47  ;;  %v637_v0 = vunpack.c.h.bf16 %v671_v54 }
  0x5e   : > { %v435_v63 = vadd.f32 %v434_v59, %v372_v53  ;;  %v636_v59 = vunpack.c.l.bf16 %v671_v54 }
  0x5f   : > { %v301_v30 = vadd.f32 %v592_v24, %v300_v25  ;;  %v380_v25 = vmul.f32 %v604_v51, %v604_v51 }
  0x60   : > { %v436_v4 = vadd.f32 %v435_v63, %v373_v58  ;;  %v672_v63 = vld [vmem:[%s717_s15 + $0xf8] sm:$0xff]  }
  0x61   : > { %v302_v34 = vadd.f32 %v593_v29, %v301_v30  ;;  %v381_v30 = vmul.f32 %v605_v56, %v605_v56 }
  0x62   : > { %v437_v8 = vadd.f32 %v436_v4, %v374_v62  ;;  %v640_v4 = vunpack.c.l.bf16 %v672_v63 }
  0x63   : > { %v303_v39 = vadd.f32 %v596_v33, %v302_v34  ;;  %v382_v34 = vmul.f32 %v608_v60, %v608_v60 }
  0x64   : > { %v438_v13 = vadd.f32 %v437_v8, %v375_v3  ;;  %v641_v8 = vunpack.c.h.bf16 %v672_v63 }
  0x65   : > { %v304_v43 = vadd.f32 %v597_v38, %v303_v39  ;;  %v383_v39 = vmul.f32 %v609_v1, %v609_v1 }
  0x66   : > { %v439_v17 = vadd.f32 %v438_v13, %v376_v7  ;;  %v392_v13 = vmul.f32 %v628_v41, %v628_v41 }
  0x67   : > { %v305_v48 = vadd.f32 %v600_v42, %v304_v43  ;;  %v384_v43 = vmul.f32 %v612_v5, %v612_v5 }
  0x68   : > { %v440_v22 = vadd.f32 %v439_v17, %v377_v12 }
  0x69   : > { %v306_v52 = vadd.f32 %v601_v47, %v305_v48  ;;  %v385_v48 = vmul.f32 %v613_v10, %v613_v10 }
  0x6a   : > { %v441_v26 = vadd.f32 %v440_v22, %v378_v16  ;;  %v393_v16 = vmul.f32 %v629_v46, %v629_v46  ;;  %v395_v22 = vmul.f32 %v633_v55, %v633_v55 }
  0x6b   : > { %v307_v57 = vadd.f32 %v604_v51, %v306_v52  ;;  %v386_v52 = vmul.f32 %v616_v14, %v616_v14 }
  0x6c   : > { %v442_v31 = vadd.f32 %v441_v26, %v379_v21 }
  0x6d   : > { %v308_v61 = vadd.f32 %v605_v56, %v307_v57  ;;  %v387_v57 = vmul.f32 %v617_v19, %v617_v19 }
  0x6e   : > { %v443_v35 = vadd.f32 %v442_v31, %v380_v25  ;;  %v396_v25 = vmul.f32 %v636_v59, %v636_v59 }
  0x6f   : > { %v309_v2 = vadd.f32 %v608_v60, %v308_v61  ;;  %v388_v61 = vmul.f32 %v620_v23, %v620_v23 }
  0x70   : > { %v444_v40 = vadd.f32 %v443_v35, %v381_v30  ;;  %v263_v30 = vld [vmem:[%s773_s1] sm:$0x1]  ;;  %v399_v35 = vmul.f32 %v641_v8, %v641_v8 }
  0x71   : > { %v310_v6 = vadd.f32 %v609_v1, %v309_v2  ;;  %v389_v2 = vmul.f32 %v621_v28, %v621_v28 }
  0x72   : > { %v445_v44 = vadd.f32 %v444_v40, %v382_v34 }
  0x73   : > { %v311_v11 = vadd.f32 %v612_v5, %v310_v6  ;;  %v390_v6 = vmul.f32 %v624_v32, %v624_v32 }
  0x74   : > { %v446_v49 = vadd.f32 %v445_v44, %v383_v39  ;;  %v335_v44 = vld [vmem:[%s774_s2] sm:$0x1] }
  0x75   : > { %v312_v15 = vadd.f32 %v613_v10, %v311_v11  ;;  %v391_v10 = vmul.f32 %v625_v37, %v625_v37 }
  0x76   : > { %v447_v53 = vadd.f32 %v446_v49, %v384_v43 }
  0x77   : > { %v313_v20 = vadd.f32 %v616_v14, %v312_v15 }
  0x78   : > { %v448_v58 = vadd.f32 %v447_v53, %v385_v48 }
  0x79   : > { %v314_v24 = vadd.f32 %v617_v19, %v313_v20  ;;  %v394_v19 = vmul.f32 %v632_v50, %v632_v50 }
  0x7a   : > { %v449_v62 = vadd.f32 %v448_v58, %v386_v52 }
  0x7b   : > { %v315_v29 = vadd.f32 %v620_v23, %v314_v24 }
  0x7c   : > { %v450_v3 = vadd.f32 %v449_v62, %v387_v57 }
  0x7d   : > { %v316_v33 = vadd.f32 %v621_v28, %v315_v29  ;;  %v397_v28 = vmul.f32 %v637_v0, %v637_v0 }
  0x7e   : > { %v451_v7 = vadd.f32 %v450_v3, %v388_v61 }
  0x7f   : > { %v317_v38 = vadd.f32 %v624_v32, %v316_v33  ;;  %v398_v32 = vmul.f32 %v640_v4, %v640_v4 }
  0x80   : > { %v452_v11 = vadd.f32 %v451_v7, %v389_v2 }
  0x81   : > { %v318_v42 = vadd.f32 %v625_v37, %v317_v38 }
  0x82   : > { %v453_v14 = vadd.f32 %v452_v11, %v390_v6 }
  0x83   : > { %v319_v47 = vadd.f32 %v628_v41, %v318_v42 }
  0x84   : > { %v454_v17 = vadd.f32 %v453_v14, %v391_v10 }
  0x85   : > { %v320_v51 = vadd.f32 %v629_v46, %v319_v47 }
  0x86   : > { %v455_v20 = vadd.f32 %v454_v17, %v392_v13 }
  0x87   : > { %v321_v56 = vadd.f32 %v632_v50, %v320_v51 }
  0x88   : > { %v456_v23 = vadd.f32 %v455_v20, %v393_v16 }
  0x89   : > { %v322_v60 = vadd.f32 %v633_v55, %v321_v56 }
  0x8a   : > { %v457_v26 = vadd.f32 %v456_v23, %v394_v19 }
  0x8b   : > { %v323_v1 = vadd.f32 %v636_v59, %v322_v60 }
  0x8c   : > { %v458_v29 = vadd.f32 %v457_v26, %v395_v22 }
  0x8d   : > { %v324_v5 = vadd.f32 %v637_v0, %v323_v1 }
  0x8e   : > { %v459_v33 = vadd.f32 %v458_v29, %v396_v25 }
  0x8f   : > { %v325_v9 = vadd.f32 %v640_v4, %v324_v5 }
  0x90   : > { %v460_v36 = vadd.f32 %v459_v33, %v397_v28 }
  0x91   : > { %v326_v12 = vadd.f32 %v641_v8, %v325_v9 }
  0x92   : > { %v461_v37 = vadd.f32 %v460_v36, %v398_v32 }
  0x93   : > { %v327_v15 = vrot.slane %v326_v12, 4 }
  0x94   : > { %v462_v38 = vadd.f32 %v461_v37, %v399_v35 }
  0x95   : > { %v328_v18 = vadd.f32 %v327_v15, %v326_v12 }
  0x96   : > { %v463_v39 = vrot.slane %v462_v38, 4 }
  0x97   : > { %v329_v21 = vrot.slane %v328_v18, 2 }
  0x98   : > { %v464_v40 = vadd.f32 %v463_v39, %v462_v38 }
  0x99   : > { %v330_v24 = vadd.f32 %v329_v21, %v328_v18 }
  0x9a   : > { %v465_v41 = vrot.slane %v464_v40, 2 }
  0x9b   : > { %v331_v27 = vrot.slane %v330_v24, 1 }
  0x9c   : > { %v466_v42 = vadd.f32 %v465_v41, %v464_v40 }
  0x9d   : > { %v332_v31 = vadd.f32 %v331_v27, %v330_v24 }
  0x9e   : > { %v467_v43 = vrot.slane %v466_v42, 1 }
  0x9f   : > { %v333_v34 = vadd.f32 %v332_v31, %v263_v30 }
  0xa0   : > { %v468_v45 = vadd.f32 %v467_v43, %v466_v42 }
  0xa1   : > { %334 = vst [vmem:[%s773_s1] sm:$0x1] %v333_v34 }
  0xa2   : > { %v469_v46 = vadd.f32 %v468_v45, %v335_v44 }
  0xa4   : > { %470 = vst [vmem:[%s774_s2] sm:$0x1] %v469_v46 }
  0xa5 PF: > { %s13_s9 = sadd.s32 1, %s688_s9  }
  0xa6   : > { %p10_p5 = scmp.ge.s32.totalorder %s13_s9, 10  }
  0xa8   :  { %12 = sbr.rel (!%p10_p5) target bundleno = 1 (0x1), region = 62 }

// kernel: generator_forward.20
= control target key start
LH: loop header
LB: loop body
LE: loop exit
PB: predicated region body
PF: predicated region fallthrough
CT: control target
= control target key end

     0   :  { %s1402_s15 = smov 0   ;;  %s1404_s16 = smov 0   ;;  %s1581_s0 = inlined_call_operand.vmem [shape: bf16[8192,64], index: 0, kind: input, shape index: {}]   ;;  %s1582_s1 = inlined_call_operand.vmem [shape: f32[1,64], index: 1, kind: input, shape index: {}]   ;;  %s1583_s2 = inlined_call_operand.vmem [shape: f32[1,64], index: 2, kind: input, shape index: {}]   ;;  %s1584_s3 = inlined_call_operand.vmem [shape: bf16[64,128], index: 3, kind: input, shape index: {}]   ;;  %s1585_s4 = inlined_call_operand.vmem [shape: bf16[8192,128], index: 4, kind: output, shape index: {}]  }
   0x1   :  { %s1406_s17 = smov 0  }
   0x2 LB: > { %s26_s18 = sadd.s32 1, %s1371_s16  ;;  %p990_p0 = scmp.ge.s32.totalorder %s1375_s17, 1  ;;  %s1375_s17 = sphi %s1406_s17, %s14_s17   ;;  %s1371_s16 = sphi %s1404_s16, %s1587_s16   ;;  %s1367_s15 = sphi %s1402_s15, %s1586_s15  }
   0x3   : > { %p28_p1 = scmp.ge.s32.totalorder %s26_s18, 32  ;;  %p186_p2 = scmp.lt.s32.totalorder %s1375_s17, 33 }
   0x5   : > { %s1589_s18 = smov (%p28_p1, %s26_s18), 0  ;;  %p187_p3 = pnand %p990_p0, %p186_p2 }
   0x6   : > { %s991_s21 = sshll.u32 (!%p187_p3), %s1367_s15, 5 }
   0x7   : > { %190 = sbr.rel (%p187_p3) target bundleno = 275 (0x113), region = 36  ;;  %p220_p4 = scmp.lt.s32.totalorder (!%p187_p3), %s991_s21, 1023 }
   0xc   : > { %v1349_v0 = vld [vmem:[%s1584_s3 + $0x18] sm:$0xff]   ;;  %v1350_v1 = vld [vmem:[%s1584_s3 + $0x10] sm:$0xff]   ;;  %s1591_s21 = smov (!%p220_p4, %s991_s21), 1023  ;;  %v1351_v2 = vld [vmem:[%s1584_s3 + $0x8] sm:$0xff]   ;;  %vm525_vm0 = vcmask 523264  }
   0xd   : > { %1277 = vmatprep.subr.bf16.mxu0 %v1349_v0  ;;  %1317 = vmatprep.subr.bf16.mxu1 %v1349_v0  ;;  %s992_s26 = sshll.u32 %s1591_s21, 2  ;;  %v1442_v3 = vld [vmem:[%s1582_s1] ss:$0 sm:$0xff] }
   0xe   : > { %1278 = vmatpush3.bf16.msra.mxu0 %v1349_v0  ;;  %1321 = vmatpush3.bf16.msra.mxu1 %v1349_v0  ;;  %s1437_s29 = scalar_lea.vmem %s1581_s0, %s992_s26  ;;  %v1352_v7 = vld [vmem:[%s1584_s3] sm:$0xff]   ;;  %s1554_s12 = scalar_lea.vmem %s1585_s4, %s992_s26 }
   0xf   : > { %1279 = vmatprep.subr.bf16.mxu0 %v1350_v1  ;;  %1318 = vmatprep.subr.bf16.mxu1 %v1350_v1  ;;  %v1084_v4 = vld [vmem:[%s1437_s29] sm:$0xff]   ;;  %v1227_v6 = vld [vmem:[%s1437_s29 + $0x8] sm:$0xff]   ;;  %v1228_v13 = vld [vmem:[%s1437_s29 + $0x10] sm:$0xff]  }
  0x10   : > { %v1234_v5 = vld [vmem:[%s1437_s29 + $0x40] sm:$0xff]   ;;  %v1085_v8 = vunpack.c.l.bf16 %v1084_v4  ;;  %v1086_v9 = vunpack.c.h.bf16 %v1084_v4  ;;  %v1235_v12 = vld [vmem:[%s1437_s29 + $0x48] sm:$0xff]   ;;  %v1089_v15 = vunpack.c.l.bf16 %v1227_v6  ;;  %v1090_v16 = vunpack.c.h.bf16 %v1227_v6  ;;  %v1236_v41 = vld [vmem:[%s1437_s29 + $0x50] sm:$0xff]  }
  0x11   : > { %v1117_v10 = vunpack.c.l.bf16 %v1234_v5  ;;  %v1118_v11 = vunpack.c.h.bf16 %v1234_v5  ;;  %v1455_v14 = vld [vmem:[%s1583_s2] ss:$0 sm:$0xff]  ;;  %v1121_v17 = vunpack.c.l.bf16 %v1235_v12  ;;  %v1122_v18 = vunpack.c.h.bf16 %v1235_v12  ;;  %v1229_v54 = vld [vmem:[%s1437_s29 + $0x18] sm:$0xff]  }
  0x12   : > { %1280 = vmatpush3.bf16.msra.mxu0 %v1350_v1  ;;  %1322 = vmatpush3.bf16.msra.mxu1 %v1350_v1  ;;  %v310_v19 = vmul.f32 %v1085_v8, %v1442_v3  ;;  %v311_v20 = vmul.f32 %v1086_v9, %v1442_v3  ;;  %v312_v23 = vmul.f32 %v1089_v15, %v1442_v3  ;;  %v1093_v26 = vunpack.c.l.bf16 %v1228_v13  ;;  %v1237_v1 = vld [vmem:[%s1437_s29 + $0x58] sm:$0xff]  }
  0x13   : > { %1281 = vmatprep.subr.bf16.mxu0 %v1351_v2  ;;  %1319 = vmatprep.subr.bf16.mxu1 %v1351_v2  ;;  %v326_v21 = vmul.f32 %v1117_v10, %v1442_v3  ;;  %v327_v22 = vmul.f32 %v1118_v11, %v1442_v3  ;;  %v313_v24 = vmul.f32 %v1090_v16, %v1442_v3  ;;  %v1094_v30 = vunpack.c.h.bf16 %v1228_v13 }
  0x14   : > { %v328_v25 = vmul.f32 %v1121_v17, %v1442_v3  ;;  %v349_v27 = vadd.f32 %v1455_v14, %v310_v19  ;;  %v350_v28 = vadd.f32 %v1455_v14, %v311_v20  ;;  %v351_v32 = vadd.f32 %v1455_v14, %v312_v23 }
  0x15   : > { %v365_v29 = vadd.f32 %v1455_v14, %v326_v21  ;;  %v366_v31 = vadd.f32 %v1455_v14, %v327_v22  ;;  %v352_v33 = vadd.f32 %v1455_v14, %v313_v24  ;;  %v329_v34 = vmul.f32 %v1122_v18, %v1442_v3  ;;  %v1230_v21 = vld [vmem:[%s1437_s29 + $0x20] sm:$0xff]  }
  0x16   : > { %1282 = vmatpush3.bf16.msra.mxu0 %v1351_v2  ;;  %1323 = vmatpush3.bf16.msra.mxu1 %v1351_v2  ;;  %vm381_vm1 = vcmp.ge.f32.partialorder %v349_v27, 0.0  ;;  %vm382_vm2 = vcmp.ge.f32.partialorder %v350_v28, 0.0  ;;  %v413_v35 = vmul.f32 0.2, %v349_v27  ;;  %v414_v36 = vmul.f32 0.2, %v350_v28 }
  0x17   : > { %1283 = vmatprep.subr.bf16.mxu0 %v1352_v7  ;;  %1320 = vmatprep.subr.bf16.mxu1 %v1352_v7  ;;  %vm397_vm3 = vcmp.ge.f32.partialorder %v365_v29, 0.0  ;;  %vm398_vm4 = vcmp.ge.f32.partialorder %v366_v31, 0.0  ;;  %v429_v37 = vmul.f32 0.2, %v365_v29  ;;  %v430_v38 = vmul.f32 0.2, %v366_v31 }
  0x18   : > { %v445_v39 = vsel %vm381_vm1, %v349_v27, %v413_v35  ;;  %v446_v40 = vsel %vm382_vm2, %v350_v28, %v414_v36  ;;  %vm383_vm5 = vcmp.ge.f32.partialorder %v351_v32, 0.0  ;;  %vm384_vm6 = vcmp.ge.f32.partialorder %v352_v33, 0.0 }
  0x19   : > { %v477_v42 = vpack.c.bf16 %v446_v40, %v445_v39  ;;  %v461_v43 = vsel %vm397_vm3, %v365_v29, %v429_v37  ;;  %v462_v44 = vsel %vm398_vm4, %v366_v31, %v430_v38  ;;  %v415_v45 = vmul.f32 0.2, %v351_v32 }
  0x1a   : > { %1284 = vmatpush3.bf16.msra.mxu0 %v1352_v7  ;;  %1324 = vmatpush3.bf16.msra.mxu1 %v1352_v7  ;;  %v485_v46 = vpack.c.bf16 %v462_v44, %v461_v43  ;;  %v416_v47 = vmul.f32 0.2, %v352_v33  ;;  %v367_v48 = vadd.f32 %v1455_v14, %v328_v25  ;;  %v368_v49 = vadd.f32 %v1455_v14, %v329_v34  ;;  %v1231_v43 = vld [vmem:[%s1437_s29 + $0x28] sm:$0xff]  }
  0x1b   : > { %1285 = vmatprep.mubr.msk.bf16.mxu0 %vm525_vm0, %v477_v42  ;;  %v447_v50 = vsel %vm383_vm5, %v351_v32, %v415_v45  ;;  %v314_v51 = vmul.f32 %v1093_v26, %v1442_v3  ;;  %v315_v52 = vmul.f32 %v1094_v30, %v1442_v3  ;;  %v1125_v53 = vunpack.c.l.bf16 %v1236_v41  ;;  %v1238_v32 = vld [vmem:[%s1437_s29 + $0x60] sm:$0xff]   ;;  %v1239_v44 = vld [vmem:[%s1437_s29 + $0x68] sm:$0xff]  }
  0x1c   : > { %1301 = vmatprep.mubr.msk.bf16.mxu1 %vm525_vm0, %v485_v46  ;;  %v448_v55 = vsel %vm384_vm6, %v352_v33, %v416_v47  ;;  %vm399_vm7 = vcmp.ge.f32.partialorder %v367_v48, 0.0  ;;  %vm400_vm8 = vcmp.ge.f32.partialorder %v368_v49, 0.0  ;;  %v431_v56 = vmul.f32 0.2, %v367_v48 }
  0x1d   : > { %v478_v57 = vpack.c.bf16 %v448_v55, %v447_v50  ;;  %v432_v58 = vmul.f32 0.2, %v368_v49  ;;  %v353_v59 = vadd.f32 %v1455_v14, %v314_v51  ;;  %v354_v60 = vadd.f32 %v1455_v14, %v315_v52 }
  0x1e   : > { %v463_v61 = vsel %vm399_vm7, %v367_v48, %v431_v56  ;;  %v1126_v62 = vunpack.c.h.bf16 %v1236_v41  ;;  %v330_v63 = vmul.f32 %v1125_v53, %v1442_v3  ;;  %v1097_v0 = vunpack.c.l.bf16 %v1229_v54 }
  0x1f   : > { %1286 = vmatmul.mubr.msk.bf16.vlgmr.msra.gmra.mxu0 %vm525_vm0, %v478_v57  ;;  %v464_v2 = vsel %vm400_vm8, %v368_v49, %v432_v58  ;;  %vm385_vm9 = vcmp.ge.f32.partialorder %v353_v59, 0.0  ;;  %vm386_vm10 = vcmp.ge.f32.partialorder %v354_v60, 0.0  ;;  %v417_v4 = vmul.f32 0.2, %v353_v59 }
  0x20   : > { %v486_v5 = vpack.c.bf16 %v464_v2, %v463_v61  ;;  %v418_v6 = vmul.f32 0.2, %v354_v60  ;;  %v331_v7 = vmul.f32 %v1126_v62, %v1442_v3  ;;  %v369_v8 = vadd.f32 %v1455_v14, %v330_v63  ;;  %v1232_v2 = vld [vmem:[%s1437_s29 + $0x30] sm:$0xff]  }
  0x21   : > { %v449_v9 = vsel %vm385_vm9, %v353_v59, %v417_v4  ;;  %v1098_v10 = vunpack.c.h.bf16 %v1229_v54  ;;  %v316_v11 = vmul.f32 %v1097_v0, %v1442_v3  ;;  %v1129_v12 = vunpack.c.l.bf16 %v1237_v1 }
  0x22   : > { %1302 = vmatmul.mubr.msk.bf16.vlgmr.msra.gmra.mxu1 %vm525_vm0, %v486_v5  ;;  %v450_v13 = vsel %vm386_vm10, %v354_v60, %v418_v6  ;;  %v370_v15 = vadd.f32 %v1455_v14, %v331_v7  ;;  %vm401_vm11 = vcmp.ge.f32.partialorder %v369_v8, 0.0  ;;  %v433_v16 = vmul.f32 0.2, %v369_v8 }
  0x23   : > { %v479_v17 = vpack.c.bf16 %v450_v13, %v449_v9  ;;  %v317_v18 = vmul.f32 %v1098_v10, %v1442_v3  ;;  %v355_v19 = vadd.f32 %v1455_v14, %v316_v11  ;;  %v1130_v20 = vunpack.c.h.bf16 %v1237_v1 }
  0x24   : > { %vm402_vm12 = vcmp.ge.f32.partialorder %v370_v15, 0.0  ;;  %v434_v22 = vmul.f32 0.2, %v370_v15  ;;  %v465_v23 = vsel %vm401_vm11, %v369_v8, %v433_v16  ;;  %v332_v24 = vmul.f32 %v1129_v12, %v1442_v3 }
  0x25   : > { %1289 = vmatprep.mubr.msk.bf16.mxu0 %vm525_vm0, %v479_v17  ;;  %v356_v25 = vadd.f32 %v1455_v14, %v317_v18  ;;  %vm387_vm13 = vcmp.ge.f32.partialorder %v355_v19, 0.0  ;;  %v419_v26 = vmul.f32 0.2, %v355_v19  ;;  %v333_v27 = vmul.f32 %v1130_v20, %v1442_v3  ;;  %v1240_v17 = vld [vmem:[%s1437_s29 + $0x70] sm:$0xff]  }
  0x26   : > { %v466_v28 = vsel %vm402_vm12, %v370_v15, %v434_v22  ;;  %v371_v29 = vadd.f32 %v1455_v14, %v332_v24  ;;  %v1101_v30 = vunpack.c.l.bf16 %v1230_v21  ;;  %v1102_v31 = vunpack.c.h.bf16 %v1230_v21 }
  0x27   : > { %v487_v33 = vpack.c.bf16 %v466_v28, %v465_v23  ;;  %vm388_vm14 = vcmp.ge.f32.partialorder %v356_v25, 0.0  ;;  %v420_v34 = vmul.f32 0.2, %v356_v25  ;;  %v451_v35 = vsel %vm387_vm13, %v355_v19, %v419_v26 }
  0x28   : > { %v372_v36 = vadd.f32 %v1455_v14, %v333_v27  ;;  %vm403_vm15 = vcmp.ge.f32.partialorder %v371_v29, 0.0  ;;  %v435_v37 = vmul.f32 0.2, %v371_v29  ;;  %v318_v38 = vmul.f32 %v1101_v30, %v1442_v3 }
  0x29   : > { %1305 = vmatprep.mubr.msk.bf16.mxu1 %vm525_vm0, %v487_v33  ;;  %v452_v39 = vsel %vm388_vm14, %v356_v25, %v420_v34  ;;  %v319_v40 = vmul.f32 %v1102_v31, %v1442_v3  ;;  %v1133_v41 = vunpack.c.l.bf16 %v1238_v32  ;;  %v1134_v42 = vunpack.c.h.bf16 %v1238_v32  ;;  %v1233_v25 = vld [vmem:[%s1437_s29 + $0x38] sm:$0xff]  }
  0x2a   : > { %v480_v45 = vpack.c.bf16 %v452_v39, %v451_v35  ;;  %vm404_vm1 = vcmp.ge.f32.partialorder %v372_v36, 0.0  ;;  %v436_v46 = vmul.f32 0.2, %v372_v36  ;;  %v467_v47 = vsel %vm403_vm15, %v371_v29, %v435_v37  ;;  %v1241_v37 = vld [vmem:[%s1437_s29 + $0x78] sm:$0xff]  }
  0x2b   : > { %v357_v48 = vadd.f32 %v1455_v14, %v318_v38  ;;  %v358_v49 = vadd.f32 %v1455_v14, %v319_v40  ;;  %v334_v50 = vmul.f32 %v1133_v41, %v1442_v3  ;;  %v335_v51 = vmul.f32 %v1134_v42, %v1442_v3 }
  0x2c   : > { %1290 = vmatmul.mubr.msk.bf16.gmra.mxu0 %vm525_vm0, %v480_v45  ;;  %v468_v52 = vsel %vm404_vm1, %v372_v36, %v436_v46  ;;  %v1105_v53 = vunpack.c.l.bf16 %v1231_v43  ;;  %v1106_v54 = vunpack.c.h.bf16 %v1231_v43  ;;  %v1137_v55 = vunpack.c.l.bf16 %v1239_v44 }
  0x2d   : > { %v488_v56 = vpack.c.bf16 %v468_v52, %v467_v47  ;;  %vm389_vm2 = vcmp.ge.f32.partialorder %v357_v48, 0.0  ;;  %vm390_vm3 = vcmp.ge.f32.partialorder %v358_v49, 0.0  ;;  %v421_v57 = vmul.f32 0.2, %v357_v48 }
  0x2e   : > { %v422_v58 = vmul.f32 0.2, %v358_v49  ;;  %v373_v59 = vadd.f32 %v1455_v14, %v334_v50  ;;  %v374_v60 = vadd.f32 %v1455_v14, %v335_v51  ;;  %v320_v61 = vmul.f32 %v1105_v53, %v1442_v3 }
  0x2f   : > { %1306 = vmatmul.mubr.msk.bf16.gmra.mxu1 %vm525_vm0, %v488_v56  ;;  %v453_v62 = vsel %vm389_vm2, %v357_v48, %v421_v57  ;;  %v321_v63 = vmul.f32 %v1106_v54, %v1442_v3  ;;  %v1138_v0 = vunpack.c.h.bf16 %v1239_v44  ;;  %v336_v1 = vmul.f32 %v1137_v55, %v1442_v3 }
  0x30   : > { %v454_v4 = vsel %vm390_vm3, %v358_v49, %v422_v58  ;;  %vm405_vm4 = vcmp.ge.f32.partialorder %v373_v59, 0.0  ;;  %vm406_vm5 = vcmp.ge.f32.partialorder %v374_v60, 0.0  ;;  %v437_v5 = vmul.f32 0.2, %v373_v59 }
  0x31   : > { %v481_v6 = vpack.c.bf16 %v454_v4, %v453_v62  ;;  %v438_v7 = vmul.f32 0.2, %v374_v60  ;;  %v359_v8 = vadd.f32 %v1455_v14, %v320_v61  ;;  %v360_v9 = vadd.f32 %v1455_v14, %v321_v63 }
  0x32   : > { %v469_v10 = vsel %vm405_vm4, %v373_v59, %v437_v5  ;;  %v337_v11 = vmul.f32 %v1138_v0, %v1442_v3  ;;  %v375_v12 = vadd.f32 %v1455_v14, %v336_v1  ;;  %v1109_v13 = vunpack.c.l.bf16 %v1232_v2 }
  0x33   : > { %1293 = vmatprep.mubr.msk.bf16.mxu0 %vm525_vm0, %v481_v6  ;;  %v470_v15 = vsel %vm406_vm5, %v374_v60, %v438_v7  ;;  %vm391_vm6 = vcmp.ge.f32.partialorder %v359_v8, 0.0  ;;  %vm392_vm7 = vcmp.ge.f32.partialorder %v360_v9, 0.0  ;;  %v423_v16 = vmul.f32 0.2, %v359_v8 }
  0x34   : > { %v489_v18 = vpack.c.bf16 %v470_v15, %v469_v10  ;;  %v424_v19 = vmul.f32 0.2, %v360_v9  ;;  %v376_v20 = vadd.f32 %v1455_v14, %v337_v11  ;;  %vm407_vm8 = vcmp.ge.f32.partialorder %v375_v12, 0.0 }
  0x35   : > { %v455_v21 = vsel %vm391_vm6, %v359_v8, %v423_v16  ;;  %v439_v22 = vmul.f32 0.2, %v375_v12  ;;  %v1110_v23 = vunpack.c.h.bf16 %v1232_v2  ;;  %v322_v24 = vmul.f32 %v1109_v13, %v1442_v3 }
  0x36   : > { %1309 = vmatprep.mubr.msk.bf16.mxu1 %vm525_vm0, %v489_v18  ;;  %v456_v26 = vsel %vm392_vm7, %v360_v9, %v424_v19  ;;  %vm408_vm9 = vcmp.ge.f32.partialorder %v376_v20, 0.0  ;;  %v440_v27 = vmul.f32 0.2, %v376_v20  ;;  %v1141_v28 = vunpack.c.l.bf16 %v1240_v17 }
  0x37   : > { %v482_v29 = vpack.c.bf16 %v456_v26, %v455_v21  ;;  %v471_v30 = vsel %vm407_vm8, %v375_v12, %v439_v22  ;;  %v323_v31 = vmul.f32 %v1110_v23, %v1442_v3  ;;  %v361_v32 = vadd.f32 %v1455_v14, %v322_v24 }
  0x38   : > { %v472_v33 = vsel %vm408_vm9, %v376_v20, %v440_v27  ;;  %v1142_v34 = vunpack.c.h.bf16 %v1240_v17  ;;  %v338_v35 = vmul.f32 %v1141_v28, %v1442_v3  ;;  %v1113_v36 = vunpack.c.l.bf16 %v1233_v25 }
  0x39   : > { %1294 = vmatmul.mubr.msk.bf16.gmra.mxu0 %vm525_vm0, %v482_v29  ;;  %v490_v38 = vpack.c.bf16 %v472_v33, %v471_v30  ;;  %v362_v39 = vadd.f32 %v1455_v14, %v323_v31  ;;  %vm393_vm10 = vcmp.ge.f32.partialorder %v361_v32, 0.0  ;;  %v425_v40 = vmul.f32 0.2, %v361_v32 }
  0x3a   : > { %v339_v41 = vmul.f32 %v1142_v34, %v1442_v3  ;;  %v377_v42 = vadd.f32 %v1455_v14, %v338_v35  ;;  %v1114_v43 = vunpack.c.h.bf16 %v1233_v25  ;;  %v324_v44 = vmul.f32 %v1113_v36, %v1442_v3 }
  0x3b   : > { %1310 = vmatmul.mubr.msk.bf16.gmra.mxu1 %vm525_vm0, %v490_v38  ;;  %vm394_vm11 = vcmp.ge.f32.partialorder %v362_v39, 0.0  ;;  %v426_v45 = vmul.f32 0.2, %v362_v39  ;;  %v457_v46 = vsel %vm393_vm10, %v361_v32, %v425_v40  ;;  %v1145_v47 = vunpack.c.l.bf16 %v1241_v37 }
  0x3c   : > { %v378_v48 = vadd.f32 %v1455_v14, %v339_v41  ;;  %vm409_vm12 = vcmp.ge.f32.partialorder %v377_v42, 0.0  ;;  %v441_v49 = vmul.f32 0.2, %v377_v42  ;;  %v325_v50 = vmul.f32 %v1114_v43, %v1442_v3 }
  0x3d   : > { %v458_v51 = vsel %vm394_vm11, %v362_v39, %v426_v45  ;;  %v363_v52 = vadd.f32 %v1455_v14, %v324_v44  ;;  %v1146_v53 = vunpack.c.h.bf16 %v1241_v37  ;;  %v340_v54 = vmul.f32 %v1145_v47, %v1442_v3 }
  0x3e   : > { %v483_v55 = vpack.c.bf16 %v458_v51, %v457_v46  ;;  %vm410_vm13 = vcmp.ge.f32.partialorder %v378_v48, 0.0  ;;  %v442_v56 = vmul.f32 0.2, %v378_v48  ;;  %v473_v57 = vsel %vm409_vm12, %v377_v42, %v441_v49 }
  0x3f   : > { %v364_v58 = vadd.f32 %v1455_v14, %v325_v50  ;;  %vm395_vm14 = vcmp.ge.f32.partialorder %v363_v52, 0.0  ;;  %v427_v59 = vmul.f32 0.2, %v363_v52  ;;  %v341_v60 = vmul.f32 %v1146_v53, %v1442_v3 }
  0x40   : > { %1297 = vmatprep.mubr.msk.bf16.mxu0 %vm525_vm0, %v483_v55  ;;  %v474_v61 = vsel %vm410_vm13, %v378_v48, %v442_v56  ;;  %v379_v62 = vadd.f32 %v1455_v14, %v340_v54 }
  0x41   : > { %v491_v63 = vpack.c.bf16 %v474_v61, %v473_v57  ;;  %vm396_vm15 = vcmp.ge.f32.partialorder %v364_v58, 0.0  ;;  %v428_v0 = vmul.f32 0.2, %v364_v58  ;;  %v459_v1 = vsel %vm395_vm14, %v363_v52, %v427_v59 }
  0x42   : > { %v380_v2 = vadd.f32 %v1455_v14, %v341_v60  ;;  %vm411_vm1 = vcmp.ge.f32.partialorder %v379_v62, 0.0  ;;  %v443_v4 = vmul.f32 0.2, %v379_v62 }
  0x43   : > { %1313 = vmatprep.mubr.msk.bf16.mxu1 %vm525_vm0, %v491_v63  ;;  %v460_v5 = vsel %vm396_vm15, %v364_v58, %v428_v0 }
  0x44   : > { %v484_v6 = vpack.c.bf16 %v460_v5, %v459_v1  ;;  %vm412_vm2 = vcmp.ge.f32.partialorder %v380_v2, 0.0  ;;  %v444_v3 = vmul.f32 0.2, %v380_v2  ;;  %v475_v7 = vsel %vm411_vm1, %v379_v62, %v443_v4 }
  0x46   : > { %1298 = vmatmul.mubr.msk.bf16.gmra.mxu0 %vm525_vm0, %v484_v6  ;;  %v476_v8 = vsel %vm412_vm2, %v380_v2, %v444_v3 }
  0x47   : > { %v492_v9 = vpack.c.bf16 %v476_v8, %v475_v7 }
  0x49   : > { %1314 = vmatmul.mubr.msk.bf16.gmra.mxu1 %vm525_vm0, %v492_v9 }
  0xdf   : > { %v1287_v10 = vpop.f32.mrf.mxu0 }
  0xe1   : > { %v608_v11 = vpop.f32.mrf.mxu0 }
  0xe2   : > { %v1303_v12 = vpop.f32.mrf.mxu1 }
  0xe3   : > { %v1288_v14 = vpop.f32.mrf.mxu0 }
  0xe4   : > { %v672_v13 = vpop.f32.mrf.mxu1  ;;  %v1155_v15 = vpack.c.bf16 %v1288_v14, %v1287_v10 }
  0xe5   : > { %v611_v16 = vpop.f32.mrf.mxu0 }
  0xe6   : > { %1242 = vst [vmem:[%s1554_s12 + $0x8] sm:$0xff] %v1155_v15   ;;  %v1304_v17 = vpop.f32.mrf.mxu1  ;;  %v1150_v18 = vpack.c.bf16 %v611_v16, %v608_v11 }
  0xe7   : > { %v1195_v19 = vpack.c.bf16 %v1304_v17, %v1303_v12 }
  0xe8   : > { %1151 = vst [vmem:[%s1554_s12] sm:$0xff] %v1150_v18   ;;  %v675_v20 = vpop.f32.mrf.mxu1 }
  0xe9   : > { %1250 = vst [vmem:[%s1554_s12 + $0x48] sm:$0xff] %v1195_v19   ;;  %v1190_v21 = vpack.c.bf16 %v675_v20, %v672_v13 }
  0xeb   : > { %1249 = vst [vmem:[%s1554_s12 + $0x40] sm:$0xff] %v1190_v21  }
  0xec   : > { %v1291_v22 = vpop.f32.mrf.mxu0 }
  0xee   : > { %v624_v23 = vpop.f32.mrf.mxu0 }
  0xef   : > { %v1307_v24 = vpop.f32.mrf.mxu1 }
  0xf0   : > { %v1292_v25 = vpop.f32.mrf.mxu0 }
  0xf1   : > { %v688_v26 = vpop.f32.mrf.mxu1  ;;  %v1165_v27 = vpack.c.bf16 %v1292_v25, %v1291_v22 }
  0xf2   : > { %v627_v28 = vpop.f32.mrf.mxu0 }
  0xf3   : > { %1244 = vst [vmem:[%s1554_s12 + $0x18] sm:$0xff] %v1165_v27   ;;  %v1308_v29 = vpop.f32.mrf.mxu1  ;;  %v1160_v30 = vpack.c.bf16 %v627_v28, %v624_v23 }
  0xf4   : > { %v1205_v31 = vpack.c.bf16 %v1308_v29, %v1307_v24 }
  0xf5   : > { %1243 = vst [vmem:[%s1554_s12 + $0x10] sm:$0xff] %v1160_v30   ;;  %v691_v32 = vpop.f32.mrf.mxu1 }
  0xf6   : > { %1252 = vst [vmem:[%s1554_s12 + $0x58] sm:$0xff] %v1205_v31   ;;  %v1200_v33 = vpack.c.bf16 %v691_v32, %v688_v26 }
  0xf8   : > { %1251 = vst [vmem:[%s1554_s12 + $0x50] sm:$0xff] %v1200_v33  }
  0xf9   : > { %v1295_v34 = vpop.f32.mrf.mxu0 }
  0xfb   : > { %v1311_v35 = vpop.f32.mrf.mxu1  ;;  %v640_v36 = vpop.f32.mrf.mxu0 }
  0xfd   : > { %v704_v37 = vpop.f32.mrf.mxu1  ;;  %v1296_v38 = vpop.f32.mrf.mxu0 }
  0xfe   : > { %v1175_v39 = vpack.c.bf16 %v1296_v38, %v1295_v34 }
  0xff   : > { %v1312_v40 = vpop.f32.mrf.mxu1  ;;  %v643_v41 = vpop.f32.mrf.mxu0 }
 0x100   : > { %1246 = vst [vmem:[%s1554_s12 + $0x28] sm:$0xff] %v1175_v39   ;;  %v1215_v42 = vpack.c.bf16 %v1312_v40, %v1311_v35  ;;  %v1170_v43 = vpack.c.bf16 %v643_v41, %v640_v36 }
 0x101   : > { %v707_v44 = vpop.f32.mrf.mxu1 }
 0x102   : > { %1254 = vst [vmem:[%s1554_s12 + $0x68] sm:$0xff] %v1215_v42   ;;  %1245 = vst [vmem:[%s1554_s12 + $0x20] sm:$0xff] %v1170_v43   ;;  %v1210_v45 = vpack.c.bf16 %v707_v44, %v704_v37 }
 0x104   : > { %1253 = vst [vmem:[%s1554_s12 + $0x60] sm:$0xff] %v1210_v45  }
 0x106   : > { %v1299_v46 = vpop.f32.mrf.mxu0 }
 0x108   : > { %v656_v47 = vpop.f32.mrf.mxu0 }
 0x109   : > { %v1315_v48 = vpop.f32.mrf.mxu1 }
 0x10a   : > { %v1300_v49 = vpop.f32.mrf.mxu0 }
 0x10b   : > { %v720_v50 = vpop.f32.mrf.mxu1  ;;  %v1185_v51 = vpack.c.bf16 %v1300_v49, %v1299_v46 }
 0x10c   : > { %v659_v52 = vpop.f32.mrf.mxu0 }
 0x10d   : > { %1248 = vst [vmem:[%s1554_s12 + $0x38] sm:$0xff] %v1185_v51   ;;  %v1316_v53 = vpop.f32.mrf.mxu1  ;;  %v1180_v54 = vpack.c.bf16 %v659_v52, %v656_v47 }
 0x10e   : > { %v1225_v55 = vpack.c.bf16 %v1316_v53, %v1315_v48 }
 0x10f   : > { %1247 = vst [vmem:[%s1554_s12 + $0x30] sm:$0xff] %v1180_v54   ;;  %v723_v56 = vpop.f32.mrf.mxu1 }
 0x110   : > { %1256 = vst [vmem:[%s1554_s12 + $0x78] sm:$0xff] %v1225_v55   ;;  %v1220_v57 = vpack.c.bf16 %v723_v56, %v720_v50 }
 0x112   : > { %1255 = vst [vmem:[%s1554_s12 + $0x70] sm:$0xff] %v1220_v57  }
 0x113 PF: > { %s14_s17 = sadd.s32 1, %s1375_s17   ;;  %s1586_s15 = smov %s1371_s16 }
 0x114   : > { %p11_p5 = scmp.ge.s32.totalorder %s14_s17, 34   ;;  %s1587_s16 = smov %s1589_s18 }
 0x116   :  { %13 = sbr.rel (!%p11_p5) target bundleno = 2 (0x2), region = 69 }

// kernel: tile.2
= control target key start
LH: loop header
LB: loop body
LE: loop exit
PB: predicated region body
PF: predicated region fallthrough
CT: control target
= control target key end

     0   :  { %s20_s0 = inlined_call_operand.<no memory space> [shape: f32[], index: 0, kind: input, shape index: {}]   ;;  %s21_s1 = inlined_call_operand.vmem [shape: f32[1,128], index: 1, kind: output, shape index: {}]  }
   0x1   :  { %v2_v0 = vstv %s20_s0 }
   0x2   :  { %3 = vst [vmem:[%s21_s1] sm:$0x1] %v2_v0 }

// kernel: generator_forward.21
= control target key start
LH: loop header
LB: loop body
LE: loop exit
PB: predicated region body
PF: predicated region fallthrough
CT: control target
= control target key end

     0   :  { %s964_s12 = smov 0   ;;  %s1223_s0 = inlined_call_operand.vmem [shape: bf16[2048,128], index: 0, kind: input, shape index: {}]   ;;  %s1224_s1 = inlined_call_operand.vmem [shape: f32[1,128], index: 1, kind: input, shape index: {}]   ;;  %s1225_s2 = inlined_call_operand.vmem [shape: f32[1,128], index: 2, kind: input, shape index: {}]   ;;  %s1226_s3 = inlined_call_operand.vmem [shape: f32[2048,128], index: 3, kind: output, shape index: {}]  }
   0x1 LB: > { %s628_s13 = sadd.s32 4294967295, %s942_s12   ;;  %p632_p0 = scmp.ge.s32.totalorder %s942_s12, 1  ;;  %s942_s12 = sphi %s964_s12, %s13_s12  }
   0x2   : > { %p138_p1 = scmp.lt.s32.totalorder %s942_s12, 5 }
   0x4   : > { %p139_p2 = pnand %p632_p0, %p138_p1 }
   0x5   : > { %s633_s14 = sshll.u32 (!%p139_p2), %s628_s13, 6 }
   0x6   : > { %142 = sbr.rel (%p139_p2) target bundleno = 99 (0x63), region = 32  ;;  %p163_p3 = scmp.lt.s32.totalorder (!%p139_p2), %s633_s14, 255 }
   0xb   : > { %s1228_s14 = smov (!%p163_p3, %s633_s14), 255  ;;  %v983_v0 = vld [vmem:[%s1224_s1] ss:$0 sm:$0xff] }
   0xc   : > { %s634_s15 = sshll.u32 %s1228_s14, 2  ;;  %v992_v9 = vld [vmem:[%s1225_s2] ss:$0 sm:$0xff]  ;;  %s636_s23 = sshll.u32 %s1228_s14, 3 }
   0xd   : > { %s978_s18 = scalar_lea.vmem %s1223_s0, %s634_s15  ;;  %s1043_s26 = scalar_lea.vmem %s1226_s3, %s636_s23 }
   0xe   : > { %v642_v1 = vld [vmem:[%s978_s18] sm:$0xff]   ;;  %v769_v2 = vld [vmem:[%s978_s18 + $0x8] sm:$0xff]   ;;  %v770_v3 = vld [vmem:[%s978_s18 + $0x10] sm:$0xff]  }
   0xf   : > { %v643_v4 = vunpack.c.l.bf16 %v642_v1  ;;  %v644_v5 = vunpack.c.h.bf16 %v642_v1  ;;  %v647_v6 = vunpack.c.l.bf16 %v769_v2  ;;  %v648_v7 = vunpack.c.h.bf16 %v769_v2  ;;  %v771_v8 = vld [vmem:[%s978_s18 + $0x18] sm:$0xff]   ;;  %v772_v21 = vld [vmem:[%s978_s18 + $0x20] sm:$0xff]   ;;  %v773_v22 = vld [vmem:[%s978_s18 + $0x28] sm:$0xff]  }
  0x10   : > { %v651_v10 = vunpack.c.l.bf16 %v770_v3  ;;  %v652_v11 = vunpack.c.h.bf16 %v770_v3  ;;  %v655_v12 = vunpack.c.l.bf16 %v771_v8  ;;  %v656_v13 = vunpack.c.h.bf16 %v771_v8  ;;  %v774_v27 = vld [vmem:[%s978_s18 + $0x30] sm:$0xff]   ;;  %v775_v44 = vld [vmem:[%s978_s18 + $0x38] sm:$0xff]   ;;  %v776_v45 = vld [vmem:[%s978_s18 + $0x40] sm:$0xff]  }
  0x11   : > { %v309_v14 = vmul.f32 %v643_v4, %v983_v0  ;;  %v310_v15 = vmul.f32 %v644_v5, %v983_v0  ;;  %v311_v16 = vmul.f32 %v647_v6, %v983_v0  ;;  %v312_v17 = vmul.f32 %v648_v7, %v983_v0  ;;  %v777_v49 = vld [vmem:[%s978_s18 + $0x48] sm:$0xff]   ;;  %v778_v2 = vld [vmem:[%s978_s18 + $0x50] sm:$0xff]   ;;  %v779_v3 = vld [vmem:[%s978_s18 + $0x58] sm:$0xff]  }
  0x12   : > { %v313_v18 = vmul.f32 %v651_v10, %v983_v0  ;;  %v314_v19 = vmul.f32 %v652_v11, %v983_v0  ;;  %v315_v20 = vmul.f32 %v655_v12, %v983_v0  ;;  %v316_v26 = vmul.f32 %v656_v13, %v983_v0  ;;  %v780_v7 = vld [vmem:[%s978_s18 + $0x60] sm:$0xff]  }
  0x13   : > { %v380_v23 = vadd.f32 %v992_v9, %v309_v14  ;;  %v381_v24 = vadd.f32 %v992_v9, %v310_v15  ;;  %v382_v25 = vadd.f32 %v992_v9, %v311_v16  ;;  %v383_v28 = vadd.f32 %v992_v9, %v312_v17 }
  0x14   : > { %v384_v29 = vadd.f32 %v992_v9, %v313_v18  ;;  %v385_v30 = vadd.f32 %v992_v9, %v314_v19  ;;  %v386_v31 = vadd.f32 %v992_v9, %v315_v20  ;;  %v659_v32 = vunpack.c.l.bf16 %v772_v21 }
  0x15   : > { %808 = vtanh.f32 %v380_v23  ;;  %v660_v33 = vunpack.c.h.bf16 %v772_v21  ;;  %v663_v34 = vunpack.c.l.bf16 %v773_v22  ;;  %v664_v35 = vunpack.c.h.bf16 %v773_v22 }
  0x16   : > { %810 = vtanh.f32 %v381_v24  ;;  %v667_v36 = vunpack.c.l.bf16 %v774_v27  ;;  %v668_v37 = vunpack.c.h.bf16 %v774_v27  ;;  %v317_v38 = vmul.f32 %v659_v32, %v983_v0  ;;  %v781_v27 = vld [vmem:[%s978_s18 + $0x68] sm:$0xff]  }
  0x17   : > { %812 = vtanh.f32 %v382_v25  ;;  %v318_v39 = vmul.f32 %v660_v33, %v983_v0  ;;  %v319_v40 = vmul.f32 %v663_v34, %v983_v0  ;;  %v387_v41 = vadd.f32 %v992_v9, %v316_v26  ;;  %v783_v33 = vld [vmem:[%s978_s18 + $0x78] sm:$0xff]  }
  0x18   : > { %814 = vtanh.f32 %v383_v28  ;;  %v320_v42 = vmul.f32 %v664_v35, %v983_v0  ;;  %v321_v43 = vmul.f32 %v667_v36, %v983_v0  ;;  %v388_v46 = vadd.f32 %v992_v9, %v317_v38  ;;  %v782_v28 = vld [vmem:[%s978_s18 + $0x70] sm:$0xff]  }
  0x19   : > { %816 = vtanh.f32 %v384_v29  ;;  %v389_v47 = vadd.f32 %v992_v9, %v318_v39  ;;  %v322_v48 = vmul.f32 %v668_v37, %v983_v0  ;;  %v390_v50 = vadd.f32 %v992_v9, %v319_v40 }
  0x1a   : > { %818 = vtanh.f32 %v385_v30  ;;  %v391_v51 = vadd.f32 %v992_v9, %v320_v42  ;;  %v392_v52 = vadd.f32 %v992_v9, %v321_v43  ;;  %v671_v53 = vunpack.c.l.bf16 %v775_v44 }
  0x1b   : > { %820 = vtanh.f32 %v386_v31  ;;  %v672_v54 = vunpack.c.h.bf16 %v775_v44  ;;  %v675_v55 = vunpack.c.l.bf16 %v776_v45  ;;  %v676_v56 = vunpack.c.h.bf16 %v776_v45 }
  0x1c   : > { %822 = vtanh.f32 %v387_v41  ;;  %v679_v57 = vunpack.c.l.bf16 %v777_v49  ;;  %v680_v58 = vunpack.c.h.bf16 %v777_v49  ;;  %v323_v59 = vmul.f32 %v671_v53, %v983_v0 }
  0x1d   : > { %824 = vtanh.f32 %v388_v46  ;;  %v324_v60 = vmul.f32 %v672_v54, %v983_v0  ;;  %v325_v61 = vmul.f32 %v675_v55, %v983_v0  ;;  %v393_v62 = vadd.f32 %v992_v9, %v322_v48  ;;  %v784_v54 = vld [vmem:[%s978_s18 + $0x80] sm:$0xff]   ;;  %v785_v55 = vld [vmem:[%s978_s18 + $0x88] sm:$0xff]  }
  0x1e   : > { %826 = vtanh.f32 %v389_v47  ;;  %v326_v63 = vmul.f32 %v676_v56, %v983_v0  ;;  %v327_v1 = vmul.f32 %v679_v57, %v983_v0  ;;  %v394_v4 = vadd.f32 %v992_v9, %v323_v59 }
  0x1f   : > { %828 = vtanh.f32 %v390_v50  ;;  %v395_v5 = vadd.f32 %v992_v9, %v324_v60  ;;  %v328_v6 = vmul.f32 %v680_v58, %v983_v0  ;;  %v396_v8 = vadd.f32 %v992_v9, %v325_v61  ;;  %v786_v60 = vld [vmem:[%s978_s18 + $0x90] sm:$0xff]  }
  0x20   : > { %830 = vtanh.f32 %v391_v51  ;;  %v397_v10 = vadd.f32 %v992_v9, %v326_v63  ;;  %v398_v11 = vadd.f32 %v992_v9, %v327_v1  ;;  %v683_v12 = vunpack.c.l.bf16 %v778_v2 }
  0x21   : > { %832 = vtanh.f32 %v392_v52  ;;  %v684_v13 = vunpack.c.h.bf16 %v778_v2  ;;  %v687_v14 = vunpack.c.l.bf16 %v779_v3  ;;  %v688_v16 = vunpack.c.h.bf16 %v779_v3 }
  0x22   : > { %v809_v15 = vpop.eup %808  ;;  %834 = vtanh.f32 %v393_v62  ;;  %v691_v17 = vunpack.c.l.bf16 %v780_v7  ;;  %v692_v18 = vunpack.c.h.bf16 %v780_v7  ;;  %v329_v20 = vmul.f32 %v683_v12, %v983_v0 }
  0x23   : > { %v811_v19 = vpop.eup %810  ;;  %508 = vst [vmem:[%s1043_s26] sm:$0xff] %v809_v15  ;;  %836 = vtanh.f32 %v394_v4  ;;  %v330_v21 = vmul.f32 %v684_v13, %v983_v0  ;;  %v331_v22 = vmul.f32 %v687_v14, %v983_v0  ;;  %v399_v24 = vadd.f32 %v992_v9, %v328_v6 }
  0x24   : > { %v813_v23 = vpop.eup %812  ;;  %509 = vst [vmem:[%s1043_s26 + $0x8] sm:$0xff] %v811_v19  ;;  %838 = vtanh.f32 %v395_v5  ;;  %v332_v25 = vmul.f32 %v688_v16, %v983_v0  ;;  %v333_v26 = vmul.f32 %v691_v17, %v983_v0  ;;  %v400_v30 = vadd.f32 %v992_v9, %v329_v20  ;;  %v787_v19 = vld [vmem:[%s978_s18 + $0x98] sm:$0xff]   ;;  %v788_v20 = vld [vmem:[%s978_s18 + $0xa0] sm:$0xff]  }
  0x25   : > { %v815_v29 = vpop.eup %814  ;;  %510 = vst [vmem:[%s1043_s26 + $0x10] sm:$0xff] %v813_v23  ;;  %840 = vtanh.f32 %v396_v8  ;;  %v401_v31 = vadd.f32 %v992_v9, %v330_v21  ;;  %v334_v32 = vmul.f32 %v692_v18, %v983_v0  ;;  %v402_v35 = vadd.f32 %v992_v9, %v331_v22 }
  0x26   : > { %v817_v34 = vpop.eup %816  ;;  %511 = vst [vmem:[%s1043_s26 + $0x18] sm:$0xff] %v815_v29  ;;  %842 = vtanh.f32 %v397_v10  ;;  %v403_v36 = vadd.f32 %v992_v9, %v332_v25  ;;  %v404_v37 = vadd.f32 %v992_v9, %v333_v26  ;;  %v695_v39 = vunpack.c.l.bf16 %v781_v27  ;;  %v789_v25 = vld [vmem:[%s978_s18 + $0xa8] sm:$0xff]  }
  0x27   : > { %v819_v38 = vpop.eup %818  ;;  %512 = vst [vmem:[%s1043_s26 + $0x20] sm:$0xff] %v817_v34  ;;  %844 = vtanh.f32 %v398_v11  ;;  %v696_v40 = vunpack.c.h.bf16 %v781_v27  ;;  %v699_v41 = vunpack.c.l.bf16 %v782_v28  ;;  %v700_v43 = vunpack.c.h.bf16 %v782_v28 }
  0x28   : > { %v821_v42 = vpop.eup %820  ;;  %513 = vst [vmem:[%s1043_s26 + $0x28] sm:$0xff] %v819_v38  ;;  %846 = vtanh.f32 %v399_v24  ;;  %v703_v44 = vunpack.c.l.bf16 %v783_v33  ;;  %v704_v45 = vunpack.c.h.bf16 %v783_v33  ;;  %v335_v47 = vmul.f32 %v695_v39, %v983_v0 }
  0x29   : > { %v823_v46 = vpop.eup %822  ;;  %514 = vst [vmem:[%s1043_s26 + $0x30] sm:$0xff] %v821_v42  ;;  %848 = vtanh.f32 %v400_v30  ;;  %v336_v48 = vmul.f32 %v696_v40, %v983_v0  ;;  %v337_v49 = vmul.f32 %v699_v41, %v983_v0  ;;  %v405_v51 = vadd.f32 %v992_v9, %v334_v32 }
  0x2a   : > { %v825_v50 = vpop.eup %824  ;;  %515 = vst [vmem:[%s1043_s26 + $0x38] sm:$0xff] %v823_v46  ;;  %850 = vtanh.f32 %v401_v31  ;;  %v338_v52 = vmul.f32 %v700_v43, %v983_v0  ;;  %v339_v53 = vmul.f32 %v703_v44, %v983_v0  ;;  %v406_v57 = vadd.f32 %v992_v9, %v335_v47  ;;  %v790_v46 = vld [vmem:[%s978_s18 + $0xb0] sm:$0xff]   ;;  %v791_v47 = vld [vmem:[%s978_s18 + $0xb8] sm:$0xff]  }
  0x2b   : > { %v827_v56 = vpop.eup %826  ;;  %516 = vst [vmem:[%s1043_s26 + $0x40] sm:$0xff] %v825_v50  ;;  %852 = vtanh.f32 %v402_v35  ;;  %v407_v58 = vadd.f32 %v992_v9, %v336_v48  ;;  %v340_v59 = vmul.f32 %v704_v45, %v983_v0  ;;  %v408_v62 = vadd.f32 %v992_v9, %v337_v49 }
  0x2c   : > { %v829_v61 = vpop.eup %828  ;;  %517 = vst [vmem:[%s1043_s26 + $0x48] sm:$0xff] %v827_v56  ;;  %854 = vtanh.f32 %v403_v36  ;;  %v409_v63 = vadd.f32 %v992_v9, %v338_v52  ;;  %v410_v1 = vadd.f32 %v992_v9, %v339_v53  ;;  %v707_v3 = vunpack.c.l.bf16 %v784_v54  ;;  %v792_v52 = vld [vmem:[%s978_s18 + $0xc0] sm:$0xff]  }
  0x2d   : > { %v831_v2 = vpop.eup %830  ;;  %518 = vst [vmem:[%s1043_s26 + $0x50] sm:$0xff] %v829_v61  ;;  %856 = vtanh.f32 %v404_v37  ;;  %v708_v4 = vunpack.c.h.bf16 %v784_v54  ;;  %v711_v5 = vunpack.c.l.bf16 %v785_v55  ;;  %v712_v7 = vunpack.c.h.bf16 %v785_v55 }
  0x2e   : > { %v833_v6 = vpop.eup %832  ;;  %519 = vst [vmem:[%s1043_s26 + $0x58] sm:$0xff] %v831_v2  ;;  %858 = vtanh.f32 %v405_v51  ;;  %v715_v8 = vunpack.c.l.bf16 %v786_v60  ;;  %v716_v10 = vunpack.c.h.bf16 %v786_v60  ;;  %v341_v12 = vmul.f32 %v707_v3, %v983_v0 }
  0x2f   : > { %v835_v11 = vpop.eup %834  ;;  %520 = vst [vmem:[%s1043_s26 + $0x60] sm:$0xff] %v833_v6  ;;  %860 = vtanh.f32 %v406_v57  ;;  %v342_v13 = vmul.f32 %v708_v4, %v983_v0  ;;  %v343_v14 = vmul.f32 %v711_v5, %v983_v0  ;;  %v411_v16 = vadd.f32 %v992_v9, %v340_v59 }
  0x30   : > { %v837_v15 = vpop.eup %836  ;;  %521 = vst [vmem:[%s1043_s26 + $0x68] sm:$0xff] %v835_v11  ;;  %862 = vtanh.f32 %v407_v58  ;;  %v344_v17 = vmul.f32 %v712_v7, %v983_v0  ;;  %v345_v18 = vmul.f32 %v715_v8, %v983_v0  ;;  %v412_v22 = vadd.f32 %v992_v9, %v341_v12  ;;  %v793_v11 = vld [vmem:[%s978_s18 + $0xc8] sm:$0xff]   ;;  %v794_v12 = vld [vmem:[%s978_s18 + $0xd0] sm:$0xff]  }
  0x31   : > { %v839_v21 = vpop.eup %838  ;;  %522 = vst [vmem:[%s1043_s26 + $0x70] sm:$0xff] %v837_v15  ;;  %864 = vtanh.f32 %v408_v62  ;;  %v413_v23 = vadd.f32 %v992_v9, %v342_v13  ;;  %v346_v24 = vmul.f32 %v716_v10, %v983_v0  ;;  %v414_v27 = vadd.f32 %v992_v9, %v343_v14 }
  0x32   : > { %v841_v26 = vpop.eup %840  ;;  %523 = vst [vmem:[%s1043_s26 + $0x78] sm:$0xff] %v839_v21  ;;  %866 = vtanh.f32 %v409_v63  ;;  %v415_v28 = vadd.f32 %v992_v9, %v344_v17  ;;  %v416_v29 = vadd.f32 %v992_v9, %v345_v18  ;;  %v719_v31 = vunpack.c.l.bf16 %v787_v19  ;;  %v795_v17 = vld [vmem:[%s978_s18 + $0xd8] sm:$0xff]  }
  0x33   : > { %v843_v30 = vpop.eup %842  ;;  %524 = vst [vmem:[%s1043_s26 + $0x80] sm:$0xff] %v841_v26  ;;  %868 = vtanh.f32 %v410_v1  ;;  %v720_v32 = vunpack.c.h.bf16 %v787_v19  ;;  %v723_v33 = vunpack.c.l.bf16 %v788_v20  ;;  %v724_v35 = vunpack.c.h.bf16 %v788_v20 }
  0x34   : > { %v845_v34 = vpop.eup %844  ;;  %525 = vst [vmem:[%s1043_s26 + $0x88] sm:$0xff] %v843_v30  ;;  %870 = vtanh.f32 %v411_v16  ;;  %v727_v36 = vunpack.c.l.bf16 %v789_v25  ;;  %v728_v37 = vunpack.c.h.bf16 %v789_v25  ;;  %v347_v39 = vmul.f32 %v719_v31, %v983_v0 }
  0x35   : > { %v847_v38 = vpop.eup %846  ;;  %526 = vst [vmem:[%s1043_s26 + $0x90] sm:$0xff] %v845_v34  ;;  %872 = vtanh.f32 %v412_v22  ;;  %v348_v40 = vmul.f32 %v720_v32, %v983_v0  ;;  %v349_v41 = vmul.f32 %v723_v33, %v983_v0  ;;  %v417_v43 = vadd.f32 %v992_v9, %v346_v24 }
  0x36   : > { %v849_v42 = vpop.eup %848  ;;  %527 = vst [vmem:[%s1043_s26 + $0x98] sm:$0xff] %v847_v38  ;;  %874 = vtanh.f32 %v413_v23  ;;  %v350_v44 = vmul.f32 %v724_v35, %v983_v0  ;;  %v351_v45 = vmul.f32 %v727_v36, %v983_v0  ;;  %v418_v49 = vadd.f32 %v992_v9, %v347_v39  ;;  %v796_v38 = vld [vmem:[%s978_s18 + $0xe0] sm:$0xff]   ;;  %v797_v39 = vld [vmem:[%s978_s18 + $0xe8] sm:$0xff]  }
  0x37   : > { %v851_v48 = vpop.eup %850  ;;  %528 = vst [vmem:[%s1043_s26 + $0xa0] sm:$0xff] %v849_v42  ;;  %876 = vtanh.f32 %v414_v27  ;;  %v419_v50 = vadd.f32 %v992_v9, %v348_v40  ;;  %v352_v51 = vmul.f32 %v728_v37, %v983_v0  ;;  %v420_v54 = vadd.f32 %v992_v9, %v349_v41 }
  0x38   : > { %v853_v53 = vpop.eup %852  ;;  %529 = vst [vmem:[%s1043_s26 + $0xa8] sm:$0xff] %v851_v48  ;;  %878 = vtanh.f32 %v415_v28  ;;  %v421_v55 = vadd.f32 %v992_v9, %v350_v44  ;;  %v422_v56 = vadd.f32 %v992_v9, %v351_v45  ;;  %v731_v58 = vunpack.c.l.bf16 %v790_v46  ;;  %v798_v44 = vld [vmem:[%s978_s18 + $0xf0] sm:$0xff]  }
  0x39   : > { %v855_v57 = vpop.eup %854  ;;  %530 = vst [vmem:[%s1043_s26 + $0xb0] sm:$0xff] %v853_v53  ;;  %880 = vtanh.f32 %v416_v29  ;;  %v732_v59 = vunpack.c.h.bf16 %v790_v46  ;;  %v735_v60 = vunpack.c.l.bf16 %v791_v47  ;;  %v736_v62 = vunpack.c.h.bf16 %v791_v47 }
  0x3a   : > { %v857_v61 = vpop.eup %856  ;;  %531 = vst [vmem:[%s1043_s26 + $0xb8] sm:$0xff] %v855_v57  ;;  %882 = vtanh.f32 %v417_v43  ;;  %v739_v63 = vunpack.c.l.bf16 %v792_v52  ;;  %v740_v1 = vunpack.c.h.bf16 %v792_v52  ;;  %v353_v3 = vmul.f32 %v731_v58, %v983_v0 }
  0x3b   : > { %v859_v2 = vpop.eup %858  ;;  %532 = vst [vmem:[%s1043_s26 + $0xc0] sm:$0xff] %v857_v61  ;;  %884 = vtanh.f32 %v418_v49  ;;  %v354_v4 = vmul.f32 %v732_v59, %v983_v0  ;;  %v355_v5 = vmul.f32 %v735_v60, %v983_v0  ;;  %v423_v7 = vadd.f32 %v992_v9, %v352_v51 }
  0x3c   : > { %v861_v6 = vpop.eup %860  ;;  %533 = vst [vmem:[%s1043_s26 + $0xc8] sm:$0xff] %v859_v2  ;;  %886 = vtanh.f32 %v419_v50  ;;  %v356_v8 = vmul.f32 %v736_v62, %v983_v0  ;;  %v357_v10 = vmul.f32 %v739_v63, %v983_v0  ;;  %v424_v14 = vadd.f32 %v992_v9, %v353_v3 }
  0x3d   : > { %v863_v13 = vpop.eup %862  ;;  %534 = vst [vmem:[%s1043_s26 + $0xd0] sm:$0xff] %v861_v6  ;;  %888 = vtanh.f32 %v420_v54  ;;  %v425_v15 = vadd.f32 %v992_v9, %v354_v4  ;;  %v358_v16 = vmul.f32 %v740_v1, %v983_v0  ;;  %v426_v19 = vadd.f32 %v992_v9, %v355_v5  ;;  %v799_v1 = vld [vmem:[%s978_s18 + $0xf8] sm:$0xff]  }
  0x3e   : > { %v865_v18 = vpop.eup %864  ;;  %535 = vst [vmem:[%s1043_s26 + $0xd8] sm:$0xff] %v863_v13  ;;  %890 = vtanh.f32 %v421_v55  ;;  %v427_v20 = vadd.f32 %v992_v9, %v356_v8  ;;  %v428_v21 = vadd.f32 %v992_v9, %v357_v10  ;;  %v743_v23 = vunpack.c.l.bf16 %v793_v11 }
  0x3f   : > { %v867_v22 = vpop.eup %866  ;;  %536 = vst [vmem:[%s1043_s26 + $0xe0] sm:$0xff] %v865_v18  ;;  %892 = vtanh.f32 %v422_v56  ;;  %v744_v24 = vunpack.c.h.bf16 %v793_v11  ;;  %v747_v25 = vunpack.c.l.bf16 %v794_v12  ;;  %v748_v27 = vunpack.c.h.bf16 %v794_v12 }
  0x40   : > { %v869_v26 = vpop.eup %868  ;;  %537 = vst [vmem:[%s1043_s26 + $0xe8] sm:$0xff] %v867_v22  ;;  %894 = vtanh.f32 %v423_v7  ;;  %v751_v28 = vunpack.c.l.bf16 %v795_v17  ;;  %v752_v29 = vunpack.c.h.bf16 %v795_v17  ;;  %v359_v31 = vmul.f32 %v743_v23, %v983_v0 }
  0x41   : > { %v871_v30 = vpop.eup %870  ;;  %538 = vst [vmem:[%s1043_s26 + $0xf0] sm:$0xff] %v869_v26  ;;  %896 = vtanh.f32 %v424_v14  ;;  %v360_v32 = vmul.f32 %v744_v24, %v983_v0  ;;  %v361_v33 = vmul.f32 %v747_v25, %v983_v0  ;;  %v429_v35 = vadd.f32 %v992_v9, %v358_v16 }
  0x42   : > { %v873_v34 = vpop.eup %872  ;;  %539 = vst [vmem:[%s1043_s26 + $0xf8] sm:$0xff] %v871_v30  ;;  %898 = vtanh.f32 %v425_v15  ;;  %v362_v36 = vmul.f32 %v748_v27, %v983_v0  ;;  %v363_v37 = vmul.f32 %v751_v28, %v983_v0  ;;  %v430_v41 = vadd.f32 %v992_v9, %v359_v31 }
  0x43   : > { %v875_v40 = vpop.eup %874  ;;  %540 = vst [vmem:[%s1043_s26 + $0x100] sm:$0xff] %v873_v34  ;;  %900 = vtanh.f32 %v426_v19  ;;  %v431_v42 = vadd.f32 %v992_v9, %v360_v32  ;;  %v364_v43 = vmul.f32 %v752_v29, %v983_v0  ;;  %v432_v46 = vadd.f32 %v992_v9, %v361_v33 }
  0x44   : > { %v877_v45 = vpop.eup %876  ;;  %541 = vst [vmem:[%s1043_s26 + $0x108] sm:$0xff] %v875_v40  ;;  %902 = vtanh.f32 %v427_v20  ;;  %v433_v47 = vadd.f32 %v992_v9, %v362_v36  ;;  %v434_v48 = vadd.f32 %v992_v9, %v363_v37  ;;  %v755_v50 = vunpack.c.l.bf16 %v796_v38 }
  0x45   : > { %v879_v49 = vpop.eup %878  ;;  %542 = vst [vmem:[%s1043_s26 + $0x110] sm:$0xff] %v877_v45  ;;  %904 = vtanh.f32 %v428_v21  ;;  %v756_v51 = vunpack.c.h.bf16 %v796_v38  ;;  %v759_v52 = vunpack.c.l.bf16 %v797_v39  ;;  %v760_v54 = vunpack.c.h.bf16 %v797_v39 }
  0x46   : > { %v881_v53 = vpop.eup %880  ;;  %543 = vst [vmem:[%s1043_s26 + $0x118] sm:$0xff] %v879_v49  ;;  %906 = vtanh.f32 %v429_v35  ;;  %v763_v55 = vunpack.c.l.bf16 %v798_v44  ;;  %v764_v56 = vunpack.c.h.bf16 %v798_v44  ;;  %v365_v58 = vmul.f32 %v755_v50, %v983_v0 }
  0x47   : > { %v883_v57 = vpop.eup %882  ;;  %544 = vst [vmem:[%s1043_s26 + $0x120] sm:$0xff] %v881_v53  ;;  %908 = vtanh.f32 %v430_v41  ;;  %v366_v59 = vmul.f32 %v756_v51, %v983_v0  ;;  %v367_v60 = vmul.f32 %v759_v52, %v983_v0  ;;  %v435_v62 = vadd.f32 %v992_v9, %v364_v43 }
  0x48   : > { %v885_v61 = vpop.eup %884  ;;  %545 = vst [vmem:[%s1043_s26 + $0x128] sm:$0xff] %v883_v57  ;;  %910 = vtanh.f32 %v431_v42  ;;  %v368_v63 = vmul.f32 %v760_v54, %v983_v0  ;;  %v436_v3 = vadd.f32 %v992_v9, %v365_v58  ;;  %v369_v4 = vmul.f32 %v763_v55, %v983_v0 }
  0x49   : > { %v887_v2 = vpop.eup %886  ;;  %546 = vst [vmem:[%s1043_s26 + $0x130] sm:$0xff] %v885_v61  ;;  %912 = vtanh.f32 %v432_v46  ;;  %v437_v6 = vadd.f32 %v992_v9, %v366_v59  ;;  %v370_v7 = vmul.f32 %v764_v56, %v983_v0  ;;  %v438_v10 = vadd.f32 %v992_v9, %v367_v60 }
  0x4a   : > { %v889_v5 = vpop.eup %888  ;;  %547 = vst [vmem:[%s1043_s26 + $0x138] sm:$0xff] %v887_v2  ;;  %914 = vtanh.f32 %v433_v47  ;;  %v767_v11 = vunpack.c.l.bf16 %v799_v1  ;;  %v768_v12 = vunpack.c.h.bf16 %v799_v1  ;;  %v439_v14 = vadd.f32 %v992_v9, %v368_v63 }
  0x4b   : > { %v891_v8 = vpop.eup %890  ;;  %548 = vst [vmem:[%s1043_s26 + $0x140] sm:$0xff] %v889_v5  ;;  %916 = vtanh.f32 %v434_v48  ;;  %v440_v16 = vadd.f32 %v992_v9, %v369_v4  ;;  %v441_v20 = vadd.f32 %v992_v9, %v370_v7 }
  0x4c   : > { %v893_v13 = vpop.eup %892  ;;  %549 = vst [vmem:[%s1043_s26 + $0x148] sm:$0xff] %v891_v8  ;;  %918 = vtanh.f32 %v435_v62  ;;  %v371_v17 = vmul.f32 %v767_v11, %v983_v0  ;;  %v372_v18 = vmul.f32 %v768_v12, %v983_v0 }
  0x4d   : > { %v895_v15 = vpop.eup %894  ;;  %550 = vst [vmem:[%s1043_s26 + $0x150] sm:$0xff] %v893_v13  ;;  %920 = vtanh.f32 %v436_v3 }
  0x4e   : > { %v897_v19 = vpop.eup %896  ;;  %551 = vst [vmem:[%s1043_s26 + $0x158] sm:$0xff] %v895_v15  ;;  %922 = vtanh.f32 %v437_v6  ;;  %v442_v22 = vadd.f32 %v992_v9, %v371_v17  ;;  %v443_v24 = vadd.f32 %v992_v9, %v372_v18 }
  0x4f   : > { %v899_v21 = vpop.eup %898  ;;  %552 = vst [vmem:[%s1043_s26 + $0x160] sm:$0xff] %v897_v19  ;;  %924 = vtanh.f32 %v438_v10 }
  0x50   : > { %v901_v23 = vpop.eup %900  ;;  %553 = vst [vmem:[%s1043_s26 + $0x168] sm:$0xff] %v899_v21  ;;  %926 = vtanh.f32 %v439_v14 }
  0x51   : > { %v903_v0 = vpop.eup %902  ;;  %554 = vst [vmem:[%s1043_s26 + $0x170] sm:$0xff] %v901_v23  ;;  %928 = vtanh.f32 %v440_v16 }
  0x52   : > { %v905_v25 = vpop.eup %904  ;;  %555 = vst [vmem:[%s1043_s26 + $0x178] sm:$0xff] %v903_v0  ;;  %930 = vtanh.f32 %v441_v20 }
  0x53   : > { %v907_v26 = vpop.eup %906  ;;  %556 = vst [vmem:[%s1043_s26 + $0x180] sm:$0xff] %v905_v25  ;;  %932 = vtanh.f32 %v442_v22 }
  0x54   : > { %v909_v27 = vpop.eup %908  ;;  %557 = vst [vmem:[%s1043_s26 + $0x188] sm:$0xff] %v907_v26  ;;  %934 = vtanh.f32 %v443_v24 }
  0x55   : > { %v911_v9 = vpop.eup %910  ;;  %558 = vst [vmem:[%s1043_s26 + $0x190] sm:$0xff] %v909_v27 }
  0x56   : > { %v913_v28 = vpop.eup %912  ;;  %559 = vst [vmem:[%s1043_s26 + $0x198] sm:$0xff] %v911_v9 }
  0x57   : > { %v915_v29 = vpop.eup %914  ;;  %560 = vst [vmem:[%s1043_s26 + $0x1a0] sm:$0xff] %v913_v28 }
  0x58   : > { %v917_v30 = vpop.eup %916  ;;  %561 = vst [vmem:[%s1043_s26 + $0x1a8] sm:$0xff] %v915_v29 }
  0x59   : > { %v919_v31 = vpop.eup %918  ;;  %562 = vst [vmem:[%s1043_s26 + $0x1b0] sm:$0xff] %v917_v30 }
  0x5a   : > { %v921_v32 = vpop.eup %920  ;;  %563 = vst [vmem:[%s1043_s26 + $0x1b8] sm:$0xff] %v919_v31 }
  0x5b   : > { %v923_v33 = vpop.eup %922  ;;  %564 = vst [vmem:[%s1043_s26 + $0x1c0] sm:$0xff] %v921_v32 }
  0x5c   : > { %v925_v34 = vpop.eup %924  ;;  %565 = vst [vmem:[%s1043_s26 + $0x1c8] sm:$0xff] %v923_v33 }
  0x5d   : > { %v927_v35 = vpop.eup %926  ;;  %566 = vst [vmem:[%s1043_s26 + $0x1d0] sm:$0xff] %v925_v34 }
  0x5e   : > { %v929_v36 = vpop.eup %928  ;;  %567 = vst [vmem:[%s1043_s26 + $0x1d8] sm:$0xff] %v927_v35 }
  0x5f   : > { %v931_v37 = vpop.eup %930  ;;  %568 = vst [vmem:[%s1043_s26 + $0x1e0] sm:$0xff] %v929_v36 }
  0x60   : > { %v933_v38 = vpop.eup %932  ;;  %569 = vst [vmem:[%s1043_s26 + $0x1e8] sm:$0xff] %v931_v37 }
  0x61   : > { %v935_v39 = vpop.eup %934  ;;  %570 = vst [vmem:[%s1043_s26 + $0x1f0] sm:$0xff] %v933_v38 }
  0x62   : > { %571 = vst [vmem:[%s1043_s26 + $0x1f8] sm:$0xff] %v935_v39 }
  0x63 PF: > { %s13_s12 = sadd.s32 1, %s942_s12  }
  0x64   : > { %p10_p4 = scmp.ge.s32.totalorder %s13_s12, 6  }
  0x66   :  { %12 = sbr.rel (!%p10_p4) target bundleno = 1 (0x1), region = 62 }

</bundles_post_ra>
